<compile_context>
chip_gen: v7x
topology: tpu7x:2x2x1
jax: 0.10.0
libtpu: 0.0.40
codegen_flags: <defaults>
</compile_context>

<pallas_src>
import functools

import jax
import jax.numpy as jnp
from jax.experimental import pallas as pl
from jax.experimental.pallas import tpu as pltpu

LN_EPS = 1e-5  # torch.nn.LayerNorm default


def _layernorm_kernel(x_ref, gamma_ref, beta_ref, o_ref):
    # x_ref: (TILE_ROWS, H) block of flattened hidden states.
    g32 = gamma_ref[...].astype(jnp.float32)   # hoisted casts, reused below
    b32 = beta_ref[...].astype(jnp.float32)
    x = x_ref[...].astype(jnp.float32)
    mean = jnp.mean(x, axis=-1, keepdims=True)
    mean_sq = jnp.mean(x * x, axis=-1, keepdims=True)
    var = jnp.maximum(mean_sq - mean * mean, 0.0)  # one-pass (biased) variance
    inv = jax.lax.rsqrt(var + LN_EPS)
    o_ref[...] = ((x - mean) * inv * g32 + b32).astype(o_ref.dtype)


def _pick_tile_rows(rows, max_tile=1024):
    """Largest tile (<= max_tile) dividing `rows`, preferring a grid of >= 2 steps."""
    best = None
    for t in (1024, 512, 256, 128, 64, 32, 16, 8):
        if t > max_tile or rows % t:
            continue
        if best is None:
            best = t            # largest divisor found so far
        if rows // t >= 2:
            return t            # keeps >= 2 grid steps (v7x: both TCs stream HBM)
    return best if best is not None else rows  # ragged row counts: one full-extent block


@functools.partial(jax.jit, static_argnames=("tile_rows",))
def gpt2_output_layer(hidden_states, gamma, beta, *, tile_rows=None):
    """Applies ln_f (LayerNorm over last dim) then reshapes to (-1, 512, 1600)."""
    H = hidden_states.shape[-1]
    x2d = hidden_states.reshape(-1, H)  # (B*S, H)
    rows = x2d.shape[0]

    if tile_rows is None:
        tile_rows = _pick_tile_rows(rows)
    assert rows % tile_rows == 0, "row count must be divisible by tile_rows"

    gamma2d = gamma.reshape(1, H)
    beta2d = beta.reshape(1, H)

    # Double-buffered input + output tiles + params + slack, clamped so it
    # always fits v7x's 64 MiB physical VMEM but exceeds v5e's 16 MiB default.
    itemsize = jnp.dtype(hidden_states.dtype).itemsize
    tile_bytes = tile_rows * H * itemsize
    vmem_limit = int(min(max(4 * tile_bytes + (4 << 20), 32 << 20), 56 << 20))

    out2d = pl.pallas_call(
        _layernorm_kernel,
        out_shape=jax.ShapeDtypeStruct((rows, H), hidden_states.dtype),
        grid_spec=pltpu.PrefetchScalarGridSpec(
            num_scalar_prefetch=0,
            grid=(rows // tile_rows,),
            in_specs=[
                pl.BlockSpec((tile_rows, H), lambda i: (i, 0)),  # hidden_states tile
                pl.BlockSpec((1, H), lambda i: (0, 0)),          # gamma (broadcast, no re-DMA)
                pl.BlockSpec((1, H), lambda i: (0, 0)),          # beta  (broadcast, no re-DMA)
            ],
            out_specs=pl.BlockSpec((tile_rows, H), lambda i: (i, 0)),
        ),
        compiler_params=pltpu.CompilerParams(
            dimension_semantics=("parallel",),
            vmem_limit_bytes=vmem_limit,
        ),
    )(x2d, gamma2d, beta2d)

    # view(-1, 512, 1600) — pure reshape, no compute.
    return out2d.reshape(-1, 512, 1600)


def _reference(hidden_states, gamma, beta):
    x = hidden_states.astype(jnp.float32)
    mean = jnp.mean(x, axis=-1, keepdims=True)
    var = jnp.mean((x - mean) ** 2, axis=-1, keepdims=True)
    y = (x - mean) * jax.lax.rsqrt(var + LN_EPS) * gamma + beta
    return y.astype(hidden_states.dtype).reshape(-1, 512, 1600)


if __name__ == "__main__":
    # GPT-2 XL final layer: hidden=1600 and seq=512 are baked into the module's
    # output_shape (-1, 512, 1600); batch=1 keeps the example small.
    B, S, H = 1, 512, 1600

    key = jax.random.PRNGKey(0)
    kx, kg, kb = jax.random.split(key, 3)
    hidden_states = jax.random.normal(kx, (B, S, H), dtype=jnp.float32)
    gamma = 1.0 + 0.02 * jax.random.normal(kg, (H,), dtype=jnp.float32)
    beta = 0.02 * jax.random.normal(kb, (H,), dtype=jnp.float32)

    out = gpt2_output_layer(hidden_states, gamma, beta)
    out = jax.block_until_ready(out)

    ref = _reference(hidden_states, gamma, beta)
    assert out.shape == (B, S, H) == ref.shape
    assert jnp.allclose(out, ref, atol=1e-4, rtol=1e-4)

    print("KERNEL_OK")
</pallas_src>

<mosaic_0001>
module attributes {stable_mosaic.version = 11 : i64} {
  func.func @_layernorm_kernel(%arg0: i32, %arg1: memref<256x1600xf32, #tpu.memory_space<vmem>>, %arg2: memref<1x1600xf32, #tpu.memory_space<vmem>>, %arg3: memref<1x1600xf32, #tpu.memory_space<vmem>>, %arg4: memref<256x1600xf32, #tpu.memory_space<vmem>>) attributes {dimension_semantics = [#tpu.dimension_semantics<parallel>], iteration_bounds = array<i64: 2>, scalar_prefetch = 0 : i64, scratch_operands = 0 : i64, tpu.core_type = #tpu.core_type<tc>, window_params = [{transform_indices = @transform_0, window_bounds = array<i64: 256, 1600>}, {pipeline_mode = #tpu.pipeline_mode<synchronous>, transform_indices = @transform_1, window_bounds = array<i64: 1, 1600>}, {pipeline_mode = #tpu.pipeline_mode<synchronous>, transform_indices = @transform_2, window_bounds = array<i64: 1, 1600>}, {transform_indices = @transform_3, window_bounds = array<i64: 256, 1600>}]} {
    %c0 = arith.constant 0 : index
    %c0_0 = arith.constant 0 : index
    %0 = vector.load %arg2[%c0, %c0_0] : memref<1x1600xf32, #tpu.memory_space<vmem>>, vector<1x1600xf32>
    %c0_1 = arith.constant 0 : index
    %c0_2 = arith.constant 0 : index
    %1 = vector.load %arg3[%c0_1, %c0_2] : memref<1x1600xf32, #tpu.memory_space<vmem>>, vector<1x1600xf32>
    %c0_3 = arith.constant 0 : index
    %c0_4 = arith.constant 0 : index
    %2 = vector.load %arg1[%c0_3, %c0_4] : memref<256x1600xf32, #tpu.memory_space<vmem>>, vector<256x1600xf32>
    %cst = arith.constant dense<0.000000e+00> : vector<256xf32>
    %3 = vector.multi_reduction <add>, %2, %cst [1] : vector<256x1600xf32> to vector<256xf32>
    %4 = vector.shape_cast %3 : vector<256xf32> to vector<256x1xf32>
    %cst_5 = arith.constant 1.600000e+03 : f32
    %5 = vector.broadcast %cst_5 : f32 to vector<256x1xf32>
    %6 = arith.divf %4, %5 : vector<256x1xf32>
    %7 = arith.mulf %2, %2 : vector<256x1600xf32>
    %cst_6 = arith.constant dense<0.000000e+00> : vector<256xf32>
    %8 = vector.multi_reduction <add>, %7, %cst_6 [1] : vector<256x1600xf32> to vector<256xf32>
    %9 = vector.shape_cast %8 : vector<256xf32> to vector<256x1xf32>
    %cst_7 = arith.constant 1.600000e+03 : f32
    %10 = vector.broadcast %cst_7 : f32 to vector<256x1xf32>
    %11 = arith.divf %9, %10 : vector<256x1xf32>
    %12 = arith.mulf %6, %6 : vector<256x1xf32>
    %13 = arith.subf %11, %12 : vector<256x1xf32>
    %cst_8 = arith.constant 0.000000e+00 : f32
    %14 = vector.broadcast %cst_8 : f32 to vector<256x1xf32>
    %15 = arith.maximumf %13, %14 : vector<256x1xf32>
    %cst_9 = arith.constant 9.99999974E-6 : f32
    %16 = vector.broadcast %cst_9 : f32 to vector<256x1xf32>
    %17 = arith.addf %15, %16 : vector<256x1xf32>
    %18 = math.rsqrt %17 : vector<256x1xf32>
    %19 = vector.broadcast %6 : vector<256x1xf32> to vector<256x1600xf32>
    %20 = arith.subf %2, %19 : vector<256x1600xf32>
    %21 = vector.broadcast %18 : vector<256x1xf32> to vector<256x1600xf32>
    %22 = arith.mulf %20, %21 : vector<256x1600xf32>
    %23 = vector.broadcast %0 : vector<1x1600xf32> to vector<256x1600xf32>
    %24 = arith.mulf %22, %23 : vector<256x1600xf32>
    %25 = vector.broadcast %1 : vector<1x1600xf32> to vector<256x1600xf32>
    %26 = arith.addf %24, %25 : vector<256x1600xf32>
    %c0_10 = arith.constant 0 : index
    %c0_11 = arith.constant 0 : index
    %27 = vector.load %arg4[%c0_10, %c0_11] : memref<256x1600xf32, #tpu.memory_space<vmem>>, vector<256x1600xf32>
    tpu.vector_store %arg4[%c0_10, %c0_11], %26 {strides = array<i32>} : memref<256x1600xf32, #tpu.memory_space<vmem>>, vector<256x1600xf32>,
    return
  }
  func.func @transform_0(%arg0: i32) -> (i32, i32) {
    %c0_i32 = arith.constant 0 : i32
    %c0_i32_0 = arith.constant 0 : i32
    return %arg0, %c0_i32 : i32, i32
  }
  func.func @transform_1(%arg0: i32) -> (i32, i32) {
    %c0_i32 = arith.constant 0 : i32
    %c0_i32_0 = arith.constant 0 : i32
    %c0_i32_1 = arith.constant 0 : i32
    return %c0_i32, %c0_i32_0 : i32, i32
  }
  func.func @transform_2(%arg0: i32) -> (i32, i32) {
    %c0_i32 = arith.constant 0 : i32
    %c0_i32_0 = arith.constant 0 : i32
    %c0_i32_1 = arith.constant 0 : i32
    return %c0_i32, %c0_i32_0 : i32, i32
  }
  func.func @transform_3(%arg0: i32) -> (i32, i32) {
    %c0_i32 = arith.constant 0 : i32
    %c0_i32_0 = arith.constant 0 : i32
    return %arg0, %c0_i32 : i32, i32
  }
}

</mosaic_0001>

<bundles_post_ra>
// kernel: gpt2_output_layer.1
= control target key start
LH: loop header
LB: loop body
LE: loop exit
PB: predicated region body
PF: predicated region fallthrough
CT: control target
= control target key end

     0   :  { %s5378_s12 = smov 0   ;;  %s11869_s0 = inlined_call_operand.vmem [shape: f32[512,1600], index: 0, kind: input, shape index: {}]   ;;  %s11870_s1 = inlined_call_operand.vmem [shape: f32[1,1600], index: 1, kind: input, shape index: {}]   ;;  %s11871_s2 = inlined_call_operand.vmem [shape: f32[1,1600], index: 2, kind: input, shape index: {}]   ;;  %s11872_s3 = inlined_call_operand.vmem [shape: f32[512,1600], index: 3, kind: output, shape index: {}]  }
   0x1 LB: > { %s4473_s13 = sadd.s32 4294967295, %s5356_s12   ;;  %p4477_p0 = scmp.ge.s32.totalorder %s5356_s12, 1  ;;  %s5356_s12 = sphi %s5378_s12, %s13_s12  }
   0x2   : > { %p139_p1 = scmp.lt.s32.totalorder %s5356_s12, 3 }
   0x4   : > { %p140_p2 = pnand %p4477_p0, %p139_p1 }
   0x6   : > { %143 = sbr.rel (%p140_p2) target bundleno = 1066 (0x42a), region = 32 }
   0xd   : > { %s4478_s14 = sshll.u32 %s4473_s13, 5  ;;  %vm610_vm0 = vcmask 523264  }
   0xe   : > { %p166_p3 = scmp.lt.s32.totalorder %s4478_s14, 63 }
  0x10   : > { %s13634_s14 = smov (!%p166_p3, %s4478_s14), 63 }
  0x11   : > { %s4484_s15 = smul.u32 104, %s13634_s14 }
  0x13   : > { %s5394_s18 = scalar_lea.vmem %s11869_s0, %s4484_s15  ;;  %s8815_s29 = scalar_lea.vmem %s11872_s3, %s4484_s15 }
  0x14   : > { %v209_v0 = vld [vmem:[%s5394_s18 + $0xd0] sm:$0xff]  ;;  %v210_v1 = vld [vmem:[%s5394_s18 + $0xd8] sm:$0xff]  ;;  %v211_v2 = vld [vmem:[%s5394_s18 + $0xe0] sm:$0xff] }
  0x15   : > { %v630_v3 = vadd.f32 %v210_v1, %v209_v0  ;;  %v212_v4 = vld [vmem:[%s5394_s18 + $0xe8] sm:$0xff]  ;;  %v213_v6 = vld [vmem:[%s5394_s18 + $0xf0] sm:$0xff]  ;;  %v5402_v7 = vld [vmem:[%s5394_s18] sm:$0xff] }
  0x16   : > { %v5405_v8 = vld [vmem:[%s5394_s18 + $0x8] sm:$0xff]  ;;  %v5408_v10 = vld [vmem:[%s5394_s18 + $0x10] sm:$0xff]  ;;  %v214_v12 = vld [vmem:[%s5394_s18 + $0xf8] sm:$0xff] }
  0x17   : > { %v631_v5 = vadd.f32 %v630_v3, %v211_v2  ;;  %v599_v11 = vadd.f32 %v5405_v8, %v5402_v7  ;;  %v5414_v13 = vld [vmem:[%s5394_s18 + $0x18] sm:$0xff]  ;;  %v215_v16 = vld [vmem:[%s5394_s18 + $0x100] sm:$0xff]  ;;  %v5429_v22 = vld [vmem:[%s5394_s18 + $0x148] sm:$0xff] }
  0x18   : > { %v5419_v17 = vld [vmem:[%s5394_s18 + $0x20] sm:$0xff]  ;;  %v5422_v18 = vld [vmem:[%s5394_s18 + $0x138] sm:$0xff]  ;;  %v216_v23 = vld [vmem:[%s5394_s18 + $0x108] sm:$0xff] }
  0x19   : > { %v632_v9 = vadd.f32 %v631_v5, %v212_v4  ;;  %v600_v15 = vadd.f32 %v599_v11, %v5408_v10  ;;  %v5426_v21 = vld [vmem:[%s5394_s18 + $0x140] sm:$0xff]  ;;  %v5433_v24 = vld [vmem:[%s5394_s18 + $0x28] sm:$0xff]  ;;  %v5439_v28 = vld [vmem:[%s5394_s18 + $0x150] sm:$0xff] }
  0x1a   : > { %v645_v25 = vadd.f32 %v5426_v21, %v5422_v18  ;;  %v217_v29 = vld [vmem:[%s5394_s18 + $0x110] sm:$0xff]  ;;  %v5446_v31 = vld [vmem:[%s5394_s18 + $0x158] sm:$0xff]  ;;  %v196_v35 = vld [vmem:[%s5394_s18 + $0x68] sm:$0xff] }
  0x1b   : > { %v633_v14 = vadd.f32 %v632_v9, %v213_v6  ;;  %v601_v20 = vadd.f32 %v600_v15, %v5414_v13  ;;  %v5443_v30 = vld [vmem:[%s5394_s18 + $0x30] sm:$0xff]  ;;  %v198_v37 = vld [vmem:[%s5394_s18 + $0x78] sm:$0xff]  ;;  %v219_v42 = vld [vmem:[%s5394_s18 + $0x120] sm:$0xff]  ;;  %v1126_v6 = vmul.f32 %v196_v35, %v196_v35 }
  0x1c   : > { %v646_v32 = vadd.f32 %v645_v25, %v5429_v22  ;;  %v197_v36 = vld [vmem:[%s5394_s18 + $0x70] sm:$0xff]  ;;  %v218_v38 = vld [vmem:[%s5394_s18 + $0x118] sm:$0xff]  ;;  %v5461_v45 = vld [vmem:[%s5394_s18 + $0x160] sm:$0xff] }
  0x1d   : > { %v634_v19 = vadd.f32 %v633_v14, %v214_v12  ;;  %v602_v27 = vadd.f32 %v601_v20, %v5419_v17  ;;  %v5455_v39 = vld [vmem:[%s5394_s18 + $0x38] sm:$0xff]  ;;  %v615_v41 = vadd.f32 %v197_v36, %v196_v35  ;;  %v5464_v46 = vld [vmem:[%s5394_s18 + $0x80] sm:$0xff]  ;;  %v220_v47 = vld [vmem:[%s5394_s18 + $0x128] sm:$0xff] }
  0x1e   : > { %v647_v40 = vadd.f32 %v646_v32, %v5439_v28  ;;  %v221_v48 = vld [vmem:[%s5394_s18 + $0x130] sm:$0xff]  ;;  %v5469_v49 = vld [vmem:[%s5394_s18 + $0x40] sm:$0xff]  ;;  %v5472_v50 = vld [vmem:[%s5394_s18 + $0x168] sm:$0xff] }
  0x1f   : > { %v635_v26 = vadd.f32 %v634_v19, %v215_v16  ;;  %v603_v34 = vadd.f32 %v602_v27, %v5433_v24  ;;  %v616_v52 = vadd.f32 %v615_v41, %v198_v37  ;;  %v5477_v55 = vld [vmem:[%s5394_s18 + $0x88] sm:$0xff]  ;;  %v249_v57 = vld [vmem:[%s5394_s18 + $0x210] sm:$0xff]  ;;  %v5485_v59 = vld [vmem:[%s5394_s18 + $0x60] sm:$0xff]  ;;  %v641_v1 = vsel %vm610_vm0, %v221_v48, 0.0 }
  0x20   : > { %v648_v51 = vadd.f32 %v647_v40, %v5446_v31  ;;  %v248_v56 = vld [vmem:[%s5394_s18 + $0x208] sm:$0xff]  ;;  %v250_v62 = vld [vmem:[%s5394_s18 + $0x218] sm:$0xff]  ;;  %v5493_v3 = vld [vmem:[%s5394_s18 + $0x170] sm:$0xff]  ;;  %v1127_v16 = vmul.f32 %v197_v36, %v197_v36 }
  0x21   : > { %v636_v33 = vadd.f32 %v635_v26, %v216_v23  ;;  %v604_v44 = vadd.f32 %v603_v34, %v5443_v30  ;;  %v5482_v58 = vld [vmem:[%s5394_s18 + $0x48] sm:$0xff]  ;;  %v617_v61 = vadd.f32 %v616_v52, %v5464_v46  ;;  %v675_v63 = vadd.f32 %v249_v57, %v248_v56  ;;  %v5496_v4 = vld [vmem:[%s5394_s18 + $0x90] sm:$0xff]  ;;  %v251_v5 = vld [vmem:[%s5394_s18 + $0x220] sm:$0xff] }
  0x22   : > { %v649_v60 = vadd.f32 %v648_v51, %v5461_v45  ;;  %v5500_v9 = vld [vmem:[%s5394_s18 + $0x50] sm:$0xff]  ;;  %v5503_v11 = vld [vmem:[%s5394_s18 + $0x178] sm:$0xff]  ;;  %v252_v25 = vld [vmem:[%s5394_s18 + $0x228] sm:$0xff]  ;;  %v1544_v57 = vadd.f32 %v1127_v16, %v1126_v6 }
  0x23   : > { %v637_v43 = vadd.f32 %v636_v33, %v217_v29  ;;  %v605_v54 = vadd.f32 %v604_v44, %v5455_v39  ;;  %v618_v14 = vadd.f32 %v617_v61, %v5477_v55  ;;  %v676_v15 = vadd.f32 %v675_v63, %v250_v62  ;;  %v5509_v23 = vld [vmem:[%s5394_s18 + $0x98] sm:$0xff]  ;;  %v235_v26 = vld [vmem:[%s5394_s18 + $0x1a0] sm:$0xff]  ;;  %v236_v35 = vld [vmem:[%s5394_s18 + $0x1a8] sm:$0xff] }
  0x24   : > { %v650_v12 = vadd.f32 %v649_v60, %v5472_v50  ;;  %v5514_v27 = vld [vmem:[%s5394_s18 + $0x58] sm:$0xff]  ;;  %v611_v29 = vsel %vm610_vm0, %v5485_v59, 0.0  ;;  %v237_v36 = vld [vmem:[%s5394_s18 + $0x1b0] sm:$0xff]  ;;  %v5524_v41 = vld [vmem:[%s5394_s18 + $0x180] sm:$0xff]  ;;  %v660_v44 = vadd.f32 %v236_v35, %v235_v26 }
  0x25   : > { %v638_v53 = vadd.f32 %v637_v43, %v218_v38  ;;  %v606_v2 = vadd.f32 %v605_v54, %v5469_v49  ;;  %v619_v33 = vadd.f32 %v618_v14, %v5496_v4  ;;  %v677_v34 = vadd.f32 %v676_v15, %v251_v5  ;;  %v253_v43 = vld [vmem:[%s5394_s18 + $0x230] sm:$0xff]  ;;  %v5531_v48 = vld [vmem:[%s5394_s18 + $0x188] sm:$0xff]  ;;  %v5534_v51 = vld [vmem:[%s5394_s18 + $0x198] sm:$0xff] }
  0x26   : > { %v651_v32 = vadd.f32 %v650_v12, %v5493_v3  ;;  %v238_v56 = vld [vmem:[%s5394_s18 + $0x1b8] sm:$0xff]  ;;  %v239_v62 = vld [vmem:[%s5394_s18 + $0x1c0] sm:$0xff]  ;;  %v661_v63 = vadd.f32 %v660_v44, %v237_v36  ;;  %v276_v14 = vld [vmem:[%s5394_s18 + $0x2e8] sm:$0xff]  ;;  %v1114_v15 = vmul.f32 %v5405_v8, %v5405_v8 }
  0x27   : > { %v639_v0 = vadd.f32 %v638_v53, %v219_v42  ;;  %v607_v20 = vadd.f32 %v606_v2, %v5482_v58  ;;  %v5527_v42 = vld [vmem:[%s5394_s18 + $0xa0] sm:$0xff]  ;;  %v620_v53 = vadd.f32 %v619_v33, %v5509_v23  ;;  %v678_v54 = vadd.f32 %v677_v34, %v252_v25  ;;  %v254_v61 = vld [vmem:[%s5394_s18 + $0x238] sm:$0xff]  ;;  %v240_v35 = vld [vmem:[%s5394_s18 + $0x1c8] sm:$0xff] }
  0x28   : > { %v652_v52 = vadd.f32 %v651_v32, %v5503_v11  ;;  %v274_v6 = vld [vmem:[%s5394_s18 + $0x2d8] sm:$0xff]  ;;  %v275_v12 = vld [vmem:[%s5394_s18 + $0x2e0] sm:$0xff]  ;;  %v662_v25 = vadd.f32 %v661_v63, %v238_v56  ;;  %v1129_v32 = vmul.f32 %v5464_v46, %v5464_v46  ;;  %v277_v36 = vld [vmem:[%s5394_s18 + $0x2f0] sm:$0xff] }
  0x29   : > { %v640_v19 = vadd.f32 %v639_v0, %v220_v47  ;;  %v608_v40 = vadd.f32 %v607_v20, %v5500_v9  ;;  %v1128_v47 = vmul.f32 %v198_v37, %v198_v37  ;;  %v5541_v37 = vld [vmem:[%s5394_s18 + $0xa8] sm:$0xff]  ;;  %v1113_v0 = vmul.f32 %v5402_v7, %v5402_v7  ;;  %v5558_v7 = vld [vmem:[%s5394_s18 + $0xb0] sm:$0xff]  ;;  %v255_v20 = vld [vmem:[%s5394_s18 + $0x240] sm:$0xff] }
  0x2a   : > { %v621_v2 = vadd.f32 %v620_v53, %v5527_v42  ;;  %v679_v5 = vadd.f32 %v678_v54, %v253_v43  ;;  %v705_v26 = vadd.f32 %v275_v12, %v274_v6  ;;  %v5565_v34 = vld [vmem:[%s5394_s18 + $0xb8] sm:$0xff]  ;;  %v5573_v46 = vld [vmem:[%s5394_s18 + $0xc8] sm:$0xff]  ;;  %v241_v44 = vld [vmem:[%s5394_s18 + $0x1d0] sm:$0xff]  ;;  %v5579_v54 = vmul.f32 %v5408_v10, %v5408_v10 }
  0x2b   : > { %v642_v38 = vadd.f32 %v641_v1, %v640_v19  ;;  %v609_v60 = vadd.f32 %v608_v40, %v5514_v27  ;;  %v653_v1 = vadd.f32 %v652_v52, %v5524_v41  ;;  %v5555_v19 = vld [vmem:[%s5394_s18 + $0x190] sm:$0xff]  ;;  %v656_v40 = vsel %vm610_vm0, %v5534_v51, 0.0  ;;  %v256_v43 = vld [vmem:[%s5394_s18 + $0x248] sm:$0xff]  ;;  %v262_v63 = vld [vmem:[%s5394_s18 + $0x278] sm:$0xff] }
  0x2c   : > { %v622_v8 = vadd.f32 %v621_v2, %v5541_v37  ;;  %v663_v52 = vadd.f32 %v662_v25, %v239_v62  ;;  %v706_v53 = vadd.f32 %v705_v26, %v276_v14  ;;  %v5589_v62 = vld [vmem:[%s5394_s18 + $0xc0] sm:$0xff]  ;;  %v257_v2 = vld [vmem:[%s5394_s18 + $0x250] sm:$0xff]  ;;  %v1130_v14 = vmul.f32 %v5477_v55, %v5477_v55  ;;  %v264_v26 = vld [vmem:[%s5394_s18 + $0x288] sm:$0xff] }
  0x2d   : > { %643 = vadd.xlane.f32.xlu1 %v642_v38  ;;  %v612_v16 = vadd.f32 %v611_v29, %v609_v60  ;;  %v654_v33 = vadd.f32 %v653_v1, %v5531_v48  ;;  %v680_v29 = vadd.f32 %v679_v5, %v254_v61  ;;  %v1545_v38 = vadd.f32 %v1544_v57, %v1128_v47  ;;  %v278_v60 = vld [vmem:[%s5394_s18 + $0x2f8] sm:$0xff]  ;;  %v261_v61 = vld [vmem:[%s5394_s18 + $0x270] sm:$0xff]  ;;  %v263_v6 = vld [vmem:[%s5394_s18 + $0x280] sm:$0xff] }
  0x2e   : > { %v623_v47 = vadd.f32 %v622_v8, %v5558_v7  ;;  %v5586_v1 = vadd.f32 %v1114_v15, %v1113_v0  ;;  %v664_v10 = vadd.f32 %v663_v52, %v240_v35  ;;  %v707_v5 = vadd.f32 %v706_v53, %v277_v36  ;;  %v242_v0 = vld [vmem:[%s5394_s18 + $0x1d8] sm:$0xff]  ;;  %v279_v15 = vld [vmem:[%s5394_s18 + $0x300] sm:$0xff]  ;;  %v260_v35 = vld [vmem:[%s5394_s18 + $0x268] sm:$0xff] }
  0x2f   : > { %613 = vadd.xlane.f32.xlu0 %v612_v16  ;;  %v655_v56 = vadd.f32 %v654_v33, %v5555_v19  ;;  %v681_v57 = vadd.f32 %v680_v29, %v255_v20  ;;  %v690_v12 = vadd.f32 %v262_v63, %v261_v61  ;;  %v1546_v33 = vadd.f32 %v1545_v38, %v1129_v32  ;;  %v258_v29 = vld [vmem:[%s5394_s18 + $0x258] sm:$0xff]  ;;  %v243_v36 = vld [vmem:[%s5394_s18 + $0x1e0] sm:$0xff]  ;;  %v265_v32 = vld [vmem:[%s5394_s18 + $0x290] sm:$0xff] }
  0x30   : > { %v624_v20 = vadd.f32 %v623_v47, %v5565_v34  ;;  %v626_v8 = vsel %vm610_vm0, %v5573_v46, 0.0  ;;  %v665_v55 = vadd.f32 %v664_v10, %v241_v44  ;;  %v300_v38 = vld [vmem:[%s5394_s18 + $0x3a8] sm:$0xff]  ;;  %v1131_v47 = vmul.f32 %v5496_v4, %v5496_v4  ;;  %v259_v44 = vld [vmem:[%s5394_s18 + $0x260] sm:$0xff]  ;;  %v301_v10 = vld [vmem:[%s5394_s18 + $0x3b0] sm:$0xff] }
  0x31   : > { %v657_v16 = vadd.f32 %v656_v40, %v655_v56  ;;  %v682_v25 = vadd.f32 %v681_v57, %v256_v43  ;;  %v708_v40 = vadd.f32 %v707_v5, %v278_v60  ;;  %v691_v52 = vadd.f32 %v690_v12, %v263_v6  ;;  %v280_v56 = vld [vmem:[%s5394_s18 + $0x308] sm:$0xff] }
  0x32   : > { %v625_v43 = vadd.f32 %v624_v20, %v5589_v62  ;;  %v5612_v57 = vmul.f32 %v5414_v13, %v5414_v13  ;;  %v666_v60 = vadd.f32 %v665_v55, %v242_v0  ;;  %v5619_v5 = vmul.f32 %v5419_v17, %v5419_v17  ;;  %v244_v12 = vld [vmem:[%s5394_s18 + $0x1e8] sm:$0xff]  ;;  %v281_v13 = vld [vmem:[%s5394_s18 + $0x310] sm:$0xff] }
  0x33   : > { %658 = vadd.xlane.f32.xlu1 %v657_v16  ;;  %v683_v53 = vadd.f32 %v682_v25, %v257_v2  ;;  %v709_v61 = vadd.f32 %v708_v40, %v279_v15  ;;  %v692_v63 = vadd.f32 %v691_v52, %v264_v26  ;;  %v302_v2 = vld [vmem:[%s5394_s18 + $0x3b8] sm:$0xff]  ;;  %v735_v20 = vadd.f32 %v301_v10, %v300_v38  ;;  %v245_v15 = vld [vmem:[%s5394_s18 + $0x1f0] sm:$0xff]  ;;  %v247_v26 = vld [vmem:[%s5394_s18 + $0x200] sm:$0xff] }
  0x34   : > { %v627_v6 = vadd.f32 %v626_v8, %v625_v43  ;;  %v266_v16 = vld [vmem:[%s5394_s18 + $0x298] sm:$0xff]  ;;  %v1547_v25 = vadd.f32 %v1546_v33, %v1130_v14  ;;  %v686_v0 = vsel %vm610_vm0, %v260_v35, 0.0  ;;  %v667_v55 = vadd.f32 %v666_v60, %v243_v36  ;;  %v303_v8 = vld [vmem:[%s5394_s18 + $0x3c0] sm:$0xff]  ;;  %v289_v60 = vld [vmem:[%s5394_s18 + $0x350] sm:$0xff] }
  0x35   : > { %v684_v4 = vadd.f32 %v683_v53, %v258_v29  ;;  %v710_v40 = vadd.f32 %v709_v61, %v280_v56  ;;  %v693_v17 = vadd.f32 %v692_v63, %v265_v32  ;;  %v282_v52 = vld [vmem:[%s5394_s18 + $0x318] sm:$0xff]  ;;  %v267_v43 = vld [vmem:[%s5394_s18 + $0x2a0] sm:$0xff]  ;;  %v304_v53 = vld [vmem:[%s5394_s18 + $0x3c8] sm:$0xff]  ;;  %v736_v14 = vadd.f32 %v735_v20, %v302_v2 }
  0x36   : > { %628 = vadd.xlane.f32.xlu0 %v627_v6  ;;  %v1132_v33 = vmul.f32 %v5509_v23, %v5509_v23  ;;  %v5635_v35 = vmul.f32 %v5433_v24, %v5433_v24  ;;  %v668_v36 = vadd.f32 %v667_v55, %v244_v12  ;;  %v287_v38 = vld [vmem:[%s5394_s18 + $0x340] sm:$0xff]  ;;  %v5642_v61 = vmul.f32 %v5527_v42, %v5527_v42  ;;  %v246_v23 = vld [vmem:[%s5394_s18 + $0x1f8] sm:$0xff]  ;;  %v268_v24 = vld [vmem:[%s5394_s18 + $0x2a8] sm:$0xff] }
  0x37   : > { %v685_v29 = vadd.f32 %v684_v4, %v259_v44  ;;  %v711_v56 = vadd.f32 %v710_v40, %v281_v13  ;;  %v694_v32 = vadd.f32 %v693_v17, %v266_v16  ;;  %v288_v44 = vld [vmem:[%s5394_s18 + $0x348] sm:$0xff]  ;;  %v283_v10 = vld [vmem:[%s5394_s18 + $0x320] sm:$0xff]  ;;  %v737_v2 = vadd.f32 %v736_v14, %v303_v8  ;;  %v305_v55 = vld [vmem:[%s5394_s18 + $0x3d0] sm:$0xff] }
  0x38   : > { %v720_v6 = vadd.f32 %v288_v44, %v287_v38  ;;  %v1548_v4 = vadd.f32 %v1547_v25, %v1131_v47  ;;  %v669_v12 = vadd.f32 %v668_v36, %v245_v15  ;;  %v284_v13 = vld [vmem:[%s5394_s18 + $0x328] sm:$0xff]  ;;  %v290_v42 = vld [vmem:[%s5394_s18 + $0x358] sm:$0xff]  ;;  %v671_v40 = vsel %vm610_vm0, %v247_v26, 0.0  ;;  %v269_v47 = vld [vmem:[%s5394_s18 + $0x2b0] sm:$0xff] }
  0x39   : > { %v687_v63 = vadd.f32 %v686_v0, %v685_v29  ;;  %v712_v16 = vadd.f32 %v711_v56, %v282_v52  ;;  %v695_v20 = vadd.f32 %v694_v32, %v267_v43  ;;  %v5652_v0 = vmul.f32 %v5541_v37, %v5541_v37  ;;  %v286_v17 = vld [vmem:[%s5394_s18 + $0x338] sm:$0xff]  ;;  %v291_v14 = vld [vmem:[%s5394_s18 + $0x360] sm:$0xff]  ;;  %v328_v44 = vld [vmem:[%s5394_s18 + $0x488] sm:$0xff] }
  0x3a   : > { %v306_v25 = vld [vmem:[%s5394_s18 + $0x3d8] sm:$0xff]  ;;  %v738_v15 = vadd.f32 %v737_v2, %v304_v53  ;;  %v721_v8 = vadd.f32 %v720_v6, %v289_v60  ;;  %v5660_v29 = vmul.f32 %v5558_v7, %v5558_v7  ;;  %v670_v52 = vadd.f32 %v669_v12, %v246_v23  ;;  %v327_v56 = vld [vmem:[%s5394_s18 + $0x480] sm:$0xff]  ;;  %v285_v53 = vld [vmem:[%s5394_s18 + $0x330] sm:$0xff] }
  0x3b   : > { %688 = vadd.xlane.f32.xlu1 %v687_v63  ;;  %v713_v43 = vadd.f32 %v712_v16, %v283_v10  ;;  %v696_v37 = vadd.f32 %v695_v20, %v268_v24  ;;  %v326_v36 = vld [vmem:[%s5394_s18 + $0x478] sm:$0xff]  ;;  %v5667_v26 = vmul.f32 %v5443_v30, %v5443_v30  ;;  %v1549_v63 = vadd.f32 %v1548_v4, %v1132_v33  ;;  %v307_v2 = vld [vmem:[%s5394_s18 + $0x3e0] sm:$0xff]  ;;  %v292_v6 = vld [vmem:[%s5394_s18 + $0x368] sm:$0xff] }
  0x3c   : > { %v270_v32 = vld [vmem:[%s5394_s18 + $0x2b8] sm:$0xff]  ;;  %v739_v7 = vadd.f32 %v738_v15, %v305_v55  ;;  %v722_v38 = vadd.f32 %v721_v8, %v290_v42  ;;  %v765_v60 = vadd.f32 %v327_v56, %v326_v36  ;;  %v672_v23 = vadd.f32 %v671_v40, %v670_v52  ;;  %v329_v30 = vld [vmem:[%s5394_s18 + $0x490] sm:$0xff]  ;;  %v271_v20 = vld [vmem:[%s5394_s18 + $0x2c0] sm:$0xff] }
  0x3d   : > { %v714_v10 = vadd.f32 %v713_v43, %v284_v13  ;;  %v697_v24 = vadd.f32 %v696_v37, %v269_v47  ;;  %v5677_v12 = vmul.f32 %v5565_v34, %v5565_v34  ;;  %v716_v16 = vsel %vm610_vm0, %v286_v17, 0.0  ;;  %v273_v55 = vld [vmem:[%s5394_s18 + $0x2d0] sm:$0xff]  ;;  %v308_v42 = vld [vmem:[%s5394_s18 + $0x3e8] sm:$0xff]  ;;  %v330_v34 = vld [vmem:[%s5394_s18 + $0x498] sm:$0xff] }
  0x3e   : > { %v740_v33 = vadd.f32 %v739_v7, %v306_v25  ;;  %v723_v4 = vadd.f32 %v722_v38, %v291_v14  ;;  %v766_v13 = vadd.f32 %v765_v60, %v328_v44  ;;  %673 = vadd.xlane.f32.xlu0 %v672_v23  ;;  %v293_v15 = vld [vmem:[%s5394_s18 + $0x370] sm:$0xff]  ;;  %v5688_v17 = vmul.f32 %v5589_v62, %v5589_v62  ;;  %v272_v25 = vld [vmem:[%s5394_s18 + $0x2c8] sm:$0xff]  ;;  %v314_v36 = vld [vmem:[%s5394_s18 + $0x418] sm:$0xff] }
  0x3f   : > { %v715_v40 = vadd.f32 %v714_v10, %v285_v53  ;;  %v698_v47 = vadd.f32 %v697_v24, %v270_v32  ;;  %v313_v8 = vld [vmem:[%s5394_s18 + $0x410] sm:$0xff]  ;;  %v1530_v52 = vadd.f32 %v5586_v1, %v5579_v54  ;;  %v315_v56 = vld [vmem:[%s5394_s18 + $0x420] sm:$0xff]  ;;  %v1550_v53 = vadd.f32 %v1549_v63, %v5642_v61  ;;  %v294_v38 = vld [vmem:[%s5394_s18 + $0x378] sm:$0xff] }
  0x40   : > { %v741_v43 = vadd.f32 %v740_v33, %v307_v2  ;;  %v724_v37 = vadd.f32 %v723_v4, %v292_v6  ;;  %v767_v14 = vadd.f32 %v766_v13, %v329_v30  ;;  %v309_v62 = vld [vmem:[%s5394_s18 + $0x3f0] sm:$0xff]  ;;  %v331_v44 = vld [vmem:[%s5394_s18 + $0x4a0] sm:$0xff]  ;;  %v750_v54 = vadd.f32 %v314_v36, %v313_v8  ;;  %v310_v23 = vld [vmem:[%s5394_s18 + $0x3f8] sm:$0xff] }
  0x41   : > { %v717_v32 = vadd.f32 %v716_v16, %v715_v40  ;;  %v699_v7 = vadd.f32 %v698_v47, %v271_v20  ;;  %v1138_v1 = vmul.f32 %v5573_v46, %v5573_v46  ;;  %v701_v60 = vsel %vm610_vm0, %v273_v55, 0.0  ;;  %v312_v10 = vld [vmem:[%s5394_s18 + $0x408] sm:$0xff]  ;;  %v295_v30 = vld [vmem:[%s5394_s18 + $0x380] sm:$0xff]  ;;  %v317_v20 = vld [vmem:[%s5394_s18 + $0x430] sm:$0xff] }
  0x42   : > { %v742_v24 = vadd.f32 %v741_v43, %v308_v42  ;;  %v725_v61 = vadd.f32 %v724_v37, %v293_v15  ;;  %v768_v63 = vadd.f32 %v767_v14, %v330_v34  ;;  %v316_v2 = vld [vmem:[%s5394_s18 + $0x428] sm:$0xff]  ;;  %v751_v46 = vadd.f32 %v750_v54, %v315_v56  ;;  %v353_v47 = vld [vmem:[%s5394_s18 + $0x550] sm:$0xff]  ;;  %v354_v15 = vld [vmem:[%s5394_s18 + $0x558] sm:$0xff] }
  0x43   : > { %718 = vadd.xlane.f32.xlu1 %v717_v32  ;;  %v700_v6 = vadd.f32 %v699_v7, %v272_v25  ;;  %v332_v16 = vld [vmem:[%s5394_s18 + $0x4a8] sm:$0xff]  ;;  %v5710_v55 = vmul.f32 %v5455_v39, %v5455_v39  ;;  %v1531_v42 = vadd.f32 %v1530_v52, %v5612_v57  ;;  %v1551_v34 = vadd.f32 %v1550_v53, %v5652_v0  ;;  %v311_v25 = vld [vmem:[%s5394_s18 + $0x400] sm:$0xff]  ;;  %v333_v39 = vld [vmem:[%s5394_s18 + $0x4b0] sm:$0xff] }
  0x44   : > { %v743_v33 = vadd.f32 %v742_v24, %v309_v62  ;;  %v726_v4 = vadd.f32 %v725_v61, %v294_v38  ;;  %v769_v13 = vadd.f32 %v768_v63, %v331_v44  ;;  %v352_v40 = vld [vmem:[%s5394_s18 + $0x548] sm:$0xff]  ;;  %v752_v37 = vadd.f32 %v751_v46, %v316_v2  ;;  %v297_v36 = vld [vmem:[%s5394_s18 + $0x390] sm:$0xff]  ;;  %v318_v7 = vld [vmem:[%s5394_s18 + $0x438] sm:$0xff] }
  0x45   : > { %v702_v8 = vadd.f32 %v701_v60, %v700_v6  ;;  %v296_v43 = vld [vmem:[%s5394_s18 + $0x388] sm:$0xff]  ;;  %v795_v57 = vadd.f32 %v353_v47, %v352_v40  ;;  %v5721_v52 = vsel %vm610_vm0, %v1138_v1, 0.0  ;;  %v355_v0 = vld [vmem:[%s5394_s18 + $0x560] sm:$0xff]  ;;  %v5728_v53 = vmul.f32 %v5469_v49, %v5469_v49  ;;  %v334_v44 = vld [vmem:[%s5394_s18 + $0x4b8] sm:$0xff] }
  0x46   : > { %v744_v14 = vadd.f32 %v743_v33, %v310_v23  ;;  %v727_v56 = vadd.f32 %v726_v4, %v295_v30  ;;  %v770_v32 = vadd.f32 %v769_v13, %v332_v16  ;;  %v746_v62 = vsel %vm610_vm0, %v312_v10, 0.0  ;;  %v299_v38 = vld [vmem:[%s5394_s18 + $0x3a0] sm:$0xff]  ;;  %v356_v2 = vld [vmem:[%s5394_s18 + $0x568] sm:$0xff]  ;;  %v298_v30 = vld [vmem:[%s5394_s18 + $0x398] sm:$0xff] }
  0x47   : > { %703 = vadd.xlane.f32.xlu0 %v702_v8  ;;  %v319_v54 = vld [vmem:[%s5394_s18 + $0x440] sm:$0xff]  ;;  %v753_v1 = vadd.f32 %v752_v37, %v317_v20  ;;  %v796_v60 = vadd.f32 %v795_v57, %v354_v15  ;;  %v1532_v23 = vadd.f32 %v1531_v42, %v5619_v5  ;;  %v340_v6 = vld [vmem:[%s5394_s18 + $0x4e8] sm:$0xff]  ;;  %v1552_v10 = vadd.f32 %v1551_v34, %v5660_v29  ;;  %v341_v33 = vld [vmem:[%s5394_s18 + $0x4f0] sm:$0xff] }
  0x48   : > { %v745_v24 = vadd.f32 %v744_v14, %v311_v25  ;;  %v728_v61 = vadd.f32 %v727_v56, %v296_v43  ;;  %v771_v63 = vadd.f32 %v770_v32, %v333_v39  ;;  %v339_v49 = vld [vmem:[%s5394_s18 + $0x4e0] sm:$0xff]  ;;  %v5744_v42 = vmul.f32 %v5482_v58, %v5482_v58  ;;  %v320_v29 = vld [vmem:[%s5394_s18 + $0x448] sm:$0xff]  ;;  %v357_v15 = vld [vmem:[%s5394_s18 + $0x570] sm:$0xff] }
  0x49   : > { %v335_v16 = vld [vmem:[%s5394_s18 + $0x4c0] sm:$0xff]  ;;  %v754_v20 = vadd.f32 %v753_v1, %v318_v7  ;;  %v797_v46 = vadd.f32 %v796_v60, %v355_v0  ;;  %v780_v5 = vadd.f32 %v340_v6, %v339_v49  ;;  %v731_v40 = vsel %vm610_vm0, %v299_v38, 0.0  ;;  %v342_v34 = vld [vmem:[%s5394_s18 + $0x4f8] sm:$0xff]  ;;  %v336_v8 = vld [vmem:[%s5394_s18 + $0x4c8] sm:$0xff] }
  0x4a   : > { %v747_v4 = vadd.f32 %v746_v62, %v745_v24  ;;  %v729_v13 = vadd.f32 %v728_v61, %v297_v36  ;;  %v772_v47 = vadd.f32 %v771_v63, %v334_v44  ;;  %v338_v25 = vld [vmem:[%s5394_s18 + $0x4d8] sm:$0xff]  ;;  %v321_v43 = vld [vmem:[%s5394_s18 + $0x450] sm:$0xff]  ;;  %v1533_v57 = vadd.f32 %v1532_v23, %v5635_v35  ;;  %v343_v32 = vld [vmem:[%s5394_s18 + $0x500] sm:$0xff] }
  0x4b   : > { %v755_v39 = vadd.f32 %v754_v20, %v319_v54  ;;  %v798_v37 = vadd.f32 %v797_v46, %v356_v2  ;;  %v781_v58 = vadd.f32 %v780_v5, %v341_v33  ;;  %v358_v56 = vld [vmem:[%s5394_s18 + $0x578] sm:$0xff]  ;;  %v1553_v0 = vadd.f32 %v1552_v10, %v5677_v12  ;;  %v337_v38 = vld [vmem:[%s5394_s18 + $0x4d0] sm:$0xff]  ;;  %v379_v1 = vld [vmem:[%s5394_s18 + $0x620] sm:$0xff] }
  0x4c   : > { %748 = vadd.xlane.f32.xlu1 %v747_v4  ;;  %v730_v14 = vadd.f32 %v729_v13, %v298_v30  ;;  %v773_v36 = vadd.f32 %v772_v47, %v335_v16  ;;  %v378_v7 = vld [vmem:[%s5394_s18 + $0x618] sm:$0xff]  ;;  %v5760_v62 = vmul.f32 %v5500_v9, %v5500_v9  ;;  %v380_v60 = vld [vmem:[%s5394_s18 + $0x628] sm:$0xff]  ;;  %v5767_v23 = vmul.f32 %v5514_v27, %v5514_v27  ;;  %v359_v63 = vld [vmem:[%s5394_s18 + $0x580] sm:$0xff] }
  0x4d   : > { %v756_v44 = vadd.f32 %v755_v39, %v320_v29  ;;  %v799_v35 = vadd.f32 %v798_v37, %v357_v15  ;;  %v782_v54 = vadd.f32 %v781_v58, %v342_v34  ;;  %v776_v61 = vsel %vm610_vm0, %v338_v25, 0.0  ;;  %v322_v9 = vld [vmem:[%s5394_s18 + $0x458] sm:$0xff]  ;;  %v344_v2 = vld [vmem:[%s5394_s18 + $0x508] sm:$0xff]  ;;  %v323_v6 = vld [vmem:[%s5394_s18 + $0x460] sm:$0xff] }
  0x4e   : > { %v732_v24 = vadd.f32 %v731_v40, %v730_v14  ;;  %v774_v12 = vadd.f32 %v773_v36, %v336_v8  ;;  %v825_v49 = vadd.f32 %v379_v1, %v378_v7  ;;  %v325_v10 = vld [vmem:[%s5394_s18 + $0x470] sm:$0xff]  ;;  %v1534_v46 = vadd.f32 %v1533_v57, %v5667_v26  ;;  %v360_v5 = vld [vmem:[%s5394_s18 + $0x588] sm:$0xff]  ;;  %v382_v13 = vld [vmem:[%s5394_s18 + $0x638] sm:$0xff] }
  0x4f   : > { %v757_v30 = vadd.f32 %v756_v44, %v321_v43  ;;  %v800_v16 = vadd.f32 %v799_v35, %v358_v56  ;;  %v783_v20 = vadd.f32 %v782_v54, %v343_v32  ;;  %v381_v27 = vld [vmem:[%s5394_s18 + $0x630] sm:$0xff]  ;;  %v1554_v47 = vadd.f32 %v1553_v0, %v5688_v17  ;;  %v366_v25 = vld [vmem:[%s5394_s18 + $0x5b8] sm:$0xff]  ;;  %v367_v43 = vld [vmem:[%s5394_s18 + $0x5c0] sm:$0xff] }
  0x50   : > { %733 = vadd.xlane.f32.xlu0 %v732_v24  ;;  %v775_v33 = vadd.f32 %v774_v12, %v337_v38  ;;  %v345_v4 = vld [vmem:[%s5394_s18 + $0x510] sm:$0xff]  ;;  %v826_v40 = vadd.f32 %v825_v49, %v380_v60  ;;  %v1152_v29 = vmul.f32 %v5422_v18, %v5422_v18  ;;  %v1153_v39 = vmul.f32 %v5426_v21, %v5426_v21  ;;  %v324_v58 = vld [vmem:[%s5394_s18 + $0x468] sm:$0xff]  ;;  %v346_v57 = vld [vmem:[%s5394_s18 + $0x518] sm:$0xff] }
  0x51   : > { %v758_v15 = vadd.f32 %v757_v30, %v322_v9  ;;  %v801_v34 = vadd.f32 %v800_v16, %v359_v63  ;;  %v784_v8 = vadd.f32 %v783_v20, %v344_v2  ;;  %v365_v26 = vld [vmem:[%s5394_s18 + $0x5b0] sm:$0xff]  ;;  %v1125_v36 = vmul.f32 %v5485_v59, %v5485_v59  ;;  %v362_v32 = vld [vmem:[%s5394_s18 + $0x598] sm:$0xff]  ;;  %v383_v38 = vld [vmem:[%s5394_s18 + $0x640] sm:$0xff] }
  0x52   : > { %v777_v37 = vadd.f32 %v776_v61, %v775_v33  ;;  %v361_v17 = vld [vmem:[%s5394_s18 + $0x590] sm:$0xff]  ;;  %v827_v18 = vadd.f32 %v826_v40, %v381_v27  ;;  %v810_v14 = vadd.f32 %v366_v25, %v365_v26  ;;  %v368_v21 = vld [vmem:[%s5394_s18 + $0x5c8] sm:$0xff]  ;;  %v1535_v44 = vadd.f32 %v1534_v46, %v5710_v55  ;;  %v347_v1 = vld [vmem:[%s5394_s18 + $0x520] sm:$0xff] }
  0x53   : > { %v759_v56 = vadd.f32 %v758_v15, %v323_v6  ;;  %v802_v7 = vadd.f32 %v801_v34, %v360_v5  ;;  %v785_v0 = vadd.f32 %v784_v8, %v345_v4  ;;  %v761_v35 = vsel %vm610_vm0, %v325_v10, 0.0  ;;  %v364_v54 = vld [vmem:[%s5394_s18 + $0x5a8] sm:$0xff]  ;;  %v369_v55 = vld [vmem:[%s5394_s18 + $0x5d0] sm:$0xff]  ;;  %v363_v10 = vld [vmem:[%s5394_s18 + $0x5a0] sm:$0xff] }
  0x54   : > { %778 = vadd.xlane.f32.xlu1 %v777_v37  ;;  %v384_v59 = vld [vmem:[%s5394_s18 + $0x648] sm:$0xff]  ;;  %v828_v60 = vadd.f32 %v827_v18, %v382_v13  ;;  %v811_v24 = vadd.f32 %v810_v14, %v367_v43  ;;  %v1154_v12 = vmul.f32 %v5429_v22, %v5429_v22  ;;  %v405_v49 = vld [vmem:[%s5394_s18 + $0x6f0] sm:$0xff]  ;;  %v1574_v6 = vadd.f32 %v1153_v39, %v1152_v29  ;;  %v406_v27 = vld [vmem:[%s5394_s18 + $0x6f8] sm:$0xff] }
  0x55   : > { %v760_v61 = vadd.f32 %v759_v56, %v324_v58  ;;  %v803_v9 = vadd.f32 %v802_v7, %v361_v17  ;;  %v786_v63 = vadd.f32 %v785_v0, %v346_v57  ;;  %v404_v2 = vld [vmem:[%s5394_s18 + $0x6e8] sm:$0xff]  ;;  %v5810_v22 = vadd.f32 %v5721_v52, %v1554_v47  ;;  %v385_v13 = vld [vmem:[%s5394_s18 + $0x650] sm:$0xff]  ;;  %v370_v40 = vld [vmem:[%s5394_s18 + $0x5d8] sm:$0xff] }
  0x56   : > { %v348_v30 = vld [vmem:[%s5394_s18 + $0x528] sm:$0xff]  ;;  %v829_v16 = vadd.f32 %v828_v60, %v383_v38  ;;  %v812_v20 = vadd.f32 %v811_v24, %v368_v21  ;;  %v855_v46 = vadd.f32 %v405_v49, %v404_v2  ;;  %v407_v29 = vld [vmem:[%s5394_s18 + $0x700] sm:$0xff]  ;;  %v1536_v15 = vadd.f32 %v1535_v44, %v5728_v53  ;;  %v349_v8 = vld [vmem:[%s5394_s18 + $0x530] sm:$0xff] }
  0x57   : > { %v762_v33 = vadd.f32 %v761_v35, %v760_v61  ;;  %v804_v5 = vadd.f32 %v803_v9, %v362_v32  ;;  %v787_v4 = vadd.f32 %v786_v63, %v347_v1  ;;  %v806_v34 = vsel %vm610_vm0, %v364_v54, 0.0  ;;  %v351_v26 = vld [vmem:[%s5394_s18 + $0x540] sm:$0xff]  ;;  %v386_v25 = vld [vmem:[%s5394_s18 + $0x658] sm:$0xff]  ;;  %v408_v17 = vld [vmem:[%s5394_s18 + $0x708] sm:$0xff] }
  0x58   : > { %v830_v52 = vadd.f32 %v829_v16, %v384_v59  ;;  %v813_v47 = vadd.f32 %v812_v20, %v369_v55  ;;  %v856_v43 = vadd.f32 %v855_v46, %v406_v27  ;;  %v371_v58 = vld [vmem:[%s5394_s18 + $0x5e0] sm:$0xff]  ;;  %v1155_v57 = vmul.f32 %v5439_v28, %v5439_v28  ;;  %v350_v14 = vld [vmem:[%s5394_s18 + $0x538] sm:$0xff]  ;;  %v392_v0 = vld [vmem:[%s5394_s18 + $0x688] sm:$0xff] }
  0x59   : > { %763 = vadd.xlane.f32.xlu0 %v762_v33  ;;  %v805_v39 = vadd.f32 %v804_v5, %v363_v10  ;;  %v788_v37 = vadd.f32 %v787_v4, %v348_v30  ;;  %v391_v53 = vld [vmem:[%s5394_s18 + $0x680] sm:$0xff]  ;;  %v1575_v18 = vadd.f32 %v1574_v6, %v1154_v12  ;;  %v393_v38 = vld [vmem:[%s5394_s18 + $0x690] sm:$0xff]  ;;  %v5829_v21 = vsel %vm610_vm0, %v1125_v36, 0.0  ;;  %v372_v28 = vld [vmem:[%s5394_s18 + $0x5e8] sm:$0xff] }
  0x5a   : > { %v831_v56 = vadd.f32 %v830_v52, %v385_v13  ;;  %v814_v32 = vadd.f32 %v813_v47, %v370_v40  ;;  %v857_v7 = vadd.f32 %v856_v43, %v407_v29  ;;  %v387_v54 = vld [vmem:[%s5394_s18 + $0x660] sm:$0xff]  ;;  %v409_v1 = vld [vmem:[%s5394_s18 + $0x710] sm:$0xff]  ;;  %v840_v59 = vadd.f32 %v392_v0, %v391_v53  ;;  %v388_v12 = vld [vmem:[%s5394_s18 + $0x668] sm:$0xff] }
  0x5b   : > { %v807_v44 = vadd.f32 %v806_v34, %v805_v39  ;;  %v789_v35 = vadd.f32 %v788_v37, %v349_v8  ;;  %v1537_v60 = vadd.f32 %v1536_v15, %v5744_v42  ;;  %v791_v24 = vsel %vm610_vm0, %v351_v26, 0.0  ;;  %v390_v61 = vld [vmem:[%s5394_s18 + $0x678] sm:$0xff]  ;;  %v373_v49 = vld [vmem:[%s5394_s18 + $0x5f0] sm:$0xff]  ;;  %v395_v10 = vld [vmem:[%s5394_s18 + $0x6a0] sm:$0xff] }
  0x5c   : > { %v832_v9 = vadd.f32 %v831_v56, %v386_v25  ;;  %v815_v36 = vadd.f32 %v814_v32, %v371_v58  ;;  %v858_v63 = vadd.f32 %v857_v7, %v408_v17  ;;  %v394_v55 = vld [vmem:[%s5394_s18 + $0x698] sm:$0xff]  ;;  %v841_v42 = vadd.f32 %v840_v59, %v393_v38  ;;  %v431_v5 = vld [vmem:[%s5394_s18 + $0x7c0] sm:$0xff]  ;;  %v432_v4 = vld [vmem:[%s5394_s18 + $0x7c8] sm:$0xff] }
  0x5d   : > { %808 = vadd.xlane.f32.xlu1 %v807_v44  ;;  %v790_v2 = vadd.f32 %v789_v35, %v350_v14  ;;  %v410_v6 = vld [vmem:[%s5394_s18 + $0x718] sm:$0xff]  ;;  %v1156_v30 = vmul.f32 %v5446_v31, %v5446_v31  ;;  %v1576_v16 = vadd.f32 %v1575_v18, %v1155_v57  ;;  %v1157_v13 = vmul.f32 %v5461_v45, %v5461_v45  ;;  %v389_v29 = vld [vmem:[%s5394_s18 + $0x670] sm:$0xff]  ;;  %v411_v31 = vld [vmem:[%s5394_s18 + $0x720] sm:$0xff] }
  0x5e   : > { %v833_v20 = vadd.f32 %v832_v9, %v387_v54  ;;  %v816_v27 = vadd.f32 %v815_v36, %v372_v28  ;;  %v859_v46 = vadd.f32 %v858_v63, %v409_v1  ;;  %v430_v33 = vld [vmem:[%s5394_s18 + $0x7b8] sm:$0xff]  ;;  %v842_v34 = vadd.f32 %v841_v42, %v394_v55  ;;  %v375_v52 = vld [vmem:[%s5394_s18 + $0x600] sm:$0xff]  ;;  %v396_v39 = vld [vmem:[%s5394_s18 + $0x6a8] sm:$0xff] }
  0x5f   : > { %v792_v40 = vadd.f32 %v791_v24, %v790_v2  ;;  %v374_v15 = vld [vmem:[%s5394_s18 + $0x5f8] sm:$0xff]  ;;  %v885_v8 = vadd.f32 %v431_v5, %v430_v33  ;;  %v1538_v26 = vadd.f32 %v1537_v60, %v5760_v62  ;;  %v433_v45 = vld [vmem:[%s5394_s18 + $0x7d0] sm:$0xff]  ;;  %v5858_v37 = vmul.f32 %v5472_v50, %v5472_v50  ;;  %v412_v62 = vld [vmem:[%s5394_s18 + $0x728] sm:$0xff] }
  0x60   : > { %v834_v25 = vadd.f32 %v833_v20, %v388_v12  ;;  %v817_v47 = vadd.f32 %v816_v27, %v373_v49  ;;  %v860_v43 = vadd.f32 %v859_v46, %v410_v6  ;;  %v836_v58 = vsel %vm610_vm0, %v390_v61, 0.0  ;;  %v377_v17 = vld [vmem:[%s5394_s18 + $0x610] sm:$0xff]  ;;  %v434_v0 = vld [vmem:[%s5394_s18 + $0x7d8] sm:$0xff]  ;;  %v376_v35 = vld [vmem:[%s5394_s18 + $0x608] sm:$0xff] }
  0x61   : > { %793 = vadd.xlane.f32.xlu0 %v792_v40  ;;  %v397_v53 = vld [vmem:[%s5394_s18 + $0x6b0] sm:$0xff]  ;;  %v843_v57 = vadd.f32 %v842_v34, %v395_v10  ;;  %v886_v18 = vadd.f32 %v885_v8, %v432_v4  ;;  %v1577_v14 = vadd.f32 %v1576_v16, %v1156_v30  ;;  %v418_v38 = vld [vmem:[%s5394_s18 + $0x758] sm:$0xff]  ;;  %v5869_v44 = vmul.f32 %v5493_v3, %v5493_v3  ;;  %v419_v59 = vld [vmem:[%s5394_s18 + $0x760] sm:$0xff] }
  0x62   : > { %v835_v56 = vadd.f32 %v834_v25, %v389_v29  ;;  %v818_v32 = vadd.f32 %v817_v47, %v374_v15  ;;  %v861_v7 = vadd.f32 %v860_v43, %v411_v31  ;;  %v417_v50 = vld [vmem:[%s5394_s18 + $0x750] sm:$0xff]  ;;  %v1539_v24 = vadd.f32 %v1538_v26, %v5767_v23  ;;  %v398_v3 = vld [vmem:[%s5394_s18 + $0x6b8] sm:$0xff]  ;;  %v435_v63 = vld [vmem:[%s5394_s18 + $0x7e0] sm:$0xff] }
  0x63   : > { %v413_v54 = vld [vmem:[%s5394_s18 + $0x730] sm:$0xff]  ;;  %v844_v28 = vadd.f32 %v843_v57, %v396_v39  ;;  %v887_v1 = vadd.f32 %v886_v18, %v433_v45  ;;  %v870_v60 = vadd.f32 %v418_v38, %v417_v50  ;;  %v821_v9 = vsel %vm610_vm0, %v377_v17, 0.0  ;;  %v420_v55 = vld [vmem:[%s5394_s18 + $0x768] sm:$0xff]  ;;  %v414_v2 = vld [vmem:[%s5394_s18 + $0x738] sm:$0xff] }
  0x64   : > { %v837_v12 = vadd.f32 %v836_v58, %v835_v56  ;;  %v819_v61 = vadd.f32 %v818_v32, %v375_v52  ;;  %v862_v36 = vadd.f32 %v861_v7, %v412_v62  ;;  %v416_v49 = vld [vmem:[%s5394_s18 + $0x748] sm:$0xff]  ;;  %v399_v6 = vld [vmem:[%s5394_s18 + $0x6c0] sm:$0xff]  ;;  %v1578_v30 = vadd.f32 %v1577_v14, %v1157_v13  ;;  %v421_v46 = vld [vmem:[%s5394_s18 + $0x770] sm:$0xff] }
  0x65   : > { %v845_v10 = vadd.f32 %v844_v28, %v397_v53  ;;  %v888_v42 = vadd.f32 %v887_v1, %v434_v0  ;;  %v871_v23 = vadd.f32 %v870_v60, %v419_v59  ;;  %v436_v27 = vld [vmem:[%s5394_s18 + $0x7e8] sm:$0xff]  ;;  %v5887_v5 = vmul.f32 %v5503_v11, %v5503_v11  ;;  %v415_v13 = vld [vmem:[%s5394_s18 + $0x740] sm:$0xff]  ;;  %v457_v31 = vld [vmem:[%s5394_s18 + $0x890] sm:$0xff] }
  0x66   : > { %838 = vadd.xlane.f32.xlu1 %v837_v12  ;;  %v820_v16 = vadd.f32 %v819_v61, %v376_v35  ;;  %v863_v20 = vadd.f32 %v862_v36, %v413_v54  ;;  %v456_v33 = vld [vmem:[%s5394_s18 + $0x888] sm:$0xff]  ;;  %v5891_v4 = vmul.f32 %v5524_v41, %v5524_v41  ;;  %v458_v34 = vld [vmem:[%s5394_s18 + $0x898] sm:$0xff]  ;;  %v5897_v8 = vadd.f32 %v5829_v21, %v1539_v24  ;;  %v437_v52 = vld [vmem:[%s5394_s18 + $0x7f0] sm:$0xff] }
  0x67   : > { %v846_v40 = vadd.f32 %v845_v10, %v398_v3  ;;  %v889_v29 = vadd.f32 %v888_v42, %v435_v63  ;;  %v872_v15 = vadd.f32 %v871_v23, %v420_v55  ;;  %v866_v25 = vsel %vm610_vm0, %v416_v49, 0.0  ;;  %v400_v41 = vld [vmem:[%s5394_s18 + $0x6c8] sm:$0xff]  ;;  %v422_v47 = vld [vmem:[%s5394_s18 + $0x778] sm:$0xff]  ;;  %v401_v39 = vld [vmem:[%s5394_s18 + $0x6d0] sm:$0xff] }
  0x68   : > { %v822_v26 = vadd.f32 %v821_v9, %v820_v16  ;;  %v864_v11 = vadd.f32 %v863_v20, %v414_v2  ;;  %v915_v43 = vadd.f32 %v457_v31, %v456_v33  ;;  %v403_v45 = vld [vmem:[%s5394_s18 + $0x6e0] sm:$0xff]  ;;  %v1579_v53 = vadd.f32 %v1578_v30, %v5858_v37  ;;  %v438_v18 = vld [vmem:[%s5394_s18 + $0x7f8] sm:$0xff]  ;;  %v460_v56 = vld [vmem:[%s5394_s18 + $0x8a8] sm:$0xff] }
  0x69   : > { %v847_v58 = vadd.f32 %v846_v40, %v399_v6  ;;  %v890_v17 = vadd.f32 %v889_v29, %v436_v27  ;;  %v873_v62 = vadd.f32 %v872_v15, %v421_v46  ;;  %v459_v21 = vld [vmem:[%s5394_s18 + $0x8a0] sm:$0xff]  ;;  %v5912_v7 = vmul.f32 %v5531_v48, %v5531_v48  ;;  %v444_v54 = vld [vmem:[%s5394_s18 + $0x828] sm:$0xff]  ;;  %v445_v28 = vld [vmem:[%s5394_s18 + $0x830] sm:$0xff] }
  0x6a   : > { %823 = vadd.xlane.f32.xlu0 %v822_v26  ;;  %v865_v57 = vadd.f32 %v864_v11, %v415_v13  ;;  %v423_v14 = vld [vmem:[%s5394_s18 + $0x780] sm:$0xff]  ;;  %v916_v32 = vadd.f32 %v915_v43, %v458_v34  ;;  %v5916_v0 = vmul.f32 %v5555_v19, %v5555_v19  ;;  %v4557_v1 = vld [vmem:[%s5394_s18 + $0xd0] sm:$0xff]  ;;  %v402_v24 = vld [vmem:[%s5394_s18 + $0x6d8] sm:$0xff]  ;;  %v1580_v10 = vadd.f32 %v1579_v53, %v5869_v44 }
  0x6b   : > { %v848_v50 = vadd.f32 %v847_v58, %v400_v41  ;;  %v891_v37 = vadd.f32 %v890_v17, %v437_v52  ;;  %v874_v38 = vadd.f32 %v873_v62, %v422_v47  ;;  %v443_v35 = vld [vmem:[%s5394_s18 + $0x820] sm:$0xff]  ;;  %v1139_v59 = vmul.f32 %v4557_v1, %v4557_v1  ;;  %v424_v12 = vld [vmem:[%s5394_s18 + $0x788] sm:$0xff]  ;;  %v4558_v9 = vld [vmem:[%s5394_s18 + $0xd8] sm:$0xff] }
  0x6c   : > { %v867_v60 = vadd.f32 %v866_v25, %v865_v57  ;;  %v439_v48 = vld [vmem:[%s5394_s18 + $0x800] sm:$0xff]  ;;  %v917_v19 = vadd.f32 %v916_v32, %v459_v21  ;;  %v900_v61 = vadd.f32 %v444_v54, %v443_v35  ;;  %v1140_v36 = vmul.f32 %v4558_v9, %v4558_v9  ;;  %v440_v63 = vld [vmem:[%s5394_s18 + $0x808] sm:$0xff]  ;;  %v461_v49 = vld [vmem:[%s5394_s18 + $0x8b0] sm:$0xff] }
  0x6d   : > { %v849_v3 = vadd.f32 %v848_v50, %v401_v39  ;;  %v892_v55 = vadd.f32 %v891_v37, %v438_v18  ;;  %v875_v2 = vadd.f32 %v874_v38, %v423_v14  ;;  %v446_v6 = vld [vmem:[%s5394_s18 + $0x838] sm:$0xff]  ;;  %v851_v42 = vsel %vm610_vm0, %v403_v45, 0.0  ;;  %v425_v30 = vld [vmem:[%s5394_s18 + $0x790] sm:$0xff]  ;;  %v447_v29 = vld [vmem:[%s5394_s18 + $0x840] sm:$0xff] }
  0x6e   : > { %868 = vadd.xlane.f32.xlu1 %v867_v60  ;;  %v442_v23 = vld [vmem:[%s5394_s18 + $0x818] sm:$0xff]  ;;  %v918_v20 = vadd.f32 %v917_v19, %v460_v56  ;;  %v901_v27 = vadd.f32 %v900_v61, %v445_v28  ;;  %v1164_v46 = vmul.f32 %v5534_v51, %v5534_v51  ;;  %v483_v15 = vld [vmem:[%s5394_s18 + $0x960] sm:$0xff]  ;;  %v441_v26 = vld [vmem:[%s5394_s18 + $0x810] sm:$0xff]  ;;  %v1559_v47 = vadd.f32 %v1140_v36, %v1139_v59 }
  0x6f   : > { %v462_v16 = vld [vmem:[%s5394_s18 + $0x8b8] sm:$0xff]  ;;  %v850_v33 = vadd.f32 %v849_v3, %v402_v24  ;;  %v893_v13 = vadd.f32 %v892_v55, %v439_v48  ;;  %v876_v40 = vadd.f32 %v875_v2, %v424_v12  ;;  %v4559_v31 = vld [vmem:[%s5394_s18 + $0xe0] sm:$0xff]  ;;  %v484_v52 = vld [vmem:[%s5394_s18 + $0x968] sm:$0xff]  ;;  %v1581_v21 = vadd.f32 %v1580_v10, %v5887_v5 }
  0x70   : > { %v482_v44 = vld [vmem:[%s5394_s18 + $0x958] sm:$0xff]  ;;  %v1141_v34 = vmul.f32 %v4559_v31, %v4559_v31  ;;  %v919_v25 = vadd.f32 %v918_v20, %v461_v49  ;;  %v902_v41 = vadd.f32 %v901_v27, %v446_v6  ;;  %v463_v58 = vld [vmem:[%s5394_s18 + $0x8c0] sm:$0xff]  ;;  %v448_v17 = vld [vmem:[%s5394_s18 + $0x848] sm:$0xff]  ;;  %v896_v53 = vsel %vm610_vm0, %v442_v23, 0.0 }
  0x71   : > { %v426_v11 = vld [vmem:[%s5394_s18 + $0x798] sm:$0xff]  ;;  %v945_v51 = vadd.f32 %v483_v15, %v482_v44  ;;  %v852_v43 = vadd.f32 %v851_v42, %v850_v33  ;;  %v894_v39 = vadd.f32 %v893_v13, %v440_v63  ;;  %v877_v45 = vadd.f32 %v876_v40, %v425_v30  ;;  %v485_v62 = vld [vmem:[%s5394_s18 + $0x970] sm:$0xff]  ;;  %v427_v57 = vld [vmem:[%s5394_s18 + $0x7a0] sm:$0xff] }
  0x72   : > { %v429_v18 = vld [vmem:[%s5394_s18 + $0x7b0] sm:$0xff]  ;;  %v464_v14 = vld [vmem:[%s5394_s18 + $0x8c8] sm:$0xff]  ;;  %v920_v56 = vadd.f32 %v919_v25, %v462_v16  ;;  %v903_v32 = vadd.f32 %v902_v41, %v447_v29  ;;  %v486_v54 = vld [vmem:[%s5394_s18 + $0x978] sm:$0xff]  ;;  %v5955_v28 = vsel %vm610_vm0, %v1164_v46, 0.0  ;;  %v1560_v9 = vadd.f32 %v1559_v47, %v1141_v34 }
  0x73   : > { %v946_v50 = vadd.f32 %v945_v51, %v484_v52  ;;  %853 = vadd.xlane.f32.xlu0 %v852_v43  ;;  %v895_v37 = vadd.f32 %v894_v39, %v441_v26  ;;  %v878_v38 = vadd.f32 %v877_v45, %v426_v11  ;;  %v449_v35 = vld [vmem:[%s5394_s18 + $0x850] sm:$0xff]  ;;  %v4560_v1 = vld [vmem:[%s5394_s18 + $0xe8] sm:$0xff]  ;;  %v470_v19 = vld [vmem:[%s5394_s18 + $0x8f8] sm:$0xff]  ;;  %v1582_v6 = vadd.f32 %v1581_v21, %v5891_v4 }
  0x74   : > { %v469_v5 = vld [vmem:[%s5394_s18 + $0x8f0] sm:$0xff]  ;;  %v1142_v59 = vmul.f32 %v4560_v1, %v4560_v1  ;;  %v428_v60 = vld [vmem:[%s5394_s18 + $0x7a8] sm:$0xff]  ;;  %v921_v24 = vadd.f32 %v920_v56, %v463_v58  ;;  %v904_v48 = vadd.f32 %v903_v32, %v448_v17  ;;  %v471_v61 = vld [vmem:[%s5394_s18 + $0x900] sm:$0xff]  ;;  %v881_v10 = vsel %vm610_vm0, %v429_v18, 0.0 }
  0x75   : > { %v947_v12 = vadd.f32 %v946_v50, %v485_v62  ;;  %v897_v36 = vadd.f32 %v896_v53, %v895_v37  ;;  %v879_v3 = vadd.f32 %v878_v38, %v427_v57  ;;  %v465_v63 = vld [vmem:[%s5394_s18 + $0x8d0] sm:$0xff]  ;;  %v450_v55 = vld [vmem:[%s5394_s18 + $0x858] sm:$0xff]  ;;  %v487_v2 = vld [vmem:[%s5394_s18 + $0x980] sm:$0xff]  ;;  %v930_v49 = vadd.f32 %v470_v19, %v469_v5 }
  0x76   : > { %v466_v42 = vld [vmem:[%s5394_s18 + $0x8d8] sm:$0xff]  ;;  %v468_v23 = vld [vmem:[%s5394_s18 + $0x8e8] sm:$0xff]  ;;  %v922_v30 = vadd.f32 %v921_v24, %v464_v14  ;;  %v905_v16 = vadd.f32 %v904_v48, %v449_v35  ;;  %v451_v33 = vld [vmem:[%s5394_s18 + $0x860] sm:$0xff]  ;;  %v1561_v51 = vadd.f32 %v1560_v9, %v1142_v59  ;;  %v1583_v62 = vadd.f32 %v1582_v6, %v5912_v7 }
  0x77   : > { %v948_v20 = vadd.f32 %v947_v12, %v486_v54  ;;  %v472_v27 = vld [vmem:[%s5394_s18 + $0x908] sm:$0xff]  ;;  %898 = vadd.xlane.f32.xlu1 %v897_v36  ;;  %v880_v46 = vadd.f32 %v879_v3, %v428_v60  ;;  %v473_v40 = vld [vmem:[%s5394_s18 + $0x910] sm:$0xff]  ;;  %v931_v4 = vadd.f32 %v930_v49, %v471_v61  ;;  %v4562_v15 = vld [vmem:[%s5394_s18 + $0xf8] sm:$0xff]  ;;  %v926_v37 = vsel %vm610_vm0, %v468_v23, 0.0 }
  0x78   : > { %v488_v13 = vld [vmem:[%s5394_s18 + $0x988] sm:$0xff]  ;;  %v4561_v29 = vld [vmem:[%s5394_s18 + $0xf0] sm:$0xff]  ;;  %v5974_v31 = vmul.f32 %v4562_v15, %v4562_v15  ;;  %v923_v34 = vadd.f32 %v922_v30, %v465_v63  ;;  %v906_v26 = vadd.f32 %v905_v16, %v450_v55  ;;  %v510_v52 = vld [vmem:[%s5394_s18 + $0xa38] sm:$0xff]  ;;  %v1584_v6 = vadd.f32 %v1583_v62, %v5916_v0 }
  0x79   : > { %v1143_v44 = vmul.f32 %v4561_v29, %v4561_v29  ;;  %v949_v11 = vadd.f32 %v948_v20, %v487_v2  ;;  %v508_v25 = vld [vmem:[%s5394_s18 + $0xa28] sm:$0xff]  ;;  %v509_v41 = vld [vmem:[%s5394_s18 + $0xa30] sm:$0xff]  ;;  %v882_v47 = vadd.f32 %v881_v10, %v880_v46  ;;  %v467_v43 = vld [vmem:[%s5394_s18 + $0x8e0] sm:$0xff]  ;;  %v932_v58 = vadd.f32 %v931_v4, %v472_v27 }
  0x7a   : > { %v452_v39 = vld [vmem:[%s5394_s18 + $0x868] sm:$0xff]  ;;  %v489_v45 = vld [vmem:[%s5394_s18 + $0x990] sm:$0xff]  ;;  %v975_v17 = vadd.f32 %v509_v41, %v508_v25  ;;  %v924_v21 = vadd.f32 %v923_v34, %v466_v42  ;;  %v907_v57 = vadd.f32 %v906_v26, %v451_v33  ;;  %v474_v14 = vld [vmem:[%s5394_s18 + $0x918] sm:$0xff]  ;;  %v6024_v62 = vadd.f32 %v5955_v28, %v1584_v6 }
  0x7b   : > { %v453_v53 = vld [vmem:[%s5394_s18 + $0x870] sm:$0xff]  ;;  %v950_v18 = vadd.f32 %v949_v11, %v488_v13  ;;  %v511_v56 = vld [vmem:[%s5394_s18 + $0xa40] sm:$0xff]  ;;  %883 = vadd.xlane.f32.xlu0 %v882_v47  ;;  %v490_v7 = vld [vmem:[%s5394_s18 + $0x998] sm:$0xff]  ;;  %v933_v54 = vadd.f32 %v932_v58, %v473_v40  ;;  %v1562_v9 = vadd.f32 %v1561_v51, %v1143_v44 }
  0x7c   : > { %v4563_v32 = vld [vmem:[%s5394_s18 + $0x100] sm:$0xff]  ;;  %v976_v5 = vadd.f32 %v975_v17, %v510_v52  ;;  %v4564_v1 = vld [vmem:[%s5394_s18 + $0x108] sm:$0xff]  ;;  %v925_v60 = vadd.f32 %v924_v21, %v467_v43  ;;  %v908_v24 = vadd.f32 %v907_v57, %v452_v39  ;;  %v454_v36 = vld [vmem:[%s5394_s18 + $0x878] sm:$0xff] }
  0x7d   : > { %v5987_v50 = vmul.f32 %v4563_v32, %v4563_v32  ;;  %v455_v38 = vld [vmem:[%s5394_s18 + $0x880] sm:$0xff]  ;;  %v5994_v59 = vmul.f32 %v4564_v1, %v4564_v1  ;;  %v951_v48 = vadd.f32 %v950_v18, %v489_v45  ;;  %v512_v12 = vld [vmem:[%s5394_s18 + $0xa48] sm:$0xff]  ;;  %v934_v63 = vadd.f32 %v933_v54, %v474_v14  ;;  %v497_v2 = vld [vmem:[%s5394_s18 + $0x9d0] sm:$0xff] }
  0x7e   : > { %v475_v35 = vld [vmem:[%s5394_s18 + $0x920] sm:$0xff]  ;;  %v496_v61 = vld [vmem:[%s5394_s18 + $0x9c8] sm:$0xff]  ;;  %v977_v55 = vadd.f32 %v976_v5, %v511_v56  ;;  %v927_v10 = vadd.f32 %v926_v37, %v925_v60  ;;  %v909_v42 = vadd.f32 %v908_v24, %v453_v53  ;;  %v513_v16 = vld [vmem:[%s5394_s18 + $0xa50] sm:$0xff]  ;;  %v911_v33 = vsel %vm610_vm0, %v455_v38, 0.0 }
  0x7f   : > { %v495_v19 = vld [vmem:[%s5394_s18 + $0x9c0] sm:$0xff]  ;;  %v952_v23 = vadd.f32 %v951_v48, %v490_v7  ;;  %v476_v30 = vld [vmem:[%s5394_s18 + $0x928] sm:$0xff]  ;;  %v498_v20 = vld [vmem:[%s5394_s18 + $0x9d8] sm:$0xff]  ;;  %v935_v0 = vadd.f32 %v934_v63, %v475_v35  ;;  %v1563_v51 = vadd.f32 %v1562_v9, %v5974_v31 }
  0x80   : > { %v491_v3 = vld [vmem:[%s5394_s18 + $0x9a0] sm:$0xff]  ;;  %v960_v49 = vadd.f32 %v496_v61, %v495_v19  ;;  %v4565_v27 = vld [vmem:[%s5394_s18 + $0x110] sm:$0xff]  ;;  %v492_v13 = vld [vmem:[%s5394_s18 + $0x9a8] sm:$0xff]  ;;  %v978_v29 = vadd.f32 %v977_v55, %v512_v12  ;;  %928 = vadd.xlane.f32.xlu1 %v927_v10  ;;  %v910_v15 = vadd.f32 %v909_v42, %v454_v36 }
  0x81   : > { %v6007_v46 = vmul.f32 %v4565_v27, %v4565_v27  ;;  %v494_v40 = vld [vmem:[%s5394_s18 + $0x9b8] sm:$0xff]  ;;  %v477_v4 = vld [vmem:[%s5394_s18 + $0x930] sm:$0xff]  ;;  %v953_v34 = vadd.f32 %v952_v23, %v491_v3  ;;  %v499_v11 = vld [vmem:[%s5394_s18 + $0x9e0] sm:$0xff]  ;;  %v936_v43 = vadd.f32 %v935_v0, %v476_v30  ;;  %v1564_v19 = vadd.f32 %v1563_v51, %v5987_v50 }
  0x82   : > { %v961_v44 = vadd.f32 %v960_v49, %v497_v2  ;;  %v514_v26 = vld [vmem:[%s5394_s18 + $0xa58] sm:$0xff]  ;;  %v493_v47 = vld [vmem:[%s5394_s18 + $0x9b0] sm:$0xff]  ;;  %v979_v39 = vadd.f32 %v978_v29, %v513_v16  ;;  %v535_v58 = vld [vmem:[%s5394_s18 + $0xb00] sm:$0xff]  ;;  %v912_v21 = vadd.f32 %v911_v33, %v910_v15  ;;  %v956_v37 = vsel %vm610_vm0, %v494_v40, 0.0 }
  0x83   : > { %v534_v25 = vld [vmem:[%s5394_s18 + $0xaf8] sm:$0xff]  ;;  %v536_v17 = vld [vmem:[%s5394_s18 + $0xb08] sm:$0xff]  ;;  %v954_v53 = vadd.f32 %v953_v34, %v492_v13  ;;  %v515_v18 = vld [vmem:[%s5394_s18 + $0xa60] sm:$0xff]  ;;  %v937_v35 = vadd.f32 %v936_v43, %v477_v4  ;;  %v1565_v51 = vadd.f32 %v1564_v19, %v5994_v59 }
  0x84   : > { %v4566_v41 = vld [vmem:[%s5394_s18 + $0x118] sm:$0xff]  ;;  %v962_v45 = vadd.f32 %v961_v44, %v498_v20  ;;  %v500_v31 = vld [vmem:[%s5394_s18 + $0x9e8] sm:$0xff]  ;;  %v1005_v14 = vadd.f32 %v535_v58, %v534_v25  ;;  %v4567_v56 = vld [vmem:[%s5394_s18 + $0x120] sm:$0xff]  ;;  %v980_v28 = vadd.f32 %v979_v39, %v514_v26  ;;  %913 = vadd.xlane.f32.xlu0 %v912_v21 }
  0x85   : > { %v6017_v52 = vmul.f32 %v4566_v41, %v4566_v41  ;;  %v478_v57 = vld [vmem:[%s5394_s18 + $0x938] sm:$0xff]  ;;  %v6030_v32 = vmul.f32 %v4567_v56, %v4567_v56  ;;  %v479_v38 = vld [vmem:[%s5394_s18 + $0x940] sm:$0xff]  ;;  %v481_v7 = vld [vmem:[%s5394_s18 + $0x950] sm:$0xff]  ;;  %v955_v1 = vadd.f32 %v954_v53, %v493_v47 }
  0x86   : > { %v963_v54 = vadd.f32 %v962_v45, %v499_v11  ;;  %v537_v5 = vld [vmem:[%s5394_s18 + $0xb10] sm:$0xff]  ;;  %v516_v60 = vld [vmem:[%s5394_s18 + $0xa68] sm:$0xff]  ;;  %v538_v48 = vld [vmem:[%s5394_s18 + $0xb18] sm:$0xff]  ;;  %v1006_v12 = vadd.f32 %v1005_v14, %v536_v17  ;;  %v938_v36 = vadd.f32 %v937_v35, %v478_v57  ;;  %v981_v3 = vadd.f32 %v980_v28, %v515_v18 }
  0x87   : > { %v501_v24 = vld [vmem:[%s5394_s18 + $0x9f0] sm:$0xff]  ;;  %v4568_v61 = vld [vmem:[%s5394_s18 + $0x208] sm:$0xff]  ;;  %v522_v2 = vld [vmem:[%s5394_s18 + $0xa98] sm:$0xff]  ;;  %v957_v42 = vadd.f32 %v956_v37, %v955_v1  ;;  %v941_v40 = vsel %vm610_vm0, %v481_v7, 0.0 }
  0x88   : > { %v1178_v9 = vmul.f32 %v4568_v61, %v4568_v61  ;;  %v964_v63 = vadd.f32 %v963_v54, %v500_v31  ;;  %v521_v55 = vld [vmem:[%s5394_s18 + $0xa90] sm:$0xff]  ;;  %v523_v49 = vld [vmem:[%s5394_s18 + $0xaa0] sm:$0xff]  ;;  %v480_v23 = vld [vmem:[%s5394_s18 + $0x948] sm:$0xff]  ;;  %v1007_v16 = vadd.f32 %v1006_v12, %v537_v5  ;;  %v939_v13 = vadd.f32 %v938_v36, %v479_v38 }
  0x89   : > { %v4569_v6 = vld [vmem:[%s5394_s18 + $0x210] sm:$0xff]  ;;  %v502_v50 = vld [vmem:[%s5394_s18 + $0x9f8] sm:$0xff]  ;;  %v990_v20 = vadd.f32 %v522_v2, %v521_v55  ;;  %v982_v0 = vadd.f32 %v981_v3, %v516_v60  ;;  %v539_v44 = vld [vmem:[%s5394_s18 + $0xb20] sm:$0xff]  ;;  %958 = vadd.xlane.f32.xlu1 %v957_v42 }
  0x8a   : > { %v1179_v10 = vmul.f32 %v4569_v6, %v4569_v6  ;;  %v517_v30 = vld [vmem:[%s5394_s18 + $0xa70] sm:$0xff]  ;;  %v4570_v27 = vld [vmem:[%s5394_s18 + $0x218] sm:$0xff]  ;;  %v965_v29 = vadd.f32 %v964_v63, %v501_v24  ;;  %v524_v15 = vld [vmem:[%s5394_s18 + $0xaa8] sm:$0xff]  ;;  %v1008_v25 = vadd.f32 %v1007_v16, %v538_v48  ;;  %v940_v39 = vadd.f32 %v939_v13, %v480_v23 }
  0x8b   : > { %v1180_v33 = vmul.f32 %v4570_v27, %v4570_v27  ;;  %v518_v4 = vld [vmem:[%s5394_s18 + $0xa78] sm:$0xff]  ;;  %v520_v34 = vld [vmem:[%s5394_s18 + $0xa88] sm:$0xff]  ;;  %v503_v26 = vld [vmem:[%s5394_s18 + $0xa00] sm:$0xff]  ;;  %v991_v41 = vadd.f32 %v990_v20, %v523_v49  ;;  %v983_v45 = vadd.f32 %v982_v0, %v517_v30  ;;  %v1566_v13 = vadd.f32 %v1565_v51, %v6007_v46 }
  0x8c   : > { %v540_v11 = vld [vmem:[%s5394_s18 + $0xb28] sm:$0xff]  ;;  %v4571_v47 = vld [vmem:[%s5394_s18 + $0x220] sm:$0xff]  ;;  %v966_v58 = vadd.f32 %v965_v29, %v502_v50  ;;  %v525_v17 = vld [vmem:[%s5394_s18 + $0xab0] sm:$0xff]  ;;  %v1604_v57 = vadd.f32 %v1179_v10, %v1178_v9  ;;  %v1009_v14 = vadd.f32 %v1008_v25, %v539_v44  ;;  %v942_v35 = vadd.f32 %v941_v40, %v940_v39 }
  0x8d   : > { %v1181_v43 = vmul.f32 %v4571_v47, %v4571_v47  ;;  %v560_v21 = vld [vmem:[%s5394_s18 + $0xbc8] sm:$0xff]  ;;  %v561_v53 = vld [vmem:[%s5394_s18 + $0xbd0] sm:$0xff]  ;;  %v519_v18 = vld [vmem:[%s5394_s18 + $0xa80] sm:$0xff]  ;;  %v992_v59 = vadd.f32 %v991_v41, %v524_v15  ;;  %v984_v28 = vadd.f32 %v983_v45, %v518_v4  ;;  %v986_v48 = vsel %vm610_vm0, %v520_v34, 0.0 }
  0x8e   : > { %v504_v31 = vld [vmem:[%s5394_s18 + $0xa08] sm:$0xff]  ;;  %v562_v56 = vld [vmem:[%s5394_s18 + $0xbd8] sm:$0xff]  ;;  %v1035_v37 = vadd.f32 %v561_v53, %v560_v21  ;;  %v967_v54 = vadd.f32 %v966_v58, %v503_v26  ;;  %v541_v5 = vld [vmem:[%s5394_s18 + $0xb30] sm:$0xff]  ;;  %v1605_v24 = vadd.f32 %v1604_v57, %v1180_v33  ;;  %v1010_v9 = vadd.f32 %v1009_v14, %v540_v11  ;;  %943 = vadd.xlane.f32.xlu0 %v942_v35 }
  0x8f   : > { %v4572_v38 = vld [vmem:[%s5394_s18 + $0x228] sm:$0xff]  ;;  %v526_v1 = vld [vmem:[%s5394_s18 + $0xab8] sm:$0xff]  ;;  %v563_v60 = vld [vmem:[%s5394_s18 + $0xbe0] sm:$0xff]  ;;  %v993_v36 = vadd.f32 %v992_v59, %v525_v17  ;;  %v985_v63 = vadd.f32 %v984_v28, %v519_v18 }
  0x90   : > { %v1182_v7 = vmul.f32 %v4572_v38, %v4572_v38  ;;  %v505_v12 = vld [vmem:[%s5394_s18 + $0xa10] sm:$0xff]  ;;  %v507_v19 = vld [vmem:[%s5394_s18 + $0xa20] sm:$0xff]  ;;  %v542_v61 = vld [vmem:[%s5394_s18 + $0xb38] sm:$0xff]  ;;  %v1036_v3 = vadd.f32 %v1035_v37, %v562_v56  ;;  %v968_v55 = vadd.f32 %v967_v54, %v504_v31  ;;  %v1606_v23 = vadd.f32 %v1605_v24, %v1181_v43 }
  0x91   : > { %v527_v2 = vld [vmem:[%s5394_s18 + $0xac0] sm:$0xff]  ;;  %v564_v49 = vld [vmem:[%s5394_s18 + $0xbe8] sm:$0xff]  ;;  %v4573_v10 = vld [vmem:[%s5394_s18 + $0x230] sm:$0xff]  ;;  %v1011_v50 = vadd.f32 %v1010_v9, %v541_v5  ;;  %v994_v16 = vadd.f32 %v993_v36, %v526_v1  ;;  %v987_v40 = vadd.f32 %v986_v48, %v985_v63  ;;  %v971_v0 = vsel %vm610_vm0, %v507_v19, 0.0 }
  0x92   : > { %v547_v6 = vld [vmem:[%s5394_s18 + $0xb60] sm:$0xff]  ;;  %v1183_v42 = vmul.f32 %v4573_v10, %v4573_v10  ;;  %v506_v30 = vld [vmem:[%s5394_s18 + $0xa18] sm:$0xff]  ;;  %v1037_v20 = vadd.f32 %v1036_v3, %v563_v60  ;;  %v548_v27 = vld [vmem:[%s5394_s18 + $0xb68] sm:$0xff]  ;;  %v969_v4 = vadd.f32 %v968_v55, %v505_v12  ;;  %v1607_v51 = vadd.f32 %v1606_v23, %v1182_v7 }
  0x93   : > { %v549_v33 = vld [vmem:[%s5394_s18 + $0xb70] sm:$0xff]  ;;  %v543_v29 = vld [vmem:[%s5394_s18 + $0xb40] sm:$0xff]  ;;  %v528_v44 = vld [vmem:[%s5394_s18 + $0xac8] sm:$0xff]  ;;  %v1020_v34 = vadd.f32 %v548_v27, %v547_v6  ;;  %v1012_v25 = vadd.f32 %v1011_v50, %v542_v61  ;;  %v995_v41 = vadd.f32 %v994_v16, %v527_v2  ;;  %988 = vadd.xlane.f32.xlu1 %v987_v40  ;;  %v1567_v7 = vadd.f32 %v1566_v13, %v6017_v52 }
  0x94   : > { %v565_v15 = vld [vmem:[%s5394_s18 + $0xbf0] sm:$0xff]  ;;  %v544_v26 = vld [vmem:[%s5394_s18 + $0xb48] sm:$0xff]  ;;  %v546_v11 = vld [vmem:[%s5394_s18 + $0xb58] sm:$0xff]  ;;  %v1038_v47 = vadd.f32 %v1037_v20, %v564_v49  ;;  %v970_v43 = vadd.f32 %v969_v4, %v506_v30  ;;  %v1608_v3 = vadd.f32 %v1607_v51, %v1183_v42 }
  0x95   : > { %v550_v46 = vld [vmem:[%s5394_s18 + $0xb78] sm:$0xff]  ;;  %v529_v39 = vld [vmem:[%s5394_s18 + $0xad0] sm:$0xff]  ;;  %v551_v58 = vld [vmem:[%s5394_s18 + $0xb80] sm:$0xff]  ;;  %v1021_v17 = vadd.f32 %v1020_v34, %v549_v33  ;;  %v1013_v31 = vadd.f32 %v1012_v25, %v543_v29  ;;  %v996_v14 = vadd.f32 %v995_v41, %v528_v44  ;;  %v1016_v63 = vsel %vm610_vm0, %v546_v11, 0.0 }
  0x96   : > { %v566_v45 = vld [vmem:[%s5394_s18 + $0xbf8] sm:$0xff]  ;;  %v4574_v21 = vld [vmem:[%s5394_s18 + $0x128] sm:$0xff]  ;;  %v4575_v57 = vld [vmem:[%s5394_s18 + $0x130] sm:$0xff]  ;;  %v1039_v59 = vadd.f32 %v1038_v47, %v565_v15  ;;  %v972_v35 = vadd.f32 %v971_v0, %v970_v43  ;;  %v1568_v33 = vadd.f32 %v1567_v7, %v6030_v32 }
  0x97   : > { %v6091_v53 = vmul.f32 %v4574_v21, %v4574_v21  ;;  %v1151_v18 = vmul.f32 %v4575_v57, %v4575_v57  ;;  %v586_v56 = vld [vmem:[%s5394_s18 + $0xc98] sm:$0xff]  ;;  %v587_v37 = vld [vmem:[%s5394_s18 + $0xca0] sm:$0xff]  ;;  %v588_v38 = vld [vmem:[%s5394_s18 + $0xca8] sm:$0xff]  ;;  %v1022_v1 = vadd.f32 %v1021_v17, %v550_v46  ;;  %v1014_v12 = vadd.f32 %v1013_v31, %v544_v26 }
  0x98   : > { %v545_v28 = vld [vmem:[%s5394_s18 + $0xb50] sm:$0xff]  ;;  %v530_v54 = vld [vmem:[%s5394_s18 + $0xad8] sm:$0xff]  ;;  %v567_v5 = vld [vmem:[%s5394_s18 + $0xc00] sm:$0xff]  ;;  %v1065_v60 = vadd.f32 %v587_v37, %v586_v56  ;;  %v997_v61 = vadd.f32 %v996_v14, %v529_v39  ;;  %v1040_v9 = vadd.f32 %v1039_v59, %v566_v45  ;;  %973 = vadd.xlane.f32.xlu0 %v972_v35 }
  0x99   : > { %v4576_v24 = vld [vmem:[%s5394_s18 + $0x238] sm:$0xff]  ;;  %v531_v19 = vld [vmem:[%s5394_s18 + $0xae0] sm:$0xff]  ;;  %v552_v36 = vld [vmem:[%s5394_s18 + $0xb88] sm:$0xff]  ;;  %v1023_v6 = vadd.f32 %v1022_v1, %v551_v58  ;;  %v1570_v23 = vsel %vm610_vm0, %v1151_v18, 0.0  ;;  %v1015_v30 = vadd.f32 %v1014_v12, %v545_v28  ;;  %v1569_v59 = vadd.f32 %v1568_v33, %v6091_v53 }
  0x9a   : > { %v1184_v48 = vmul.f32 %v4576_v24, %v4576_v24  ;;  %v589_v52 = vld [vmem:[%s5394_s18 + $0xcb0] sm:$0xff]  ;;  %v568_v2 = vld [vmem:[%s5394_s18 + $0xc08] sm:$0xff]  ;;  %v1066_v10 = vadd.f32 %v1065_v60, %v588_v38  ;;  %v998_v50 = vadd.f32 %v997_v61, %v530_v54  ;;  %v1041_v16 = vadd.f32 %v1040_v9, %v567_v5  ;;  %v590_v20 = vld [vmem:[%s5394_s18 + $0xcb8] sm:$0xff] }
  0x9b   : > { %v533_v55 = vld [vmem:[%s5394_s18 + $0xaf0] sm:$0xff]  ;;  %v574_v27 = vld [vmem:[%s5394_s18 + $0xc38] sm:$0xff]  ;;  %v532_v13 = vld [vmem:[%s5394_s18 + $0xae8] sm:$0xff]  ;;  %v1024_v4 = vadd.f32 %v1023_v6, %v552_v36  ;;  %v1017_v26 = vadd.f32 %v1016_v63, %v1015_v30  ;;  %v6139_v6 = vadd.f32 %v1570_v23, %v1569_v59 }
  0x9c   : > { %v553_v49 = vld [vmem:[%s5394_s18 + $0xb90] sm:$0xff]  ;;  %v1067_v0 = vadd.f32 %v1066_v10, %v589_v52  ;;  %v575_v29 = vld [vmem:[%s5394_s18 + $0xc40] sm:$0xff]  ;;  %v999_v11 = vadd.f32 %v998_v50, %v531_v19  ;;  %v1042_v25 = vadd.f32 %v1041_v16, %v568_v2  ;;  %v554_v41 = vld [vmem:[%s5394_s18 + $0xb98] sm:$0xff]  ;;  %v1609_v46 = vadd.f32 %v1608_v3, %v1184_v48 }
  0x9d   : > { %v573_v42 = vld [vmem:[%s5394_s18 + $0xc30] sm:$0xff]  ;;  %v4577_v15 = vld [vmem:[%s5394_s18 + $0x240] sm:$0xff]  ;;  %v576_v32 = vld [vmem:[%s5394_s18 + $0xc48] sm:$0xff]  ;;  %v1001_v51 = vsel %vm610_vm0, %v533_v55, 0.0  ;;  %v1025_v45 = vadd.f32 %v1024_v4, %v553_v49  ;;  %1018 = vadd.xlane.f32.xlu1 %v1017_v26 }
  0x9e   : > { %v569_v40 = vld [vmem:[%s5394_s18 + $0xc10] sm:$0xff]  ;;  %v1050_v44 = vadd.f32 %v574_v27, %v573_v42  ;;  %v1185_v34 = vmul.f32 %v4577_v15, %v4577_v15  ;;  %v591_v47 = vld [vmem:[%s5394_s18 + $0xcc0] sm:$0xff]  ;;  %v570_v43 = vld [vmem:[%s5394_s18 + $0xc18] sm:$0xff]  ;;  %v1068_v58 = vadd.f32 %v1067_v0, %v590_v20  ;;  %v1000_v21 = vadd.f32 %v999_v11, %v532_v13 }
  0x9f   : > { %v572_v39 = vld [vmem:[%s5394_s18 + $0xc28] sm:$0xff]  ;;  %v1043_v57 = vadd.f32 %v1042_v25, %v569_v40  ;;  %v555_v18 = vld [vmem:[%s5394_s18 + $0xba0] sm:$0xff]  ;;  %v577_v14 = vld [vmem:[%s5394_s18 + $0xc50] sm:$0xff]  ;;  %v1026_v7 = vadd.f32 %v1025_v45, %v554_v41 }
  0xa0   : > { %v1051_v17 = vadd.f32 %v1050_v44, %v575_v29  ;;  %v592_v31 = vld [vmem:[%s5394_s18 + $0xcc8] sm:$0xff]  ;;  %v571_v38 = vld [vmem:[%s5394_s18 + $0xc20] sm:$0xff]  ;;  %v1069_v35 = vadd.f32 %v1068_v58, %v591_v47  ;;  %v1002_v1 = vadd.f32 %v1001_v51, %v1000_v21  ;;  %v593_v48 = vld [vmem:[%s5394_s18 + $0xcd0] sm:$0xff]  ;;  %v1610_v19 = vadd.f32 %v1609_v46, %v1185_v34 }
  0xa1   : > { %v4578_v56 = vld [vmem:[%s5394_s18 + $0x248] sm:$0xff]  ;;  %v4579_v54 = vld [vmem:[%s5394_s18 + $0x1a0] sm:$0xff]  ;;  %v1044_v60 = vadd.f32 %v1043_v57, %v570_v43  ;;  %v578_v12 = vld [vmem:[%s5394_s18 + $0xc58] sm:$0xff]  ;;  %v1046_v9 = vsel %vm610_vm0, %v572_v39, 0.0  ;;  %v1027_v36 = vadd.f32 %v1026_v7, %v555_v18 }
  0xa2   : > { %v1186_v37 = vmul.f32 %v4578_v56, %v4578_v56  ;;  %v1052_v28 = vadd.f32 %v1051_v17, %v576_v32  ;;  %v1165_v5 = vmul.f32 %v4579_v54, %v4579_v54  ;;  %v556_v24 = vld [vmem:[%s5394_s18 + $0xba8] sm:$0xff]  ;;  %v1070_v52 = vadd.f32 %v1069_v35, %v592_v31  ;;  %1003 = vadd.xlane.f32.xlu0 %v1002_v1  ;;  %v557_v55 = vld [vmem:[%s5394_s18 + $0xbb0] sm:$0xff]  ;;  %v594_v2 = vld [vmem:[%s5394_s18 + $0xcd8] sm:$0xff] }
  0xa3   : > { %v4580_v53 = vld [vmem:[%s5394_s18 + $0x1a8] sm:$0xff]  ;;  %v1045_v63 = vadd.f32 %v1044_v60, %v571_v38  ;;  %v579_v49 = vld [vmem:[%s5394_s18 + $0xc60] sm:$0xff]  ;;  %v4581_v10 = vld [vmem:[%s5394_s18 + $0x250] sm:$0xff]  ;;  %v1028_v42 = vadd.f32 %v1027_v36, %v556_v24 }
  0xa4   : > { %v1166_v61 = vmul.f32 %v4580_v53, %v4580_v53  ;;  %v1053_v3 = vadd.f32 %v1052_v28, %v577_v14  ;;  %v1187_v30 = vmul.f32 %v4581_v10, %v4581_v10  ;;  %v4582_v50 = vld [vmem:[%s5394_s18 + $0x1b0] sm:$0xff]  ;;  %v559_v20 = vld [vmem:[%s5394_s18 + $0xbc0] sm:$0xff]  ;;  %v1071_v27 = vadd.f32 %v1070_v52, %v593_v48  ;;  %v4583_v13 = vld [vmem:[%s5394_s18 + $0x258] sm:$0xff] }
  0xa5   : > { %v1167_v16 = vmul.f32 %v4582_v50, %v4582_v50  ;;  %v1188_v40 = vmul.f32 %v4583_v13, %v4583_v13  ;;  %v1047_v4 = vadd.f32 %v1046_v9, %v1045_v63  ;;  %v558_v0 = vld [vmem:[%s5394_s18 + $0xbb8] sm:$0xff]  ;;  %v595_v29 = vld [vmem:[%s5394_s18 + $0xce0] sm:$0xff]  ;;  %v580_v23 = vld [vmem:[%s5394_s18 + $0xc68] sm:$0xff]  ;;  %v1611_v44 = vadd.f32 %v1610_v19, %v1186_v37 }
  0xa6   : > { %v1054_v33 = vadd.f32 %v1053_v3, %v578_v12  ;;  %v4584_v15 = vld [vmem:[%s5394_s18 + $0x1b8] sm:$0xff]  ;;  %v1589_v26 = vadd.f32 %v1166_v61, %v1165_v5  ;;  %v1029_v11 = vadd.f32 %v1028_v42, %v557_v55  ;;  %v1072_v25 = vadd.f32 %v1071_v27, %v594_v2  ;;  %v4585_v47 = vld [vmem:[%s5394_s18 + $0x268] sm:$0xff]  ;;  %v581_v43 = vld [vmem:[%s5394_s18 + $0xc70] sm:$0xff] }
  0xa7   : > { %v1168_v34 = vmul.f32 %v4584_v15, %v4584_v15  ;;  %v1190_v32 = vmul.f32 %v4585_v47, %v4585_v47  ;;  %1048 = vadd.xlane.f32.xlu1 %v1047_v4  ;;  %v1031_v46 = vsel %vm610_vm0, %v559_v20, 0.0  ;;  %v596_v51 = vld [vmem:[%s5394_s18 + $0xce8] sm:$0xff]  ;;  %v4586_v39 = vld [vmem:[%s5394_s18 + $0x1c0] sm:$0xff]  ;;  %v4587_v17 = vld [vmem:[%s5394_s18 + $0x2d8] sm:$0xff]  ;;  %v1612_v28 = vadd.f32 %v1611_v44, %v1187_v30 }
  0xa8   : > { %v1055_v41 = vadd.f32 %v1054_v33, %v579_v49  ;;  %v1169_v45 = vmul.f32 %v4586_v39, %v4586_v39  ;;  %v1590_v58 = vadd.f32 %v1589_v26, %v1167_v16  ;;  %v1204_v21 = vmul.f32 %v4587_v17, %v4587_v17  ;;  %v598_v18 = vld [vmem:[%s5394_s18 + $0xcf8] sm:$0xff]  ;;  %v4588_v59 = vld [vmem:[%s5394_s18 + $0x2e0] sm:$0xff]  ;;  %v597_v37 = vld [vmem:[%s5394_s18 + $0xcf0] sm:$0xff] }
  0xa9   : > { %v1030_v57 = vadd.f32 %v1029_v11, %v558_v0  ;;  %v1073_v31 = vadd.f32 %v1072_v25, %v595_v29  ;;  %v1205_v56 = vmul.f32 %v4588_v59, %v4588_v59  ;;  %v582_v38 = vld [vmem:[%s5394_s18 + $0xc78] sm:$0xff]  ;;  %v4589_v7 = vld [vmem:[%s5394_s18 + $0x260] sm:$0xff]  ;;  %v4590_v54 = vld [vmem:[%s5394_s18 + $0x1c8] sm:$0xff]  ;;  %v1076_v61 = vsel %vm610_vm0, %v598_v18, 0.0 }
  0xaa   : > { %v1056_v14 = vadd.f32 %v1055_v41, %v580_v23  ;;  %v1189_v35 = vmul.f32 %v4589_v7, %v4589_v7  ;;  %v1170_v5 = vmul.f32 %v4590_v54, %v4590_v54  ;;  %v1591_v1 = vadd.f32 %v1590_v58, %v1168_v34  ;;  %v585_v48 = vld [vmem:[%s5394_s18 + $0xc90] sm:$0xff]  ;;  %v4591_v19 = vld [vmem:[%s5394_s18 + $0x2e8] sm:$0xff]  ;;  %v583_v9 = vld [vmem:[%s5394_s18 + $0xc80] sm:$0xff] }
  0xab   : > { %v1032_v60 = vadd.f32 %v1031_v46, %v1030_v57  ;;  %v1074_v24 = vadd.f32 %v1073_v31, %v596_v51  ;;  %v1206_v53 = vmul.f32 %v4591_v19, %v4591_v19  ;;  %v6166_v36 = vsel %vm610_vm0, %v1190_v32, 0.0  ;;  %v4592_v52 = vld [vmem:[%s5394_s18 + $0x1d0] sm:$0xff]  ;;  %v584_v50 = vld [vmem:[%s5394_s18 + $0xc88] sm:$0xff]  ;;  %v4594_v42 = vld [vmem:[%s5394_s18 + $0x1d8] sm:$0xff] }
  0xac   : > { %v1057_v12 = vadd.f32 %v1056_v14, %v581_v43  ;;  %v1171_v3 = vmul.f32 %v4592_v52, %v4592_v52  ;;  %v1592_v63 = vadd.f32 %v1591_v1, %v1169_v45  ;;  %v4593_v49 = vld [vmem:[%s5394_s18 + $0x2f0] sm:$0xff]  ;;  %v1634_v30 = vadd.f32 %v1205_v56, %v1204_v21  ;;  %v4595_v0 = vld [vmem:[%s5394_s18 + $0x2f8] sm:$0xff]  ;;  %v4596_v44 = vld [vmem:[%s5394_s18 + $0x1e0] sm:$0xff] }
  0xad   : > { %1033 = vadd.xlane.f32.xlu0 %v1032_v60  ;;  %v1075_v55 = vadd.f32 %v1074_v24, %v597_v37  ;;  %v1207_v10 = vmul.f32 %v4593_v49, %v4593_v49  ;;  %v1061_v16 = vsel %vm610_vm0, %v585_v48, 0.0  ;;  %v1613_v20 = vadd.f32 %v1612_v28, %v1188_v40  ;;  %v4597_v26 = vld [vmem:[%s5394_s18 + $0x270] sm:$0xff]  ;;  %v4598_v25 = vld [vmem:[%s5394_s18 + $0x278] sm:$0xff]  ;;  %v4599_v47 = vld [vmem:[%s5394_s18 + $0x1e8] sm:$0xff] }
  0xae   : > { %v1058_v2 = vadd.f32 %v1057_v12, %v582_v38  ;;  %v1172_v27 = vmul.f32 %v4594_v42, %v4594_v42  ;;  %v1593_v33 = vadd.f32 %v1592_v63, %v1170_v5  ;;  %v1208_v29 = vmul.f32 %v4595_v0, %v4595_v0  ;;  %v4600_v46 = vld [vmem:[%s5394_s18 + $0x300] sm:$0xff]  ;;  %v4601_v45 = vld [vmem:[%s5394_s18 + $0x1f0] sm:$0xff]  ;;  %v4603_v31 = vld [vmem:[%s5394_s18 + $0x1f8] sm:$0xff] }
  0xaf   : > { %v1077_v13 = vadd.f32 %v1076_v61, %v1075_v55  ;;  %v1635_v23 = vadd.f32 %v1634_v30, %v1206_v53  ;;  %v1173_v15 = vmul.f32 %v4596_v44, %v4596_v44  ;;  %v1191_v11 = vmul.f32 %v4597_v26, %v4597_v26  ;;  %v4602_v21 = vld [vmem:[%s5394_s18 + $0x280] sm:$0xff]  ;;  %v4604_v59 = vld [vmem:[%s5394_s18 + $0x308] sm:$0xff]  ;;  %v4607_v1 = vld [vmem:[%s5394_s18 + $0x310] sm:$0xff] }
  0xb0   : > { %v1059_v4 = vadd.f32 %v1058_v2, %v583_v9  ;;  %v1594_v34 = vadd.f32 %v1593_v33, %v1171_v3  ;;  %v1192_v40 = vmul.f32 %v4598_v25, %v4598_v25  ;;  %v1174_v32 = vmul.f32 %v4599_v47, %v4599_v47  ;;  %v4605_v38 = vld [vmem:[%s5394_s18 + $0x200] sm:$0xff]  ;;  %v4606_v54 = vld [vmem:[%s5394_s18 + $0x288] sm:$0xff]  ;;  %v4608_v48 = vld [vmem:[%s5394_s18 + $0x290] sm:$0xff] }
  0xb1   : > { %1078 = vadd.xlane.f32.xlu1 %v1077_v13  ;;  %v1209_v51 = vmul.f32 %v4600_v46, %v4600_v46  ;;  %v1636_v43 = vadd.f32 %v1635_v23, %v1207_v10  ;;  %v1614_v39 = vadd.f32 %v1613_v20, %v1189_v35  ;;  %v1175_v58 = vmul.f32 %v4601_v45, %v4601_v45  ;;  %v4609_v61 = vld [vmem:[%s5394_s18 + $0x3a8] sm:$0xff]  ;;  %v4610_v52 = vld [vmem:[%s5394_s18 + $0x3b0] sm:$0xff]  ;;  %v4611_v55 = vld [vmem:[%s5394_s18 + $0x318] sm:$0xff] }
  0xb2   : > { %v1060_v41 = vadd.f32 %v1059_v4, %v584_v50  ;;  %v1595_v17 = vadd.f32 %v1594_v34, %v1172_v27  ;;  %v1193_v57 = vmul.f32 %v4602_v21, %v4602_v21  ;;  %v1176_v14 = vmul.f32 %v4603_v31, %v4603_v31  ;;  %v4613_v50 = vld [vmem:[%s5394_s18 + $0x298] sm:$0xff]  ;;  %v4615_v33 = vld [vmem:[%s5394_s18 + $0x328] sm:$0xff]  ;;  %v4616_v0 = vld [vmem:[%s5394_s18 + $0x2a0] sm:$0xff] }
  0xb3   : > { %v1210_v56 = vmul.f32 %v4604_v59, %v4604_v59  ;;  %v1637_v37 = vadd.f32 %v1636_v43, %v1208_v29  ;;  %v1177_v7 = vmul.f32 %v4605_v38, %v4605_v38  ;;  %v1194_v35 = vmul.f32 %v4606_v54, %v4606_v54  ;;  %v4614_v42 = vld [vmem:[%s5394_s18 + $0x3b8] sm:$0xff]  ;;  %v4621_v46 = vld [vmem:[%s5394_s18 + $0x3c8] sm:$0xff]  ;;  %v4625_v59 = vld [vmem:[%s5394_s18 + $0x3d0] sm:$0xff] }
  0xb4   : > { %v1062_v18 = vadd.f32 %v1061_v16, %v1060_v41  ;;  %v1596_v28 = vadd.f32 %v1595_v17, %v1173_v15  ;;  %v1619_v5 = vadd.f32 %v1192_v40, %v1191_v11  ;;  %v1211_v60 = vmul.f32 %v4607_v1, %v4607_v1  ;;  %v4617_v15 = vld [vmem:[%s5394_s18 + $0x3c0] sm:$0xff]  ;;  %v4618_v11 = vld [vmem:[%s5394_s18 + $0x330] sm:$0xff]  ;;  %v4620_v41 = vld [vmem:[%s5394_s18 + $0x2a8] sm:$0xff] }
  0xb5   : > { %1557 = vadd.xlane.f32.xlu1 %v5810_v22  ;;  %v1638_v24 = vadd.f32 %v1637_v37, %v1209_v51  ;;  %v1195_v12 = vmul.f32 %v4608_v48, %v4608_v48  ;;  %v1230_v9 = vmul.f32 %v4609_v61, %v4609_v61  ;;  %v1231_v3 = vmul.f32 %v4610_v52, %v4610_v52  ;;  %v4612_v22 = vld [vmem:[%s5394_s18 + $0x320] sm:$0xff]  ;;  %v4623_v21 = vld [vmem:[%s5394_s18 + $0x348] sm:$0xff]  ;;  %v4627_v54 = vld [vmem:[%s5394_s18 + $0x350] sm:$0xff] }
  0xb6   : > { %1063 = vadd.xlane.f32.xlu0 %v1062_v18  ;;  %v1597_v19 = vadd.f32 %v1596_v28, %v1174_v32  ;;  %v1620_v53 = vadd.f32 %v1619_v5, %v1193_v57  ;;  %v1616_v63 = vadd.f32 %v6166_v36, %v1614_v39  ;;  %v1212_v2 = vmul.f32 %v4611_v55, %v4611_v55  ;;  %v4622_v39 = vld [vmem:[%s5394_s18 + $0x340] sm:$0xff]  ;;  %v4624_v18 = vld [vmem:[%s5394_s18 + $0x2b0] sm:$0xff] }
  0xb7   : > { %v1213_v49 = vmul.f32 %v4612_v22, %v4612_v22  ;;  %v1639_v10 = vadd.f32 %v1638_v24, %v1210_v56  ;;  %v1196_v16 = vmul.f32 %v4613_v50, %v4613_v50  ;;  %v1232_v27 = vmul.f32 %v4614_v42, %v4614_v42  ;;  %v4628_v5 = vld [vmem:[%s5394_s18 + $0x2c0] sm:$0xff]  ;;  %v4629_v24 = vld [vmem:[%s5394_s18 + $0x3d8] sm:$0xff] }
  0xb8   : > { %v1598_v30 = vadd.f32 %v1597_v19, %v1175_v58  ;;  %v1621_v20 = vadd.f32 %v1620_v53, %v1194_v35  ;;  %v1600_v36 = vsel %vm610_vm0, %v1177_v7, 0.0  ;;  %v1214_v13 = vmul.f32 %v4615_v33, %v4615_v33  ;;  %v4630_v53 = vld [vmem:[%s5394_s18 + $0x2d0] sm:$0xff]  ;;  %v4632_v55 = vld [vmem:[%s5394_s18 + $0x3e0] sm:$0xff] }
  0xb9   : > { %1587 = vadd.xlane.f32.xlu1 %v6024_v62  ;;  %v1640_v4 = vadd.f32 %v1639_v10, %v1211_v60  ;;  %v1197_v29 = vmul.f32 %v4616_v0, %v4616_v0  ;;  %v1233_v34 = vmul.f32 %v4617_v15, %v4617_v15  ;;  %v1664_v26 = vadd.f32 %v1231_v3, %v1230_v9  ;;  %v4631_v9 = vld [vmem:[%s5394_s18 + $0x358] sm:$0xff]  ;;  %v4635_v42 = vld [vmem:[%s5394_s18 + $0x480] sm:$0xff] }
  0xba   : > { %1542 = vadd.xlane.f32.xlu0 %v5897_v8  ;;  %v1599_v23 = vadd.f32 %v1598_v30, %v1176_v14  ;;  %v1622_v44 = vadd.f32 %v1621_v20, %v1195_v12  ;;  %v1215_v25 = vmul.f32 %v4618_v11, %v4618_v11  ;;  %v4619_v8 = vld [vmem:[%s5394_s18 + $0x338] sm:$0xff]  ;;  %v1198_v47 = vmul.f32 %v4620_v41, %v4620_v41 }
  0xbb   : > { %v1216_v62 = vmul.f32 %v4619_v8, %v4619_v8  ;;  %v1641_v40 = vadd.f32 %v1640_v4, %v1212_v2  ;;  %v1234_v51 = vmul.f32 %v4621_v46, %v4621_v46  ;;  %v1665_v43 = vadd.f32 %v1664_v26, %v1232_v27  ;;  %v4637_v4 = vld [vmem:[%s5394_s18 + $0x3e8] sm:$0xff]  ;;  %v4640_v8 = vld [vmem:[%s5394_s18 + $0x3f0] sm:$0xff] }
  0xbc   : > { %v1623_v32 = vadd.f32 %v1622_v44, %v1196_v16  ;;  %v1217_v45 = vmul.f32 %v4622_v39, %v4622_v39  ;;  %v1601_v58 = vadd.f32 %v1600_v36, %v1599_v23  ;;  %v1218_v57 = vmul.f32 %v4623_v21, %v4623_v21  ;;  %v4634_v16 = vld [vmem:[%s5394_s18 + $0x478] sm:$0xff]  ;;  %v4636_v36 = vld [vmem:[%s5394_s18 + $0x2c8] sm:$0xff] }
  0xbd   : > { %1617 = vadd.xlane.f32.xlu1 %v1616_v63  ;;  %v1642_v17 = vadd.f32 %v1641_v40, %v1213_v49  ;;  %v1199_v31 = vmul.f32 %v4624_v18, %v4624_v18  ;;  %v1235_v56 = vmul.f32 %v4625_v59, %v4625_v59  ;;  %v1666_v37 = vadd.f32 %v1665_v43, %v1233_v34  ;;  %v4633_v49 = vld [vmem:[%s5394_s18 + $0x360] sm:$0xff]  ;;  %v4638_v44 = vld [vmem:[%s5394_s18 + $0x368] sm:$0xff]  ;;  %v4641_v40 = vld [vmem:[%s5394_s18 + $0x3f8] sm:$0xff] }
  0xbe   : > { %1572 = vadd.xlane.f32.xlu0 %v6139_v6  ;;  %v1624_v14 = vadd.f32 %v1623_v32, %v1197_v29  ;;  %v1645_v7 = vsel %vm610_vm0, %v1216_v62, 0.0  ;;  %v4626_v6 = vld [vmem:[%s5394_s18 + $0x2b8] sm:$0xff]  ;;  %v1219_v35 = vmul.f32 %v4627_v54, %v4627_v54  ;;  %v1201_v1 = vmul.f32 %v4628_v5, %v4628_v5  ;;  %v4639_v26 = vld [vmem:[%s5394_s18 + $0x488] sm:$0xff]  ;;  %v4642_v32 = vld [vmem:[%s5394_s18 + $0x370] sm:$0xff] }
  0xbf   : > { %v1643_v38 = vadd.f32 %v1642_v17, %v1214_v13  ;;  %v1200_v28 = vmul.f32 %v4626_v6, %v4626_v6  ;;  %v1236_v48 = vmul.f32 %v4629_v24, %v4629_v24  ;;  %v1667_v12 = vadd.f32 %v1666_v37, %v1234_v51  ;;  %v4643_v43 = vld [vmem:[%s5394_s18 + $0x490] sm:$0xff]  ;;  %v4644_v17 = vld [vmem:[%s5394_s18 + $0x400] sm:$0xff]  ;;  %v4647_v37 = vld [vmem:[%s5394_s18 + $0x498] sm:$0xff] }
  0xc0   : > { %v1625_v60 = vadd.f32 %v1624_v14, %v1198_v47  ;;  %v1203_v61 = vmul.f32 %v4630_v53, %v4630_v53  ;;  %v1220_v52 = vmul.f32 %v4631_v9, %v4631_v9  ;;  %v1649_v3 = vadd.f32 %v1218_v57, %v1217_v45  ;;  %v4645_v57 = vld [vmem:[%s5394_s18 + $0x408] sm:$0xff]  ;;  %v4646_v14 = vld [vmem:[%s5394_s18 + $0x378] sm:$0xff]  ;;  %v4648_v54 = vld [vmem:[%s5394_s18 + $0x410] sm:$0xff] }
  0xc1   : > { %v1644_v19 = vadd.f32 %v1643_v38, %v1215_v25  ;;  %v1237_v2 = vmul.f32 %v4632_v55, %v4632_v55  ;;  %v1668_v22 = vadd.f32 %v1667_v12, %v1235_v56  ;;  %v1221_v10 = vmul.f32 %v4633_v49, %v4633_v49  ;;  %v4649_v5 = vld [vmem:[%s5394_s18 + $0x418] sm:$0xff]  ;;  %v4651_v12 = vld [vmem:[%s5394_s18 + $0x4a0] sm:$0xff] }
  0xc2   : > { %1602 = vadd.xlane.f32.xlu0 %v1601_v58  ;;  %v1626_v63 = vadd.f32 %v1625_v60, %v1199_v31  ;;  %v1650_v50 = vadd.f32 %v1649_v3, %v1219_v35  ;;  %v1256_v20 = vmul.f32 %v4634_v16, %v4634_v16  ;;  %v1257_v27 = vmul.f32 %v4635_v42, %v4635_v42  ;;  %v4650_v60 = vld [vmem:[%s5394_s18 + $0x380] sm:$0xff] }
  0xc3   : > { %v1646_v30 = vadd.f32 %v1645_v7, %v1644_v19  ;;  %v1202_v33 = vmul.f32 %v4636_v36, %v4636_v36  ;;  %v1238_v0 = vmul.f32 %v4637_v4, %v4637_v4  ;;  %v1669_v29 = vadd.f32 %v1668_v22, %v1236_v48  ;;  %v4658_v4 = vld [vmem:[%s5394_s18 + $0x4b0] sm:$0xff] }
  0xc4   : > { %v1627_v13 = vadd.f32 %v1626_v63, %v1200_v28  ;;  %v1630_v23 = vsel %vm610_vm0, %v1203_v61, 0.0  ;;  %v1222_v15 = vmul.f32 %v4638_v44, %v4638_v44  ;;  %v1651_v34 = vadd.f32 %v1650_v50, %v1220_v52  ;;  %v4652_v52 = vld [vmem:[%s5394_s18 + $0x388] sm:$0xff]  ;;  %v4653_v63 = vld [vmem:[%s5394_s18 + $0x420] sm:$0xff] }
  0xc5   : > { %1647 = vadd.xlane.f32.xlu1 %v1646_v30  ;;  %v1258_v11 = vmul.f32 %v4639_v26, %v4639_v26  ;;  %v1239_v62 = vmul.f32 %v4640_v8, %v4640_v8  ;;  %v1240_v41 = vmul.f32 %v4641_v40, %v4641_v40  ;;  %v1670_v47 = vadd.f32 %v1669_v29, %v1237_v2  ;;  %v4654_v2 = vld [vmem:[%s5394_s18 + $0x390] sm:$0xff]  ;;  %v4660_v26 = vld [vmem:[%s5394_s18 + $0x548] sm:$0xff] }
  0xc6   : > { %v1628_v25 = vadd.f32 %v1627_v13, %v1201_v1  ;;  %v1223_v46 = vmul.f32 %v4642_v32, %v4642_v32  ;;  %v1652_v51 = vadd.f32 %v1651_v34, %v1221_v10  ;;  %v1259_v39 = vmul.f32 %v4643_v43, %v4643_v43  ;;  %v4655_v10 = vld [vmem:[%s5394_s18 + $0x4a8] sm:$0xff]  ;;  %v4664_v43 = vld [vmem:[%s5394_s18 + $0x438] sm:$0xff] }
  0xc7   : > { %v1694_v45 = vadd.f32 %v1257_v27, %v1256_v20  ;;  %v1241_v21 = vmul.f32 %v4644_v17, %v4644_v17  ;;  %v1242_v18 = vmul.f32 %v4645_v57, %v4645_v57  ;;  %v1671_v31 = vadd.f32 %v1670_v47, %v1238_v0  ;;  %v4656_v20 = vld [vmem:[%s5394_s18 + $0x3a0] sm:$0xff]  ;;  %v4657_v27 = vld [vmem:[%s5394_s18 + $0x428] sm:$0xff]  ;;  %v4663_v47 = vld [vmem:[%s5394_s18 + $0x4b8] sm:$0xff] }
  0xc8   : > { %v1629_v58 = vadd.f32 %v1628_v25, %v1202_v33  ;;  %v1224_v59 = vmul.f32 %v4646_v14, %v4646_v14  ;;  %v1653_v56 = vadd.f32 %v1652_v51, %v1222_v15  ;;  %v1260_v38 = vmul.f32 %v4647_v37, %v4647_v37  ;;  %v4661_v25 = vld [vmem:[%s5394_s18 + $0x550] sm:$0xff]  ;;  %v4666_v57 = vld [vmem:[%s5394_s18 + $0x4c0] sm:$0xff] }
  0xc9   : > { %v1695_v7 = vadd.f32 %v1694_v45, %v1258_v11  ;;  %v1672_v28 = vadd.f32 %v1671_v31, %v1239_v62  ;;  %v1243_v35 = vmul.f32 %v4648_v54, %v4648_v54  ;;  %v1244_v1 = vmul.f32 %v4649_v5, %v4649_v5  ;;  %v4662_v62 = vld [vmem:[%s5394_s18 + $0x398] sm:$0xff]  ;;  %v4667_v31 = vld [vmem:[%s5394_s18 + $0x4c8] sm:$0xff] }
  0xca   : > { %v1631_v6 = vadd.f32 %v1630_v23, %v1629_v58  ;;  %v1225_v24 = vmul.f32 %v4650_v60, %v4650_v60  ;;  %v1654_v48 = vadd.f32 %v1653_v56, %v1223_v46  ;;  %v1261_v19 = vmul.f32 %v4651_v12, %v4651_v12  ;;  %v4659_v23 = vld [vmem:[%s5394_s18 + $0x430] sm:$0xff]  ;;  %v4665_v58 = vld [vmem:[%s5394_s18 + $0x558] sm:$0xff]  ;;  %v4668_v56 = vld [vmem:[%s5394_s18 + $0x440] sm:$0xff] }
  0xcb   : > { %v1696_v53 = vadd.f32 %v1695_v7, %v1259_v39  ;;  %v1673_v61 = vadd.f32 %v1672_v28, %v1240_v41  ;;  %v1675_v9 = vsel %vm610_vm0, %v1242_v18, 0.0  ;;  %v1226_v3 = vmul.f32 %v4652_v52, %v4652_v52  ;;  %v4669_v7 = vld [vmem:[%s5394_s18 + $0x560] sm:$0xff] }
  0xcc   : > { %1632 = vadd.xlane.f32.xlu0 %v1631_v6  ;;  %v1245_v55 = vmul.f32 %v4653_v63, %v4653_v63  ;;  %v1227_v22 = vmul.f32 %v4654_v2, %v4654_v2  ;;  %v1655_v49 = vadd.f32 %v1654_v48, %v1224_v59  ;;  %v1262_v30 = vmul.f32 %v4655_v10, %v4655_v10  ;;  %v4672_v48 = vld [vmem:[%s5394_s18 + $0x448] sm:$0xff]  ;;  %v4674_v63 = vld [vmem:[%s5394_s18 + $0x4e0] sm:$0xff] }
  0xcd   : > { %v1697_v50 = vadd.f32 %v1696_v53, %v1260_v38  ;;  %v1674_v16 = vadd.f32 %v1673_v61, %v1241_v21  ;;  %v1229_v42 = vmul.f32 %v4656_v20, %v4656_v20  ;;  %v1246_v36 = vmul.f32 %v4657_v27, %v4657_v27  ;;  %v4673_v53 = vld [vmem:[%s5394_s18 + $0x568] sm:$0xff] }
  0xce   : > { %v1679_v33 = vadd.f32 %v1244_v1, %v1243_v35  ;;  %v1656_v13 = vadd.f32 %v1655_v49, %v1225_v24  ;;  %v1263_v0 = vmul.f32 %v4658_v4, %v4658_v4  ;;  %v1247_v44 = vmul.f32 %v4659_v23, %v4659_v23  ;;  %v4670_v35 = vld [vmem:[%s5394_s18 + $0x4d0] sm:$0xff]  ;;  %v4671_v1 = vld [vmem:[%s5394_s18 + $0x4d8] sm:$0xff]  ;;  %v4675_v2 = vld [vmem:[%s5394_s18 + $0x4e8] sm:$0xff] }
  0xcf   : > { %v1698_v29 = vadd.f32 %v1697_v50, %v1261_v19  ;;  %v1676_v15 = vadd.f32 %v1675_v9, %v1674_v16  ;;  %v1282_v11 = vmul.f32 %v4660_v26, %v4660_v26  ;;  %v1283_v8 = vmul.f32 %v4661_v25, %v4661_v25  ;;  %v4676_v49 = vld [vmem:[%s5394_s18 + $0x450] sm:$0xff] }
  0xd0   : > { %v1680_v34 = vadd.f32 %v1679_v33, %v1245_v55  ;;  %v1228_v40 = vmul.f32 %v4662_v62, %v4662_v62  ;;  %v1657_v41 = vadd.f32 %v1656_v13, %v1226_v3  ;;  %v1264_v32 = vmul.f32 %v4663_v47, %v4663_v47  ;;  %v4677_v50 = vld [vmem:[%s5394_s18 + $0x570] sm:$0xff]  ;;  %v4684_v47 = vld [vmem:[%s5394_s18 + $0x580] sm:$0xff] }
  0xd1   : > { %v1699_v46 = vadd.f32 %v1698_v29, %v1262_v30  ;;  %1677 = vadd.xlane.f32.xlu1 %v1676_v15  ;;  %v1660_v51 = vsel %vm610_vm0, %v1229_v42, 0.0  ;;  %v1248_v39 = vmul.f32 %v4664_v43, %v4664_v43  ;;  %v1284_v17 = vmul.f32 %v4665_v58, %v4665_v58  ;;  %v4679_v13 = vld [vmem:[%s5394_s18 + $0x4f0] sm:$0xff]  ;;  %v4686_v58 = vld [vmem:[%s5394_s18 + $0x618] sm:$0xff] }
  0xd2   : > { %v1681_v45 = vadd.f32 %v1680_v34, %v1246_v36  ;;  %v1658_v21 = vadd.f32 %v1657_v41, %v1227_v22  ;;  %v1265_v18 = vmul.f32 %v4666_v57, %v4666_v57  ;;  %v1266_v14 = vmul.f32 %v4667_v31, %v4667_v31  ;;  %v4678_v36 = vld [vmem:[%s5394_s18 + $0x458] sm:$0xff] }
  0xd3   : > { %v1700_v59 = vadd.f32 %v1699_v46, %v1263_v0  ;;  %v1249_v37 = vmul.f32 %v4668_v56, %v4668_v56  ;;  %v1285_v6 = vmul.f32 %v4669_v7, %v4669_v7  ;;  %v1724_v28 = vadd.f32 %v1283_v8, %v1282_v11  ;;  %v4680_v0 = vld [vmem:[%s5394_s18 + $0x460] sm:$0xff]  ;;  %v4682_v11 = vld [vmem:[%s5394_s18 + $0x470] sm:$0xff]  ;;  %v4683_v8 = vld [vmem:[%s5394_s18 + $0x4f8] sm:$0xff] }
  0xd4   : > { %v1682_v38 = vadd.f32 %v1681_v45, %v1247_v44  ;;  %v1659_v54 = vadd.f32 %v1658_v21, %v1228_v40  ;;  %v1267_v5 = vmul.f32 %v4670_v35, %v4670_v35  ;;  %v1268_v60 = vmul.f32 %v4671_v1, %v4671_v1  ;;  %v4681_v44 = vld [vmem:[%s5394_s18 + $0x578] sm:$0xff]  ;;  %v4687_v21 = vld [vmem:[%s5394_s18 + $0x620] sm:$0xff]  ;;  %v4690_v7 = vld [vmem:[%s5394_s18 + $0x508] sm:$0xff] }
  0xd5   : > { %v1701_v24 = vadd.f32 %v1700_v59, %v1264_v32  ;;  %v1250_v12 = vmul.f32 %v4672_v48, %v4672_v48  ;;  %v1286_v61 = vmul.f32 %v4673_v53, %v4673_v53  ;;  %v1725_v9 = vadd.f32 %v1724_v28, %v1284_v17  ;;  %v4689_v59 = vld [vmem:[%s5394_s18 + $0x588] sm:$0xff]  ;;  %v4692_v1 = vld [vmem:[%s5394_s18 + $0x590] sm:$0xff] }
  0xd6   : > { %v1683_v19 = vadd.f32 %v1682_v38, %v1248_v39  ;;  %v1661_v52 = vadd.f32 %v1660_v51, %v1659_v54  ;;  %v1269_v55 = vmul.f32 %v4674_v63, %v4674_v63  ;;  %v1270_v22 = vmul.f32 %v4675_v2, %v4675_v2  ;;  %v4685_v51 = vld [vmem:[%s5394_s18 + $0x500] sm:$0xff]  ;;  %v4691_v54 = vld [vmem:[%s5394_s18 + $0x628] sm:$0xff] }
  0xd7   : > { %v1702_v3 = vadd.f32 %v1701_v24, %v1265_v18  ;;  %v1251_v10 = vmul.f32 %v4676_v49, %v4676_v49  ;;  %v1287_v16 = vmul.f32 %v4677_v50, %v4677_v50  ;;  %v1726_v20 = vadd.f32 %v1725_v9, %v1285_v6  ;;  %v4688_v18 = vld [vmem:[%s5394_s18 + $0x468] sm:$0xff]  ;;  %v4693_v24 = vld [vmem:[%s5394_s18 + $0x598] sm:$0xff]  ;;  %v4695_v9 = vld [vmem:[%s5394_s18 + $0x630] sm:$0xff] }
  0xd8   : > { %v1684_v30 = vadd.f32 %v1683_v19, %v1249_v37  ;;  %1662 = vadd.xlane.f32.xlu0 %v1661_v52  ;;  %v1705_v27 = vsel %vm610_vm0, %v1268_v60, 0.0  ;;  %v1252_v33 = vmul.f32 %v4678_v36, %v4678_v36  ;;  %v1271_v4 = vmul.f32 %v4679_v13, %v4679_v13  ;;  %v4694_v19 = vld [vmem:[%s5394_s18 + $0x510] sm:$0xff] }
  0xd9   : > { %v1703_v42 = vadd.f32 %v1702_v3, %v1266_v14  ;;  %v1253_v29 = vmul.f32 %v4680_v0, %v4680_v0  ;;  %v1288_v15 = vmul.f32 %v4681_v44, %v4681_v44  ;;  %v1727_v34 = vadd.f32 %v1726_v20, %v1286_v61  ;;  %v4699_v20 = vld [vmem:[%s5394_s18 + $0x638] sm:$0xff]  ;;  %v4700_v13 = vld [vmem:[%s5394_s18 + $0x5b0] sm:$0xff] }
  0xda   : > { %v1685_v23 = vadd.f32 %v1684_v30, %v1250_v12  ;;  %v1255_v25 = vmul.f32 %v4682_v11, %v4682_v11  ;;  %v1272_v62 = vmul.f32 %v4683_v8, %v4683_v8  ;;  %v1709_v40 = vadd.f32 %v1270_v22, %v1269_v55  ;;  %v4696_v55 = vld [vmem:[%s5394_s18 + $0x5a0] sm:$0xff]  ;;  %v4697_v22 = vld [vmem:[%s5394_s18 + $0x5a8] sm:$0xff]  ;;  %v4698_v30 = vld [vmem:[%s5394_s18 + $0x518] sm:$0xff] }
  0xdb   : > { %v1704_v26 = vadd.f32 %v1703_v42, %v1267_v5  ;;  %v1289_v32 = vmul.f32 %v4684_v47, %v4684_v47  ;;  %v1728_v46 = vadd.f32 %v1727_v34, %v1287_v16  ;;  %v1273_v43 = vmul.f32 %v4685_v51, %v4685_v51  ;;  %v4701_v0 = vld [vmem:[%s5394_s18 + $0x5b8] sm:$0xff]  ;;  %v4703_v34 = vld [vmem:[%s5394_s18 + $0x640] sm:$0xff] }
  0xdc   : > { %v1686_v41 = vadd.f32 %v1685_v23, %v1251_v10  ;;  %v1710_v45 = vadd.f32 %v1709_v40, %v1271_v4  ;;  %v1308_v17 = vmul.f32 %v4686_v58, %v4686_v58  ;;  %v1309_v57 = vmul.f32 %v4687_v21, %v4687_v21  ;;  %v4702_v23 = vld [vmem:[%s5394_s18 + $0x520] sm:$0xff] }
  0xdd   : > { %v1706_v39 = vadd.f32 %v1705_v27, %v1704_v26  ;;  %v1254_v31 = vmul.f32 %v4688_v18, %v4688_v18  ;;  %v1290_v56 = vmul.f32 %v4689_v59, %v4689_v59  ;;  %v1729_v37 = vadd.f32 %v1728_v46, %v1288_v15  ;;  %v4710_v59 = vld [vmem:[%s5394_s18 + $0x650] sm:$0xff] }
  0xde   : > { %v1687_v14 = vadd.f32 %v1686_v41, %v1252_v33  ;;  %v1690_v38 = vsel %vm610_vm0, %v1255_v25, 0.0  ;;  %v1274_v6 = vmul.f32 %v4690_v7, %v4690_v7  ;;  %v1711_v28 = vadd.f32 %v1710_v45, %v1272_v62  ;;  %v4704_v62 = vld [vmem:[%s5394_s18 + $0x528] sm:$0xff]  ;;  %v4705_v41 = vld [vmem:[%s5394_s18 + $0x5c0] sm:$0xff] }
  0xdf   : > { %1707 = vadd.xlane.f32.xlu1 %v1706_v39  ;;  %v1310_v35 = vmul.f32 %v4691_v54, %v4691_v54  ;;  %v1291_v60 = vmul.f32 %v4692_v1, %v4692_v1  ;;  %v1292_v48 = vmul.f32 %v4693_v24, %v4693_v24  ;;  %v1730_v12 = vadd.f32 %v1729_v37, %v1289_v32  ;;  %v4706_v32 = vld [vmem:[%s5394_s18 + $0x530] sm:$0xff]  ;;  %v4712_v54 = vld [vmem:[%s5394_s18 + $0x6e8] sm:$0xff] }
  0xe0   : > { %v1688_v5 = vadd.f32 %v1687_v14, %v1253_v29  ;;  %v1275_v53 = vmul.f32 %v4694_v19, %v4694_v19  ;;  %v1712_v61 = vadd.f32 %v1711_v28, %v1273_v43  ;;  %v1311_v52 = vmul.f32 %v4695_v9, %v4695_v9  ;;  %v4707_v43 = vld [vmem:[%s5394_s18 + $0x648] sm:$0xff]  ;;  %v4716_v9 = vld [vmem:[%s5394_s18 + $0x5d8] sm:$0xff] }
  0xe1   : > { %v1754_v3 = vadd.f32 %v1309_v57, %v1308_v17  ;;  %v1293_v2 = vmul.f32 %v4696_v55, %v4696_v55  ;;  %v1294_v49 = vmul.f32 %v4697_v22, %v4697_v22  ;;  %v1731_v10 = vadd.f32 %v1730_v12, %v1290_v56  ;;  %v4708_v17 = vld [vmem:[%s5394_s18 + $0x540] sm:$0xff]  ;;  %v4709_v57 = vld [vmem:[%s5394_s18 + $0x5c8] sm:$0xff]  ;;  %v4715_v12 = vld [vmem:[%s5394_s18 + $0x658] sm:$0xff] }
  0xe2   : > { %v1689_v63 = vadd.f32 %v1688_v5, %v1254_v31  ;;  %v1276_v50 = vmul.f32 %v4698_v30, %v4698_v30  ;;  %v1713_v16 = vadd.f32 %v1712_v61, %v1274_v6  ;;  %v1312_v42 = vmul.f32 %v4699_v20, %v4699_v20  ;;  %v4713_v5 = vld [vmem:[%s5394_s18 + $0x6f0] sm:$0xff]  ;;  %v4718_v22 = vld [vmem:[%s5394_s18 + $0x660] sm:$0xff] }
  0xe3   : > { %v1755_v27 = vadd.f32 %v1754_v3, %v1310_v35  ;;  %v1732_v33 = vadd.f32 %v1731_v10, %v1291_v60  ;;  %v1295_v4 = vmul.f32 %v4700_v13, %v4700_v13  ;;  %v1296_v29 = vmul.f32 %v4701_v0, %v4701_v0  ;;  %v4714_v60 = vld [vmem:[%s5394_s18 + $0x538] sm:$0xff]  ;;  %v4719_v10 = vld [vmem:[%s5394_s18 + $0x668] sm:$0xff] }
  0xe4   : > { %v1691_v36 = vadd.f32 %v1690_v38, %v1689_v63  ;;  %v1277_v44 = vmul.f32 %v4702_v23, %v4702_v23  ;;  %v1714_v15 = vadd.f32 %v1713_v16, %v1275_v53  ;;  %v1313_v26 = vmul.f32 %v4703_v34, %v4703_v34  ;;  %v4711_v38 = vld [vmem:[%s5394_s18 + $0x5d0] sm:$0xff]  ;;  %v4717_v63 = vld [vmem:[%s5394_s18 + $0x6f8] sm:$0xff]  ;;  %v4720_v16 = vld [vmem:[%s5394_s18 + $0x5e0] sm:$0xff] }
  0xe5   : > { %v1756_v11 = vadd.f32 %v1755_v27, %v1311_v52  ;;  %v1733_v25 = vadd.f32 %v1732_v33, %v1292_v48  ;;  %v1735_v8 = vsel %vm610_vm0, %v1294_v49, 0.0  ;;  %v1278_v40 = vmul.f32 %v4704_v62, %v4704_v62  ;;  %v4721_v27 = vld [vmem:[%s5394_s18 + $0x700] sm:$0xff] }
  0xe6   : > { %1692 = vadd.xlane.f32.xlu0 %v1691_v36  ;;  %v1297_v47 = vmul.f32 %v4705_v41, %v4705_v41  ;;  %v1279_v46 = vmul.f32 %v4706_v32, %v4706_v32  ;;  %v1715_v51 = vadd.f32 %v1714_v15, %v1276_v50  ;;  %v1314_v39 = vmul.f32 %v4707_v43, %v4707_v43  ;;  %v4724_v15 = vld [vmem:[%s5394_s18 + $0x5e8] sm:$0xff]  ;;  %v4726_v41 = vld [vmem:[%s5394_s18 + $0x680] sm:$0xff] }
  0xe7   : > { %v1757_v45 = vadd.f32 %v1756_v11, %v1312_v42  ;;  %v1734_v58 = vadd.f32 %v1733_v25, %v1293_v2  ;;  %v1281_v21 = vmul.f32 %v4708_v17, %v4708_v17  ;;  %v1298_v18 = vmul.f32 %v4709_v57, %v4709_v57  ;;  %v4725_v11 = vld [vmem:[%s5394_s18 + $0x708] sm:$0xff] }
  0xe8   : > { %v1739_v31 = vadd.f32 %v1296_v29, %v1295_v4  ;;  %v1716_v14 = vadd.f32 %v1715_v51, %v1277_v44  ;;  %v1315_v56 = vmul.f32 %v4710_v59, %v4710_v59  ;;  %v1299_v7 = vmul.f32 %v4711_v38, %v4711_v38  ;;  %v4722_v4 = vld [vmem:[%s5394_s18 + $0x670] sm:$0xff]  ;;  %v4723_v29 = vld [vmem:[%s5394_s18 + $0x678] sm:$0xff]  ;;  %v4727_v32 = vld [vmem:[%s5394_s18 + $0x688] sm:$0xff] }
  0xe9   : > { %v1758_v37 = vadd.f32 %v1757_v45, %v1313_v26  ;;  %v1736_v6 = vadd.f32 %v1735_v8, %v1734_v58  ;;  %v1334_v35 = vmul.f32 %v4712_v54, %v4712_v54  ;;  %v1335_v1 = vmul.f32 %v4713_v5, %v4713_v5  ;;  %v4728_v51 = vld [vmem:[%s5394_s18 + $0x5f0] sm:$0xff] }
  0xea   : > { %v1740_v28 = vadd.f32 %v1739_v31, %v1297_v47  ;;  %v1280_v24 = vmul.f32 %v4714_v60, %v4714_v60  ;;  %v1717_v48 = vadd.f32 %v1716_v14, %v1278_v40  ;;  %v1316_v19 = vmul.f32 %v4715_v12, %v4715_v12  ;;  %v4729_v45 = vld [vmem:[%s5394_s18 + $0x710] sm:$0xff]  ;;  %v4736_v12 = vld [vmem:[%s5394_s18 + $0x720] sm:$0xff] }
  0xeb   : > { %v1759_v53 = vadd.f32 %v1758_v37, %v1314_v39  ;;  %1737 = vadd.xlane.f32.xlu1 %v1736_v6  ;;  %v1720_v61 = vsel %vm610_vm0, %v1281_v21, 0.0  ;;  %v1300_v52 = vmul.f32 %v4716_v9, %v4716_v9  ;;  %v1336_v55 = vmul.f32 %v4717_v63, %v4717_v63  ;;  %v4731_v14 = vld [vmem:[%s5394_s18 + $0x690] sm:$0xff]  ;;  %v4738_v63 = vld [vmem:[%s5394_s18 + $0x7b8] sm:$0xff] }
  0xec   : > { %v1741_v3 = vadd.f32 %v1740_v28, %v1298_v18  ;;  %v1718_v2 = vadd.f32 %v1717_v48, %v1279_v46  ;;  %v1317_v49 = vmul.f32 %v4718_v22, %v4718_v22  ;;  %v1318_v30 = vmul.f32 %v4719_v10, %v4719_v10  ;;  %v4730_v18 = vld [vmem:[%s5394_s18 + $0x5f8] sm:$0xff] }
  0xed   : > { %v1760_v50 = vadd.f32 %v1759_v53, %v1315_v56  ;;  %v1301_v20 = vmul.f32 %v4720_v16, %v4720_v16  ;;  %v1337_v36 = vmul.f32 %v4721_v27, %v4721_v27  ;;  %v1784_v33 = vadd.f32 %v1335_v1, %v1334_v35  ;;  %v4732_v56 = vld [vmem:[%s5394_s18 + $0x600] sm:$0xff]  ;;  %v4734_v35 = vld [vmem:[%s5394_s18 + $0x610] sm:$0xff]  ;;  %v4735_v1 = vld [vmem:[%s5394_s18 + $0x698] sm:$0xff] }
  0xee   : > { %v1742_v42 = vadd.f32 %v1741_v3, %v1299_v7  ;;  %v1719_v13 = vadd.f32 %v1718_v2, %v1280_v24  ;;  %v1319_v0 = vmul.f32 %v4722_v4, %v4722_v4  ;;  %v1320_v23 = vmul.f32 %v4723_v29, %v4723_v29  ;;  %v4733_v7 = vld [vmem:[%s5394_s18 + $0x718] sm:$0xff]  ;;  %v4739_v2 = vld [vmem:[%s5394_s18 + $0x7c0] sm:$0xff]  ;;  %v4742_v27 = vld [vmem:[%s5394_s18 + $0x6a8] sm:$0xff] }
  0xef   : > { %v1761_v44 = vadd.f32 %v1760_v50, %v1316_v19  ;;  %v1302_v34 = vmul.f32 %v4724_v15, %v4724_v15  ;;  %v1338_v25 = vmul.f32 %v4725_v11, %v4725_v11  ;;  %v1785_v8 = vadd.f32 %v1784_v33, %v1336_v55  ;;  %v4741_v50 = vld [vmem:[%s5394_s18 + $0x728] sm:$0xff]  ;;  %v4744_v29 = vld [vmem:[%s5394_s18 + $0x730] sm:$0xff] }
  0xf0   : > { %v1743_v26 = vadd.f32 %v1742_v42, %v1300_v52  ;;  %v1721_v62 = vadd.f32 %v1720_v61, %v1719_v13  ;;  %v1321_v47 = vmul.f32 %v4726_v41, %v4726_v41  ;;  %v1322_v46 = vmul.f32 %v4727_v32, %v4727_v32  ;;  %v4737_v61 = vld [vmem:[%s5394_s18 + $0x6a0] sm:$0xff]  ;;  %v4743_v13 = vld [vmem:[%s5394_s18 + $0x7c8] sm:$0xff] }
  0xf1   : > { %v1762_v40 = vadd.f32 %v1761_v44, %v1317_v49  ;;  %v1303_v43 = vmul.f32 %v4728_v51, %v4728_v51  ;;  %v1339_v58 = vmul.f32 %v4729_v45, %v4729_v45  ;;  %v1786_v17 = vadd.f32 %v1785_v8, %v1337_v36  ;;  %v4740_v49 = vld [vmem:[%s5394_s18 + $0x608] sm:$0xff]  ;;  %v4745_v44 = vld [vmem:[%s5394_s18 + $0x738] sm:$0xff]  ;;  %v4747_v8 = vld [vmem:[%s5394_s18 + $0x7d0] sm:$0xff] }
  0xf2   : > { %v1744_v39 = vadd.f32 %v1743_v26, %v1301_v20  ;;  %1722 = vadd.xlane.f32.xlu0 %v1721_v62  ;;  %v1765_v57 = vsel %vm610_vm0, %v1320_v23, 0.0  ;;  %v1304_v31 = vmul.f32 %v4730_v18, %v4730_v18  ;;  %v1323_v59 = vmul.f32 %v4731_v14, %v4731_v14  ;;  %v4746_v26 = vld [vmem:[%s5394_s18 + $0x6b0] sm:$0xff] }
  0xf3   : > { %v1763_v21 = vadd.f32 %v1762_v40, %v1318_v30  ;;  %v1305_v37 = vmul.f32 %v4732_v56, %v4732_v56  ;;  %v1340_v6 = vmul.f32 %v4733_v7, %v4733_v7  ;;  %v1787_v28 = vadd.f32 %v1786_v17, %v1338_v25  ;;  %v4751_v17 = vld [vmem:[%s5394_s18 + $0x7d8] sm:$0xff]  ;;  %v4752_v14 = vld [vmem:[%s5394_s18 + $0x750] sm:$0xff] }
  0xf4   : > { %v1745_v38 = vadd.f32 %v1744_v39, %v1302_v34  ;;  %v1307_v5 = vmul.f32 %v4734_v35, %v4734_v35  ;;  %v1324_v60 = vmul.f32 %v4735_v1, %v4735_v1  ;;  %v1769_v24 = vadd.f32 %v1322_v46, %v1321_v47  ;;  %v4748_v47 = vld [vmem:[%s5394_s18 + $0x740] sm:$0xff]  ;;  %v4749_v46 = vld [vmem:[%s5394_s18 + $0x748] sm:$0xff]  ;;  %v4750_v39 = vld [vmem:[%s5394_s18 + $0x6b8] sm:$0xff] }
  0xf5   : > { %v1764_v54 = vadd.f32 %v1763_v21, %v1319_v0  ;;  %v1341_v19 = vmul.f32 %v4736_v12, %v4736_v12  ;;  %v1788_v53 = vadd.f32 %v1787_v28, %v1339_v58  ;;  %v1325_v9 = vmul.f32 %v4737_v61, %v4737_v61  ;;  %v4753_v56 = vld [vmem:[%s5394_s18 + $0x758] sm:$0xff]  ;;  %v4755_v28 = vld [vmem:[%s5394_s18 + $0x7e0] sm:$0xff] }
  0xf6   : > { %v1746_v48 = vadd.f32 %v1745_v38, %v1303_v43  ;;  %v1770_v3 = vadd.f32 %v1769_v24, %v1323_v59  ;;  %v1360_v55 = vmul.f32 %v4738_v63, %v4738_v63  ;;  %v1361_v22 = vmul.f32 %v4739_v2, %v4739_v2  ;;  %v4754_v38 = vld [vmem:[%s5394_s18 + $0x6c0] sm:$0xff] }
  0xf7   : > { %v1766_v52 = vadd.f32 %v1765_v57, %v1764_v54  ;;  %v1306_v10 = vmul.f32 %v4740_v49, %v4740_v49  ;;  %v1342_v16 = vmul.f32 %v4741_v50, %v4741_v50  ;;  %v1789_v20 = vadd.f32 %v1788_v53, %v1340_v6  ;;  %v4762_v50 = vld [vmem:[%s5394_s18 + $0x7f0] sm:$0xff] }
  0xf8   : > { %v1747_v30 = vadd.f32 %v1746_v48, %v1304_v31  ;;  %v1750_v42 = vsel %vm610_vm0, %v1307_v5, 0.0  ;;  %v1326_v36 = vmul.f32 %v4742_v27, %v4742_v27  ;;  %v1771_v33 = vadd.f32 %v1770_v3, %v1324_v60  ;;  %v4756_v60 = vld [vmem:[%s5394_s18 + $0x6c8] sm:$0xff]  ;;  %v4757_v48 = vld [vmem:[%s5394_s18 + $0x760] sm:$0xff] }
  0xf9   : > { %1767 = vadd.xlane.f32.xlu1 %v1766_v52  ;;  %v1362_v4 = vmul.f32 %v4743_v13, %v4743_v13  ;;  %v1343_v23 = vmul.f32 %v4744_v29, %v4744_v29  ;;  %v1344_v15 = vmul.f32 %v4745_v44, %v4745_v44  ;;  %v1790_v34 = vadd.f32 %v1789_v20, %v1341_v19  ;;  %v4758_v19 = vld [vmem:[%s5394_s18 + $0x6d0] sm:$0xff]  ;;  %v4764_v13 = vld [vmem:[%s5394_s18 + $0x888] sm:$0xff] }
  0xfa   : > { %v1748_v0 = vadd.f32 %v1747_v30, %v1305_v37  ;;  %v1327_v11 = vmul.f32 %v4746_v26, %v4746_v26  ;;  %v1772_v25 = vadd.f32 %v1771_v33, %v1325_v9  ;;  %v1363_v62 = vmul.f32 %v4747_v8, %v4747_v8  ;;  %v4759_v9 = vld [vmem:[%s5394_s18 + $0x7e8] sm:$0xff]  ;;  %v4768_v8 = vld [vmem:[%s5394_s18 + $0x778] sm:$0xff] }
  0xfb   : > { %v1814_v40 = vadd.f32 %v1361_v22, %v1360_v55  ;;  %v1345_v32 = vmul.f32 %v4748_v47, %v4748_v47  ;;  %v1346_v51 = vmul.f32 %v4749_v46, %v4749_v46  ;;  %v1791_v43 = vadd.f32 %v1790_v34, %v1342_v16  ;;  %v4760_v55 = vld [vmem:[%s5394_s18 + $0x6e0] sm:$0xff]  ;;  %v4761_v22 = vld [vmem:[%s5394_s18 + $0x768] sm:$0xff]  ;;  %v4767_v34 = vld [vmem:[%s5394_s18 + $0x7f8] sm:$0xff] }
  0xfc   : > { %v1749_v41 = vadd.f32 %v1748_v0, %v1306_v10  ;;  %v1328_v45 = vmul.f32 %v4750_v39, %v4750_v39  ;;  %v1773_v58 = vadd.f32 %v1772_v25, %v1326_v36  ;;  %v1364_v21 = vmul.f32 %v4751_v17, %v4751_v17  ;;  %v4765_v0 = vld [vmem:[%s5394_s18 + $0x890] sm:$0xff]  ;;  %v4770_v46 = vld [vmem:[%s5394_s18 + $0x800] sm:$0xff] }
  0xfd   : > { %v1815_v57 = vadd.f32 %v1814_v40, %v1362_v4  ;;  %v1792_v31 = vadd.f32 %v1791_v43, %v1343_v23  ;;  %v1347_v59 = vmul.f32 %v4752_v14, %v4752_v14  ;;  %v1348_v37 = vmul.f32 %v4753_v56, %v4753_v56  ;;  %v4766_v23 = vld [vmem:[%s5394_s18 + $0x6d8] sm:$0xff]  ;;  %v4771_v43 = vld [vmem:[%s5394_s18 + $0x808] sm:$0xff] }
  0xfe   : > { %v1751_v18 = vadd.f32 %v1750_v42, %v1749_v41  ;;  %v1329_v7 = vmul.f32 %v4754_v38, %v4754_v38  ;;  %v1774_v6 = vadd.f32 %v1773_v58, %v1327_v11  ;;  %v1365_v54 = vmul.f32 %v4755_v28, %v4755_v28  ;;  %v4763_v42 = vld [vmem:[%s5394_s18 + $0x770] sm:$0xff]  ;;  %v4769_v41 = vld [vmem:[%s5394_s18 + $0x898] sm:$0xff]  ;;  %v4772_v58 = vld [vmem:[%s5394_s18 + $0x780] sm:$0xff] }
  0xff   : > { %v1816_v35 = vadd.f32 %v1815_v57, %v1363_v62  ;;  %v1793_v5 = vadd.f32 %v1792_v31, %v1344_v15  ;;  %v1795_v1 = vsel %vm610_vm0, %v1346_v51, 0.0  ;;  %v1330_v24 = vmul.f32 %v4756_v60, %v4756_v60  ;;  %v4773_v57 = vld [vmem:[%s5394_s18 + $0x8a0] sm:$0xff] }
 0x100   : > { %1752 = vadd.xlane.f32.xlu0 %v1751_v18  ;;  %v1349_v12 = vmul.f32 %v4757_v48, %v4757_v48  ;;  %v1331_v53 = vmul.f32 %v4758_v19, %v4758_v19  ;;  %v1775_v61 = vadd.f32 %v1774_v6, %v1328_v45  ;;  %v1366_v52 = vmul.f32 %v4759_v9, %v4759_v9  ;;  %v4776_v6 = vld [vmem:[%s5394_s18 + $0x788] sm:$0xff]  ;;  %v4778_v48 = vld [vmem:[%s5394_s18 + $0x820] sm:$0xff] }
 0x101   : > { %v1817_v3 = vadd.f32 %v1816_v35, %v1364_v21  ;;  %v1794_v63 = vadd.f32 %v1793_v5, %v1345_v32  ;;  %v1333_v2 = vmul.f32 %v4760_v55, %v4760_v55  ;;  %v1350_v49 = vmul.f32 %v4761_v22, %v4761_v22  ;;  %v4777_v35 = vld [vmem:[%s5394_s18 + $0x8a8] sm:$0xff] }
 0x102   : > { %v1799_v10 = vadd.f32 %v1348_v37, %v1347_v59  ;;  %v1776_v30 = vadd.f32 %v1775_v61, %v1329_v7  ;;  %v1367_v16 = vmul.f32 %v4762_v50, %v4762_v50  ;;  %v1351_v27 = vmul.f32 %v4763_v42, %v4763_v42  ;;  %v4774_v59 = vld [vmem:[%s5394_s18 + $0x810] sm:$0xff]  ;;  %v4775_v37 = vld [vmem:[%s5394_s18 + $0x818] sm:$0xff]  ;;  %v4779_v19 = vld [vmem:[%s5394_s18 + $0x828] sm:$0xff] }
 0x103   : > { %v1818_v20 = vadd.f32 %v1817_v3, %v1365_v54  ;;  %v1796_v36 = vadd.f32 %v1795_v1, %v1794_v63  ;;  %v1386_v4 = vmul.f32 %v4764_v13, %v4764_v13  ;;  %v1387_v29 = vmul.f32 %v4765_v0, %v4765_v0  ;;  %v4780_v61 = vld [vmem:[%s5394_s18 + $0x790] sm:$0xff] }
 0x104   : > { %v1800_v33 = vadd.f32 %v1799_v10, %v1349_v12  ;;  %v1332_v44 = vmul.f32 %v4766_v23, %v4766_v23  ;;  %v1777_v15 = vadd.f32 %v1776_v30, %v1330_v24  ;;  %v1368_v26 = vmul.f32 %v4767_v34, %v4767_v34  ;;  %v4781_v3 = vld [vmem:[%s5394_s18 + $0x8b0] sm:$0xff]  ;;  %v4788_v34 = vld [vmem:[%s5394_s18 + $0x8c0] sm:$0xff] }
 0x105   : > { %v1819_v11 = vadd.f32 %v1818_v20, %v1366_v52  ;;  %1797 = vadd.xlane.f32.xlu1 %v1796_v36  ;;  %v1780_v25 = vsel %vm610_vm0, %v1333_v2, 0.0  ;;  %v1352_v62 = vmul.f32 %v4768_v8, %v4768_v8  ;;  %v1388_v47 = vmul.f32 %v4769_v41, %v4769_v41  ;;  %v4783_v30 = vld [vmem:[%s5394_s18 + $0x830] sm:$0xff]  ;;  %v4790_v41 = vld [vmem:[%s5394_s18 + $0x958] sm:$0xff] }
 0x106   : > { %v1801_v40 = vadd.f32 %v1800_v33, %v1350_v49  ;;  %v1778_v32 = vadd.f32 %v1777_v15, %v1331_v53  ;;  %v1369_v51 = vmul.f32 %v4770_v46, %v4770_v46  ;;  %v1370_v39 = vmul.f32 %v4771_v43, %v4771_v43  ;;  %v4782_v49 = vld [vmem:[%s5394_s18 + $0x798] sm:$0xff] }
 0x107   : > { %v1820_v45 = vadd.f32 %v1819_v11, %v1367_v16  ;;  %v1353_v17 = vmul.f32 %v4772_v58, %v4772_v58  ;;  %v1389_v18 = vmul.f32 %v4773_v57, %v4773_v57  ;;  %v1844_v31 = vadd.f32 %v1387_v29, %v1386_v4  ;;  %v4784_v16 = vld [vmem:[%s5394_s18 + $0x7a0] sm:$0xff]  ;;  %v4786_v4 = vld [vmem:[%s5394_s18 + $0x7b0] sm:$0xff]  ;;  %v4787_v29 = vld [vmem:[%s5394_s18 + $0x838] sm:$0xff] }
 0x108   : > { %v1802_v21 = vadd.f32 %v1801_v40, %v1351_v27  ;;  %v1779_v14 = vadd.f32 %v1778_v32, %v1332_v44  ;;  %v1371_v56 = vmul.f32 %v4774_v59, %v4774_v59  ;;  %v1372_v38 = vmul.f32 %v4775_v37, %v4775_v37  ;;  %v4785_v27 = vld [vmem:[%s5394_s18 + $0x8b8] sm:$0xff]  ;;  %v4791_v32 = vld [vmem:[%s5394_s18 + $0x960] sm:$0xff]  ;;  %v4794_v57 = vld [vmem:[%s5394_s18 + $0x848] sm:$0xff] }
 0x109   : > { %v1821_v7 = vadd.f32 %v1820_v45, %v1368_v26  ;;  %v1354_v28 = vmul.f32 %v4776_v6, %v4776_v6  ;;  %v1390_v5 = vmul.f32 %v4777_v35, %v4777_v35  ;;  %v1845_v1 = vadd.f32 %v1844_v31, %v1388_v47  ;;  %v4793_v45 = vld [vmem:[%s5394_s18 + $0x8c8] sm:$0xff]  ;;  %v4796_v37 = vld [vmem:[%s5394_s18 + $0x8d0] sm:$0xff] }
 0x10a   : > { %v1803_v54 = vadd.f32 %v1802_v21, %v1352_v62  ;;  %v1781_v60 = vadd.f32 %v1780_v25, %v1779_v14  ;;  %v1373_v12 = vmul.f32 %v4778_v48, %v4778_v48  ;;  %v1374_v53 = vmul.f32 %v4779_v19, %v4779_v19  ;;  %v4789_v25 = vld [vmem:[%s5394_s18 + $0x840] sm:$0xff]  ;;  %v4795_v14 = vld [vmem:[%s5394_s18 + $0x968] sm:$0xff] }
 0x10b   : > { %v1822_v24 = vadd.f32 %v1821_v7, %v1369_v51  ;;  %v1355_v9 = vmul.f32 %v4780_v61, %v4780_v61  ;;  %v1391_v63 = vmul.f32 %v4781_v3, %v4781_v3  ;;  %v1846_v55 = vadd.f32 %v1845_v1, %v1389_v18  ;;  %v4792_v51 = vld [vmem:[%s5394_s18 + $0x7a8] sm:$0xff]  ;;  %v4797_v7 = vld [vmem:[%s5394_s18 + $0x8d8] sm:$0xff]  ;;  %v4799_v1 = vld [vmem:[%s5394_s18 + $0x970] sm:$0xff] }
 0x10c   : > { %v1804_v52 = vadd.f32 %v1803_v54, %v1353_v17  ;;  %1782 = vadd.xlane.f32.xlu0 %v1781_v60  ;;  %v1825_v22 = vsel %vm610_vm0, %v1372_v38, 0.0  ;;  %v1356_v10 = vmul.f32 %v4782_v49, %v4782_v49  ;;  %v1375_v50 = vmul.f32 %v4783_v30, %v4783_v30  ;;  %v4798_v54 = vld [vmem:[%s5394_s18 + $0x850] sm:$0xff] }
 0x10d   : > { %v1823_v2 = vadd.f32 %v1822_v24, %v1370_v39  ;;  %v1357_v20 = vmul.f32 %v4784_v16, %v4784_v16  ;;  %v1392_v36 = vmul.f32 %v4785_v27, %v4785_v27  ;;  %v1847_v33 = vadd.f32 %v1846_v55, %v1390_v5  ;;  %v4803_v55 = vld [vmem:[%s5394_s18 + $0x978] sm:$0xff]  ;;  %v4804_v30 = vld [vmem:[%s5394_s18 + $0x8f0] sm:$0xff] }
 0x10e   : > { %v1805_v42 = vadd.f32 %v1804_v52, %v1354_v28  ;;  %v1359_v0 = vmul.f32 %v4786_v4, %v4786_v4  ;;  %v1376_v23 = vmul.f32 %v4787_v29, %v4787_v29  ;;  %v1829_v44 = vadd.f32 %v1374_v53, %v1373_v12  ;;  %v4800_v12 = vld [vmem:[%s5394_s18 + $0x8e0] sm:$0xff]  ;;  %v4801_v53 = vld [vmem:[%s5394_s18 + $0x8e8] sm:$0xff]  ;;  %v4802_v52 = vld [vmem:[%s5394_s18 + $0x858] sm:$0xff] }
 0x10f   : > { %v1824_v13 = vadd.f32 %v1823_v2, %v1371_v56  ;;  %v1393_v26 = vmul.f32 %v4788_v34, %v4788_v34  ;;  %v1848_v11 = vadd.f32 %v1847_v33, %v1391_v63  ;;  %v1377_v8 = vmul.f32 %v4789_v25, %v4789_v25  ;;  %v4805_v16 = vld [vmem:[%s5394_s18 + $0x8f8] sm:$0xff]  ;;  %v4807_v33 = vld [vmem:[%s5394_s18 + $0x980] sm:$0xff] }
 0x110   : > { %v1806_v15 = vadd.f32 %v1805_v42, %v1355_v9  ;;  %v1830_v40 = vadd.f32 %v1829_v44, %v1375_v50  ;;  %v1412_v47 = vmul.f32 %v4790_v41, %v4790_v41  ;;  %v1413_v46 = vmul.f32 %v4791_v32, %v4791_v32  ;;  %v4806_v42 = vld [vmem:[%s5394_s18 + $0x860] sm:$0xff] }
 0x111   : > { %v1826_v62 = vadd.f32 %v1825_v22, %v1824_v13  ;;  %v1358_v43 = vmul.f32 %v4792_v51, %v4792_v51  ;;  %v1394_v58 = vmul.f32 %v4793_v45, %v4793_v45  ;;  %v1849_v17 = vadd.f32 %v1848_v11, %v1392_v36  ;;  %v4814_v45 = vld [vmem:[%s5394_s18 + $0x990] sm:$0xff] }
 0x112   : > { %v1807_v39 = vadd.f32 %v1806_v15, %v1356_v10  ;;  %v1810_v21 = vsel %vm610_vm0, %v1359_v0, 0.0  ;;  %v1378_v18 = vmul.f32 %v4794_v57, %v4794_v57  ;;  %v1831_v31 = vadd.f32 %v1830_v40, %v1376_v23  ;;  %v4808_v23 = vld [vmem:[%s5394_s18 + $0x868] sm:$0xff]  ;;  %v4809_v15 = vld [vmem:[%s5394_s18 + $0x900] sm:$0xff] }
 0x113   : > { %1827 = vadd.xlane.f32.xlu1 %v1826_v62  ;;  %v1414_v59 = vmul.f32 %v4795_v14, %v4795_v14  ;;  %v1395_v38 = vmul.f32 %v4796_v37, %v4796_v37  ;;  %v1396_v6 = vmul.f32 %v4797_v7, %v4797_v7  ;;  %v1850_v28 = vadd.f32 %v1849_v17, %v1393_v26  ;;  %v4810_v26 = vld [vmem:[%s5394_s18 + $0x870] sm:$0xff]  ;;  %v4816_v14 = vld [vmem:[%s5394_s18 + $0xa28] sm:$0xff] }
 0x114   : > { %v1808_v56 = vadd.f32 %v1807_v39, %v1357_v20  ;;  %v1379_v35 = vmul.f32 %v4798_v54, %v4798_v54  ;;  %v1832_v5 = vadd.f32 %v1831_v31, %v1377_v8  ;;  %v1415_v60 = vmul.f32 %v4799_v1, %v4799_v1  ;;  %v4811_v8 = vld [vmem:[%s5394_s18 + $0x988] sm:$0xff]  ;;  %v4820_v1 = vld [vmem:[%s5394_s18 + $0x918] sm:$0xff] }
 0x115   : > { %v1874_v24 = vadd.f32 %v1413_v46, %v1412_v47  ;;  %v1397_v19 = vmul.f32 %v4800_v12, %v4800_v12  ;;  %v1398_v61 = vmul.f32 %v4801_v53, %v4801_v53  ;;  %v1851_v9 = vadd.f32 %v1850_v28, %v1394_v58  ;;  %v4812_v47 = vld [vmem:[%s5394_s18 + $0x880] sm:$0xff]  ;;  %v4813_v46 = vld [vmem:[%s5394_s18 + $0x908] sm:$0xff]  ;;  %v4819_v28 = vld [vmem:[%s5394_s18 + $0x998] sm:$0xff] }
 0x116   : > { %v1809_v48 = vadd.f32 %v1808_v56, %v1358_v43  ;;  %v1380_v3 = vmul.f32 %v4802_v52, %v4802_v52  ;;  %v1833_v63 = vadd.f32 %v1832_v5, %v1378_v18  ;;  %v1416_v2 = vmul.f32 %v4803_v55, %v4803_v55  ;;  %v4817_v56 = vld [vmem:[%s5394_s18 + $0xa30] sm:$0xff]  ;;  %v4822_v53 = vld [vmem:[%s5394_s18 + $0x9a0] sm:$0xff] }
 0x117   : > { %v1875_v22 = vadd.f32 %v1874_v24, %v1414_v59  ;;  %v1852_v10 = vadd.f32 %v1851_v9, %v1395_v38  ;;  %v1399_v50 = vmul.f32 %v4804_v30, %v4804_v30  ;;  %v1400_v20 = vmul.f32 %v4805_v16, %v4805_v16  ;;  %v4818_v38 = vld [vmem:[%s5394_s18 + $0x878] sm:$0xff]  ;;  %v4823_v9 = vld [vmem:[%s5394_s18 + $0x9a8] sm:$0xff] }
 0x118   : > { %v1811_v49 = vadd.f32 %v1810_v21, %v1809_v48  ;;  %v1381_v27 = vmul.f32 %v4806_v42, %v4806_v42  ;;  %v1834_v36 = vadd.f32 %v1833_v63, %v1379_v35  ;;  %v1417_v13 = vmul.f32 %v4807_v33, %v4807_v33  ;;  %v4815_v21 = vld [vmem:[%s5394_s18 + $0x910] sm:$0xff]  ;;  %v4821_v48 = vld [vmem:[%s5394_s18 + $0xa38] sm:$0xff]  ;;  %v4824_v63 = vld [vmem:[%s5394_s18 + $0x920] sm:$0xff] }
 0x119   : > { %v1876_v4 = vadd.f32 %v1875_v22, %v1415_v60  ;;  %v1853_v0 = vadd.f32 %v1852_v10, %v1396_v6  ;;  %v1855_v29 = vsel %vm610_vm0, %v1398_v61, 0.0  ;;  %v1382_v44 = vmul.f32 %v4808_v23, %v4808_v23  ;;  %v4825_v22 = vld [vmem:[%s5394_s18 + $0xa40] sm:$0xff] }
 0x11a   : > { %1812 = vadd.xlane.f32.xlu0 %v1811_v49  ;;  %v1401_v34 = vmul.f32 %v4809_v15, %v4809_v15  ;;  %v1383_v11 = vmul.f32 %v4810_v26, %v4810_v26  ;;  %v1835_v25 = vadd.f32 %v1834_v36, %v1380_v3  ;;  %v1418_v62 = vmul.f32 %v4811_v8, %v4811_v8  ;;  %v4828_v36 = vld [vmem:[%s5394_s18 + $0x928] sm:$0xff]  ;;  %v4830_v15 = vld [vmem:[%s5394_s18 + $0x9c0] sm:$0xff] }
 0x11b   : > { %v1877_v40 = vadd.f32 %v1876_v4, %v1416_v2  ;;  %v1854_v41 = vadd.f32 %v1853_v0, %v1397_v19  ;;  %v1385_v32 = vmul.f32 %v4812_v47, %v4812_v47  ;;  %v1402_v51 = vmul.f32 %v4813_v46, %v4813_v46  ;;  %v4829_v4 = vld [vmem:[%s5394_s18 + $0xa48] sm:$0xff] }
 0x11c   : > { %v1859_v43 = vadd.f32 %v1400_v20, %v1399_v50  ;;  %v1836_v39 = vadd.f32 %v1835_v25, %v1381_v27  ;;  %v1419_v58 = vmul.f32 %v4814_v45, %v4814_v45  ;;  %v1403_v57 = vmul.f32 %v4815_v21, %v4815_v21  ;;  %v4826_v50 = vld [vmem:[%s5394_s18 + $0x9b0] sm:$0xff]  ;;  %v4827_v20 = vld [vmem:[%s5394_s18 + $0x9b8] sm:$0xff]  ;;  %v4831_v26 = vld [vmem:[%s5394_s18 + $0x9c8] sm:$0xff] }
 0x11d   : > { %v1878_v17 = vadd.f32 %v1877_v40, %v1417_v13  ;;  %v1856_v18 = vadd.f32 %v1855_v29, %v1854_v41  ;;  %v1438_v59 = vmul.f32 %v4816_v14, %v4816_v14  ;;  %v1439_v37 = vmul.f32 %v4817_v56, %v4817_v56  ;;  %v4832_v25 = vld [vmem:[%s5394_s18 + $0x930] sm:$0xff] }
 0x11e   : > { %v1860_v31 = vadd.f32 %v1859_v43, %v1401_v34  ;;  %v1384_v7 = vmul.f32 %v4818_v38, %v4818_v38  ;;  %v1837_v6 = vadd.f32 %v1836_v39, %v1382_v44  ;;  %v1420_v54 = vmul.f32 %v4819_v28, %v4819_v28  ;;  %v4833_v40 = vld [vmem:[%s5394_s18 + $0xa50] sm:$0xff]  ;;  %v4840_v28 = vld [vmem:[%s5394_s18 + $0xa60] sm:$0xff] }
 0x11f   : > { %v1879_v35 = vadd.f32 %v1878_v17, %v1418_v62  ;;  %1857 = vadd.xlane.f32.xlu1 %v1856_v18  ;;  %v1840_v5 = vsel %vm610_vm0, %v1385_v32, 0.0  ;;  %v1404_v60 = vmul.f32 %v4820_v1, %v4820_v1  ;;  %v1440_v12 = vmul.f32 %v4821_v48, %v4821_v48  ;;  %v4835_v39 = vld [vmem:[%s5394_s18 + $0x9d0] sm:$0xff]  ;;  %v4842_v48 = vld [vmem:[%s5394_s18 + $0xaf8] sm:$0xff] }
 0x120   : > { %v1861_v24 = vadd.f32 %v1860_v31, %v1402_v51  ;;  %v1838_v19 = vadd.f32 %v1837_v6, %v1383_v11  ;;  %v1421_v61 = vmul.f32 %v4822_v53, %v4822_v53  ;;  %v1422_v52 = vmul.f32 %v4823_v9, %v4823_v9  ;;  %v4834_v51 = vld [vmem:[%s5394_s18 + $0x938] sm:$0xff] }
 0x121   : > { %v1880_v3 = vadd.f32 %v1879_v35, %v1419_v58  ;;  %v1405_v55 = vmul.f32 %v4824_v63, %v4824_v63  ;;  %v1441_v49 = vmul.f32 %v4825_v22, %v4825_v22  ;;  %v1904_v10 = vadd.f32 %v1439_v37, %v1438_v59  ;;  %v4836_v58 = vld [vmem:[%s5394_s18 + $0x940] sm:$0xff]  ;;  %v4838_v59 = vld [vmem:[%s5394_s18 + $0x950] sm:$0xff]  ;;  %v4839_v37 = vld [vmem:[%s5394_s18 + $0x9d8] sm:$0xff] }
 0x122   : > { %v1862_v2 = vadd.f32 %v1861_v24, %v1403_v57  ;;  %v1839_v30 = vadd.f32 %v1838_v19, %v1384_v7  ;;  %v1423_v16 = vmul.f32 %v4826_v50, %v4826_v50  ;;  %v1424_v42 = vmul.f32 %v4827_v20, %v4827_v20  ;;  %v4837_v57 = vld [vmem:[%s5394_s18 + $0xa58] sm:$0xff]  ;;  %v4843_v19 = vld [vmem:[%s5394_s18 + $0xb00] sm:$0xff]  ;;  %v4846_v22 = vld [vmem:[%s5394_s18 + $0x9e8] sm:$0xff] }
 0x123   : > { %v1881_v27 = vadd.f32 %v1880_v3, %v1420_v54  ;;  %v1406_v33 = vmul.f32 %v4828_v36, %v4828_v36  ;;  %v1442_v0 = vmul.f32 %v4829_v4, %v4829_v4  ;;  %v1905_v29 = vadd.f32 %v1904_v10, %v1440_v12  ;;  %v4845_v3 = vld [vmem:[%s5394_s18 + $0xa68] sm:$0xff]  ;;  %v4848_v20 = vld [vmem:[%s5394_s18 + $0xa70] sm:$0xff] }
 0x124   : > { %v1863_v13 = vadd.f32 %v1862_v2, %v1404_v60  ;;  %v1841_v23 = vadd.f32 %v1840_v5, %v1839_v30  ;;  %v1425_v34 = vmul.f32 %v4830_v15, %v4830_v15  ;;  %v1426_v11 = vmul.f32 %v4831_v26, %v4831_v26  ;;  %v4841_v5 = vld [vmem:[%s5394_s18 + $0x9e0] sm:$0xff]  ;;  %v4847_v30 = vld [vmem:[%s5394_s18 + $0xb08] sm:$0xff] }
 0x125   : > { %v1882_v44 = vadd.f32 %v1881_v27, %v1421_v61  ;;  %v1407_v8 = vmul.f32 %v4832_v25, %v4832_v25  ;;  %v1443_v41 = vmul.f32 %v4833_v40, %v4833_v40  ;;  %v1906_v47 = vadd.f32 %v1905_v29, %v1441_v49  ;;  %v4844_v61 = vld [vmem:[%s5394_s18 + $0x948] sm:$0xff]  ;;  %v4849_v27 = vld [vmem:[%s5394_s18 + $0xa78] sm:$0xff]  ;;  %v4851_v29 = vld [vmem:[%s5394_s18 + $0xb10] sm:$0xff] }
 0x126   : > { %v1864_v62 = vadd.f32 %v1863_v13, %v1405_v55  ;;  %1842 = vadd.xlane.f32.xlu0 %v1841_v23  ;;  %v1885_v46 = vsel %vm610_vm0, %v1424_v42, 0.0  ;;  %v1408_v43 = vmul.f32 %v4834_v51, %v4834_v51  ;;  %v1427_v45 = vmul.f32 %v4835_v39, %v4835_v39  ;;  %v4850_v13 = vld [vmem:[%s5394_s18 + $0x9f0] sm:$0xff] }
 0x127   : > { %v1883_v32 = vadd.f32 %v1882_v44, %v1422_v52  ;;  %v1409_v17 = vmul.f32 %v4836_v58, %v4836_v58  ;;  %v1444_v18 = vmul.f32 %v4837_v57, %v4837_v57  ;;  %v1907_v31 = vadd.f32 %v1906_v47, %v1442_v0  ;;  %v4855_v47 = vld [vmem:[%s5394_s18 + $0xb18] sm:$0xff]  ;;  %v4856_v39 = vld [vmem:[%s5394_s18 + $0xa90] sm:$0xff] }
 0x128   : > { %v1865_v21 = vadd.f32 %v1864_v62, %v1406_v33  ;;  %v1411_v56 = vmul.f32 %v4838_v59, %v4838_v59  ;;  %v1428_v38 = vmul.f32 %v4839_v37, %v4839_v37  ;;  %v1889_v7 = vadd.f32 %v1426_v11, %v1425_v34  ;;  %v4852_v34 = vld [vmem:[%s5394_s18 + $0xa80] sm:$0xff]  ;;  %v4853_v11 = vld [vmem:[%s5394_s18 + $0xa88] sm:$0xff]  ;;  %v4854_v62 = vld [vmem:[%s5394_s18 + $0x9f8] sm:$0xff] }
 0x129   : > { %v1884_v14 = vadd.f32 %v1883_v32, %v1423_v16  ;;  %v1445_v54 = vmul.f32 %v4840_v28, %v4840_v28  ;;  %v1908_v35 = vadd.f32 %v1907_v31, %v1443_v41  ;;  %v1429_v1 = vmul.f32 %v4841_v5, %v4841_v5  ;;  %v4857_v58 = vld [vmem:[%s5394_s18 + $0xa98] sm:$0xff]  ;;  %v4859_v31 = vld [vmem:[%s5394_s18 + $0xb20] sm:$0xff] }
 0x12a   : > { %v1866_v6 = vadd.f32 %v1865_v21, %v1407_v8  ;;  %v1890_v24 = vadd.f32 %v1889_v7, %v1427_v45  ;;  %v1464_v12 = vmul.f32 %v4842_v48, %v4842_v48  ;;  %v1465_v53 = vmul.f32 %v4843_v19, %v4843_v19  ;;  %v4858_v21 = vld [vmem:[%s5394_s18 + $0xa00] sm:$0xff] }
 0x12b   : > { %v1886_v60 = vadd.f32 %v1885_v46, %v1884_v14  ;;  %v1410_v9 = vmul.f32 %v4844_v61, %v4844_v61  ;;  %v1446_v63 = vmul.f32 %v4845_v3, %v4845_v3  ;;  %v1909_v55 = vadd.f32 %v1908_v35, %v1444_v18  ;;  %v4866_v3 = vld [vmem:[%s5394_s18 + $0xb30] sm:$0xff] }
 0x12c   : > { %v1867_v52 = vadd.f32 %v1866_v6, %v1408_v43  ;;  %v1870_v2 = vsel %vm610_vm0, %v1411_v56, 0.0  ;;  %v1430_v49 = vmul.f32 %v4846_v22, %v4846_v22  ;;  %v1891_v10 = vadd.f32 %v1890_v24, %v1428_v38  ;;  %v4860_v38 = vld [vmem:[%s5394_s18 + $0xa08] sm:$0xff]  ;;  %v4861_v6 = vld [vmem:[%s5394_s18 + $0xaa0] sm:$0xff] }
 0x12d   : > { %1887 = vadd.xlane.f32.xlu1 %v1886_v60  ;;  %v1466_v50 = vmul.f32 %v4847_v30, %v4847_v30  ;;  %v1447_v42 = vmul.f32 %v4848_v20, %v4848_v20  ;;  %v1448_v36 = vmul.f32 %v4849_v27, %v4849_v27  ;;  %v1910_v33 = vadd.f32 %v1909_v55, %v1445_v54  ;;  %v4862_v54 = vld [vmem:[%s5394_s18 + $0xa10] sm:$0xff]  ;;  %v4868_v30 = vld [vmem:[%s5394_s18 + $0xbc8] sm:$0xff] }
 0x12e   : > { %v1868_v16 = vadd.f32 %v1867_v52, %v1409_v17  ;;  %v1431_v4 = vmul.f32 %v4850_v13, %v4850_v13  ;;  %v1892_v0 = vadd.f32 %v1891_v10, %v1429_v1  ;;  %v1467_v23 = vmul.f32 %v4851_v29, %v4851_v29  ;;  %v4863_v1 = vld [vmem:[%s5394_s18 + $0xb28] sm:$0xff]  ;;  %v4872_v29 = vld [vmem:[%s5394_s18 + $0xab8] sm:$0xff] }
 0x12f   : > { %v1934_v44 = vadd.f32 %v1465_v53, %v1464_v12  ;;  %v1449_v26 = vmul.f32 %v4852_v34, %v4852_v34  ;;  %v1450_v25 = vmul.f32 %v4853_v11, %v4853_v11  ;;  %v1911_v8 = vadd.f32 %v1910_v33, %v1446_v63  ;;  %v4864_v12 = vld [vmem:[%s5394_s18 + $0xa20] sm:$0xff]  ;;  %v4865_v53 = vld [vmem:[%s5394_s18 + $0xaa8] sm:$0xff]  ;;  %v4871_v33 = vld [vmem:[%s5394_s18 + $0xb38] sm:$0xff] }
 0x130   : > { %v1869_v15 = vadd.f32 %v1868_v16, %v1410_v9  ;;  %v1432_v40 = vmul.f32 %v4854_v62, %v4854_v62  ;;  %v1893_v41 = vadd.f32 %v1892_v0, %v1430_v49  ;;  %v1468_v32 = vmul.f32 %v4855_v47, %v4855_v47  ;;  %v4869_v16 = vld [vmem:[%s5394_s18 + $0xbd0] sm:$0xff]  ;;  %v4874_v11 = vld [vmem:[%s5394_s18 + $0xb40] sm:$0xff] }
 0x131   : > { %v1935_v46 = vadd.f32 %v1934_v44, %v1466_v50  ;;  %v1912_v43 = vadd.f32 %v1911_v8, %v1447_v42  ;;  %v1451_v45 = vmul.f32 %v4856_v39, %v4856_v39  ;;  %v1452_v17 = vmul.f32 %v4857_v58, %v4857_v58  ;;  %v4870_v42 = vld [vmem:[%s5394_s18 + $0xa18] sm:$0xff]  ;;  %v4875_v8 = vld [vmem:[%s5394_s18 + $0xb48] sm:$0xff] }
 0x132   : > { %v1871_v51 = vadd.f32 %v1870_v2, %v1869_v15  ;;  %v1433_v57 = vmul.f32 %v4858_v21, %v4858_v21  ;;  %v1894_v18 = vadd.f32 %v1893_v41, %v1431_v4  ;;  %v1469_v14 = vmul.f32 %v4859_v31, %v4859_v31  ;;  %v4867_v2 = vld [vmem:[%s5394_s18 + $0xab0] sm:$0xff]  ;;  %v4873_v15 = vld [vmem:[%s5394_s18 + $0xbd8] sm:$0xff]  ;;  %v4876_v41 = vld [vmem:[%s5394_s18 + $0xac0] sm:$0xff] }
 0x133   : > { %v1936_v59 = vadd.f32 %v1935_v46, %v1467_v23  ;;  %v1913_v56 = vadd.f32 %v1912_v43, %v1448_v36  ;;  %v1915_v37 = vsel %vm610_vm0, %v1450_v25, 0.0  ;;  %v1434_v7 = vmul.f32 %v4860_v38, %v4860_v38  ;;  %v4877_v46 = vld [vmem:[%s5394_s18 + $0xbe0] sm:$0xff] }
 0x134   : > { %1872 = vadd.xlane.f32.xlu0 %v1871_v51  ;;  %v1453_v28 = vmul.f32 %v4861_v6, %v4861_v6  ;;  %v1435_v35 = vmul.f32 %v4862_v54, %v4862_v54  ;;  %v1895_v5 = vadd.f32 %v1894_v18, %v1432_v40  ;;  %v1470_v60 = vmul.f32 %v4863_v1, %v4863_v1  ;;  %v4880_v18 = vld [vmem:[%s5394_s18 + $0xac8] sm:$0xff]  ;;  %v4882_v6 = vld [vmem:[%s5394_s18 + $0xb60] sm:$0xff] }
 0x135   : > { %v1937_v24 = vadd.f32 %v1936_v59, %v1468_v32  ;;  %v1914_v48 = vadd.f32 %v1913_v56, %v1449_v26  ;;  %v1437_v19 = vmul.f32 %v4864_v12, %v4864_v12  ;;  %v1454_v61 = vmul.f32 %v4865_v53, %v4865_v53  ;;  %v4881_v59 = vld [vmem:[%s5394_s18 + $0xbe8] sm:$0xff] }
 0x136   : > { %v1919_v9 = vadd.f32 %v1452_v17, %v1451_v45  ;;  %v1896_v52 = vadd.f32 %v1895_v5, %v1433_v57  ;;  %v1471_v63 = vmul.f32 %v4866_v3, %v4866_v3  ;;  %v1455_v22 = vmul.f32 %v4867_v2, %v4867_v2  ;;  %v4878_v45 = vld [vmem:[%s5394_s18 + $0xb50] sm:$0xff]  ;;  %v4879_v17 = vld [vmem:[%s5394_s18 + $0xb58] sm:$0xff]  ;;  %v4883_v54 = vld [vmem:[%s5394_s18 + $0xb68] sm:$0xff] }
 0x137   : > { %v1938_v55 = vadd.f32 %v1937_v24, %v1469_v14  ;;  %v1916_v49 = vadd.f32 %v1915_v37, %v1914_v48  ;;  %v1490_v50 = vmul.f32 %v4868_v30, %v4868_v30  ;;  %v1491_v20 = vmul.f32 %v4869_v16, %v4869_v16  ;;  %v4884_v5 = vld [vmem:[%s5394_s18 + $0xad0] sm:$0xff] }
 0x138   : > { %v1920_v10 = vadd.f32 %v1919_v9, %v1453_v28  ;;  %v1436_v27 = vmul.f32 %v4870_v42, %v4870_v42  ;;  %v1897_v36 = vadd.f32 %v1896_v52, %v1434_v7  ;;  %v1472_v13 = vmul.f32 %v4871_v33, %v4871_v33  ;;  %v4885_v24 = vld [vmem:[%s5394_s18 + $0xbf0] sm:$0xff]  ;;  %v4892_v33 = vld [vmem:[%s5394_s18 + $0xc00] sm:$0xff] }
 0x139   : > { %v1939_v4 = vadd.f32 %v1938_v55, %v1470_v60  ;;  %1917 = vadd.xlane.f32.xlu1 %v1916_v49  ;;  %v1900_v0 = vsel %vm610_vm0, %v1437_v19, 0.0  ;;  %v1456_v23 = vmul.f32 %v4872_v29, %v4872_v29  ;;  %v1492_v34 = vmul.f32 %v4873_v15, %v4873_v15  ;;  %v4887_v52 = vld [vmem:[%s5394_s18 + $0xb70] sm:$0xff]  ;;  %v4894_v15 = vld [vmem:[%s5394_s18 + $0xc98] sm:$0xff] }
 0x13a   : > { %v1921_v44 = vadd.f32 %v1920_v10, %v1454_v61  ;;  %v1898_v26 = vadd.f32 %v1897_v36, %v1435_v35  ;;  %v1473_v25 = vmul.f32 %v4874_v11, %v4874_v11  ;;  %v1474_v62 = vmul.f32 %v4875_v8, %v4875_v8  ;;  %v4886_v61 = vld [vmem:[%s5394_s18 + $0xad8] sm:$0xff] }
 0x13b   : > { %v1940_v40 = vadd.f32 %v1939_v4, %v1471_v63  ;;  %v1457_v47 = vmul.f32 %v4876_v41, %v4876_v41  ;;  %v1493_v51 = vmul.f32 %v4877_v46, %v4877_v46  ;;  %v1964_v43 = vadd.f32 %v1491_v20, %v1490_v50  ;;  %v4888_v63 = vld [vmem:[%s5394_s18 + $0xae0] sm:$0xff]  ;;  %v4890_v50 = vld [vmem:[%s5394_s18 + $0xaf0] sm:$0xff]  ;;  %v4891_v20 = vld [vmem:[%s5394_s18 + $0xb78] sm:$0xff] }
 0x13c   : > { %v1922_v32 = vadd.f32 %v1921_v44, %v1455_v22  ;;  %v1899_v39 = vadd.f32 %v1898_v26, %v1436_v27  ;;  %v1475_v58 = vmul.f32 %v4878_v45, %v4878_v45  ;;  %v1476_v21 = vmul.f32 %v4879_v17, %v4879_v17  ;;  %v4889_v22 = vld [vmem:[%s5394_s18 + $0xbf8] sm:$0xff]  ;;  %v4895_v26 = vld [vmem:[%s5394_s18 + $0xca0] sm:$0xff]  ;;  %v4898_v46 = vld [vmem:[%s5394_s18 + $0xb88] sm:$0xff] }
 0x13d   : > { %v1941_v57 = vadd.f32 %v1940_v40, %v1472_v13  ;;  %v1458_v31 = vmul.f32 %v4880_v18, %v4880_v18  ;;  %v1494_v56 = vmul.f32 %v4881_v59, %v4881_v59  ;;  %v1965_v37 = vadd.f32 %v1964_v43, %v1492_v34  ;;  %v4897_v40 = vld [vmem:[%s5394_s18 + $0xc08] sm:$0xff]  ;;  %v4900_v17 = vld [vmem:[%s5394_s18 + $0xc10] sm:$0xff] }
 0x13e   : > { %v1923_v14 = vadd.f32 %v1922_v32, %v1456_v23  ;;  %v1901_v38 = vadd.f32 %v1900_v0, %v1899_v39  ;;  %v1477_v28 = vmul.f32 %v4882_v6, %v4882_v6  ;;  %v1478_v35 = vmul.f32 %v4883_v54, %v4883_v54  ;;  %v4893_v0 = vld [vmem:[%s5394_s18 + $0xb80] sm:$0xff]  ;;  %v4899_v39 = vld [vmem:[%s5394_s18 + $0xca8] sm:$0xff] }
 0x13f   : > { %v1942_v7 = vadd.f32 %v1941_v57, %v1473_v25  ;;  %v1459_v1 = vmul.f32 %v4884_v5, %v4884_v5  ;;  %v1495_v48 = vmul.f32 %v4885_v24, %v4885_v24  ;;  %v1966_v12 = vadd.f32 %v1965_v37, %v1493_v51  ;;  %v4896_v25 = vld [vmem:[%s5394_s18 + $0xae8] sm:$0xff]  ;;  %v4901_v57 = vld [vmem:[%s5394_s18 + $0xc18] sm:$0xff]  ;;  %v4903_v37 = vld [vmem:[%s5394_s18 + $0xcb0] sm:$0xff] }
 0x140   : > { %v1924_v60 = vadd.f32 %v1923_v14, %v1457_v47  ;;  %1902 = vadd.xlane.f32.xlu0 %v1901_v38  ;;  %v1945_v53 = vsel %vm610_vm0, %v1476_v21, 0.0  ;;  %v1460_v9 = vmul.f32 %v4886_v61, %v4886_v61  ;;  %v1479_v3 = vmul.f32 %v4887_v52, %v4887_v52  ;;  %v4902_v14 = vld [vmem:[%s5394_s18 + $0xb90] sm:$0xff] }
 0x141   : > { %v1943_v19 = vadd.f32 %v1942_v7, %v1474_v62  ;;  %v1461_v55 = vmul.f32 %v4888_v63, %v4888_v63  ;;  %v1496_v49 = vmul.f32 %v4889_v22, %v4889_v22  ;;  %v1967_v10 = vadd.f32 %v1966_v12, %v1494_v56  ;;  %v4907_v12 = vld [vmem:[%s5394_s18 + $0xcb8] sm:$0xff]  ;;  %v4908_v52 = vld [vmem:[%s5394_s18 + $0xc30] sm:$0xff] }
 0x142   : > { %v1925_v2 = vadd.f32 %v1924_v60, %v1458_v31  ;;  %v1463_v16 = vmul.f32 %v4890_v50, %v4890_v50  ;;  %v1480_v42 = vmul.f32 %v4891_v20, %v4891_v20  ;;  %v1949_v27 = vadd.f32 %v1478_v35, %v1477_v28  ;;  %v4904_v28 = vld [vmem:[%s5394_s18 + $0xc20] sm:$0xff]  ;;  %v4905_v35 = vld [vmem:[%s5394_s18 + $0xc28] sm:$0xff]  ;;  %v4906_v60 = vld [vmem:[%s5394_s18 + $0xb98] sm:$0xff] }
 0x143   : > { %v1944_v30 = vadd.f32 %v1943_v19, %v1475_v58  ;;  %v1497_v13 = vmul.f32 %v4892_v33, %v4892_v33  ;;  %v1968_v4 = vadd.f32 %v1967_v10, %v1495_v48  ;;  %v1481_v29 = vmul.f32 %v4893_v0, %v4893_v0  ;;  %v4909_v63 = vld [vmem:[%s5394_s18 + $0xc38] sm:$0xff]  ;;  %v4911_v10 = vld [vmem:[%s5394_s18 + $0xcc0] sm:$0xff] }
 0x144   : > { %v1926_v36 = vadd.f32 %v1925_v2, %v1459_v1  ;;  %v1950_v44 = vadd.f32 %v1949_v27, %v1479_v3  ;;  %v1516_v34 = vmul.f32 %v4894_v15, %v4894_v15  ;;  %v1517_v11 = vmul.f32 %v4895_v26, %v4895_v26  ;;  %v4910_v2 = vld [vmem:[%s5394_s18 + $0xba0] sm:$0xff]  ;;  %v4916_v26 = vld [vmem:[%s5394_s18 + $0xbb0] sm:$0xff] }
 0x145   : > { %v1946_v23 = vadd.f32 %v1945_v53, %v1944_v30  ;;  %v1462_v8 = vmul.f32 %v4896_v25, %v4896_v25  ;;  %v1498_v41 = vmul.f32 %v4897_v40, %v4897_v40  ;;  %v1969_v47 = vadd.f32 %v1968_v4, %v1496_v49  ;;  %v4914_v4 = vld [vmem:[%s5394_s18 + $0xcc8] sm:$0xff] }
 0x146   : > { %v1927_v62 = vadd.f32 %v1926_v36, %v1460_v9  ;;  %v1930_v32 = vsel %vm610_vm0, %v1463_v16, 0.0  ;;  %v1482_v51 = vmul.f32 %v4898_v46, %v4898_v46  ;;  %v1951_v43 = vadd.f32 %v1950_v44, %v1480_v42  ;;  %v4912_v42 = vld [vmem:[%s5394_s18 + $0xc40] sm:$0xff]  ;;  %v4913_v36 = vld [vmem:[%s5394_s18 + $0xba8] sm:$0xff]  ;;  %v4919_v46 = vld [vmem:[%s5394_s18 + $0xc50] sm:$0xff] }
 0x147   : > { %1947 = vadd.xlane.f32.xlu1 %v1946_v23  ;;  %v1518_v45 = vmul.f32 %v4899_v39, %v4899_v39  ;;  %v1499_v21 = vmul.f32 %v4900_v17, %v4900_v17  ;;  %v1500_v18 = vmul.f32 %v4901_v57, %v4901_v57  ;;  %v1970_v31 = vadd.f32 %v1969_v47, %v1497_v13  ;;  %v4915_v44 = vld [vmem:[%s5394_s18 + $0xc48] sm:$0xff]  ;;  %v4918_v47 = vld [vmem:[%s5394_s18 + $0xbc0] sm:$0xff]  ;;  %v4920_v39 = vld [vmem:[%s5394_s18 + $0xbb8] sm:$0xff] }
 0x148   : > { %v1928_v58 = vadd.f32 %v1927_v62, %v1461_v55  ;;  %v1483_v59 = vmul.f32 %v4902_v14, %v4902_v14  ;;  %v1952_v56 = vadd.f32 %v1951_v43, %v1481_v29  ;;  %v1519_v38 = vmul.f32 %v4903_v37, %v4903_v37  ;;  %v4921_v17 = vld [vmem:[%s5394_s18 + $0xcd8] sm:$0xff]  ;;  %v4923_v37 = vld [vmem:[%s5394_s18 + $0xce0] sm:$0xff] }
 0x149   : > { %v1994_v7 = vadd.f32 %v1517_v11, %v1516_v34  ;;  %v1501_v54 = vmul.f32 %v4904_v28, %v4904_v28  ;;  %v1502_v5 = vmul.f32 %v4905_v35, %v4905_v35  ;;  %v1971_v1 = vadd.f32 %v1970_v31, %v1498_v41  ;;  %v4924_v28 = vld [vmem:[%s5394_s18 + $0xc60] sm:$0xff] }
 0x14a   : > { %v1929_v6 = vadd.f32 %v1928_v58, %v1462_v8  ;;  %v1484_v24 = vmul.f32 %v4906_v60, %v4906_v60  ;;  %v1953_v48 = vadd.f32 %v1952_v56, %v1482_v51  ;;  %v1520_v19 = vmul.f32 %v4907_v12, %v4907_v12  ;;  %v4917_v8 = vld [vmem:[%s5394_s18 + $0xcd0] sm:$0xff] }
 0x14b   : > { %v1995_v53 = vadd.f32 %v1994_v7, %v1518_v45  ;;  %v1972_v9 = vadd.f32 %v1971_v1, %v1499_v21  ;;  %v1503_v3 = vmul.f32 %v4908_v52, %v4908_v52  ;;  %v1504_v55 = vmul.f32 %v4909_v63, %v4909_v63  ;;  %v4925_v1 = vld [vmem:[%s5394_s18 + $0xce8] sm:$0xff] }
 0x14c   : > { %v1931_v61 = vadd.f32 %v1930_v32, %v1929_v6  ;;  %v1485_v22 = vmul.f32 %v4910_v2, %v4910_v2  ;;  %v1954_v49 = vadd.f32 %v1953_v48, %v1483_v59  ;;  %v1521_v30 = vmul.f32 %v4911_v10, %v4911_v10  ;;  %v644_v59 = vpop.xlane.xlu1 %643  ;;  %v4930_v10 = vld [vmem:[%s5394_s18 + $0xc70] sm:$0xff] }
 0x14d   : > { %v1996_v50 = vadd.f32 %v1995_v53, %v1519_v38  ;;  %v1973_v16 = vadd.f32 %v1972_v9, %v1500_v18  ;;  %v1975_v20 = vsel %vm610_vm0, %v1502_v5, 0.0  ;;  %v1505_v27 = vmul.f32 %v4912_v42, %v4912_v42  ;;  %v4922_v18 = vld [vmem:[%s5394_s18 + $0xc58] sm:$0xff] }
 0x14e   : > { %1932 = vadd.xlane.f32.xlu0 %v1931_v61  ;;  %v1486_v33 = vmul.f32 %v4913_v36, %v4913_v36  ;;  %v1955_v13 = vadd.f32 %v1954_v49, %v1484_v24  ;;  %v1522_v0 = vmul.f32 %v4914_v4, %v4914_v4  ;;  %v1506_v15 = vmul.f32 %v4915_v44, %v4915_v44  ;;  %v4926_v24 = vld [vmem:[%s5394_s18 + $0xcf8] sm:$0xff]  ;;  %v4928_v61 = vld [vmem:[%s5394_s18 + $0xc68] sm:$0xff]  ;;  %v614_v49 = vpop.xlane.xlu0 %613 }
 0x14f   : > { %v1997_v29 = vadd.f32 %v1996_v50, %v1520_v19  ;;  %v1974_v23 = vadd.f32 %v1973_v16, %v1501_v54  ;;  %v1979_v34 = vadd.f32 %v1504_v55, %v1503_v3  ;;  %v1487_v11 = vmul.f32 %v4916_v26, %v4916_v26  ;;  %v4927_v19 = vld [vmem:[%s5394_s18 + $0xcf0] sm:$0xff]  ;;  %v4933_v4 = vld [vmem:[%s5394_s18 + $0xc88] sm:$0xff]  ;;  %v6728_v26 = vld [vmem:[%s5394_s18 + $0x178] sm:$0xff] }
 0x150   : > { %v1956_v25 = vadd.f32 %v1955_v13, %v1485_v22  ;;  %v1523_v62 = vmul.f32 %v4917_v8, %v4917_v8  ;;  %v1489_v32 = vmul.f32 %v4918_v47, %v4918_v47  ;;  %v1507_v51 = vmul.f32 %v4919_v46, %v4919_v46  ;;  %v4929_v55 = vld [vmem:[%s5394_s18 + $0xc90] sm:$0xff]  ;;  %v659_v16 = vpop.xlane.xlu1 %658  ;;  %v6558_v8 = vld [vmem:[%s5394_s18 + $0xd8] sm:$0xff]  ;;  %v6568_v47 = vld [vmem:[%s5394_s18 + $0xe8] sm:$0xff]  ;;  %12367 = vst [vmem:[#allocation39_spill] sm:$0xff] %v6728_v26 }
 0x151   : > { %v1998_v40 = vadd.f32 %v1997_v29, %v1521_v30  ;;  %v1976_v41 = vadd.f32 %v1975_v20, %v1974_v23  ;;  %v1980_v43 = vadd.f32 %v1979_v34, %v1505_v27  ;;  %v1488_v45 = vmul.f32 %v4920_v39, %v4920_v39  ;;  %v4931_v27 = vld [vmem:[%s5394_s18 + $0xc78] sm:$0xff]  ;;  %v6551_v34 = vld [vmem:[%s5394_s18 + $0xd0] sm:$0xff]  ;;  %12334 = vst [vmem:[#allocation6_spill] sm:$0xff] %v6558_v8  ;;  %v7536_v26 = vld [vmem:[%s5394_s18 + $0x628] sm:$0xff] }
 0x152   : > { %v1957_v58 = vadd.f32 %v1956_v25, %v1486_v33  ;;  %v1524_v21 = vmul.f32 %v4921_v17, %v4921_v17  ;;  %v1508_v31 = vmul.f32 %v4922_v18, %v4922_v18  ;;  %v1525_v38 = vmul.f32 %v4923_v37, %v4923_v37  ;;  %v4932_v33 = vld [vmem:[%s5394_s18 + $0xc80] sm:$0xff]  ;;  %12332 = vst [vmem:[#allocation4_spill] sm:$0xff] %v6551_v34  ;;  %v6578_v39 = vld [vmem:[%s5394_s18 + $0xf8] sm:$0xff]  ;;  %v6588_v18 = vld [vmem:[%s5394_s18 + $0x108] sm:$0xff] }
 0x153   : > { %v1999_v57 = vadd.f32 %v1998_v40, %v1522_v0  ;;  %1977 = vadd.xlane.f32.xlu1 %v1976_v41  ;;  %v1981_v14 = vadd.f32 %v1980_v43, %v1506_v15  ;;  %v1960_v6 = vsel %vm610_vm0, %v1489_v32, 0.0  ;;  %v1509_v54 = vmul.f32 %v4924_v28, %v4924_v28  ;;  %v6563_v40 = vld [vmem:[%s5394_s18 + $0xe0] sm:$0xff]  ;;  %12336 = vst [vmem:[#allocation8_spill] sm:$0xff] %v6568_v47  ;;  %v6610_v28 = vld [vmem:[%s5394_s18 + $0x128] sm:$0xff]  ;;  %v6701_v37 = vld [vmem:[%s5394_s18 + $0x150] sm:$0xff] }
 0x154   : > { %v1958_v56 = vadd.f32 %v1957_v58, %v1487_v11  ;;  %v1526_v60 = vmul.f32 %v4925_v1, %v4925_v1  ;;  %v1528_v48 = vmul.f32 %v4926_v24, %v4926_v24  ;;  %v1527_v53 = vmul.f32 %v4927_v19, %v4927_v19  ;;  %12335 = vst [vmem:[#allocation7_spill] sm:$0xff] %v6563_v40  ;;  %v6583_v58 = vld [vmem:[%s5394_s18 + $0x100] sm:$0xff]  ;;  %v6630_v19 = vld [vmem:[%s5394_s18 + $0x10] sm:$0xff]  ;;  %v6718_v32 = vld [vmem:[%s5394_s18 + $0x168] sm:$0xff] }
 0x155   : > { %v2000_v7 = vadd.f32 %v1999_v57, %v1523_v62  ;;  %v1982_v35 = vadd.f32 %v1981_v14, %v1507_v51  ;;  %v1510_v9 = vmul.f32 %v4928_v61, %v4928_v61  ;;  %v1515_v2 = vmul.f32 %v4929_v55, %v4929_v55  ;;  %v6573_v51 = vld [vmem:[%s5394_s18 + $0xf0] sm:$0xff]  ;;  %12338 = vst [vmem:[#allocation10_spill] sm:$0xff] %v6578_v39  ;;  %v6620_v1 = vld [vmem:[%s5394_s18] sm:$0xff]  ;;  %v6635_v61 = vld [vmem:[%s5394_s18 + $0x18] sm:$0xff] }
 0x156   : > { %v1959_v5 = vadd.f32 %v1958_v56, %v1488_v45  ;;  %v6538_v22 = vmul.f32 0.000625, %v644_v59  ;;  %v1511_v30 = vmul.f32 %v4930_v10, %v4930_v10  ;;  %v2005_v42 = vsel %vm610_vm0, %v1528_v48, 0.0  ;;  %12337 = vst [vmem:[#allocation9_spill] sm:$0xff] %v6573_v51  ;;  %12339 = vst [vmem:[#allocation11_spill] sm:$0xff] %v6583_v58  ;;  %v6593_v14 = vld [vmem:[%s5394_s18 + $0x110] sm:$0xff] }
 0x157   : > { %v2001_v12 = vadd.f32 %v2000_v7, %v1524_v21  ;;  %v1983_v52 = vadd.f32 %v1982_v35, %v1508_v31  ;;  %v1512_v36 = vmul.f32 %v4931_v27, %v4931_v27  ;;  %v1513_v13 = vmul.f32 %v4932_v33, %v4932_v33  ;;  %v629_v21 = vpop.xlane.xlu0 %628  ;;  %12340 = vst [vmem:[#allocation12_spill] sm:$0xff] %v6588_v18  ;;  %v6598_v56 = vld [vmem:[%s5394_s18 + $0x118] sm:$0xff]  ;;  %v6605_v7 = vld [vmem:[%s5394_s18 + $0x120] sm:$0xff]  ;;  %v6615_v35 = vld [vmem:[%s5394_s18 + $0x130] sm:$0xff] }
 0x158   : > { %v1961_v3 = vadd.f32 %v1960_v6, %v1959_v5  ;;  %12330 = vst [vmem:[#allocation2_spill] sm:$0xff] %v6538_v22  ;;  %v1514_v0 = vmul.f32 %v4933_v4, %v4933_v4  ;;  %v6545_v23 = vmul.f32 0.000625, %v614_v49  ;;  %v6548_v15 = vsel %vm610_vm0, %v1515_v2, 0.0  ;;  %12341 = vst [vmem:[#allocation13_spill] sm:$0xff] %v6593_v14  ;;  %v6625_v48 = vld [vmem:[%s5394_s18 + $0x8] sm:$0xff] }
 0x159   : > { %v2002_v63 = vadd.f32 %v2001_v12, %v1525_v38  ;;  %v1984_v50 = vadd.f32 %v1983_v52, %v1509_v54  ;;  %v6555_v11 = vmul.f32 0.000625, %v659_v16  ;;  %12342 = vst [vmem:[#allocation14_spill] sm:$0xff] %v6598_v56  ;;  %v6602_v38 = vpop.xlane.xlu1 %688  ;;  %12343 = vst [vmem:[#allocation15_spill] sm:$0xff] %v6605_v7  ;;  %v6640_v52 = vld [vmem:[%s5394_s18 + $0x20] sm:$0xff]  ;;  %v6650_v2 = vld [vmem:[%s5394_s18 + $0x30] sm:$0xff] }
 0x15a   : > { %1962 = vadd.xlane.f32.xlu0 %v1961_v3  ;;  %12331 = vst [vmem:[#allocation3_spill] sm:$0xff] %v6545_v23  ;;  %12344 = vst [vmem:[#allocation16_spill] sm:$0xff] %v6610_v28  ;;  %v6655_v10 = vld [vmem:[%s5394_s18 + $0x38] sm:$0xff]  ;;  %v6660_v16 = vld [vmem:[%s5394_s18 + $0x40] sm:$0xff]  ;;  %v6705_v31 = vmul.f32 0.000625, %v629_v21 }
 0x15b   : > { %v2003_v20 = vadd.f32 %v2002_v63, %v1526_v60  ;;  %v1985_v29 = vadd.f32 %v1984_v50, %v1510_v9  ;;  %12333 = vst [vmem:[#allocation5_spill] sm:$0xff] %v6555_v11  ;;  %12345 = vst [vmem:[#allocation17_spill] sm:$0xff] %v6615_v35  ;;  %v6645_v63 = vld [vmem:[%s5394_s18 + $0x28] sm:$0xff]  ;;  %v6708_v45 = vld [vmem:[%s5394_s18 + $0x158] sm:$0xff]  ;;  %v6753_v59 = vmul.f32 0.000625, %v6602_v38 }
 0x15c   : > { %12346 = vst [vmem:[#allocation18_spill] sm:$0xff] %v6620_v1  ;;  %12347 = vst [vmem:[#allocation19_spill] sm:$0xff] %v6625_v48  ;;  %v6696_v54 = vld [vmem:[%s5394_s18 + $0x148] sm:$0xff]  ;;  %v6723_v21 = vld [vmem:[%s5394_s18 + $0x170] sm:$0xff] }
 0x15d   : > { %v2004_v44 = vadd.f32 %v2003_v20, %v1527_v53  ;;  %v1986_v25 = vadd.f32 %v1985_v29, %v1511_v30  ;;  %12348 = vst [vmem:[#allocation20_spill] sm:$0xff] %v6630_v19  ;;  %12349 = vst [vmem:[#allocation21_spill] sm:$0xff] %v6635_v61  ;;  %v719_v17 = vpop.xlane.xlu1 %718  ;;  %v6733_v43 = vld [vmem:[%s5394_s18 + $0x180] sm:$0xff]  ;;  %v6738_v41 = vld [vmem:[%s5394_s18 + $0x188] sm:$0xff] }
 0x15e   : > { %12350 = vst [vmem:[#allocation22_spill] sm:$0xff] %v6640_v52  ;;  %12351 = vst [vmem:[#allocation23_spill] sm:$0xff] %v6645_v63  ;;  %v6743_v62 = vld [vmem:[%s5394_s18 + $0x190] sm:$0xff]  ;;  %v6757_v29 = vmul.f32 0.000625, %v719_v17  ;;  %v6760_v6 = vld [vmem:[%s5394_s18 + $0x68] sm:$0xff] }
 0x15f   : > { %v2006_v46 = vadd.f32 %v2005_v42, %v2004_v44  ;;  %v1987_v57 = vadd.f32 %v1986_v25, %v1512_v36  ;;  %12352 = vst [vmem:[#allocation24_spill] sm:$0xff] %v6650_v2  ;;  %12353 = vst [vmem:[#allocation25_spill] sm:$0xff] %v6655_v10  ;;  %v6665_v42 = vld [vmem:[%s5394_s18 + $0x48] sm:$0xff]  ;;  %v6670_v36 = vld [vmem:[%s5394_s18 + $0x50] sm:$0xff] }
 0x160   : > { %12354 = vst [vmem:[#allocation26_spill] sm:$0xff] %v6660_v16  ;;  %12355 = vst [vmem:[#allocation27_spill] sm:$0xff] %v6665_v42  ;;  %v6685_v44 = vld [vmem:[%s5394_s18 + $0x138] sm:$0xff]  ;;  %v6765_v4 = vld [vmem:[%s5394_s18 + $0x70] sm:$0xff] }
 0x161   : > { %2007 = vadd.xlane.f32.xlu1 %v2006_v46  ;;  %v1988_v24 = vadd.f32 %v1987_v57, %v1513_v13  ;;  %12356 = vst [vmem:[#allocation28_spill] sm:$0xff] %v6670_v36  ;;  %v6675_v13 = vld [vmem:[%s5394_s18 + $0x58] sm:$0xff]  ;;  %12359 = vst [vmem:[#allocation31_spill] sm:$0xff] %v6685_v44  ;;  %v6690_v46 = vld [vmem:[%s5394_s18 + $0x140] sm:$0xff]  ;;  %v6816_v60 = vpop.xlane.xlu1 %748 }
 0x162   : > { %12357 = vst [vmem:[#allocation29_spill] sm:$0xff] %v6675_v13  ;;  %12360 = vst [vmem:[#allocation32_spill] sm:$0xff] %v6690_v46  ;;  %v6748_v57 = vld [vmem:[%s5394_s18 + $0x198] sm:$0xff]  ;;  %v6780_v20 = vld [vmem:[%s5394_s18 + $0x88] sm:$0xff] }
 0x163   : > { %v1989_v50 = vadd.f32 %v1988_v24, %v1514_v0  ;;  %v6680_v0 = vld [vmem:[%s5394_s18 + $0x60] sm:$0xff]  ;;  %v674_v24 = vpop.xlane.xlu0 %673  ;;  %12361 = vst [vmem:[#allocation33_spill] sm:$0xff] %v6696_v54  ;;  %12362 = vst [vmem:[#allocation34_spill] sm:$0xff] %v6701_v37  ;;  %v6770_v33 = vld [vmem:[%s5394_s18 + $0x78] sm:$0xff] }
 0x164   : > { %12358 = vst [vmem:[#allocation30_spill] sm:$0xff] %v6680_v0  ;;  %12363 = vst [vmem:[#allocation35_spill] sm:$0xff] %v6708_v45  ;;  %v6755_v25 = vmul.f32 0.000625, %v674_v24  ;;  %v6775_v24 = vld [vmem:[%s5394_s18 + $0x80] sm:$0xff]  ;;  %v6785_v49 = vld [vmem:[%s5394_s18 + $0x90] sm:$0xff] }
 0x165   : > { %v1991_v5 = vadd.f32 %v6548_v15, %v1989_v50  ;;  %v6713_v50 = vld [vmem:[%s5394_s18 + $0x160] sm:$0xff]  ;;  %12365 = vst [vmem:[#allocation37_spill] sm:$0xff] %v6718_v32  ;;  %12366 = vst [vmem:[#allocation38_spill] sm:$0xff] %v6723_v21  ;;  %v6790_v3 = vld [vmem:[%s5394_s18 + $0x98] sm:$0xff]  ;;  %v779_v58 = vpop.xlane.xlu1 %778 }
 0x166   : > { %12364 = vst [vmem:[#allocation36_spill] sm:$0xff] %v6713_v50  ;;  %12368 = vst [vmem:[#allocation40_spill] sm:$0xff] %v6733_v43  ;;  %v6797_v12 = vld [vmem:[%s5394_s18 + $0xa0] sm:$0xff]  ;;  %v6802_v30 = vld [vmem:[%s5394_s18 + $0xa8] sm:$0xff] }
 0x167   : > { %1992 = vadd.xlane.f32.xlu0 %v1991_v5  ;;  %12369 = vst [vmem:[#allocation41_spill] sm:$0xff] %v6738_v41  ;;  %12370 = vst [vmem:[#allocation42_spill] sm:$0xff] %v6743_v62  ;;  %v6794_v53 = vpop.xlane.xlu0 %703  ;;  %v6807_v27 = vld [vmem:[%s5394_s18 + $0xb0] sm:$0xff]  ;;  %v6812_v38 = vld [vmem:[%s5394_s18 + $0xb8] sm:$0xff] }
 0x168   : > { %12371 = vst [vmem:[#allocation43_spill] sm:$0xff] %v6748_v57  ;;  %12372 = vst [vmem:[#allocation44_spill] sm:$0xff] %v6753_v59  ;;  %v6819_v5 = vld [vmem:[%s5394_s18 + $0xc0] sm:$0xff]  ;;  %v6824_v17 = vld [vmem:[%s5394_s18 + $0xc8] sm:$0xff] }
 0x169   : > { %12373 = vst [vmem:[#allocation45_spill] sm:$0xff] %v6755_v25  ;;  %12374 = vst [vmem:[#allocation46_spill] sm:$0xff] %v6757_v29  ;;  %v6829_v35 = vld [vmem:[%s5394_s18 + $0x208] sm:$0xff]  ;;  %v6834_v28 = vld [vmem:[%s5394_s18 + $0x210] sm:$0xff] }
 0x16a   : > { %12375 = vst [vmem:[#allocation47_spill] sm:$0xff] %v6829_v35  ;;  %12376 = vst [vmem:[#allocation48_spill] sm:$0xff] %v6834_v28  ;;  %v6839_v56 = vld [vmem:[%s5394_s18 + $0x218] sm:$0xff]  ;;  %v6844_v14 = vld [vmem:[%s5394_s18 + $0x220] sm:$0xff] }
 0x16b   : > { %12377 = vst [vmem:[#allocation49_spill] sm:$0xff] %v6839_v56  ;;  %12378 = vst [vmem:[#allocation50_spill] sm:$0xff] %v6844_v14  ;;  %v6849_v18 = vld [vmem:[%s5394_s18 + $0x228] sm:$0xff]  ;;  %v6854_v35 = vld [vmem:[%s5394_s18 + $0x230] sm:$0xff] }
 0x16c   : > { %12379 = vst [vmem:[#allocation51_spill] sm:$0xff] %v6849_v18  ;;  %12380 = vst [vmem:[#allocation52_spill] sm:$0xff] %v6854_v35  ;;  %v6859_v28 = vld [vmem:[%s5394_s18 + $0x238] sm:$0xff]  ;;  %v6864_v56 = vld [vmem:[%s5394_s18 + $0x240] sm:$0xff] }
 0x16d   : > { %12381 = vst [vmem:[#allocation53_spill] sm:$0xff] %v6859_v28  ;;  %12382 = vst [vmem:[#allocation54_spill] sm:$0xff] %v6864_v56  ;;  %v6869_v14 = vld [vmem:[%s5394_s18 + $0x248] sm:$0xff]  ;;  %v6874_v18 = vld [vmem:[%s5394_s18 + $0x250] sm:$0xff] }
 0x16e   : > { %12383 = vst [vmem:[#allocation55_spill] sm:$0xff] %v6869_v14  ;;  %12384 = vst [vmem:[#allocation56_spill] sm:$0xff] %v6874_v18  ;;  %v6879_v35 = vld [vmem:[%s5394_s18 + $0x258] sm:$0xff]  ;;  %v6884_v28 = vld [vmem:[%s5394_s18 + $0x260] sm:$0xff] }
 0x16f   : > { %12385 = vst [vmem:[#allocation57_spill] sm:$0xff] %v6879_v35  ;;  %12386 = vst [vmem:[#allocation58_spill] sm:$0xff] %v6884_v28  ;;  %v6889_v56 = vld [vmem:[%s5394_s18 + $0x268] sm:$0xff]  ;;  %v6894_v14 = vld [vmem:[%s5394_s18 + $0x1a0] sm:$0xff] }
 0x170   : > { %12387 = vst [vmem:[#allocation59_spill] sm:$0xff] %v6889_v56  ;;  %12388 = vst [vmem:[#allocation60_spill] sm:$0xff] %v6894_v14  ;;  %v6899_v55 = vld [vmem:[%s5394_s18 + $0x1a8] sm:$0xff]  ;;  %v6904_v18 = vld [vmem:[%s5394_s18 + $0x1b0] sm:$0xff]  ;;  %v734_v14 = vpop.xlane.xlu0 %733 }
 0x171   : > { %12389 = vst [vmem:[#allocation61_spill] sm:$0xff] %v6899_v55  ;;  %12390 = vst [vmem:[#allocation62_spill] sm:$0xff] %v6904_v18  ;;  %v6909_v28 = vld [vmem:[%s5394_s18 + $0x1b8] sm:$0xff]  ;;  %v6914_v56 = vld [vmem:[%s5394_s18 + $0x1c0] sm:$0xff] }
 0x172   : > { %12391 = vst [vmem:[#allocation63_spill] sm:$0xff] %v6909_v28  ;;  %12392 = vst [vmem:[#allocation64_spill] sm:$0xff] %v6914_v56  ;;  %v6919_v35 = vld [vmem:[%s5394_s18 + $0x1c8] sm:$0xff]  ;;  %v6924_v9 = vld [vmem:[%s5394_s18 + $0x1d0] sm:$0xff] }
 0x173   : > { %12393 = vst [vmem:[#allocation65_spill] sm:$0xff] %v6919_v35  ;;  %12394 = vst [vmem:[#allocation66_spill] sm:$0xff] %v6924_v9  ;;  %v6929_v15 = vld [vmem:[%s5394_s18 + $0x1d8] sm:$0xff]  ;;  %v6934_v7 = vld [vmem:[%s5394_s18 + $0x1e0] sm:$0xff] }
 0x174   : > { %12395 = vst [vmem:[#allocation67_spill] sm:$0xff] %v6929_v15  ;;  %12396 = vst [vmem:[#allocation68_spill] sm:$0xff] %v6934_v7  ;;  %v6939_v55 = vld [vmem:[%s5394_s18 + $0x1e8] sm:$0xff]  ;;  %v6944_v18 = vld [vmem:[%s5394_s18 + $0x1f0] sm:$0xff]  ;;  %v6974_v7 = vmul.f32 0.000625, %v6794_v53 }
 0x175   : > { %12397 = vst [vmem:[#allocation69_spill] sm:$0xff] %v6939_v55  ;;  %12398 = vst [vmem:[#allocation70_spill] sm:$0xff] %v6944_v18  ;;  %v6949_v28 = vld [vmem:[%s5394_s18 + $0x1f8] sm:$0xff]  ;;  %v6954_v56 = vld [vmem:[%s5394_s18 + $0x200] sm:$0xff] }
 0x176   : > { %12399 = vst [vmem:[#allocation71_spill] sm:$0xff] %v6949_v28  ;;  %12400 = vst [vmem:[#allocation72_spill] sm:$0xff] %v6954_v56  ;;  %v6959_v35 = vld [vmem:[%s5394_s18 + $0x2d8] sm:$0xff]  ;;  %v6964_v9 = vld [vmem:[%s5394_s18 + $0x2e0] sm:$0xff]  ;;  %v7027_v28 = vmul.f32 0.000625, %v6816_v60 }
 0x177   : > { %12401 = vst [vmem:[#allocation73_spill] sm:$0xff] %v6959_v35  ;;  %12402 = vst [vmem:[#allocation74_spill] sm:$0xff] %v6964_v9  ;;  %v6969_v15 = vld [vmem:[%s5394_s18 + $0x2e8] sm:$0xff]  ;;  %v6977_v56 = vld [vmem:[%s5394_s18 + $0x2f0] sm:$0xff]  ;;  %v7043_v60 = vmul.f32 0.000625, %v779_v58 }
 0x178   : > { %12403 = vst [vmem:[#allocation75_spill] sm:$0xff] %v6969_v15  ;;  %12404 = vst [vmem:[#allocation76_spill] sm:$0xff] %v6974_v7  ;;  %v6982_v35 = vld [vmem:[%s5394_s18 + $0x2f8] sm:$0xff]  ;;  %v6987_v9 = vld [vmem:[%s5394_s18 + $0x300] sm:$0xff] }
 0x179   : > { %12405 = vst [vmem:[#allocation77_spill] sm:$0xff] %v6977_v56  ;;  %12406 = vst [vmem:[#allocation78_spill] sm:$0xff] %v6982_v35  ;;  %v6992_v15 = vld [vmem:[%s5394_s18 + $0x308] sm:$0xff]  ;;  %v6997_v39 = vld [vmem:[%s5394_s18 + $0x310] sm:$0xff] }
 0x17a   : > { %12407 = vst [vmem:[#allocation79_spill] sm:$0xff] %v6987_v9  ;;  %12408 = vst [vmem:[#allocation80_spill] sm:$0xff] %v6992_v15  ;;  %v7002_v56 = vld [vmem:[%s5394_s18 + $0x318] sm:$0xff]  ;;  %v7007_v35 = vld [vmem:[%s5394_s18 + $0x320] sm:$0xff] }
 0x17b   : > { %12409 = vst [vmem:[#allocation81_spill] sm:$0xff] %v6997_v39  ;;  %12410 = vst [vmem:[#allocation82_spill] sm:$0xff] %v7002_v56  ;;  %v7012_v9 = vld [vmem:[%s5394_s18 + $0x328] sm:$0xff]  ;;  %v7017_v15 = vld [vmem:[%s5394_s18 + $0x330] sm:$0xff]  ;;  %v7031_v56 = vpop.xlane.xlu0 %763 }
 0x17c   : > { %12411 = vst [vmem:[#allocation83_spill] sm:$0xff] %v7007_v35  ;;  %12412 = vst [vmem:[#allocation84_spill] sm:$0xff] %v7012_v9  ;;  %v7022_v39 = vld [vmem:[%s5394_s18 + $0x338] sm:$0xff]  ;;  %v7029_v35 = vmul.f32 0.000625, %v734_v14  ;;  %v7034_v53 = vld [vmem:[%s5394_s18 + $0x270] sm:$0xff]  ;;  %v7049_v14 = vmul.f32 %v6705_v31, %v6705_v31 }
 0x17d   : > { %12413 = vst [vmem:[#allocation85_spill] sm:$0xff] %v7017_v15  ;;  %12414 = vst [vmem:[#allocation86_spill] sm:$0xff] %v7022_v39  ;;  %v7039_v15 = vld [vmem:[%s5394_s18 + $0x278] sm:$0xff]  ;;  %v7045_v39 = vpop.xlane.xlu1 %808  ;;  %v7052_v9 = vld [vmem:[%s5394_s18 + $0x280] sm:$0xff]  ;;  %v7269_v8 = vmul.f32 0.000625, %v7031_v56 }
 0x17e   : > { %12415 = vst [vmem:[#allocation87_spill] sm:$0xff] %v7034_v53  ;;  %12416 = vst [vmem:[#allocation88_spill] sm:$0xff] %v7039_v15  ;;  %v7057_v53 = vld [vmem:[%s5394_s18 + $0x288] sm:$0xff]  ;;  %v7062_v18 = vld [vmem:[%s5394_s18 + $0x290] sm:$0xff]  ;;  %v7307_v56 = vmul.f32 0.000625, %v7045_v39 }
 0x17f   : > { %12417 = vst [vmem:[#allocation89_spill] sm:$0xff] %v7043_v60  ;;  %12418 = vst [vmem:[#allocation90_spill] sm:$0xff] %v7052_v9  ;;  %v7067_v51 = vld [vmem:[%s5394_s18 + $0x298] sm:$0xff]  ;;  %v7072_v40 = vld [vmem:[%s5394_s18 + $0x2a0] sm:$0xff] }
 0x180   : > { %12419 = vst [vmem:[#allocation91_spill] sm:$0xff] %v7057_v53  ;;  %12420 = vst [vmem:[#allocation92_spill] sm:$0xff] %v7062_v18  ;;  %v7077_v9 = vld [vmem:[%s5394_s18 + $0x2a8] sm:$0xff]  ;;  %v7082_v53 = vld [vmem:[%s5394_s18 + $0x2b0] sm:$0xff] }
 0x181   : > { %12421 = vst [vmem:[#allocation93_spill] sm:$0xff] %v7067_v51  ;;  %12422 = vst [vmem:[#allocation94_spill] sm:$0xff] %v7072_v40  ;;  %v7087_v18 = vld [vmem:[%s5394_s18 + $0x2b8] sm:$0xff]  ;;  %v7092_v51 = vld [vmem:[%s5394_s18 + $0x2c0] sm:$0xff]  ;;  %v839_v58 = vpop.xlane.xlu1 %838 }
 0x182   : > { %12423 = vst [vmem:[#allocation95_spill] sm:$0xff] %v7077_v9  ;;  %12424 = vst [vmem:[#allocation96_spill] sm:$0xff] %v7082_v53  ;;  %v7097_v40 = vld [vmem:[%s5394_s18 + $0x2c8] sm:$0xff]  ;;  %v7102_v9 = vld [vmem:[%s5394_s18 + $0x2d0] sm:$0xff]  ;;  %v7312_v15 = vmul.f32 0.000625, %v839_v58 }
 0x183   : > { %12425 = vst [vmem:[#allocation97_spill] sm:$0xff] %v7087_v18  ;;  %12426 = vst [vmem:[#allocation98_spill] sm:$0xff] %v7092_v51  ;;  %v7107_v53 = vld [vmem:[%s5394_s18 + $0x3a8] sm:$0xff]  ;;  %v7112_v18 = vld [vmem:[%s5394_s18 + $0x3b0] sm:$0xff] }
 0x184   : > { %12427 = vst [vmem:[#allocation99_spill] sm:$0xff] %v7097_v40  ;;  %12428 = vst [vmem:[#allocation100_spill] sm:$0xff] %v7102_v9  ;;  %v7117_v51 = vld [vmem:[%s5394_s18 + $0x3b8] sm:$0xff]  ;;  %v7122_v40 = vld [vmem:[%s5394_s18 + $0x3c0] sm:$0xff] }
 0x185   : > { %12429 = vst [vmem:[#allocation101_spill] sm:$0xff] %v7107_v53  ;;  %12430 = vst [vmem:[#allocation102_spill] sm:$0xff] %v7112_v18  ;;  %v7127_v9 = vld [vmem:[%s5394_s18 + $0x3c8] sm:$0xff]  ;;  %v7132_v55 = vld [vmem:[%s5394_s18 + $0x3d0] sm:$0xff]  ;;  %v869_v57 = vpop.xlane.xlu1 %868 }
 0x186   : > { %12431 = vst [vmem:[#allocation103_spill] sm:$0xff] %v7117_v51  ;;  %12432 = vst [vmem:[#allocation104_spill] sm:$0xff] %v7122_v40  ;;  %v7137_v53 = vld [vmem:[%s5394_s18 + $0x3d8] sm:$0xff]  ;;  %v7142_v51 = vld [vmem:[%s5394_s18 + $0x3e0] sm:$0xff]  ;;  %v7330_v58 = vmul.f32 0.000625, %v869_v57 }
 0x187   : > { %12433 = vst [vmem:[#allocation105_spill] sm:$0xff] %v7127_v9  ;;  %12434 = vst [vmem:[#allocation106_spill] sm:$0xff] %v7132_v55  ;;  %v7147_v40 = vld [vmem:[%s5394_s18 + $0x3e8] sm:$0xff]  ;;  %v7151_v9 = vpop.xlane.xlu0 %793  ;;  %v7154_v18 = vld [vmem:[%s5394_s18 + $0x3f0] sm:$0xff] }
 0x188   : > { %12435 = vst [vmem:[#allocation107_spill] sm:$0xff] %v7137_v53  ;;  %12436 = vst [vmem:[#allocation108_spill] sm:$0xff] %v7142_v51  ;;  %v7159_v53 = vld [vmem:[%s5394_s18 + $0x3f8] sm:$0xff]  ;;  %v7164_v51 = vld [vmem:[%s5394_s18 + $0x400] sm:$0xff] }
 0x189   : > { %12437 = vst [vmem:[#allocation109_spill] sm:$0xff] %v7147_v40  ;;  %12438 = vst [vmem:[#allocation110_spill] sm:$0xff] %v7154_v18  ;;  %v7169_v40 = vld [vmem:[%s5394_s18 + $0x408] sm:$0xff]  ;;  %v7174_v18 = vld [vmem:[%s5394_s18 + $0x340] sm:$0xff] }
 0x18a   : > { %12439 = vst [vmem:[#allocation111_spill] sm:$0xff] %v7159_v53  ;;  %12440 = vst [vmem:[#allocation112_spill] sm:$0xff] %v7164_v51  ;;  %v7179_v53 = vld [vmem:[%s5394_s18 + $0x348] sm:$0xff]  ;;  %v7184_v51 = vld [vmem:[%s5394_s18 + $0x350] sm:$0xff] }
 0x18b   : > { %12441 = vst [vmem:[#allocation113_spill] sm:$0xff] %v7169_v40  ;;  %12442 = vst [vmem:[#allocation114_spill] sm:$0xff] %v7174_v18  ;;  %v7189_v40 = vld [vmem:[%s5394_s18 + $0x358] sm:$0xff]  ;;  %v7194_v34 = vld [vmem:[%s5394_s18 + $0x360] sm:$0xff] }
 0x18c   : > { %12443 = vst [vmem:[#allocation115_spill] sm:$0xff] %v7179_v53  ;;  %12444 = vst [vmem:[#allocation116_spill] sm:$0xff] %v7184_v51  ;;  %v7199_v18 = vld [vmem:[%s5394_s18 + $0x368] sm:$0xff]  ;;  %v7204_v53 = vld [vmem:[%s5394_s18 + $0x370] sm:$0xff] }
 0x18d   : > { %12445 = vst [vmem:[#allocation117_spill] sm:$0xff] %v7189_v40  ;;  %12446 = vst [vmem:[#allocation118_spill] sm:$0xff] %v7194_v34  ;;  %v7209_v51 = vld [vmem:[%s5394_s18 + $0x378] sm:$0xff]  ;;  %v7214_v40 = vld [vmem:[%s5394_s18 + $0x380] sm:$0xff] }
 0x18e   : > { %12447 = vst [vmem:[#allocation119_spill] sm:$0xff] %v7199_v18  ;;  %12448 = vst [vmem:[#allocation120_spill] sm:$0xff] %v7204_v53  ;;  %v7219_v34 = vld [vmem:[%s5394_s18 + $0x388] sm:$0xff]  ;;  %v7224_v18 = vld [vmem:[%s5394_s18 + $0x390] sm:$0xff] }
 0x18f   : > { %12449 = vst [vmem:[#allocation121_spill] sm:$0xff] %v7209_v51  ;;  %12450 = vst [vmem:[#allocation122_spill] sm:$0xff] %v7214_v40  ;;  %v7229_v53 = vld [vmem:[%s5394_s18 + $0x398] sm:$0xff]  ;;  %v7234_v51 = vld [vmem:[%s5394_s18 + $0x3a0] sm:$0xff] }
 0x190   : > { %12451 = vst [vmem:[#allocation123_spill] sm:$0xff] %v7219_v34  ;;  %12452 = vst [vmem:[#allocation124_spill] sm:$0xff] %v7224_v18  ;;  %v7239_v40 = vld [vmem:[%s5394_s18 + $0x478] sm:$0xff]  ;;  %v7244_v34 = vld [vmem:[%s5394_s18 + $0x480] sm:$0xff] }
 0x191   : > { %12453 = vst [vmem:[#allocation125_spill] sm:$0xff] %v7229_v53  ;;  %12454 = vst [vmem:[#allocation126_spill] sm:$0xff] %v7234_v51  ;;  %v7249_v18 = vld [vmem:[%s5394_s18 + $0x488] sm:$0xff]  ;;  %v7254_v53 = vld [vmem:[%s5394_s18 + $0x490] sm:$0xff] }
 0x192   : > { %12455 = vst [vmem:[#allocation127_spill] sm:$0xff] %v7239_v40  ;;  %12456 = vst [vmem:[#allocation128_spill] sm:$0xff] %v7244_v34  ;;  %v7259_v51 = vld [vmem:[%s5394_s18 + $0x498] sm:$0xff]  ;;  %v7264_v40 = vld [vmem:[%s5394_s18 + $0x4a0] sm:$0xff] }
 0x193   : > { %12457 = vst [vmem:[#allocation129_spill] sm:$0xff] %v7249_v18  ;;  %12458 = vst [vmem:[#allocation130_spill] sm:$0xff] %v7254_v53  ;;  %v824_v18 = vpop.xlane.xlu0 %823  ;;  %v7272_v34 = vld [vmem:[%s5394_s18 + $0x4a8] sm:$0xff]  ;;  %v7277_v53 = vld [vmem:[%s5394_s18 + $0x4b0] sm:$0xff] }
 0x194   : > { %12459 = vst [vmem:[#allocation131_spill] sm:$0xff] %v7259_v51  ;;  %12460 = vst [vmem:[#allocation132_spill] sm:$0xff] %v7264_v40  ;;  %v7282_v51 = vld [vmem:[%s5394_s18 + $0x4b8] sm:$0xff]  ;;  %v7287_v40 = vld [vmem:[%s5394_s18 + $0x4c0] sm:$0xff] }
 0x195   : > { %12461 = vst [vmem:[#allocation133_spill] sm:$0xff] %v7269_v8  ;;  %12462 = vst [vmem:[#allocation134_spill] sm:$0xff] %v7272_v34  ;;  %v7292_v62 = vld [vmem:[%s5394_s18 + $0x4c8] sm:$0xff]  ;;  %v7297_v47 = vld [vmem:[%s5394_s18 + $0x4d0] sm:$0xff] }
 0x196   : > { %12463 = vst [vmem:[#allocation135_spill] sm:$0xff] %v7277_v53  ;;  %12464 = vst [vmem:[#allocation136_spill] sm:$0xff] %v7282_v51  ;;  %v7302_v55 = vld [vmem:[%s5394_s18 + $0x4d8] sm:$0xff]  ;;  %v7318_v53 = vmul.f32 %v6545_v23, %v6545_v23  ;;  %v7342_v39 = vld [vmem:[%s5394_s18 + $0x428] sm:$0xff] }
 0x197   : > { %12465 = vst [vmem:[#allocation137_spill] sm:$0xff] %v7287_v40  ;;  %12466 = vst [vmem:[#allocation138_spill] sm:$0xff] %v7292_v62  ;;  %v7310_v40 = vmul.f32 0.000625, %v7151_v9  ;;  %v7314_v62 = vmul.f32 0.000625, %v824_v18  ;;  %v7334_v18 = vmul.f32 %v6555_v11, %v6555_v11 }
 0x198   : > { %12467 = vst [vmem:[#allocation139_spill] sm:$0xff] %v7297_v47  ;;  %12468 = vst [vmem:[#allocation140_spill] sm:$0xff] %v7302_v55  ;;  %v7321_v47 = vld [vmem:[%s5394_s18 + $0x410] sm:$0xff]  ;;  %v7326_v51 = vld [vmem:[%s5394_s18 + $0x418] sm:$0xff] }
 0x199   : > { %12469 = vst [vmem:[#allocation141_spill] sm:$0xff] %v7307_v56  ;;  %12470 = vst [vmem:[#allocation142_spill] sm:$0xff] %v7310_v40  ;;  %v7337_v55 = vld [vmem:[%s5394_s18 + $0x420] sm:$0xff]  ;;  %v7347_v9 = vld [vmem:[%s5394_s18 + $0x430] sm:$0xff] }
 0x19a   : > { %12471 = vst [vmem:[#allocation143_spill] sm:$0xff] %v7312_v15  ;;  %12472 = vst [vmem:[#allocation144_spill] sm:$0xff] %v7314_v62  ;;  %v7357_v43 = vld [vmem:[%s5394_s18 + $0x440] sm:$0xff]  ;;  %v7397_v34 = vld [vmem:[%s5394_s18 + $0x550] sm:$0xff] }
 0x19b   : > { %12473 = vst [vmem:[#allocation145_spill] sm:$0xff] %v7321_v47  ;;  %12474 = vst [vmem:[#allocation146_spill] sm:$0xff] %v7326_v51  ;;  %v7352_v51 = vld [vmem:[%s5394_s18 + $0x438] sm:$0xff]  ;;  %v7407_v57 = vld [vmem:[%s5394_s18 + $0x560] sm:$0xff] }
 0x19c   : > { %12475 = vst [vmem:[#allocation147_spill] sm:$0xff] %v7330_v58  ;;  %12476 = vst [vmem:[#allocation148_spill] sm:$0xff] %v7337_v55  ;;  %v7362_v55 = vld [vmem:[%s5394_s18 + $0x448] sm:$0xff]  ;;  %v7402_v47 = vld [vmem:[%s5394_s18 + $0x558] sm:$0xff] }
 0x19d   : > { %12477 = vst [vmem:[#allocation149_spill] sm:$0xff] %v7342_v39  ;;  %12478 = vst [vmem:[#allocation150_spill] sm:$0xff] %v7347_v9  ;;  %v7367_v39 = vld [vmem:[%s5394_s18 + $0x450] sm:$0xff]  ;;  %v7372_v9 = vld [vmem:[%s5394_s18 + $0x458] sm:$0xff] }
 0x19e   : > { %12479 = vst [vmem:[#allocation151_spill] sm:$0xff] %v7352_v51  ;;  %12480 = vst [vmem:[#allocation152_spill] sm:$0xff] %v7357_v43  ;;  %v7377_v51 = vld [vmem:[%s5394_s18 + $0x460] sm:$0xff]  ;;  %v7382_v43 = vld [vmem:[%s5394_s18 + $0x468] sm:$0xff] }
 0x19f   : > { %12481 = vst [vmem:[#allocation153_spill] sm:$0xff] %v7362_v55  ;;  %12482 = vst [vmem:[#allocation154_spill] sm:$0xff] %v7367_v39  ;;  %v7387_v55 = vld [vmem:[%s5394_s18 + $0x470] sm:$0xff]  ;;  %v7392_v39 = vld [vmem:[%s5394_s18 + $0x548] sm:$0xff] }
 0x1a0   : > { %12483 = vst [vmem:[#allocation155_spill] sm:$0xff] %v7372_v9  ;;  %12484 = vst [vmem:[#allocation156_spill] sm:$0xff] %v7377_v51  ;;  %v7412_v41 = vld [vmem:[%s5394_s18 + $0x568] sm:$0xff]  ;;  %v7416_v51 = vpop.xlane.xlu0 %853  ;;  %v7481_v21 = vld [vmem:[%s5394_s18 + $0x500] sm:$0xff] }
 0x1a1   : > { %12485 = vst [vmem:[#allocation157_spill] sm:$0xff] %v7382_v43  ;;  %12486 = vst [vmem:[#allocation158_spill] sm:$0xff] %v7387_v55  ;;  %v7439_v43 = vld [vmem:[%s5394_s18 + $0x590] sm:$0xff]  ;;  %v7444_v55 = vld [vmem:[%s5394_s18 + $0x598] sm:$0xff]  ;;  %v7678_v32 = vmul.f32 0.000625, %v7416_v51 }
 0x1a2   : > { %12487 = vst [vmem:[#allocation159_spill] sm:$0xff] %v7392_v39  ;;  %12488 = vst [vmem:[#allocation160_spill] sm:$0xff] %v7397_v34  ;;  %v7419_v34 = vld [vmem:[%s5394_s18 + $0x570] sm:$0xff]  ;;  %v7449_v39 = vld [vmem:[%s5394_s18 + $0x5a0] sm:$0xff] }
 0x1a3   : > { %12489 = vst [vmem:[#allocation161_spill] sm:$0xff] %v7402_v47  ;;  %12490 = vst [vmem:[#allocation162_spill] sm:$0xff] %v7407_v57  ;;  %v7424_v47 = vld [vmem:[%s5394_s18 + $0x578] sm:$0xff]  ;;  %v7429_v57 = vld [vmem:[%s5394_s18 + $0x580] sm:$0xff] }
 0x1a4   : > { %12491 = vst [vmem:[#allocation163_spill] sm:$0xff] %v7412_v41  ;;  %12492 = vst [vmem:[#allocation164_spill] sm:$0xff] %v7419_v34  ;;  %v7434_v41 = vld [vmem:[%s5394_s18 + $0x588] sm:$0xff]  ;;  %v7458_v34 = vpop.xlane.xlu1 %898  ;;  %v7603_v50 = vld [vmem:[%s5394_s18 + $0x5c0] sm:$0xff] }
 0x1a5   : > { %12493 = vst [vmem:[#allocation165_spill] sm:$0xff] %v7424_v47  ;;  %12494 = vst [vmem:[#allocation166_spill] sm:$0xff] %v7429_v57  ;;  %v7454_v9 = vld [vmem:[%s5394_s18 + $0x5a8] sm:$0xff]  ;;  %v7521_v47 = vld [vmem:[%s5394_s18 + $0x540] sm:$0xff] }
 0x1a6   : > { %12495 = vst [vmem:[#allocation167_spill] sm:$0xff] %v7434_v41  ;;  %12496 = vst [vmem:[#allocation168_spill] sm:$0xff] %v7439_v43  ;;  %v7461_v43 = vld [vmem:[%s5394_s18 + $0x4e0] sm:$0xff]  ;;  %v7526_v57 = vld [vmem:[%s5394_s18 + $0x618] sm:$0xff] }
 0x1a7   : > { %12497 = vst [vmem:[#allocation169_spill] sm:$0xff] %v7444_v55  ;;  %12498 = vst [vmem:[#allocation170_spill] sm:$0xff] %v7449_v39  ;;  %v7466_v55 = vld [vmem:[%s5394_s18 + $0x4e8] sm:$0xff]  ;;  %v7471_v39 = vld [vmem:[%s5394_s18 + $0x4f0] sm:$0xff] }
 0x1a8   : > { %12499 = vst [vmem:[#allocation171_spill] sm:$0xff] %v7454_v9  ;;  %12500 = vst [vmem:[#allocation172_spill] sm:$0xff] %v7461_v43  ;;  %v7476_v9 = vld [vmem:[%s5394_s18 + $0x4f8] sm:$0xff]  ;;  %v7486_v43 = vld [vmem:[%s5394_s18 + $0x508] sm:$0xff] }
 0x1a9   : > { %12501 = vst [vmem:[#allocation173_spill] sm:$0xff] %v7466_v55  ;;  %12502 = vst [vmem:[#allocation174_spill] sm:$0xff] %v7471_v39  ;;  %v7491_v55 = vld [vmem:[%s5394_s18 + $0x510] sm:$0xff]  ;;  %v7496_v39 = vld [vmem:[%s5394_s18 + $0x518] sm:$0xff] }
 0x1aa   : > { %12503 = vst [vmem:[#allocation175_spill] sm:$0xff] %v7476_v9  ;;  %12504 = vst [vmem:[#allocation176_spill] sm:$0xff] %v7481_v21  ;;  %v7501_v9 = vld [vmem:[%s5394_s18 + $0x520] sm:$0xff]  ;;  %v7506_v21 = vld [vmem:[%s5394_s18 + $0x528] sm:$0xff] }
 0x1ab   : > { %12505 = vst [vmem:[#allocation177_spill] sm:$0xff] %v7486_v43  ;;  %12506 = vst [vmem:[#allocation178_spill] sm:$0xff] %v7491_v55  ;;  %v7511_v43 = vld [vmem:[%s5394_s18 + $0x530] sm:$0xff]  ;;  %v7516_v55 = vld [vmem:[%s5394_s18 + $0x538] sm:$0xff] }
 0x1ac   : > { %12507 = vst [vmem:[#allocation179_spill] sm:$0xff] %v7496_v39  ;;  %12508 = vst [vmem:[#allocation180_spill] sm:$0xff] %v7501_v9  ;;  %v7531_v41 = vld [vmem:[%s5394_s18 + $0x620] sm:$0xff]  ;;  %v7540_v9 = vpop.xlane.xlu0 %883  ;;  %v7578_v39 = vld [vmem:[%s5394_s18 + $0x668] sm:$0xff] }
 0x1ad   : > { %12509 = vst [vmem:[#allocation181_spill] sm:$0xff] %v7506_v21  ;;  %12510 = vst [vmem:[#allocation182_spill] sm:$0xff] %v7511_v43  ;;  %v7563_v21 = vld [vmem:[%s5394_s18 + $0x650] sm:$0xff]  ;;  %v7568_v43 = vld [vmem:[%s5394_s18 + $0x658] sm:$0xff] }
 0x1ae   : > { %12511 = vst [vmem:[#allocation183_spill] sm:$0xff] %v7516_v55  ;;  %12512 = vst [vmem:[#allocation184_spill] sm:$0xff] %v7521_v47  ;;  %v7543_v47 = vld [vmem:[%s5394_s18 + $0x630] sm:$0xff]  ;;  %v7573_v55 = vld [vmem:[%s5394_s18 + $0x660] sm:$0xff] }
 0x1af   : > { %12513 = vst [vmem:[#allocation185_spill] sm:$0xff] %v7526_v57  ;;  %12514 = vst [vmem:[#allocation186_spill] sm:$0xff] %v7531_v41  ;;  %v7548_v57 = vld [vmem:[%s5394_s18 + $0x638] sm:$0xff]  ;;  %v7553_v41 = vld [vmem:[%s5394_s18 + $0x640] sm:$0xff] }
 0x1b0   : > { %12515 = vst [vmem:[#allocation187_spill] sm:$0xff] %v7536_v26  ;;  %12516 = vst [vmem:[#allocation188_spill] sm:$0xff] %v7543_v47  ;;  %v7558_v26 = vld [vmem:[%s5394_s18 + $0x648] sm:$0xff]  ;;  %v929_v47 = vpop.xlane.xlu1 %928  ;;  %v7718_v51 = vld [vmem:[%s5394_s18 + $0x740] sm:$0xff] }
 0x1b1   : > { %12517 = vst [vmem:[#allocation189_spill] sm:$0xff] %v7548_v57  ;;  %12518 = vst [vmem:[#allocation190_spill] sm:$0xff] %v7553_v41  ;;  %v7663_v57 = vld [vmem:[%s5394_s18 + $0x6f0] sm:$0xff]  ;;  %v7668_v41 = vld [vmem:[%s5394_s18 + $0x6f8] sm:$0xff] }
 0x1b2   : > { %12519 = vst [vmem:[#allocation191_spill] sm:$0xff] %v7558_v26  ;;  %12520 = vst [vmem:[#allocation192_spill] sm:$0xff] %v7563_v21  ;;  %v7583_v21 = vld [vmem:[%s5394_s18 + $0x670] sm:$0xff]  ;;  %v7673_v26 = vld [vmem:[%s5394_s18 + $0x700] sm:$0xff] }
 0x1b3   : > { %12521 = vst [vmem:[#allocation193_spill] sm:$0xff] %v7568_v43  ;;  %12522 = vst [vmem:[#allocation194_spill] sm:$0xff] %v7573_v55  ;;  %v7588_v43 = vld [vmem:[%s5394_s18 + $0x678] sm:$0xff]  ;;  %v7593_v55 = vld [vmem:[%s5394_s18 + $0x5b0] sm:$0xff] }
 0x1b4   : > { %12523 = vst [vmem:[#allocation195_spill] sm:$0xff] %v7578_v39  ;;  %12524 = vst [vmem:[#allocation196_spill] sm:$0xff] %v7583_v21  ;;  %v7598_v39 = vld [vmem:[%s5394_s18 + $0x5b8] sm:$0xff]  ;;  %v7608_v21 = vld [vmem:[%s5394_s18 + $0x5c8] sm:$0xff]  ;;  %v7700_v45 = vpop.xlane.xlu1 %958 }
 0x1b5   : > { %12525 = vst [vmem:[#allocation197_spill] sm:$0xff] %v7588_v43  ;;  %12526 = vst [vmem:[#allocation198_spill] sm:$0xff] %v7593_v55  ;;  %v7613_v43 = vld [vmem:[%s5394_s18 + $0x5d0] sm:$0xff]  ;;  %v7618_v55 = vld [vmem:[%s5394_s18 + $0x5d8] sm:$0xff] }
 0x1b6   : > { %12527 = vst [vmem:[#allocation199_spill] sm:$0xff] %v7598_v39  ;;  %12528 = vst [vmem:[#allocation200_spill] sm:$0xff] %v7603_v50  ;;  %v7623_v39 = vld [vmem:[%s5394_s18 + $0x5e0] sm:$0xff]  ;;  %v7628_v50 = vld [vmem:[%s5394_s18 + $0x5e8] sm:$0xff] }
 0x1b7   : > { %12529 = vst [vmem:[#allocation201_spill] sm:$0xff] %v7608_v21  ;;  %12530 = vst [vmem:[#allocation202_spill] sm:$0xff] %v7613_v43  ;;  %v7633_v21 = vld [vmem:[%s5394_s18 + $0x5f0] sm:$0xff]  ;;  %v7638_v43 = vld [vmem:[%s5394_s18 + $0x5f8] sm:$0xff] }
 0x1b8   : > { %12531 = vst [vmem:[#allocation203_spill] sm:$0xff] %v7618_v55  ;;  %12532 = vst [vmem:[#allocation204_spill] sm:$0xff] %v7623_v39  ;;  %v7643_v55 = vld [vmem:[%s5394_s18 + $0x600] sm:$0xff]  ;;  %v7648_v39 = vld [vmem:[%s5394_s18 + $0x608] sm:$0xff] }
 0x1b9   : > { %12533 = vst [vmem:[#allocation205_spill] sm:$0xff] %v7628_v50  ;;  %12534 = vst [vmem:[#allocation206_spill] sm:$0xff] %v7633_v21  ;;  %v7653_v50 = vld [vmem:[%s5394_s18 + $0x610] sm:$0xff]  ;;  %v7658_v21 = vld [vmem:[%s5394_s18 + $0x6e8] sm:$0xff] }
 0x1ba   : > { %12535 = vst [vmem:[#allocation207_spill] sm:$0xff] %v7638_v43  ;;  %12536 = vst [vmem:[#allocation208_spill] sm:$0xff] %v7643_v55  ;;  %v914_v43 = vpop.xlane.xlu0 %913  ;;  %v7703_v55 = vld [vmem:[%s5394_s18 + $0x728] sm:$0xff]  ;;  %v7836_v54 = vld [vmem:[%s5394_s18 + $0x7e0] sm:$0xff] }
 0x1bb   : > { %12537 = vst [vmem:[#allocation209_spill] sm:$0xff] %v7648_v39  ;;  %12538 = vst [vmem:[#allocation210_spill] sm:$0xff] %v7653_v50  ;;  %v7708_v39 = vld [vmem:[%s5394_s18 + $0x730] sm:$0xff]  ;;  %v7713_v50 = vld [vmem:[%s5394_s18 + $0x738] sm:$0xff] }
 0x1bc   : > { %12539 = vst [vmem:[#allocation211_spill] sm:$0xff] %v7658_v21  ;;  %12540 = vst [vmem:[#allocation212_spill] sm:$0xff] %v7663_v57  ;;  %v7681_v21 = vld [vmem:[%s5394_s18 + $0x708] sm:$0xff]  ;;  %v7686_v57 = vld [vmem:[%s5394_s18 + $0x710] sm:$0xff] }
 0x1bd   : > { %12541 = vst [vmem:[#allocation213_spill] sm:$0xff] %v7668_v41  ;;  %12542 = vst [vmem:[#allocation214_spill] sm:$0xff] %v7673_v26  ;;  %v7691_v41 = vld [vmem:[%s5394_s18 + $0x718] sm:$0xff]  ;;  %v7696_v26 = vld [vmem:[%s5394_s18 + $0x720] sm:$0xff] }
 0x1be   : > { %12543 = vst [vmem:[#allocation215_spill] sm:$0xff] %v7678_v32  ;;  %12544 = vst [vmem:[#allocation216_spill] sm:$0xff] %v7681_v21  ;;  %v7723_v37 = vld [vmem:[%s5394_s18 + $0x748] sm:$0xff]  ;;  %v7762_v21 = vld [vmem:[%s5394_s18 + $0x6a0] sm:$0xff] }
 0x1bf   : > { %12545 = vst [vmem:[#allocation217_spill] sm:$0xff] %v7686_v57  ;;  %12546 = vst [vmem:[#allocation218_spill] sm:$0xff] %v7691_v41  ;;  %v7728_v57 = vmul.f32 0.000625, %v7458_v34  ;;  %v7733_v41 = vmul.f32 0.000625, %v929_v47 }
 0x1c0   : > { %12547 = vst [vmem:[#allocation219_spill] sm:$0xff] %v7696_v26  ;;  %12548 = vst [vmem:[#allocation220_spill] sm:$0xff] %v7703_v55  ;;  %v7745_v34 = vmul.f32 0.000625, %v914_v43  ;;  %v7752_v47 = vld [vmem:[%s5394_s18 + $0x690] sm:$0xff]  ;;  %v7757_v26 = vld [vmem:[%s5394_s18 + $0x698] sm:$0xff] }
 0x1c1   : > { %12549 = vst [vmem:[#allocation221_spill] sm:$0xff] %v7708_v39  ;;  %12550 = vst [vmem:[#allocation222_spill] sm:$0xff] %v7713_v50  ;;  %v7731_v39 = vmul.f32 0.000625, %v7540_v9  ;;  %v7736_v50 = vld [vmem:[%s5394_s18 + $0x680] sm:$0xff]  ;;  %v7749_v9 = vmul.f32 %v6538_v22, %v6538_v22  ;;  %v7799_v43 = vld [vmem:[%s5394_s18 + $0x6d8] sm:$0xff] }
 0x1c2   : > { %12551 = vst [vmem:[#allocation223_spill] sm:$0xff] %v7718_v51  ;;  %12552 = vst [vmem:[#allocation224_spill] sm:$0xff] %v7723_v37  ;;  %v7741_v51 = vld [vmem:[%s5394_s18 + $0x688] sm:$0xff]  ;;  %v7771_v37 = vpop.xlane.xlu0 %943  ;;  %v7804_v55 = vld [vmem:[%s5394_s18 + $0x6e0] sm:$0xff] }
 0x1c3   : > { %12553 = vst [vmem:[#allocation225_spill] sm:$0xff] %v7728_v57  ;;  %12554 = vst [vmem:[#allocation226_spill] sm:$0xff] %v7731_v39  ;;  %v7809_v22 = vld [vmem:[%s5394_s18 + $0x7b8] sm:$0xff]  ;;  %v7891_v32 = vld [vmem:[%s5394_s18 + $0x768] sm:$0xff]  ;;  %v8033_v57 = vmul.f32 0.000625, %v7700_v45 }
 0x1c4   : > { %12555 = vst [vmem:[#allocation227_spill] sm:$0xff] %v7733_v41  ;;  %12556 = vst [vmem:[#allocation228_spill] sm:$0xff] %v7736_v50  ;;  %v7794_v50 = vld [vmem:[%s5394_s18 + $0x6d0] sm:$0xff]  ;;  %v7958_v46 = vld [vmem:[%s5394_s18 + $0x8a0] sm:$0xff] }
 0x1c5   : > { %12557 = vst [vmem:[#allocation229_spill] sm:$0xff] %v7741_v51  ;;  %12558 = vst [vmem:[#allocation230_spill] sm:$0xff] %v7745_v34  ;;  %v7767_v51 = vld [vmem:[%s5394_s18 + $0x6a8] sm:$0xff]  ;;  %v8089_v45 = vld [vmem:[%s5394_s18 + $0x958] sm:$0xff] }
 0x1c6   : > { %12559 = vst [vmem:[#allocation231_spill] sm:$0xff] %v7752_v47  ;;  %12560 = vst [vmem:[#allocation232_spill] sm:$0xff] %v7757_v26  ;;  %v7774_v47 = vld [vmem:[%s5394_s18 + $0x6b0] sm:$0xff]  ;;  %v7779_v26 = vld [vmem:[%s5394_s18 + $0x6b8] sm:$0xff] }
 0x1c7   : > { %12561 = vst [vmem:[#allocation233_spill] sm:$0xff] %v7762_v21  ;;  %12562 = vst [vmem:[#allocation234_spill] sm:$0xff] %v7767_v51  ;;  %v7784_v21 = vld [vmem:[%s5394_s18 + $0x6c0] sm:$0xff]  ;;  %v7789_v51 = vld [vmem:[%s5394_s18 + $0x6c8] sm:$0xff] }
 0x1c8   : > { %12563 = vst [vmem:[#allocation235_spill] sm:$0xff] %v7774_v47  ;;  %12564 = vst [vmem:[#allocation236_spill] sm:$0xff] %v7779_v26  ;;  %v7813_v47 = vpop.xlane.xlu1 %988  ;;  %v7876_v26 = vld [vmem:[%s5394_s18 + $0x750] sm:$0xff]  ;;  %v8157_v34 = vld [vmem:[%s5394_s18 + $0x9b8] sm:$0xff] }
 0x1c9   : > { %12565 = vst [vmem:[#allocation237_spill] sm:$0xff] %v7784_v21  ;;  %12566 = vst [vmem:[#allocation238_spill] sm:$0xff] %v7789_v51  ;;  %v7881_v21 = vld [vmem:[%s5394_s18 + $0x758] sm:$0xff]  ;;  %v7886_v51 = vld [vmem:[%s5394_s18 + $0x760] sm:$0xff] }
 0x1ca   : > { %12567 = vst [vmem:[#allocation239_spill] sm:$0xff] %v7794_v50  ;;  %12568 = vst [vmem:[#allocation240_spill] sm:$0xff] %v7799_v43  ;;  %v7816_v50 = vld [vmem:[%s5394_s18 + $0x7c0] sm:$0xff]  ;;  %v7821_v43 = vld [vmem:[%s5394_s18 + $0x7c8] sm:$0xff] }
 0x1cb   : > { %12569 = vst [vmem:[#allocation241_spill] sm:$0xff] %v7804_v55  ;;  %12570 = vst [vmem:[#allocation242_spill] sm:$0xff] %v7809_v22  ;;  %v7826_v55 = vld [vmem:[%s5394_s18 + $0x7d0] sm:$0xff]  ;;  %v7831_v22 = vld [vmem:[%s5394_s18 + $0x7d8] sm:$0xff] }
 0x1cc   : > { %12571 = vst [vmem:[#allocation243_spill] sm:$0xff] %v7816_v50  ;;  %12572 = vst [vmem:[#allocation244_spill] sm:$0xff] %v7821_v43  ;;  %v7841_v50 = vld [vmem:[%s5394_s18 + $0x7e8] sm:$0xff]  ;;  %v7846_v43 = vld [vmem:[%s5394_s18 + $0x7f0] sm:$0xff] }
 0x1cd   : > { %12573 = vst [vmem:[#allocation245_spill] sm:$0xff] %v7826_v55  ;;  %12574 = vst [vmem:[#allocation246_spill] sm:$0xff] %v7831_v22  ;;  %v7851_v55 = vld [vmem:[%s5394_s18 + $0x7f8] sm:$0xff]  ;;  %v7856_v22 = vld [vmem:[%s5394_s18 + $0x800] sm:$0xff] }
 0x1ce   : > { %12575 = vst [vmem:[#allocation247_spill] sm:$0xff] %v7836_v54  ;;  %12576 = vst [vmem:[#allocation248_spill] sm:$0xff] %v7841_v50  ;;  %v7861_v54 = vld [vmem:[%s5394_s18 + $0x808] sm:$0xff]  ;;  %v7866_v50 = vld [vmem:[%s5394_s18 + $0x810] sm:$0xff] }
 0x1cf   : > { %12577 = vst [vmem:[#allocation249_spill] sm:$0xff] %v7846_v43  ;;  %12578 = vst [vmem:[#allocation250_spill] sm:$0xff] %v7851_v55  ;;  %v7871_v43 = vld [vmem:[%s5394_s18 + $0x818] sm:$0xff]  ;;  %v7933_v55 = vld [vmem:[%s5394_s18 + $0x7a8] sm:$0xff] }
 0x1d0   : > { %12579 = vst [vmem:[#allocation251_spill] sm:$0xff] %v7856_v22  ;;  %12580 = vst [vmem:[#allocation252_spill] sm:$0xff] %v7861_v54  ;;  %v7895_v22 = vpop.xlane.xlu0 %973  ;;  %v7918_v54 = vld [vmem:[%s5394_s18 + $0x790] sm:$0xff]  ;;  %v8313_v11 = vld [vmem:[%s5394_s18 + $0x9d8] sm:$0xff] }
 0x1d1   : > { %12581 = vst [vmem:[#allocation253_spill] sm:$0xff] %v7866_v50  ;;  %12582 = vst [vmem:[#allocation254_spill] sm:$0xff] %v7871_v43  ;;  %v7923_v50 = vld [vmem:[%s5394_s18 + $0x798] sm:$0xff]  ;;  %v7928_v43 = vld [vmem:[%s5394_s18 + $0x7a0] sm:$0xff]  ;;  %v8084_v41 = vmul.f32 0.000625, %v7895_v22  ;;  %v8102_v22 = vmul.f32 %v6753_v59, %v6753_v59 }
 0x1d2   : > { %12583 = vst [vmem:[#allocation255_spill] sm:$0xff] %v7876_v26  ;;  %12584 = vst [vmem:[#allocation256_spill] sm:$0xff] %v7881_v21  ;;  %v7898_v26 = vld [vmem:[%s5394_s18 + $0x770] sm:$0xff]  ;;  %v7903_v21 = vld [vmem:[%s5394_s18 + $0x778] sm:$0xff] }
 0x1d3   : > { %12585 = vst [vmem:[#allocation257_spill] sm:$0xff] %v7886_v51  ;;  %12586 = vst [vmem:[#allocation258_spill] sm:$0xff] %v7891_v32  ;;  %v7908_v51 = vld [vmem:[%s5394_s18 + $0x780] sm:$0xff]  ;;  %v7913_v32 = vld [vmem:[%s5394_s18 + $0x788] sm:$0xff] }
 0x1d4   : > { %12587 = vst [vmem:[#allocation259_spill] sm:$0xff] %v7898_v26  ;;  %12588 = vst [vmem:[#allocation260_spill] sm:$0xff] %v7903_v21  ;;  %v1019_v26 = vpop.xlane.xlu1 %1018  ;;  %v8018_v21 = vld [vmem:[%s5394_s18 + $0x830] sm:$0xff]  ;;  %v8189_v59 = vld [vmem:[%s5394_s18 + $0x918] sm:$0xff] }
 0x1d5   : > { %12589 = vst [vmem:[#allocation261_spill] sm:$0xff] %v7908_v51  ;;  %12590 = vst [vmem:[#allocation262_spill] sm:$0xff] %v7913_v32  ;;  %v8023_v51 = vld [vmem:[%s5394_s18 + $0x838] sm:$0xff]  ;;  %v8028_v32 = vld [vmem:[%s5394_s18 + $0x840] sm:$0xff] }
 0x1d6   : > { %12591 = vst [vmem:[#allocation263_spill] sm:$0xff] %v7918_v54  ;;  %12592 = vst [vmem:[#allocation264_spill] sm:$0xff] %v7923_v50  ;;  %v7938_v54 = vld [vmem:[%s5394_s18 + $0x7b0] sm:$0xff]  ;;  %v7943_v50 = vld [vmem:[%s5394_s18 + $0x888] sm:$0xff] }
 0x1d7   : > { %12593 = vst [vmem:[#allocation265_spill] sm:$0xff] %v7928_v43  ;;  %12594 = vst [vmem:[#allocation266_spill] sm:$0xff] %v7933_v55  ;;  %v7948_v43 = vld [vmem:[%s5394_s18 + $0x890] sm:$0xff]  ;;  %v7953_v55 = vld [vmem:[%s5394_s18 + $0x898] sm:$0xff] }
 0x1d8   : > { %12595 = vst [vmem:[#allocation267_spill] sm:$0xff] %v7938_v54  ;;  %12596 = vst [vmem:[#allocation268_spill] sm:$0xff] %v7943_v50  ;;  %v7963_v54 = vld [vmem:[%s5394_s18 + $0x8a8] sm:$0xff]  ;;  %v7968_v50 = vld [vmem:[%s5394_s18 + $0x8b0] sm:$0xff] }
 0x1d9   : > { %12597 = vst [vmem:[#allocation269_spill] sm:$0xff] %v7948_v43  ;;  %12598 = vst [vmem:[#allocation270_spill] sm:$0xff] %v7953_v55  ;;  %v7973_v43 = vld [vmem:[%s5394_s18 + $0x8b8] sm:$0xff]  ;;  %v7978_v55 = vld [vmem:[%s5394_s18 + $0x8c0] sm:$0xff] }
 0x1da   : > { %12599 = vst [vmem:[#allocation271_spill] sm:$0xff] %v7958_v46  ;;  %12600 = vst [vmem:[#allocation272_spill] sm:$0xff] %v7963_v54  ;;  %v7983_v46 = vld [vmem:[%s5394_s18 + $0x8c8] sm:$0xff]  ;;  %v7988_v54 = vld [vmem:[%s5394_s18 + $0x8d0] sm:$0xff] }
 0x1db   : > { %12601 = vst [vmem:[#allocation273_spill] sm:$0xff] %v7968_v50  ;;  %12602 = vst [vmem:[#allocation274_spill] sm:$0xff] %v7973_v43  ;;  %v7993_v50 = vld [vmem:[%s5394_s18 + $0x8d8] sm:$0xff]  ;;  %v7998_v43 = vld [vmem:[%s5394_s18 + $0x8e0] sm:$0xff] }
 0x1dc   : > { %12603 = vst [vmem:[#allocation275_spill] sm:$0xff] %v7978_v55  ;;  %12604 = vst [vmem:[#allocation276_spill] sm:$0xff] %v7983_v46  ;;  %v8003_v55 = vld [vmem:[%s5394_s18 + $0x8e8] sm:$0xff]  ;;  %v8008_v46 = vld [vmem:[%s5394_s18 + $0x820] sm:$0xff] }
 0x1dd   : > { %12605 = vst [vmem:[#allocation277_spill] sm:$0xff] %v7988_v54  ;;  %12606 = vst [vmem:[#allocation278_spill] sm:$0xff] %v7993_v50  ;;  %v8013_v54 = vld [vmem:[%s5394_s18 + $0x828] sm:$0xff]  ;;  %v1004_v50 = vpop.xlane.xlu0 %1003  ;;  %v8162_v39 = vld [vmem:[%s5394_s18 + $0x8f0] sm:$0xff] }
 0x1de   : > { %12607 = vst [vmem:[#allocation279_spill] sm:$0xff] %v7998_v43  ;;  %12608 = vst [vmem:[#allocation280_spill] sm:$0xff] %v8003_v55  ;;  %v8058_v43 = vld [vmem:[%s5394_s18 + $0x868] sm:$0xff]  ;;  %v8063_v55 = vld [vmem:[%s5394_s18 + $0x870] sm:$0xff] }
 0x1df   : > { %12609 = vst [vmem:[#allocation281_spill] sm:$0xff] %v8008_v46  ;;  %12610 = vst [vmem:[#allocation282_spill] sm:$0xff] %v8013_v54  ;;  %v8036_v54 = vld [vmem:[%s5394_s18 + $0x848] sm:$0xff]  ;;  %v8051_v46 = vld [vmem:[%s5394_s18 + $0x860] sm:$0xff] }
 0x1e0   : > { %12611 = vst [vmem:[#allocation283_spill] sm:$0xff] %v8018_v21  ;;  %12612 = vst [vmem:[#allocation284_spill] sm:$0xff] %v8023_v51  ;;  %v8041_v21 = vld [vmem:[%s5394_s18 + $0x850] sm:$0xff]  ;;  %v8046_v51 = vld [vmem:[%s5394_s18 + $0x858] sm:$0xff] }
 0x1e1   : > { %12613 = vst [vmem:[#allocation285_spill] sm:$0xff] %v8028_v32  ;;  %12614 = vst [vmem:[#allocation286_spill] sm:$0xff] %v8033_v57  ;;  %v8055_v32 = vpop.xlane.xlu1 %1048  ;;  %v8244_v57 = vld [vmem:[%s5394_s18 + $0xa40] sm:$0xff] }
 0x1e2   : > { %12615 = vst [vmem:[#allocation287_spill] sm:$0xff] %v8036_v54  ;;  %12616 = vst [vmem:[#allocation288_spill] sm:$0xff] %v8041_v21  ;;  %v8076_v21 = vld [vmem:[%s5394_s18 + $0x880] sm:$0xff]  ;;  %v8115_v54 = vld [vmem:[%s5394_s18 + $0x978] sm:$0xff] }
 0x1e3   : > { %12617 = vst [vmem:[#allocation289_spill] sm:$0xff] %v8046_v51  ;;  %12618 = vst [vmem:[#allocation290_spill] sm:$0xff] %v8051_v46  ;;  %v8068_v51 = vld [vmem:[%s5394_s18 + $0x878] sm:$0xff]  ;;  %v8073_v46 = vmul.f32 0.000625, %v7771_v37  ;;  %v8110_v37 = vld [vmem:[%s5394_s18 + $0x970] sm:$0xff] }
 0x1e4   : > { %12619 = vst [vmem:[#allocation291_spill] sm:$0xff] %v8058_v43  ;;  %12620 = vst [vmem:[#allocation292_spill] sm:$0xff] %v8063_v55  ;;  %v8081_v43 = vmul.f32 0.000625, %v7813_v47  ;;  %v8086_v55 = vmul.f32 0.000625, %v1019_v26 }
 0x1e5   : > { %12621 = vst [vmem:[#allocation293_spill] sm:$0xff] %v8068_v51  ;;  %12622 = vst [vmem:[#allocation294_spill] sm:$0xff] %v8073_v46  ;;  %v8094_v51 = vld [vmem:[%s5394_s18 + $0x960] sm:$0xff]  ;;  %v8098_v47 = vmul.f32 0.000625, %v1004_v50  ;;  %v8105_v26 = vld [vmem:[%s5394_s18 + $0x968] sm:$0xff] }
 0x1e6   : > { %12623 = vst [vmem:[#allocation295_spill] sm:$0xff] %v8076_v21  ;;  %12624 = vst [vmem:[#allocation296_spill] sm:$0xff] %v8081_v43  ;;  %v8124_v21 = vpop.xlane.xlu0 %1033  ;;  %v8152_v50 = vld [vmem:[%s5394_s18 + $0x9b0] sm:$0xff]  ;;  %v8368_v46 = vld [vmem:[%s5394_s18 + $0xb00] sm:$0xff] }
 0x1e7   : > { %12625 = vst [vmem:[#allocation297_spill] sm:$0xff] %v8084_v41  ;;  %12626 = vst [vmem:[#allocation298_spill] sm:$0xff] %v8086_v55  ;;  %v8475_v55 = vld [vmem:[%s5394_s18 + $0xad0] sm:$0xff]  ;;  %v8550_v43 = vld [vmem:[%s5394_s18 + $0xbf8] sm:$0xff] }
 0x1e8   : > { %12627 = vst [vmem:[#allocation299_spill] sm:$0xff] %v8089_v45  ;;  %12628 = vst [vmem:[#allocation300_spill] sm:$0xff] %v8094_v51  ;;  %v8120_v51 = vld [vmem:[%s5394_s18 + $0x980] sm:$0xff]  ;;  %v8147_v45 = vld [vmem:[%s5394_s18 + $0x9a8] sm:$0xff] }
 0x1e9   : > { %12629 = vst [vmem:[#allocation301_spill] sm:$0xff] %v8098_v47  ;;  %12630 = vst [vmem:[#allocation302_spill] sm:$0xff] %v8105_v26  ;;  %v8127_v26 = vld [vmem:[%s5394_s18 + $0x988] sm:$0xff]  ;;  %v181_v44 = vld [vmem:[%s11871_s2] sm:$0xff] }
 0x1ea   : > { %12631 = vst [vmem:[#allocation303_spill] sm:$0xff] %v8110_v37  ;;  %12632 = vst [vmem:[#allocation304_spill] sm:$0xff] %v8115_v54  ;;  %v8132_v37 = vld [vmem:[%s5394_s18 + $0x990] sm:$0xff]  ;;  %v8137_v54 = vld [vmem:[%s5394_s18 + $0x998] sm:$0xff] }
 0x1eb   : > { %12633 = vst [vmem:[#allocation305_spill] sm:$0xff] %v8120_v51  ;;  %12634 = vst [vmem:[#allocation306_spill] sm:$0xff] %v8127_v26  ;;  %v8142_v51 = vld [vmem:[%s5394_s18 + $0x9a0] sm:$0xff]  ;;  %v8166_v26 = vpop.xlane.xlu1 %1078 }
 0x1ec   : > { %12635 = vst [vmem:[#allocation307_spill] sm:$0xff] %v8132_v37  ;;  %12636 = vst [vmem:[#allocation308_spill] sm:$0xff] %v8137_v54  ;;  %v8229_v37 = vld [vmem:[%s5394_s18 + $0xa28] sm:$0xff]  ;;  %v8234_v54 = vld [vmem:[%s5394_s18 + $0xa30] sm:$0xff] }
 0x1ed   : > { %12637 = vst [vmem:[#allocation309_spill] sm:$0xff] %v8142_v51  ;;  %12638 = vst [vmem:[#allocation310_spill] sm:$0xff] %v8147_v45  ;;  %v8169_v45 = vld [vmem:[%s5394_s18 + $0x8f8] sm:$0xff] }
 0x1ee   : > { %12639 = vst [vmem:[#allocation311_spill] sm:$0xff] %v8152_v50  ;;  %12640 = vst [vmem:[#allocation312_spill] sm:$0xff] %v8157_v34  ;;  %v8174_v50 = vld [vmem:[%s5394_s18 + $0x900] sm:$0xff]  ;;  %v8179_v34 = vld [vmem:[%s5394_s18 + $0x908] sm:$0xff] }
 0x1ef   : > { %12641 = vst [vmem:[#allocation313_spill] sm:$0xff] %v8162_v39  ;;  %12642 = vst [vmem:[#allocation314_spill] sm:$0xff] %v8169_v45  ;;  %v8184_v39 = vld [vmem:[%s5394_s18 + $0x910] sm:$0xff]  ;;  %v8194_v45 = vld [vmem:[%s5394_s18 + $0x920] sm:$0xff] }
 0x1f0   : > { %12643 = vst [vmem:[#allocation315_spill] sm:$0xff] %v8174_v50  ;;  %12644 = vst [vmem:[#allocation316_spill] sm:$0xff] %v8179_v34  ;;  %v8199_v50 = vld [vmem:[%s5394_s18 + $0x928] sm:$0xff]  ;;  %v8204_v34 = vld [vmem:[%s5394_s18 + $0x930] sm:$0xff] }
 0x1f1   : > { %12645 = vst [vmem:[#allocation317_spill] sm:$0xff] %v8184_v39  ;;  %12646 = vst [vmem:[#allocation318_spill] sm:$0xff] %v8189_v59  ;;  %v8209_v39 = vld [vmem:[%s5394_s18 + $0x938] sm:$0xff]  ;;  %v8214_v59 = vld [vmem:[%s5394_s18 + $0x940] sm:$0xff] }
 0x1f2   : > { %12647 = vst [vmem:[#allocation319_spill] sm:$0xff] %v8194_v45  ;;  %12648 = vst [vmem:[#allocation320_spill] sm:$0xff] %v8199_v50  ;;  %v8219_v45 = vld [vmem:[%s5394_s18 + $0x948] sm:$0xff]  ;;  %v8224_v50 = vld [vmem:[%s5394_s18 + $0x950] sm:$0xff] }
 0x1f3   : > { %12649 = vst [vmem:[#allocation321_spill] sm:$0xff] %v8204_v34  ;;  %12650 = vst [vmem:[#allocation322_spill] sm:$0xff] %v8209_v39  ;;  %v8239_v51 = vld [vmem:[%s5394_s18 + $0xa38] sm:$0xff]  ;;  %v8248_v39 = vpop.xlane.xlu0 %1063  ;;  %v8286_v34 = vld [vmem:[%s5394_s18 + $0xa80] sm:$0xff] }
 0x1f4   : > { %12651 = vst [vmem:[#allocation323_spill] sm:$0xff] %v8214_v59  ;;  %12652 = vst [vmem:[#allocation324_spill] sm:$0xff] %v8219_v45  ;;  %v8271_v59 = vld [vmem:[%s5394_s18 + $0xa68] sm:$0xff]  ;;  %v8276_v45 = vld [vmem:[%s5394_s18 + $0xa70] sm:$0xff] }
 0x1f5   : > { %12653 = vst [vmem:[#allocation325_spill] sm:$0xff] %v8224_v50  ;;  %12654 = vst [vmem:[#allocation326_spill] sm:$0xff] %v8229_v37  ;;  %v8251_v37 = vld [vmem:[%s5394_s18 + $0xa48] sm:$0xff]  ;;  %v8281_v50 = vld [vmem:[%s5394_s18 + $0xa78] sm:$0xff] }
 0x1f6   : > { %12655 = vst [vmem:[#allocation327_spill] sm:$0xff] %v8234_v54  ;;  %12656 = vst [vmem:[#allocation328_spill] sm:$0xff] %v8239_v51  ;;  %v8256_v54 = vld [vmem:[%s5394_s18 + $0xa50] sm:$0xff]  ;;  %v8261_v51 = vld [vmem:[%s5394_s18 + $0xa58] sm:$0xff] }
 0x1f7   : > { %12657 = vst [vmem:[#allocation329_spill] sm:$0xff] %v8244_v57  ;;  %12658 = vst [vmem:[#allocation330_spill] sm:$0xff] %v8251_v37  ;;  %v8266_v57 = vld [vmem:[%s5394_s18 + $0xa60] sm:$0xff]  ;;  %v8290_v37 = vpop.xlane.xlu1 %1557 }
 0x1f8   : > { %12659 = vst [vmem:[#allocation331_spill] sm:$0xff] %v8256_v54  ;;  %12660 = vst [vmem:[#allocation332_spill] sm:$0xff] %v8261_v51  ;;  %v8353_v54 = vld [vmem:[%s5394_s18 + $0xa18] sm:$0xff]  ;;  %v8358_v51 = vld [vmem:[%s5394_s18 + $0xa20] sm:$0xff] }
 0x1f9   : > { %12661 = vst [vmem:[#allocation333_spill] sm:$0xff] %v8266_v57  ;;  %12662 = vst [vmem:[#allocation334_spill] sm:$0xff] %v8271_v59  ;;  %v8293_v59 = vld [vmem:[%s5394_s18 + $0xa88] sm:$0xff]  ;;  %v8363_v57 = vld [vmem:[%s5394_s18 + $0xaf8] sm:$0xff] }
 0x1fa   : > { %12663 = vst [vmem:[#allocation335_spill] sm:$0xff] %v8276_v45  ;;  %12664 = vst [vmem:[#allocation336_spill] sm:$0xff] %v8281_v50  ;;  %v8298_v45 = vld [vmem:[%s5394_s18 + $0x9c0] sm:$0xff]  ;;  %v8303_v50 = vld [vmem:[%s5394_s18 + $0x9c8] sm:$0xff] }
 0x1fb   : > { %12665 = vst [vmem:[#allocation337_spill] sm:$0xff] %v8286_v34  ;;  %12666 = vst [vmem:[#allocation338_spill] sm:$0xff] %v8293_v59  ;;  %v8308_v34 = vld [vmem:[%s5394_s18 + $0x9d0] sm:$0xff]  ;;  %v8318_v59 = vld [vmem:[%s5394_s18 + $0x9e0] sm:$0xff]  ;;  %v8414_v41 = vpop.xlane.xlu1 %1587 }
 0x1fc   : > { %12667 = vst [vmem:[#allocation339_spill] sm:$0xff] %v8298_v45  ;;  %12668 = vst [vmem:[#allocation340_spill] sm:$0xff] %v8303_v50  ;;  %v8323_v45 = vld [vmem:[%s5394_s18 + $0x9e8] sm:$0xff]  ;;  %v8328_v50 = vld [vmem:[%s5394_s18 + $0x9f0] sm:$0xff] }
 0x1fd   : > { %12669 = vst [vmem:[#allocation341_spill] sm:$0xff] %v8308_v34  ;;  %12670 = vst [vmem:[#allocation342_spill] sm:$0xff] %v8313_v11  ;;  %v8333_v34 = vld [vmem:[%s5394_s18 + $0x9f8] sm:$0xff]  ;;  %v8338_v11 = vld [vmem:[%s5394_s18 + $0xa00] sm:$0xff] }
 0x1fe   : > { %12671 = vst [vmem:[#allocation343_spill] sm:$0xff] %v8318_v59  ;;  %12672 = vst [vmem:[#allocation344_spill] sm:$0xff] %v8323_v45  ;;  %v8343_v59 = vld [vmem:[%s5394_s18 + $0xa08] sm:$0xff]  ;;  %v8348_v45 = vld [vmem:[%s5394_s18 + $0xa10] sm:$0xff] }
 0x1ff   : > { %12673 = vst [vmem:[#allocation345_spill] sm:$0xff] %v8328_v50  ;;  %12674 = vst [vmem:[#allocation346_spill] sm:$0xff] %v8333_v34  ;;  %v8372_v34 = vpop.xlane.xlu0 %1542  ;;  %v8410_v50 = vld [vmem:[%s5394_s18 + $0xb40] sm:$0xff] }
 0x200   : > { %12675 = vst [vmem:[#allocation347_spill] sm:$0xff] %v8338_v11  ;;  %12676 = vst [vmem:[#allocation348_spill] sm:$0xff] %v8343_v59  ;;  %v8395_v11 = vld [vmem:[%s5394_s18 + $0xb28] sm:$0xff]  ;;  %v8400_v59 = vld [vmem:[%s5394_s18 + $0xb30] sm:$0xff] }
 0x201   : > { %12677 = vst [vmem:[#allocation349_spill] sm:$0xff] %v8348_v45  ;;  %12678 = vst [vmem:[#allocation350_spill] sm:$0xff] %v8353_v54  ;;  %v8375_v54 = vld [vmem:[%s5394_s18 + $0xb08] sm:$0xff]  ;;  %v8405_v45 = vld [vmem:[%s5394_s18 + $0xb38] sm:$0xff] }
 0x202   : > { %12679 = vst [vmem:[#allocation351_spill] sm:$0xff] %v8358_v51  ;;  %12680 = vst [vmem:[#allocation352_spill] sm:$0xff] %v8363_v57  ;;  %v8380_v51 = vld [vmem:[%s5394_s18 + $0xb10] sm:$0xff]  ;;  %v8385_v57 = vld [vmem:[%s5394_s18 + $0xb18] sm:$0xff] }
 0x203   : > { %12681 = vst [vmem:[#allocation353_spill] sm:$0xff] %v8368_v46  ;;  %12682 = vst [vmem:[#allocation354_spill] sm:$0xff] %v8375_v54  ;;  %v8390_v46 = vld [vmem:[%s5394_s18 + $0xb20] sm:$0xff]  ;;  %v8417_v54 = vld [vmem:[%s5394_s18 + $0xb48] sm:$0xff] }
 0x204   : > { %12683 = vst [vmem:[#allocation355_spill] sm:$0xff] %v8380_v51  ;;  %12684 = vst [vmem:[#allocation356_spill] sm:$0xff] %v8385_v57  ;;  %v8437_v51 = vld [vmem:[%s5394_s18 + $0xa98] sm:$0xff]  ;;  %v8442_v57 = vld [vmem:[%s5394_s18 + $0xaa0] sm:$0xff] }
 0x205   : > { %12685 = vst [vmem:[#allocation357_spill] sm:$0xff] %v8390_v46  ;;  %12686 = vst [vmem:[#allocation358_spill] sm:$0xff] %v8395_v11  ;;  %v8447_v46 = vld [vmem:[%s5394_s18 + $0xaa8] sm:$0xff]  ;;  %v8452_v11 = vmul.f32 0.000625, %v8055_v32 }
 0x206   : > { %12687 = vst [vmem:[#allocation359_spill] sm:$0xff] %v8400_v59  ;;  %12688 = vst [vmem:[#allocation360_spill] sm:$0xff] %v8405_v45  ;;  %v8422_v59 = vld [vmem:[%s5394_s18 + $0xb50] sm:$0xff]  ;;  %v8427_v45 = vld [vmem:[%s5394_s18 + $0xb58] sm:$0xff] }
 0x207   : > { %12689 = vst [vmem:[#allocation361_spill] sm:$0xff] %v8410_v50  ;;  %12690 = vst [vmem:[#allocation362_spill] sm:$0xff] %v8417_v54  ;;  %v8432_v50 = vld [vmem:[%s5394_s18 + $0xa90] sm:$0xff]  ;;  %v8511_v32 = vld [vmem:[%s5394_s18 + $0xbc8] sm:$0xff] }
 0x208   : > { %12691 = vst [vmem:[#allocation363_spill] sm:$0xff] %v8422_v59  ;;  %12692 = vst [vmem:[#allocation364_spill] sm:$0xff] %v8427_v45  ;;  %v8497_v54 = vld [vmem:[%s5394_s18 + $0xaf0] sm:$0xff]  ;;  %v8505_v45 = vmul.f32 0.000625, %v8166_v26  ;;  %v12712_v59 = vlaneseq  ;;  %v8523_v26 = vpop.xlane.xlu1 %1617 }
 0x209   : > { %12693 = vst [vmem:[#allocation365_spill] sm:$0xff] %v8432_v50  ;;  %12694 = vst [vmem:[#allocation366_spill] sm:$0xff] %v8437_v51  ;;  %v8455_v50 = vld [vmem:[%s5394_s18 + $0xab0] sm:$0xff]  ;;  %v8460_v51 = vld [vmem:[%s5394_s18 + $0xab8] sm:$0xff] }
 0x20a   : > { %12695 = vst [vmem:[#allocation367_spill] sm:$0xff] %v8442_v57  ;;  %12696 = vst [vmem:[#allocation368_spill] sm:$0xff] %v8447_v46  ;;  %v8465_v57 = vld [vmem:[%s5394_s18 + $0xac0] sm:$0xff]  ;;  %v8470_v46 = vld [vmem:[%s5394_s18 + $0xac8] sm:$0xff] }
 0x20b   : > { %12697 = vst [vmem:[#allocation369_spill] sm:$0xff] %v8452_v11  ;;  %12698 = vst [vmem:[#allocation370_spill] sm:$0xff] %v8455_v50  ;;  %v8480_v50 = vld [vmem:[%s5394_s18 + $0xad8] sm:$0xff]  ;;  %v8610_v11 = vld [vmem:[%s5394_s18 + $0xb88] sm:$0xff] }
 0x20c   : > { %12699 = vst [vmem:[#allocation371_spill] sm:$0xff] %v8460_v51  ;;  %12700 = vst [vmem:[#allocation372_spill] sm:$0xff] %v8465_v57  ;;  %v8485_v51 = vld [vmem:[%s5394_s18 + $0xae0] sm:$0xff]  ;;  %v8490_v57 = vld [vmem:[%s5394_s18 + $0xae8] sm:$0xff] }
 0x20d   : > { %12701 = vst [vmem:[#allocation373_spill] sm:$0xff] %v8470_v46  ;;  %12702 = vst [vmem:[#allocation374_spill] sm:$0xff] %v8475_v55  ;;  %v8494_v46 = vpop.xlane.xlu0 %1572  ;;  %v8516_v55 = vld [vmem:[%s5394_s18 + $0xbd0] sm:$0xff] }
 0x20e   : > { %12703 = vst [vmem:[#allocation375_spill] sm:$0xff] %v8480_v50  ;;  %12704 = vst [vmem:[#allocation376_spill] sm:$0xff] %v8485_v51  ;;  %v8502_v50 = vmul.f32 0.000625, %v8124_v21  ;;  %v8508_v51 = vmul.f32 0.000625, %v8248_v39  ;;  %v8527_v39 = vmul.f32 %v6755_v25, %v6755_v25  ;;  %v1648_v25 = vpop.xlane.xlu1 %1647 }
 0x20f   : > { %12705 = vst [vmem:[#allocation377_spill] sm:$0xff] %v8490_v57  ;;  %12706 = vst [vmem:[#allocation378_spill] sm:$0xff] %v8497_v54  ;;  %v8521_v54 = vshrl.u32 %v12712_v59, 7  ;;  %v8540_v21 = vld [vmem:[%s5394_s18 + $0xbe8] sm:$0xff] }
 0x210   : > { %12707 = vst [vmem:[#allocation379_spill] sm:$0xff] %v8502_v50  ;;  %12708 = vst [vmem:[#allocation380_spill] sm:$0xff] %v8505_v45  ;;  %v8545_v45 = vld [vmem:[%s5394_s18 + $0xbf0] sm:$0xff]  ;;  %v8590_v57 = vld [vmem:[%s5394_s18 + $0xb68] sm:$0xff] }
 0x211   : > { %12709 = vst [vmem:[#allocation381_spill] sm:$0xff] %v8508_v51  ;;  %12710 = vst [vmem:[#allocation382_spill] sm:$0xff] %v8511_v32  ;;  %v8530_v51 = vld [vmem:[%s5394_s18 + $0xbd8] sm:$0xff]  ;;  %v8535_v32 = vld [vmem:[%s5394_s18 + $0xbe0] sm:$0xff]  ;;  %v3045_v59 = vsub.s32 2, %v8521_v54  ;;  %v3057_v47 = vsub.s32 5, %v8521_v54 }
 0x212   : > { %12711 = vst [vmem:[#allocation383_spill] sm:$0xff] %v8516_v55  ;;  %12713 = vst [vmem:[#allocation384_spill] sm:$0xff] %v8530_v51  ;;  %v8555_v51 = vld [vmem:[%s5394_s18 + $0xc00] sm:$0xff]  ;;  %v180_v55 = vld [vmem:[%s11870_s1 + $0x8] sm:$0x1f]  ;;  %v3065_v50 = vsub.s32 7, %v8521_v54 }
 0x213   : > { %12714 = vst [vmem:[#allocation385_spill] sm:$0xff] %v8535_v32  ;;  %12715 = vst [vmem:[#allocation386_spill] sm:$0xff] %v8540_v21  ;;  %v8560_v32 = vld [vmem:[%s5394_s18 + $0xc08] sm:$0xff]  ;;  %v8565_v21 = vld [vmem:[%s5394_s18 + $0xc10] sm:$0xff]  ;;  %v8669_v19 = vrot.slane %v180_v55, %v3045_v59 }
 0x214   : > { %12716 = vst [vmem:[#allocation387_spill] sm:$0xff] %v8545_v45  ;;  %12717 = vst [vmem:[#allocation388_spill] sm:$0xff] %v8550_v43  ;;  %v8570_v45 = vld [vmem:[%s5394_s18 + $0xc18] sm:$0xff]  ;;  %v8575_v43 = vld [vmem:[%s5394_s18 + $0xc20] sm:$0xff] }
 0x215   : > { %12718 = vst [vmem:[#allocation389_spill] sm:$0xff] %v8555_v51  ;;  %12719 = vst [vmem:[#allocation390_spill] sm:$0xff] %v8560_v32  ;;  %v8580_v51 = vld [vmem:[%s5394_s18 + $0xc28] sm:$0xff]  ;;  %v8585_v32 = vld [vmem:[%s5394_s18 + $0xb60] sm:$0xff] }
 0x216   : > { %12720 = vst [vmem:[#allocation391_spill] sm:$0xff] %v8565_v21  ;;  %12721 = vst [vmem:[#allocation392_spill] sm:$0xff] %v8570_v45  ;;  %v8595_v21 = vld [vmem:[%s5394_s18 + $0xb70] sm:$0xff]  ;;  %v3037_v45 = vsub.s32 0, %v8521_v54 }
 0x217   : > { %12722 = vst [vmem:[#allocation393_spill] sm:$0xff] %v8575_v43  ;;  %12723 = vst [vmem:[#allocation394_spill] sm:$0xff] %v8580_v51  ;;  %v8600_v43 = vld [vmem:[%s5394_s18 + $0xb78] sm:$0xff]  ;;  %v8605_v51 = vld [vmem:[%s5394_s18 + $0xb80] sm:$0xff] }
 0x218   : > { %12724 = vst [vmem:[#allocation395_spill] sm:$0xff] %v8585_v32  ;;  %12725 = vst [vmem:[#allocation396_spill] sm:$0xff] %v8590_v57  ;;  %v1603_v32 = vpop.xlane.xlu0 %1602  ;;  %v8615_v57 = vld [vmem:[%s5394_s18 + $0xb90] sm:$0xff]  ;;  %v8665_v52 = vrot.slane %v180_v55, %v3037_v45 }
 0x219   : > { %12726 = vst [vmem:[#allocation397_spill] sm:$0xff] %v8595_v21  ;;  %12727 = vst [vmem:[#allocation398_spill] sm:$0xff] %v8600_v43  ;;  %v8620_v21 = vld [vmem:[%s5394_s18 + $0xb98] sm:$0xff]  ;;  %v8625_v43 = vld [vmem:[%s5394_s18 + $0xba0] sm:$0xff] }
 0x21a   : > { %12728 = vst [vmem:[#allocation399_spill] sm:$0xff] %v8605_v51  ;;  %12729 = vst [vmem:[#allocation400_spill] sm:$0xff] %v8610_v11  ;;  %v179_v51 = vld [vmem:[%s11870_s1] sm:$0xff]  ;;  %v3041_v11 = vsub.s32 1, %v8521_v54 }
 0x21b   : > { %12730 = vst [vmem:[#allocation401_spill] sm:$0xff] %v8615_v57  ;;  %12731 = vst [vmem:[#allocation402_spill] sm:$0xff] %v8620_v21  ;;  %v3049_v57 = vsub.s32 3, %v8521_v54  ;;  %v3053_v21 = vsub.s32 4, %v8521_v54  ;;  %v8646_v0 = vrot.slane %v179_v51, %v3037_v45  ;;  %v8650_v36 = vrot.slane %v179_v51, %v3045_v59 }
 0x21c   : > { %12732 = vst [vmem:[#allocation403_spill] sm:$0xff] %v8625_v43  ;;  %v3061_v43 = vsub.s32 6, %v8521_v54  ;;  %v8648_v13 = vrot.slane %v179_v51, %v3041_v11  ;;  %v8656_v10 = vrot.slane %v179_v51, %v3057_v47  ;;  %v8660_v63 = vrot.slane %v179_v51, %v3065_v50  ;;  %v182_v54 = vld [vmem:[%s11871_s2 + $0x8] sm:$0x1f]  ;;  %12738 = vst [vmem:[#allocation409_spill] sm:$0xff] %v8665_v52  ;;  %v1633_v23 = vpop.xlane.xlu0 %1632 }
 0x21d   : > { %v8652_v42 = vrot.slane %v179_v51, %v3049_v57  ;;  %v8654_v16 = vrot.slane %v179_v51, %v3053_v21  ;;  %v8667_v61 = vrot.slane %v180_v55, %v3041_v11  ;;  %12740 = vst [vmem:[#allocation411_spill] sm:$0xff] %v8669_v19  ;;  %v8671_v48 = vrot.slane %v180_v55, %v3049_v57  ;;  %v1678_v19 = vpop.xlane.xlu1 %1677 }
 0x21e   : > { %12735 = vst [vmem:[#allocation406_spill] sm:$0xff] %v8656_v10  ;;  %v8658_v2 = vrot.slane %v179_v51, %v3061_v43  ;;  %12737 = vst [vmem:[#allocation408_spill] sm:$0xff] %v8660_v63  ;;  %v8673_v1 = vrot.slane %v180_v55, %v3053_v21  ;;  %v8675_v10 = vrot.slane %v181_v44, %v3037_v45 }
 0x21f   : > { %12733 = vst [vmem:[#allocation404_spill] sm:$0xff] %v8652_v42  ;;  %12734 = vst [vmem:[#allocation405_spill] sm:$0xff] %v8654_v16  ;;  %v8679_v51 = vrot.slane %v181_v44, %v3045_v59  ;;  %v8681_v63 = vrot.slane %v181_v44, %v3049_v57  ;;  %v8683_v16 = vrot.slane %v181_v44, %v3053_v21 }
 0x220   : > { %12736 = vst [vmem:[#allocation407_spill] sm:$0xff] %v8658_v2  ;;  %12739 = vst [vmem:[#allocation410_spill] sm:$0xff] %v8667_v61  ;;  %v8677_v2 = vrot.slane %v181_v44, %v3041_v11  ;;  %v8685_v52 = vrot.slane %v181_v44, %v3057_v47  ;;  %v8687_v61 = vrot.slane %v181_v44, %v3061_v43  ;;  %v2009_v47 = vmul.f32 0.000625, %v8372_v34 }
 0x221   : > { %12741 = vst [vmem:[#allocation412_spill] sm:$0xff] %v8671_v48  ;;  %12742 = vst [vmem:[#allocation413_spill] sm:$0xff] %v8675_v10  ;;  %v8689_v42 = vrot.slane %v181_v44, %v3065_v50  ;;  %v8691_v48 = vrot.slane %v182_v54, %v3037_v45  ;;  %v8693_v55 = vrot.slane %v182_v54, %v3041_v11  ;;  %v2012_v43 = vmul.f32 0.000625, %v8414_v41 }
 0x222   : > { %12743 = vst [vmem:[#allocation414_spill] sm:$0xff] %v8677_v2  ;;  %12744 = vst [vmem:[#allocation415_spill] sm:$0xff] %v8679_v51  ;;  %v8695_v10 = vrot.slane %v182_v54, %v3045_v59  ;;  %v8697_v2 = vrot.slane %v182_v54, %v3049_v57  ;;  %v8699_v51 = vrot.slane %v182_v54, %v3053_v21  ;;  %v2014_v44 = vmul.f32 0.000625, %v8523_v26  ;;  %v1663_v59 = vpop.xlane.xlu0 %1662 }
 0x223   : > { %12745 = vst [vmem:[#allocation416_spill] sm:$0xff] %v8681_v63  ;;  %12746 = vst [vmem:[#allocation417_spill] sm:$0xff] %v8687_v61  ;;  %v2010_v63 = vmul.f32 0.000625, %v8290_v37  ;;  %v2011_v61 = vmul.f32 0.000625, %v8494_v46  ;;  %v2048_v11 = vmul.f32 %v6757_v29, %v6757_v29  ;;  %v2073_v57 = vsub.f32 %v2009_v47, %v7318_v53 }
 0x224   : > { %12747 = vst [vmem:[#allocation418_spill] sm:$0xff] %v8697_v2  ;;  %12748 = vst [vmem:[#allocation419_spill] sm:$0xff] %v8699_v51  ;;  %v2013_v50 = vmul.f32 0.000625, %v1603_v32  ;;  %v2016_v21 = vmul.f32 0.000625, %v1648_v25  ;;  %v2076_v37 = vsub.f32 %v2012_v43, %v7334_v18  ;;  %v2078_v41 = vsub.f32 %v2014_v44, %v8102_v22 }
 0x225   : > { %v2074_v45 = vsub.f32 %v2010_v63, %v7049_v14  ;;  %v2075_v34 = vsub.f32 %v2011_v61, %v7749_v9  ;;  %v2047_v46 = vmul.f32 %v6974_v7, %v6974_v7  ;;  %v2105_v54 = vmax.f32 %v2073_v57, 0.0  ;;  %v1708_v63 = vpop.xlane.xlu1 %1707 }
 0x226   : > { %v2077_v29 = vsub.f32 %v2013_v50, %v8527_v39  ;;  %v2080_v51 = vsub.f32 %v2016_v21, %v2048_v11  ;;  %v2108_v14 = vmax.f32 %v2076_v37, 0.0  ;;  %v2110_v32 = vmax.f32 %v2078_v41, 0.0  ;;  %v1693_v11 = vpop.xlane.xlu0 %1692 }
 0x227   : > { %v2106_v26 = vmax.f32 %v2074_v45, 0.0  ;;  %v2107_v53 = vmax.f32 %v2075_v34, 0.0  ;;  %v2015_v25 = vmul.f32 0.000625, %v1633_v23  ;;  %v2137_v2 = vadd.f32 1e-05, %v2105_v54 }
 0x228   : > { %v2109_v18 = vmax.f32 %v2077_v29, 0.0  ;;  %v2112_v43 = vmax.f32 %v2080_v51, 0.0  ;;  %v2140_v61 = vadd.f32 1e-05, %v2108_v14  ;;  %v2142_v22 = vadd.f32 1e-05, %v2110_v32 }
 0x229   : > { %v2138_v47 = vadd.f32 1e-05, %v2106_v26  ;;  %v2139_v9 = vadd.f32 1e-05, %v2107_v53  ;;  %v2079_v44 = vsub.f32 %v2015_v25, %v2047_v46  ;;  %v2050_v39 = vmul.f32 %v7027_v28, %v7027_v28  ;;  %v1738_v37 = vpop.xlane.xlu1 %1737 }
 0x22a   : > { %v2141_v7 = vadd.f32 1e-05, %v2109_v18  ;;  %v2144_v45 = vadd.f32 1e-05, %v2112_v43  ;;  %v2018_v50 = vmul.f32 0.000625, %v1678_v19  ;;  %v2049_v23 = vmul.f32 %v7029_v35, %v7029_v35  ;;  %v1723_v25 = vpop.xlane.xlu0 %1722 }
 0x22b   : > { %4493 = vrsqrt.f32 %v2138_v47  ;;  %v2111_v57 = vmax.f32 %v2079_v44, 0.0  ;;  %v2017_v29 = vmul.f32 0.000625, %v1663_v59  ;;  %v2052_v51 = vmul.f32 %v7043_v60, %v7043_v60 }
 0x22c   : > { %4495 = vrsqrt.f32 %v2137_v2  ;;  %v2020_v21 = vmul.f32 0.000625, %v1708_v63  ;;  %v2082_v41 = vsub.f32 %v2018_v50, %v2050_v39  ;;  %v2051_v46 = vmul.f32 %v7269_v8, %v7269_v8 }
 0x22d   : > { %4497 = vrsqrt.f32 %v2140_v61  ;;  %v2143_v34 = vadd.f32 1e-05, %v2111_v57  ;;  %v2081_v2 = vsub.f32 %v2017_v29, %v2049_v23  ;;  %v2019_v19 = vmul.f32 0.000625, %v1693_v11  ;;  %v1768_v39 = vpop.xlane.xlu1 %1767 }
 0x22e   : > { %4499 = vrsqrt.f32 %v2139_v9  ;;  %v2084_v26 = vsub.f32 %v2020_v21, %v2052_v51  ;;  %v2114_v54 = vmax.f32 %v2082_v41, 0.0  ;;  %v2054_v59 = vmul.f32 %v7307_v56, %v7307_v56 }
 0x22f   : > { %4501 = vrsqrt.f32 %v2142_v22  ;;  %v2022_v14 = vmul.f32 0.000625, %v1738_v37  ;;  %v2113_v53 = vmax.f32 %v2081_v2, 0.0  ;;  %v2083_v32 = vsub.f32 %v2019_v19, %v2051_v46 }
 0x230   : > { %4503 = vrsqrt.f32 %v2141_v7  ;;  %v2116_v63 = vmax.f32 %v2084_v26, 0.0  ;;  %v2146_v47 = vadd.f32 1e-05, %v2114_v54  ;;  %v8728_v43 = vmul.f32 %v7310_v40, %v7310_v40  ;;  %v12779_v40 = vld [vmem:[#allocation415_spill] sm:$0xff] }
 0x231   : > { %4505 = vrsqrt.f32 %v2144_v45  ;;  %v2086_v18 = vsub.f32 %v2022_v14, %v2054_v59  ;;  %v2145_v61 = vadd.f32 1e-05, %v2113_v53  ;;  %v2115_v7 = vmax.f32 %v2083_v32, 0.0 }
 0x232   : > { %4507 = vrsqrt.f32 %v2143_v34  ;;  %12749 = vst [vmem:[#allocation420_spill] sm:$0xff] %v8728_v43  ;;  %v8730_v9 = vadd.f32 1e-05, %v2116_v63  ;;  %v8734_v22 = vmul.f32 %v7312_v15, %v7312_v15  ;;  %v8738_v45 = vmul.f32 0.000625, %v1723_v25 }
 0x233   : > { %4509 = vrsqrt.f32 %v2146_v47  ;;  %v8736_v44 = vmax.f32 %v2086_v18, 0.0  ;;  %v8742_v11 = vmul.f32 %v7314_v62, %v7314_v62  ;;  %v8744_v50 = vadd.f32 1e-05, %v2115_v7  ;;  %v12778_v62 = vld [vmem:[#allocation414_spill] sm:$0xff] }
 0x234   : > { %12750 = vst [vmem:[#allocation421_spill] sm:$0xff] %v8734_v22  ;;  %12751 = vst [vmem:[#allocation422_spill] sm:$0xff] %v8738_v45  ;;  %4511 = vrsqrt.f32 %v2145_v61  ;;  %v8746_v23 = vmul.f32 0.000625, %v1768_v39  ;;  %v8750_v29 = vmul.f32 %v7330_v58, %v7330_v58  ;;  %v12755_v21 = vsub.f32 %v6760_v6, %v6705_v31  ;;  %v12809_v22 = vld [vmem:[#allocation30_spill] sm:$0xff] }
 0x235   : > { %12752 = vst [vmem:[#allocation423_spill] sm:$0xff] %v8742_v11  ;;  %v4494_v57 = vpop.eup %4493  ;;  %v12756_v34 = vsub.f32 %v6765_v4, %v6705_v31  ;;  %v12757_v46 = vsub.f32 %v6770_v33, %v6705_v31  ;;  %v12758_v26 = vsub.f32 %v6775_v24, %v6705_v31  ;;  %v12759_v59 = vsub.f32 %v6780_v20, %v6705_v31  ;;  %v12805_v11 = vld [vmem:[#allocation28_spill] sm:$0xff] }
 0x236   : > { %12753 = vst [vmem:[#allocation424_spill] sm:$0xff] %v8746_v23  ;;  %12754 = vst [vmem:[#allocation425_spill] sm:$0xff] %v8750_v29  ;;  %v8752_v51 = vpop.eup %4495  ;;  %v2630_v37 = vmul.f32 %v4494_v57, %v12755_v21  ;;  %v12760_v6 = vsub.f32 %v6785_v49, %v6705_v31  ;;  %v12761_v4 = vsub.f32 %v6790_v3, %v6705_v31  ;;  %v12783_v29 = vld [vmem:[#allocation419_spill] sm:$0xff]  ;;  %v12807_v23 = vld [vmem:[#allocation29_spill] sm:$0xff]  ;;  %4513 = vrsqrt.f32 %v8730_v9 }
 0x237   : > { %v2631_v41 = vmul.f32 %v4494_v57, %v12756_v34  ;;  %v2632_v2 = vmul.f32 %v4494_v57, %v12757_v46  ;;  %v2633_v19 = vmul.f32 %v4494_v57, %v12758_v26  ;;  %v8766_v54 = vpop.eup %4497  ;;  %v2634_v14 = vmul.f32 %v4494_v57, %v12759_v59  ;;  %v12769_v59 = vld [vmem:[#allocation405_spill] sm:$0xff] }
 0x238   : > { %v2635_v53 = vmul.f32 %v4494_v57, %v12760_v6  ;;  %v2636_v63 = vmul.f32 %v4494_v57, %v12761_v4  ;;  %v12762_v33 = vsub.f32 %v6797_v12, %v6705_v31  ;;  %v8780_v24 = vpop.eup %4499  ;;  %v12763_v25 = vsub.f32 %v6802_v30, %v6705_v31 }
 0x239   : > { %v12764_v47 = vsub.f32 %v6807_v27, %v6705_v31  ;;  %v12765_v18 = vsub.f32 %v6812_v38, %v6705_v31  ;;  %v12766_v61 = vsub.f32 %v6819_v5, %v6705_v31  ;;  %v8794_v7 = vpop.eup %4501  ;;  %v12767_v39 = vsub.f32 %v6824_v17, %v6705_v31  ;;  %v12768_v38 = vld [vmem:[#allocation404_spill] sm:$0xff]  ;;  %v12770_v5 = vld [vmem:[#allocation406_spill] sm:$0xff] }
 0x23a   : > { %v2637_v32 = vmul.f32 %v4494_v57, %v12762_v33  ;;  %v2638_v20 = vmul.f32 %v4494_v57, %v12763_v25  ;;  %v3113_v21 = vmul.f32 %v8646_v0, %v2630_v37  ;;  %v3114_v34 = vmul.f32 %v8648_v13, %v2631_v41  ;;  %v8802_v46 = vpop.eup %4503  ;;  %v12771_v33 = vld [vmem:[#allocation407_spill] sm:$0xff]  ;;  %v12772_v31 = vld [vmem:[#allocation408_spill] sm:$0xff]  ;;  %v12774_v41 = vld [vmem:[#allocation410_spill] sm:$0xff] }
 0x23b   : > { %v2639_v49 = vmul.f32 %v4494_v57, %v12764_v47  ;;  %v2640_v3 = vmul.f32 %v4494_v57, %v12765_v18  ;;  %v2641_v12 = vmul.f32 %v4494_v57, %v12766_v61  ;;  %v2642_v30 = vmul.f32 %v4494_v57, %v12767_v39  ;;  %v8808_v47 = vpop.eup %4505  ;;  %v12773_v57 = vld [vmem:[#allocation409_spill] sm:$0xff] }
 0x23c   : > { %v3115_v27 = vmul.f32 %v8650_v36, %v2632_v2  ;;  %v3116_v26 = vmul.f32 %v12768_v38, %v2633_v19  ;;  %v3117_v6 = vmul.f32 %v12769_v59, %v2634_v14  ;;  %v3118_v4 = vmul.f32 %v12770_v5, %v2635_v53  ;;  %v12775_v19 = vld [vmem:[#allocation411_spill] sm:$0xff]  ;;  %v8821_v53 = vpop.eup %4507  ;;  %v12777_v39 = vld [vmem:[#allocation413_spill] sm:$0xff] }
 0x23d   : > { %v3119_v25 = vmul.f32 %v12771_v33, %v2636_v63  ;;  %v3120_v17 = vmul.f32 %v12772_v31, %v2637_v32  ;;  %v3121_v37 = vmul.f32 %v12773_v57, %v2638_v20  ;;  %v3122_v2 = vmul.f32 %v12774_v41, %v2639_v49  ;;  %v12776_v63 = vld [vmem:[#allocation412_spill] sm:$0xff]  ;;  %v8831_v8 = vpop.eup %4509 }
 0x23e   : > { %v3123_v14 = vmul.f32 %v12775_v19, %v2640_v3  ;;  %v3124_v18 = vmul.f32 %v12776_v63, %v2641_v12  ;;  %v3125_v61 = vmul.f32 %v8673_v1, %v2642_v30  ;;  %v3596_v58 = vadd.f32 %v12777_v39, %v3113_v21  ;;  %v12780_v20 = vld [vmem:[#allocation416_spill] sm:$0xff]  ;;  %v12781_v12 = vld [vmem:[#allocation417_spill] sm:$0xff] }
 0x23f   : > { %v3597_v15 = vadd.f32 %v12778_v62, %v3114_v34  ;;  %v3598_v32 = vadd.f32 %v12779_v40, %v3115_v27  ;;  %v3599_v49 = vadd.f32 %v12780_v20, %v3116_v26  ;;  %v3600_v3 = vadd.f32 %v8683_v16, %v3117_v6  ;;  %v8839_v26 = vpop.eup %4511 }
 0x240   : > { %v3601_v56 = vadd.f32 %v8685_v52, %v3118_v4  ;;  %v3602_v30 = vadd.f32 %v12781_v12, %v3119_v25  ;;  %v3603_v21 = vadd.f32 %v8689_v42, %v3120_v17  ;;  %v3604_v34 = vadd.f32 %v8691_v48, %v3121_v37  ;;  %4012 = vst [vmem:[%s8815_s29 + $0x68] sm:$0xff] %v3596_v58  ;;  %v12782_v4 = vld [vmem:[#allocation418_spill] sm:$0xff]  ;;  %v12785_v37 = vld [vmem:[#allocation3_spill] sm:$0xff] }
 0x241   : > { %v3605_v27 = vadd.f32 %v8693_v55, %v3122_v2  ;;  %4013 = vst [vmem:[%s8815_s29 + $0x70] sm:$0xff] %v3597_v15  ;;  %v3606_v6 = vadd.f32 %v8695_v10, %v3123_v14  ;;  %v3607_v60 = vadd.f32 %v12782_v4, %v3124_v18  ;;  %v3608_v25 = vadd.f32 %v12783_v29, %v3125_v61  ;;  %v12784_v17 = vld [vmem:[#allocation18_spill] sm:$0xff]  ;;  %v12787_v58 = vld [vmem:[#allocation19_spill] sm:$0xff]  ;;  %v12789_v61 = vld [vmem:[#allocation20_spill] sm:$0xff] }
 0x242   : > { %4014 = vst [vmem:[%s8815_s29 + $0x78] sm:$0xff] %v3598_v32  ;;  %4015 = vst [vmem:[%s8815_s29 + $0x80] sm:$0xff] %v3599_v49  ;;  %v12786_v2 = vsub.f32 %v12784_v17, %v12785_v37  ;;  %v12788_v14 = vsub.f32 %v12787_v58, %v12785_v37  ;;  %v12790_v32 = vsub.f32 %v12789_v61, %v12785_v37  ;;  %4515 = vrsqrt.f32 %v8744_v50 }
 0x243   : > { %4016 = vst [vmem:[%s8815_s29 + $0x88] sm:$0xff] %v3600_v3  ;;  %4017 = vst [vmem:[%s8815_s29 + $0x90] sm:$0xff] %v3601_v56  ;;  %v12791_v56 = vld [vmem:[#allocation21_spill] sm:$0xff] }
 0x244   : > { %v2617_v15 = vmul.f32 %v8752_v51, %v12786_v2  ;;  %4018 = vst [vmem:[%s8815_s29 + $0x98] sm:$0xff] %v3602_v30  ;;  %4019 = vst [vmem:[%s8815_s29 + $0xa0] sm:$0xff] %v3603_v21  ;;  %v2618_v18 = vmul.f32 %v8752_v51, %v12788_v14  ;;  %v2619_v49 = vmul.f32 %v8752_v51, %v12790_v32  ;;  %v12793_v2 = vld [vmem:[#allocation22_spill] sm:$0xff]  ;;  %v12797_v14 = vld [vmem:[#allocation24_spill] sm:$0xff] }
 0x245   : > { %4020 = vst [vmem:[%s8815_s29 + $0xa8] sm:$0xff] %v3604_v34  ;;  %4021 = vst [vmem:[%s8815_s29 + $0xb0] sm:$0xff] %v3605_v27  ;;  %v12792_v3 = vsub.f32 %v12791_v56, %v12785_v37  ;;  %v12794_v30 = vsub.f32 %v12793_v2, %v12785_v37  ;;  %v12795_v34 = vld [vmem:[#allocation23_spill] sm:$0xff]  ;;  %v12798_v61 = vsub.f32 %v12797_v14, %v12785_v37  ;;  %v12799_v56 = vld [vmem:[#allocation25_spill] sm:$0xff] }
 0x246   : > { %4022 = vst [vmem:[%s8815_s29 + $0xb8] sm:$0xff] %v3606_v6  ;;  %4023 = vst [vmem:[%s8815_s29 + $0xc0] sm:$0xff] %v3607_v60  ;;  %v12796_v27 = vsub.f32 %v12795_v34, %v12785_v37  ;;  %v12806_v14 = vsub.f32 %v12805_v11, %v12785_v37  ;;  %v3100_v45 = vmul.f32 %v8646_v0, %v2617_v15 }
 0x247   : > { %v2620_v17 = vmul.f32 %v8752_v51, %v12792_v3  ;;  %v2621_v21 = vmul.f32 %v8752_v51, %v12794_v30  ;;  %4024 = vst.msk [vmem:[%s8815_s29 + $0xc8] sm:$0xff] %vm610_vm0, %v3608_v25  ;;  %v2623_v32 = vmul.f32 %v8752_v51, %v12798_v61  ;;  %v12800_v3 = vsub.f32 %v12799_v56, %v12785_v37  ;;  %v12801_v30 = vld [vmem:[#allocation26_spill] sm:$0xff]  ;;  %v12803_v25 = vld [vmem:[#allocation27_spill] sm:$0xff] }
 0x248   : > { %v2622_v58 = vmul.f32 %v8752_v51, %v12796_v27  ;;  %v12802_v60 = vsub.f32 %v12801_v30, %v12785_v37  ;;  %v12804_v34 = vsub.f32 %v12803_v25, %v12785_v37  ;;  %v2627_v61 = vmul.f32 %v8752_v51, %v12806_v14 }
 0x249   : > { %v2624_v2 = vmul.f32 %v8752_v51, %v12800_v3  ;;  %v12808_v56 = vsub.f32 %v12807_v23, %v12785_v37  ;;  %v12810_v30 = vsub.f32 %v12809_v22, %v12785_v37  ;;  %v3101_v25 = vmul.f32 %v8648_v13, %v2618_v18 }
 0x24a   : > { %v2625_v6 = vmul.f32 %v8752_v51, %v12802_v60  ;;  %v2626_v27 = vmul.f32 %v8752_v51, %v12804_v34  ;;  %v3102_v34 = vmul.f32 %v8650_v36, %v2619_v49  ;;  %v3103_v11 = vmul.f32 %v12768_v38, %v2620_v17 }
 0x24b   : > { %v2628_v3 = vmul.f32 %v8752_v51, %v12808_v56  ;;  %v2629_v60 = vmul.f32 %v8752_v51, %v12810_v30  ;;  %v3104_v14 = vmul.f32 %v12769_v59, %v2621_v21  ;;  %v3105_v43 = vmul.f32 %v12770_v5, %v2622_v58 }
 0x24c   : > { %v3106_v23 = vmul.f32 %v12771_v33, %v2623_v32  ;;  %v3107_v56 = vmul.f32 %v12772_v31, %v2624_v2  ;;  %v3108_v22 = vmul.f32 %v12773_v57, %v2625_v6  ;;  %v3109_v51 = vmul.f32 %v12774_v41, %v2626_v27 }
 0x24d   : > { %v3110_v37 = vmul.f32 %v12775_v19, %v2627_v61  ;;  %v3111_v15 = vmul.f32 %v12776_v63, %v2628_v3  ;;  %v3112_v18 = vmul.f32 %v8673_v1, %v2629_v60  ;;  %v3583_v49 = vadd.f32 %v12777_v39, %v3100_v45  ;;  %v12811_v60 = vld [vmem:[#allocation31_spill] sm:$0xff] }
 0x24e   : > { %v3584_v17 = vadd.f32 %v12778_v62, %v3101_v25  ;;  %v3585_v21 = vadd.f32 %v12779_v40, %v3102_v34  ;;  %v3586_v58 = vadd.f32 %v12780_v20, %v3103_v11  ;;  %v3587_v32 = vadd.f32 %v8683_v16, %v3104_v14  ;;  %v12812_v25 = vld [vmem:[#allocation5_spill] sm:$0xff]  ;;  %v12814_v14 = vld [vmem:[#allocation32_spill] sm:$0xff] }
 0x24f   : > { %v3588_v2 = vadd.f32 %v8685_v52, %v3105_v43  ;;  %v3589_v6 = vadd.f32 %v12781_v12, %v3106_v23  ;;  %v3590_v27 = vadd.f32 %v8689_v42, %v3107_v56  ;;  %v3591_v45 = vadd.f32 %v8691_v48, %v3108_v22  ;;  %3999 = vst [vmem:[%s8815_s29] sm:$0xff] %v3583_v49  ;;  %v12816_v22 = vld [vmem:[#allocation33_spill] sm:$0xff] }
 0x250   : > { %v3592_v61 = vadd.f32 %v8693_v55, %v3109_v51  ;;  %v3593_v3 = vadd.f32 %v8695_v10, %v3110_v37  ;;  %4000 = vst [vmem:[%s8815_s29 + $0x8] sm:$0xff] %v3584_v17  ;;  %4001 = vst [vmem:[%s8815_s29 + $0x10] sm:$0xff] %v3585_v21  ;;  %v3594_v30 = vadd.f32 %v12782_v4, %v3111_v15  ;;  %v12818_v15 = vld [vmem:[#allocation34_spill] sm:$0xff]  ;;  %v12820_v17 = vld [vmem:[#allocation35_spill] sm:$0xff] }
 0x251   : > { %v3595_v43 = vadd.f32 %v12783_v29, %v3112_v18  ;;  %4002 = vst [vmem:[%s8815_s29 + $0x18] sm:$0xff] %v3586_v58  ;;  %4003 = vst [vmem:[%s8815_s29 + $0x20] sm:$0xff] %v3587_v32  ;;  %v12813_v34 = vsub.f32 %v12811_v60, %v12812_v25  ;;  %v12815_v23 = vsub.f32 %v12814_v14, %v12812_v25  ;;  %v12822_v32 = vld [vmem:[#allocation36_spill] sm:$0xff]  ;;  %v12828_v14 = vld [vmem:[#allocation39_spill] sm:$0xff] }
 0x252   : > { %4004 = vst [vmem:[%s8815_s29 + $0x28] sm:$0xff] %v3588_v2  ;;  %4005 = vst [vmem:[%s8815_s29 + $0x30] sm:$0xff] %v3589_v6  ;;  %v12817_v51 = vsub.f32 %v12816_v22, %v12812_v25  ;;  %v12819_v18 = vsub.f32 %v12818_v15, %v12812_v25  ;;  %v12821_v21 = vsub.f32 %v12820_v17, %v12812_v25  ;;  %v12832_v15 = vld [vmem:[#allocation41_spill] sm:$0xff] }
 0x253   : > { %v2656_v11 = vmul.f32 %v8766_v54, %v12813_v34  ;;  %v2657_v56 = vmul.f32 %v8766_v54, %v12815_v23  ;;  %4006 = vst [vmem:[%s8815_s29 + $0x38] sm:$0xff] %v3590_v27  ;;  %4007 = vst [vmem:[%s8815_s29 + $0x40] sm:$0xff] %v3591_v45  ;;  %v12823_v2 = vsub.f32 %v12822_v32, %v12812_v25  ;;  %v12824_v27 = vld [vmem:[#allocation37_spill] sm:$0xff] }
 0x254   : > { %4008 = vst [vmem:[%s8815_s29 + $0x48] sm:$0xff] %v3592_v61  ;;  %4009 = vst [vmem:[%s8815_s29 + $0x50] sm:$0xff] %v3593_v3  ;;  %v2658_v37 = vmul.f32 %v8766_v54, %v12817_v51  ;;  %v2659_v49 = vmul.f32 %v8766_v54, %v12819_v18  ;;  %v2660_v58 = vmul.f32 %v8766_v54, %v12821_v21  ;;  %v12826_v3 = vld [vmem:[#allocation38_spill] sm:$0xff]  ;;  %v12830_v51 = vld [vmem:[#allocation40_spill] sm:$0xff] }
 0x255   : > { %v2661_v6 = vmul.f32 %v8766_v54, %v12823_v2  ;;  %4010 = vst [vmem:[%s8815_s29 + $0x58] sm:$0xff] %v3594_v30  ;;  %4011 = vst.msk [vmem:[%s8815_s29 + $0x60] sm:$0xff] %vm610_vm0, %v3595_v43  ;;  %v12825_v45 = vsub.f32 %v12824_v27, %v12812_v25  ;;  %v12827_v60 = vsub.f32 %v12826_v3, %v12812_v25  ;;  %v12834_v21 = vld [vmem:[#allocation42_spill] sm:$0xff]  ;;  %v12836_v27 = vld [vmem:[#allocation43_spill] sm:$0xff] }
 0x256   : > { %v12829_v23 = vsub.f32 %v12828_v14, %v12812_v25  ;;  %v12831_v30 = vsub.f32 %v12830_v51, %v12812_v25  ;;  %v12833_v18 = vsub.f32 %v12832_v15, %v12812_v25  ;;  %v12835_v32 = vsub.f32 %v12834_v21, %v12812_v25 }
 0x257   : > { %v2662_v61 = vmul.f32 %v8766_v54, %v12825_v45  ;;  %v2663_v34 = vmul.f32 %v8766_v54, %v12827_v60  ;;  %v12837_v45 = vsub.f32 %v12836_v27, %v12812_v25  ;;  %v3139_v60 = vmul.f32 %v8646_v0, %v2656_v11 }
 0x258   : > { %v2664_v22 = vmul.f32 %v8766_v54, %v12829_v23  ;;  %v2665_v43 = vmul.f32 %v8766_v54, %v12831_v30  ;;  %v2666_v17 = vmul.f32 %v8766_v54, %v12833_v18  ;;  %v2667_v2 = vmul.f32 %v8766_v54, %v12835_v32 }
 0x259   : > { %v2668_v3 = vmul.f32 %v8766_v54, %v12837_v45  ;;  %v3140_v14 = vmul.f32 %v8648_v13, %v2657_v56  ;;  %v3141_v23 = vmul.f32 %v8650_v36, %v2658_v37  ;;  %v3142_v51 = vmul.f32 %v12768_v38, %v2659_v49 }
 0x25a   : > { %v3143_v30 = vmul.f32 %v12769_v59, %v2660_v58  ;;  %v3144_v15 = vmul.f32 %v12770_v5, %v2661_v6  ;;  %v3145_v18 = vmul.f32 %v12771_v33, %v2662_v61  ;;  %v3146_v21 = vmul.f32 %v12772_v31, %v2663_v34 }
 0x25b   : > { %v3147_v25 = vmul.f32 %v12773_v57, %v2664_v22  ;;  %v3148_v54 = vmul.f32 %v12774_v41, %v2665_v43  ;;  %v3149_v11 = vmul.f32 %v12775_v19, %v2666_v17  ;;  %v3150_v56 = vmul.f32 %v12776_v63, %v2667_v2 }
 0x25c   : > { %v3151_v37 = vmul.f32 %v8673_v1, %v2668_v3  ;;  %v3622_v49 = vadd.f32 %v12777_v39, %v3139_v60  ;;  %v3623_v58 = vadd.f32 %v12778_v62, %v3140_v14  ;;  %v3624_v6 = vadd.f32 %v12779_v40, %v3141_v23  ;;  %v12838_v60 = vld [vmem:[#allocation4_spill] sm:$0xff]  ;;  %v12839_v14 = vld [vmem:[#allocation2_spill] sm:$0xff] }
 0x25d   : > { %v3625_v61 = vadd.f32 %v12780_v20, %v3142_v51  ;;  %v3626_v34 = vadd.f32 %v8683_v16, %v3143_v30  ;;  %v3627_v22 = vadd.f32 %v8685_v52, %v3144_v15  ;;  %v3628_v43 = vadd.f32 %v12781_v12, %v3145_v18  ;;  %v12841_v30 = vld [vmem:[#allocation6_spill] sm:$0xff] }
 0x25e   : > { %v3629_v17 = vadd.f32 %v8689_v42, %v3146_v21  ;;  %v3630_v32 = vadd.f32 %v8691_v48, %v3147_v25  ;;  %v3631_v2 = vadd.f32 %v8693_v55, %v3148_v54  ;;  %v3632_v27 = vadd.f32 %v8695_v10, %v3149_v11  ;;  %4038 = vst [vmem:[%s8815_s29 + $0x138] sm:$0xff] %v3622_v49  ;;  %v12843_v21 = vld [vmem:[#allocation7_spill] sm:$0xff]  ;;  %v12845_v11 = vld [vmem:[#allocation8_spill] sm:$0xff]  ;;  %v12847_v49 = vld [vmem:[#allocation9_spill] sm:$0xff] }
 0x25f   : > { %v3633_v45 = vadd.f32 %v12782_v4, %v3150_v56  ;;  %4039 = vst [vmem:[%s8815_s29 + $0x140] sm:$0xff] %v3623_v58  ;;  %4040 = vst [vmem:[%s8815_s29 + $0x148] sm:$0xff] %v3624_v6  ;;  %v3634_v3 = vadd.f32 %v12783_v29, %v3151_v37  ;;  %v12840_v23 = vsub.f32 %v12838_v60, %v12839_v14  ;;  %v12855_v60 = vld [vmem:[#allocation13_spill] sm:$0xff] }
 0x260   : > { %4041 = vst [vmem:[%s8815_s29 + $0x150] sm:$0xff] %v3625_v61  ;;  %4042 = vst [vmem:[%s8815_s29 + $0x158] sm:$0xff] %v3626_v34  ;;  %v12842_v15 = vsub.f32 %v12841_v30, %v12839_v14  ;;  %v12844_v25 = vsub.f32 %v12843_v21, %v12839_v14  ;;  %v12846_v56 = vsub.f32 %v12845_v11, %v12839_v14  ;;  %v12849_v61 = vld [vmem:[#allocation10_spill] sm:$0xff]  ;;  %v12859_v11 = vld [vmem:[#allocation15_spill] sm:$0xff] }
 0x261   : > { %4043 = vst [vmem:[%s8815_s29 + $0x160] sm:$0xff] %v3627_v22  ;;  %4044 = vst [vmem:[%s8815_s29 + $0x168] sm:$0xff] %v3628_v43  ;;  %v2643_v51 = vmul.f32 %v8780_v24, %v12840_v23  ;;  %v12848_v58 = vsub.f32 %v12847_v49, %v12839_v14  ;;  %v12850_v34 = vsub.f32 %v12849_v61, %v12839_v14  ;;  %v12851_v43 = vld [vmem:[#allocation11_spill] sm:$0xff]  ;;  %v12861_v49 = vld [vmem:[#allocation16_spill] sm:$0xff] }
 0x262   : > { %4045 = vst [vmem:[%s8815_s29 + $0x170] sm:$0xff] %v3629_v17  ;;  %v2644_v18 = vmul.f32 %v8780_v24, %v12842_v15  ;;  %v2645_v54 = vmul.f32 %v8780_v24, %v12844_v25  ;;  %4046 = vst [vmem:[%s8815_s29 + $0x178] sm:$0xff] %v3630_v32  ;;  %v2646_v37 = vmul.f32 %v8780_v24, %v12846_v56  ;;  %v12857_v15 = vld [vmem:[#allocation14_spill] sm:$0xff] }
 0x263   : > { %4047 = vst [vmem:[%s8815_s29 + $0x180] sm:$0xff] %v3631_v2  ;;  %4048 = vst [vmem:[%s8815_s29 + $0x188] sm:$0xff] %v3632_v27  ;;  %v2647_v6 = vmul.f32 %v8780_v24, %v12848_v58  ;;  %v2648_v22 = vmul.f32 %v8780_v24, %v12850_v34  ;;  %v12852_v17 = vsub.f32 %v12851_v43, %v12839_v14  ;;  %v12853_v2 = vld [vmem:[#allocation12_spill] sm:$0xff]  ;;  %v12863_v34 = vld [vmem:[#allocation17_spill] sm:$0xff] }
 0x264   : > { %4049 = vst [vmem:[%s8815_s29 + $0x190] sm:$0xff] %v3633_v45  ;;  %4050 = vst.msk [vmem:[%s8815_s29 + $0x198] sm:$0xff] %vm610_vm0, %v3634_v3  ;;  %v12854_v27 = vsub.f32 %v12853_v2, %v12839_v14  ;;  %v12856_v23 = vsub.f32 %v12855_v60, %v12839_v14  ;;  %v12858_v21 = vsub.f32 %v12857_v15, %v12839_v14 }
 0x265   : > { %v2649_v32 = vmul.f32 %v8780_v24, %v12852_v17  ;;  %v12860_v56 = vsub.f32 %v12859_v11, %v12839_v14  ;;  %v12862_v58 = vsub.f32 %v12861_v49, %v12839_v14  ;;  %v12864_v43 = vsub.f32 %v12863_v34, %v12839_v14 }
 0x266   : > { %v2650_v45 = vmul.f32 %v8780_v24, %v12854_v27  ;;  %v2651_v30 = vmul.f32 %v8780_v24, %v12856_v23  ;;  %v2652_v25 = vmul.f32 %v8780_v24, %v12858_v21  ;;  %v3126_v2 = vmul.f32 %v8646_v0, %v2643_v51 }
 0x267   : > { %v2653_v3 = vmul.f32 %v8780_v24, %v12860_v56  ;;  %v2654_v61 = vmul.f32 %v8780_v24, %v12862_v58  ;;  %v2655_v17 = vmul.f32 %v8780_v24, %v12864_v43  ;;  %v3127_v27 = vmul.f32 %v8648_v13, %v2644_v18 }
 0x268   : > { %v3128_v60 = vmul.f32 %v8650_v36, %v2645_v54  ;;  %v3129_v23 = vmul.f32 %v12768_v38, %v2646_v37  ;;  %v3130_v15 = vmul.f32 %v12769_v59, %v2647_v6  ;;  %v3131_v21 = vmul.f32 %v12770_v5, %v2648_v22 }
 0x269   : > { %v3132_v11 = vmul.f32 %v12771_v33, %v2649_v32  ;;  %v3133_v56 = vmul.f32 %v12772_v31, %v2650_v45  ;;  %v3134_v14 = vmul.f32 %v12773_v57, %v2651_v30  ;;  %v3135_v24 = vmul.f32 %v12774_v41, %v2652_v25 }
 0x26a   : > { %v3136_v51 = vmul.f32 %v12775_v19, %v2653_v3  ;;  %v3137_v18 = vmul.f32 %v12776_v63, %v2654_v61  ;;  %v3138_v54 = vmul.f32 %v8673_v1, %v2655_v17  ;;  %v3609_v37 = vadd.f32 %v12777_v39, %v3126_v2  ;;  %v12865_v17 = vld [vmem:[#allocation47_spill] sm:$0xff]  ;;  %v12866_v2 = vld [vmem:[#allocation44_spill] sm:$0xff] }
 0x26b   : > { %v3610_v6 = vadd.f32 %v12778_v62, %v3127_v27  ;;  %v3611_v22 = vadd.f32 %v12779_v40, %v3128_v60  ;;  %v3612_v32 = vadd.f32 %v12780_v20, %v3129_v23  ;;  %v3613_v45 = vadd.f32 %v8683_v16, %v3130_v15  ;;  %v12868_v23 = vld [vmem:[#allocation48_spill] sm:$0xff] }
 0x26c   : > { %v3614_v30 = vadd.f32 %v8685_v52, %v3131_v21  ;;  %v3615_v25 = vadd.f32 %v12781_v12, %v3132_v11  ;;  %v3616_v3 = vadd.f32 %v8689_v42, %v3133_v56  ;;  %v3617_v49 = vadd.f32 %v8691_v48, %v3134_v14  ;;  %4025 = vst [vmem:[%s8815_s29 + $0xd0] sm:$0xff] %v3609_v37  ;;  %v12870_v11 = vld [vmem:[#allocation49_spill] sm:$0xff] }
 0x26d   : > { %v3618_v58 = vadd.f32 %v8693_v55, %v3135_v24  ;;  %v3619_v61 = vadd.f32 %v8695_v10, %v3136_v51  ;;  %v3620_v34 = vadd.f32 %v12782_v4, %v3137_v18  ;;  %v3621_v43 = vadd.f32 %v12783_v29, %v3138_v54  ;;  %4026 = vst [vmem:[%s8815_s29 + $0xd8] sm:$0xff] %v3610_v6  ;;  %v12872_v24 = vld [vmem:[#allocation50_spill] sm:$0xff]  ;;  %v12874_v54 = vld [vmem:[#allocation51_spill] sm:$0xff] }
 0x26e   : > { %4027 = vst [vmem:[%s8815_s29 + $0xe0] sm:$0xff] %v3611_v22  ;;  %4028 = vst [vmem:[%s8815_s29 + $0xe8] sm:$0xff] %v3612_v32  ;;  %v12867_v27 = vsub.f32 %v12865_v17, %v12866_v2  ;;  %v12869_v15 = vsub.f32 %v12868_v23, %v12866_v2  ;;  %v12871_v56 = vsub.f32 %v12870_v11, %v12866_v2  ;;  %v12876_v22 = vld [vmem:[#allocation52_spill] sm:$0xff]  ;;  %v12886_v11 = vld [vmem:[#allocation57_spill] sm:$0xff] }
 0x26f   : > { %4029 = vst [vmem:[%s8815_s29 + $0xf0] sm:$0xff] %v3613_v45  ;;  %4030 = vst [vmem:[%s8815_s29 + $0xf8] sm:$0xff] %v3614_v30  ;;  %v12873_v51 = vsub.f32 %v12872_v24, %v12866_v2  ;;  %v12875_v37 = vsub.f32 %v12874_v54, %v12866_v2  ;;  %v12877_v32 = vsub.f32 %v12876_v22, %v12866_v2  ;;  %v12878_v30 = vld [vmem:[#allocation53_spill] sm:$0xff]  ;;  %v12890_v22 = vld [vmem:[#allocation59_spill] sm:$0xff] }
 0x270   : > { %4031 = vst [vmem:[%s8815_s29 + $0x100] sm:$0xff] %v3615_v25  ;;  %4032 = vst [vmem:[%s8815_s29 + $0x108] sm:$0xff] %v3616_v3  ;;  %v2682_v60 = vmul.f32 %v8794_v7, %v12867_v27  ;;  %v2683_v21 = vmul.f32 %v8794_v7, %v12869_v15  ;;  %v2684_v14 = vmul.f32 %v8794_v7, %v12871_v56  ;;  %v12884_v27 = vld [vmem:[#allocation56_spill] sm:$0xff] }
 0x271   : > { %4033 = vst [vmem:[%s8815_s29 + $0x110] sm:$0xff] %v3617_v49  ;;  %v2685_v18 = vmul.f32 %v8794_v7, %v12873_v51  ;;  %4034 = vst [vmem:[%s8815_s29 + $0x118] sm:$0xff] %v3618_v58  ;;  %v2686_v6 = vmul.f32 %v8794_v7, %v12875_v37  ;;  %v2687_v45 = vmul.f32 %v8794_v7, %v12877_v32  ;;  %v12880_v49 = vld [vmem:[#allocation54_spill] sm:$0xff] }
 0x272   : > { %4035 = vst [vmem:[%s8815_s29 + $0x120] sm:$0xff] %v3619_v61  ;;  %4036 = vst [vmem:[%s8815_s29 + $0x128] sm:$0xff] %v3620_v34  ;;  %v12879_v25 = vsub.f32 %v12878_v30, %v12866_v2  ;;  %v12881_v58 = vsub.f32 %v12880_v49, %v12866_v2  ;;  %v12882_v34 = vld [vmem:[#allocation55_spill] sm:$0xff]  ;;  %v12885_v23 = vsub.f32 %v12884_v27, %v12866_v2  ;;  %v12888_v51 = vld [vmem:[#allocation58_spill] sm:$0xff] }
 0x273   : > { %4037 = vst.msk [vmem:[%s8815_s29 + $0x130] sm:$0xff] %vm610_vm0, %v3621_v43  ;;  %v12883_v43 = vsub.f32 %v12882_v34, %v12866_v2  ;;  %v12887_v56 = vsub.f32 %v12886_v11, %v12866_v2  ;;  %v12889_v54 = vsub.f32 %v12888_v51, %v12866_v2  ;;  %v12891_v32 = vsub.f32 %v12890_v22, %v12866_v2 }
 0x274   : > { %v2688_v3 = vmul.f32 %v8794_v7, %v12879_v25  ;;  %v2689_v61 = vmul.f32 %v8794_v7, %v12881_v58  ;;  %v2691_v15 = vmul.f32 %v8794_v7, %v12885_v23  ;;  %v3165_v25 = vmul.f32 %v8646_v0, %v2682_v60 }
 0x275   : > { %v2690_v17 = vmul.f32 %v8794_v7, %v12883_v43  ;;  %v2692_v24 = vmul.f32 %v8794_v7, %v12887_v56  ;;  %v2693_v37 = vmul.f32 %v8794_v7, %v12889_v54  ;;  %v2694_v30 = vmul.f32 %v8794_v7, %v12891_v32  ;;  %v12892_v32 = vld [vmem:[#allocation60_spill] sm:$0xff] }
 0x276   : > { %v3166_v49 = vmul.f32 %v8648_v13, %v2683_v21  ;;  %v3167_v58 = vmul.f32 %v8650_v36, %v2684_v14  ;;  %v3168_v34 = vmul.f32 %v12768_v38, %v2685_v18  ;;  %v3169_v43 = vmul.f32 %v12769_v59, %v2686_v6 }
 0x277   : > { %v3170_v27 = vmul.f32 %v12770_v5, %v2687_v45  ;;  %v3171_v23 = vmul.f32 %v12771_v33, %v2688_v3  ;;  %v3172_v11 = vmul.f32 %v12772_v31, %v2689_v61  ;;  %v3173_v2 = vmul.f32 %v12773_v57, %v2690_v17 }
 0x278   : > { %v3174_v7 = vmul.f32 %v12774_v41, %v2691_v15  ;;  %v3175_v60 = vmul.f32 %v12775_v19, %v2692_v24  ;;  %v3176_v21 = vmul.f32 %v12776_v63, %v2693_v37  ;;  %v3177_v14 = vmul.f32 %v8673_v1, %v2694_v30  ;;  %v12893_v30 = vld [vmem:[#allocation45_spill] sm:$0xff] }
 0x279   : > { %v3648_v18 = vadd.f32 %v12777_v39, %v3165_v25  ;;  %v3649_v6 = vadd.f32 %v12778_v62, %v3166_v49  ;;  %v3650_v45 = vadd.f32 %v12779_v40, %v3167_v58  ;;  %v3651_v3 = vadd.f32 %v12780_v20, %v3168_v34  ;;  %v12895_v58 = vld [vmem:[#allocation61_spill] sm:$0xff] }
 0x27a   : > { %v3652_v61 = vadd.f32 %v8683_v16, %v3169_v43  ;;  %v3653_v17 = vadd.f32 %v8685_v52, %v3170_v27  ;;  %v3654_v15 = vadd.f32 %v12781_v12, %v3171_v23  ;;  %v3655_v56 = vadd.f32 %v8689_v42, %v3172_v11  ;;  %v12897_v27 = vld [vmem:[#allocation62_spill] sm:$0xff] }
 0x27b   : > { %v3656_v24 = vadd.f32 %v8691_v48, %v3173_v2  ;;  %v3657_v51 = vadd.f32 %v8693_v55, %v3174_v7  ;;  %4064 = vst [vmem:[%s8815_s29 + $0x208] sm:$0xff] %v3648_v18  ;;  %4065 = vst [vmem:[%s8815_s29 + $0x210] sm:$0xff] %v3649_v6  ;;  %v3658_v54 = vadd.f32 %v8695_v10, %v3175_v60  ;;  %v12899_v2 = vld [vmem:[#allocation63_spill] sm:$0xff]  ;;  %v12903_v6 = vld [vmem:[#allocation65_spill] sm:$0xff] }
 0x27c   : > { %v3659_v37 = vadd.f32 %v12782_v4, %v3176_v21  ;;  %v3660_v22 = vadd.f32 %v12783_v29, %v3177_v14  ;;  %4066 = vst [vmem:[%s8815_s29 + $0x218] sm:$0xff] %v3650_v45  ;;  %4067 = vst [vmem:[%s8815_s29 + $0x220] sm:$0xff] %v3651_v3  ;;  %v12894_v25 = vsub.f32 %v12892_v32, %v12893_v30  ;;  %v12901_v21 = vld [vmem:[#allocation64_spill] sm:$0xff] }
 0x27d   : > { %4068 = vst [vmem:[%s8815_s29 + $0x228] sm:$0xff] %v3652_v61  ;;  %4069 = vst [vmem:[%s8815_s29 + $0x230] sm:$0xff] %v3653_v17  ;;  %v12896_v34 = vsub.f32 %v12895_v58, %v12893_v30  ;;  %v12898_v23 = vsub.f32 %v12897_v27, %v12893_v30  ;;  %v12900_v7 = vsub.f32 %v12899_v2, %v12893_v30  ;;  %v12905_v61 = vld [vmem:[#allocation66_spill] sm:$0xff]  ;;  %v12909_v32 = vld [vmem:[#allocation68_spill] sm:$0xff] }
 0x27e   : > { %v2669_v49 = vmul.f32 %v8802_v46, %v12894_v25  ;;  %4070 = vst [vmem:[%s8815_s29 + $0x238] sm:$0xff] %v3654_v15  ;;  %4071 = vst [vmem:[%s8815_s29 + $0x240] sm:$0xff] %v3655_v56  ;;  %v12902_v14 = vsub.f32 %v12901_v21, %v12893_v30  ;;  %v12904_v45 = vsub.f32 %v12903_v6, %v12893_v30  ;;  %v12907_v56 = vld [vmem:[#allocation67_spill] sm:$0xff] }
 0x27f   : > { %4072 = vst [vmem:[%s8815_s29 + $0x248] sm:$0xff] %v3656_v24  ;;  %4073 = vst [vmem:[%s8815_s29 + $0x250] sm:$0xff] %v3657_v51  ;;  %v2670_v43 = vmul.f32 %v8802_v46, %v12896_v34  ;;  %v2671_v11 = vmul.f32 %v8802_v46, %v12898_v23  ;;  %v2672_v60 = vmul.f32 %v8802_v46, %v12900_v7  ;;  %v12913_v34 = vld [vmem:[#allocation70_spill] sm:$0xff]  ;;  %v12915_v2 = vld [vmem:[#allocation71_spill] sm:$0xff] }
 0x280   : > { %v2673_v18 = vmul.f32 %v8802_v46, %v12902_v14  ;;  %4074 = vst [vmem:[%s8815_s29 + $0x258] sm:$0xff] %v3658_v54  ;;  %4075 = vst [vmem:[%s8815_s29 + $0x260] sm:$0xff] %v3659_v37  ;;  %v2674_v3 = vmul.f32 %v8802_v46, %v12904_v45  ;;  %v12906_v17 = vsub.f32 %v12905_v61, %v12893_v30  ;;  %v12917_v14 = vld [vmem:[#allocation72_spill] sm:$0xff] }
 0x281   : > { %4076 = vst.msk [vmem:[%s8815_s29 + $0x268] sm:$0xff] %vm610_vm0, %v3660_v22  ;;  %v12908_v24 = vsub.f32 %v12907_v56, %v12893_v30  ;;  %v12910_v54 = vsub.f32 %v12909_v32, %v12893_v30  ;;  %v12911_v22 = vld [vmem:[#allocation69_spill] sm:$0xff]  ;;  %v12914_v27 = vsub.f32 %v12913_v34, %v12893_v30  ;;  %v12916_v7 = vsub.f32 %v12915_v2, %v12893_v30 }
 0x282   : > { %v2675_v15 = vmul.f32 %v8802_v46, %v12906_v17  ;;  %v12912_v25 = vsub.f32 %v12911_v22, %v12893_v30  ;;  %v12918_v6 = vsub.f32 %v12917_v14, %v12893_v30  ;;  %v3152_v61 = vmul.f32 %v8646_v0, %v2669_v49  ;;  %v12919_v14 = vld [vmem:[#allocation73_spill] sm:$0xff] }
 0x283   : > { %v2676_v51 = vmul.f32 %v8802_v46, %v12908_v24  ;;  %v2677_v37 = vmul.f32 %v8802_v46, %v12910_v54  ;;  %v2679_v23 = vmul.f32 %v8802_v46, %v12914_v27  ;;  %v2680_v21 = vmul.f32 %v8802_v46, %v12916_v7 }
 0x284   : > { %v2678_v58 = vmul.f32 %v8802_v46, %v12912_v25  ;;  %v2681_v45 = vmul.f32 %v8802_v46, %v12918_v6  ;;  %v3153_v17 = vmul.f32 %v8648_v13, %v2670_v43  ;;  %v3154_v56 = vmul.f32 %v8650_v36, %v2671_v11  ;;  %v12920_v6 = vld [vmem:[#allocation46_spill] sm:$0xff] }
 0x285   : > { %v3155_v24 = vmul.f32 %v12768_v38, %v2672_v60  ;;  %v3156_v32 = vmul.f32 %v12769_v59, %v2673_v18  ;;  %v3157_v54 = vmul.f32 %v12770_v5, %v2674_v3  ;;  %v3158_v22 = vmul.f32 %v12771_v33, %v2675_v15 }
 0x286   : > { %v3159_v25 = vmul.f32 %v12772_v31, %v2676_v51  ;;  %v3160_v30 = vmul.f32 %v12773_v57, %v2677_v37  ;;  %v3161_v46 = vmul.f32 %v12774_v41, %v2678_v58  ;;  %v3162_v49 = vmul.f32 %v12775_v19, %v2679_v23 }
 0x287   : > { %v3163_v43 = vmul.f32 %v12776_v63, %v2680_v21  ;;  %v3164_v11 = vmul.f32 %v8673_v1, %v2681_v45  ;;  %v3635_v60 = vadd.f32 %v12777_v39, %v3152_v61  ;;  %v3636_v18 = vadd.f32 %v12778_v62, %v3153_v17  ;;  %v12922_v17 = vld [vmem:[#allocation74_spill] sm:$0xff] }
 0x288   : > { %v3637_v3 = vadd.f32 %v12779_v40, %v3154_v56  ;;  %v3638_v15 = vadd.f32 %v12780_v20, %v3155_v24  ;;  %v3639_v51 = vadd.f32 %v8683_v16, %v3156_v32  ;;  %v3640_v37 = vadd.f32 %v8685_v52, %v3157_v54  ;;  %v12924_v32 = vld [vmem:[#allocation75_spill] sm:$0xff] }
 0x289   : > { %v3641_v58 = vadd.f32 %v12781_v12, %v3158_v22  ;;  %v3642_v34 = vadd.f32 %v8689_v42, %v3159_v25  ;;  %v3643_v27 = vadd.f32 %v8691_v48, %v3160_v30  ;;  %v3644_v23 = vadd.f32 %v8693_v55, %v3161_v46  ;;  %4051 = vst [vmem:[%s8815_s29 + $0x1a0] sm:$0xff] %v3635_v60  ;;  %v12926_v25 = vld [vmem:[#allocation77_spill] sm:$0xff]  ;;  %v12930_v60 = vld [vmem:[#allocation79_spill] sm:$0xff] }
 0x28a   : > { %v3645_v2 = vadd.f32 %v8695_v10, %v3162_v49  ;;  %4052 = vst [vmem:[%s8815_s29 + $0x1a8] sm:$0xff] %v3636_v18  ;;  %4053 = vst [vmem:[%s8815_s29 + $0x1b0] sm:$0xff] %v3637_v3  ;;  %v3646_v7 = vadd.f32 %v12782_v4, %v3163_v43  ;;  %v3647_v21 = vadd.f32 %v12783_v29, %v3164_v11  ;;  %v12928_v49 = vld [vmem:[#allocation78_spill] sm:$0xff] }
 0x28b   : > { %4054 = vst [vmem:[%s8815_s29 + $0x1b8] sm:$0xff] %v3638_v15  ;;  %4055 = vst [vmem:[%s8815_s29 + $0x1c0] sm:$0xff] %v3639_v51  ;;  %v12921_v45 = vsub.f32 %v12919_v14, %v12920_v6  ;;  %v12923_v56 = vsub.f32 %v12922_v17, %v12920_v6  ;;  %v12925_v54 = vsub.f32 %v12924_v32, %v12920_v6  ;;  %v12932_v15 = vld [vmem:[#allocation80_spill] sm:$0xff] }
 0x28c   : > { %4056 = vst [vmem:[%s8815_s29 + $0x1c8] sm:$0xff] %v3640_v37  ;;  %4057 = vst [vmem:[%s8815_s29 + $0x1d0] sm:$0xff] %v3641_v58  ;;  %v12927_v30 = vsub.f32 %v12926_v25, %v12920_v6  ;;  %v12929_v43 = vsub.f32 %v12928_v49, %v12920_v6  ;;  %v12931_v18 = vsub.f32 %v12930_v60, %v12920_v6  ;;  %v12934_v58 = vld [vmem:[#allocation81_spill] sm:$0xff]  ;;  %v12940_v17 = vld [vmem:[#allocation84_spill] sm:$0xff] }
 0x28d   : > { %v2708_v61 = vmul.f32 %v8808_v47, %v12921_v45  ;;  %v2709_v24 = vmul.f32 %v8808_v47, %v12923_v56  ;;  %4058 = vst [vmem:[%s8815_s29 + $0x1d8] sm:$0xff] %v3642_v34  ;;  %4059 = vst [vmem:[%s8815_s29 + $0x1e0] sm:$0xff] %v3643_v27  ;;  %v2710_v22 = vmul.f32 %v8808_v47, %v12925_v54  ;;  %v12938_v45 = vld [vmem:[#allocation83_spill] sm:$0xff]  ;;  %v12942_v54 = vld [vmem:[#allocation85_spill] sm:$0xff] }
 0x28e   : > { %4060 = vst [vmem:[%s8815_s29 + $0x1e8] sm:$0xff] %v3644_v23  ;;  %4061 = vst [vmem:[%s8815_s29 + $0x1f0] sm:$0xff] %v3645_v2  ;;  %v2711_v46 = vmul.f32 %v8808_v47, %v12927_v30  ;;  %v2712_v11 = vmul.f32 %v8808_v47, %v12929_v43  ;;  %v2713_v3 = vmul.f32 %v8808_v47, %v12931_v18  ;;  %v12936_v23 = vld [vmem:[#allocation82_spill] sm:$0xff] }
 0x28f   : > { %4062 = vst [vmem:[%s8815_s29 + $0x1f8] sm:$0xff] %v3646_v7  ;;  %4063 = vst.msk [vmem:[%s8815_s29 + $0x200] sm:$0xff] %vm610_vm0, %v3647_v21  ;;  %v12933_v51 = vsub.f32 %v12932_v15, %v12920_v6  ;;  %v12935_v34 = vsub.f32 %v12934_v58, %v12920_v6  ;;  %v12937_v2 = vsub.f32 %v12936_v23, %v12920_v6  ;;  %v12944_v49 = vld [vmem:[#allocation86_spill] sm:$0xff] }
 0x290   : > { %v12939_v7 = vsub.f32 %v12938_v45, %v12920_v6  ;;  %v12941_v56 = vsub.f32 %v12940_v17, %v12920_v6  ;;  %v12943_v25 = vsub.f32 %v12942_v54, %v12920_v6  ;;  %v12945_v43 = vsub.f32 %v12944_v49, %v12920_v6  ;;  %v12947_v49 = vld [vmem:[#allocation76_spill] sm:$0xff] }
 0x291   : > { %v2714_v37 = vmul.f32 %v8808_v47, %v12933_v51  ;;  %v2715_v27 = vmul.f32 %v8808_v47, %v12935_v34  ;;  %v2716_v14 = vmul.f32 %v8808_v47, %v12937_v2  ;;  %v3191_v18 = vmul.f32 %v8646_v0, %v2708_v61 }
 0x292   : > { %v2717_v21 = vmul.f32 %v8808_v47, %v12939_v7  ;;  %v2718_v32 = vmul.f32 %v8808_v47, %v12941_v56  ;;  %v2719_v30 = vmul.f32 %v8808_v47, %v12943_v25  ;;  %v2720_v60 = vmul.f32 %v8808_v47, %v12945_v43 }
 0x293   : > { %v3192_v15 = vmul.f32 %v8648_v13, %v2709_v24  ;;  %v3193_v51 = vmul.f32 %v8650_v36, %v2710_v22  ;;  %v3194_v58 = vmul.f32 %v12768_v38, %v2711_v46  ;;  %v3195_v34 = vmul.f32 %v12769_v59, %v2712_v11 }
 0x294   : > { %v3196_v23 = vmul.f32 %v12770_v5, %v2713_v3  ;;  %v3197_v2 = vmul.f32 %v12771_v33, %v2714_v37  ;;  %v3198_v45 = vmul.f32 %v12772_v31, %v2715_v27  ;;  %v3199_v6 = vmul.f32 %v12773_v57, %v2716_v14 }
 0x295   : > { %v3200_v47 = vmul.f32 %v12774_v41, %v2717_v21  ;;  %v3201_v61 = vmul.f32 %v12775_v19, %v2718_v32  ;;  %v3202_v24 = vmul.f32 %v12776_v63, %v2719_v30  ;;  %v3203_v22 = vmul.f32 %v8673_v1, %v2720_v60  ;;  %v12946_v30 = vld [vmem:[#allocation87_spill] sm:$0xff] }
 0x296   : > { %v3674_v46 = vadd.f32 %v12777_v39, %v3191_v18  ;;  %v3675_v11 = vadd.f32 %v12778_v62, %v3192_v15  ;;  %v3676_v3 = vadd.f32 %v12779_v40, %v3193_v51  ;;  %v3677_v37 = vadd.f32 %v12780_v20, %v3194_v58  ;;  %v12949_v18 = vld [vmem:[#allocation88_spill] sm:$0xff]  ;;  %v12951_v58 = vld [vmem:[#allocation90_spill] sm:$0xff] }
 0x297   : > { %v3678_v27 = vadd.f32 %v8683_v16, %v3195_v34  ;;  %v3679_v14 = vadd.f32 %v8685_v52, %v3196_v23  ;;  %v3680_v7 = vadd.f32 %v12781_v12, %v3197_v2  ;;  %v3681_v21 = vadd.f32 %v8689_v42, %v3198_v45  ;;  %v12953_v2 = vld [vmem:[#allocation91_spill] sm:$0xff] }
 0x298   : > { %v3682_v17 = vadd.f32 %v8691_v48, %v3199_v6  ;;  %v3683_v56 = vadd.f32 %v8693_v55, %v3200_v47  ;;  %v3684_v32 = vadd.f32 %v8695_v10, %v3201_v61  ;;  %v3685_v54 = vadd.f32 %v12782_v4, %v3202_v24  ;;  %4090 = vst [vmem:[%s8815_s29 + $0x2d8] sm:$0xff] %v3674_v46  ;;  %v12955_v47 = vld [vmem:[#allocation92_spill] sm:$0xff] }
 0x299   : > { %4091 = vst [vmem:[%s8815_s29 + $0x2e0] sm:$0xff] %v3675_v11  ;;  %4092 = vst [vmem:[%s8815_s29 + $0x2e8] sm:$0xff] %v3676_v3  ;;  %v3686_v25 = vadd.f32 %v12783_v29, %v3203_v22  ;;  %v12948_v43 = vsub.f32 %v12946_v30, %v12947_v49  ;;  %v12950_v15 = vsub.f32 %v12949_v18, %v12947_v49  ;;  %v12957_v22 = vld [vmem:[#allocation93_spill] sm:$0xff]  ;;  %v12959_v3 = vld [vmem:[#allocation94_spill] sm:$0xff] }
 0x29a   : > { %4093 = vst [vmem:[%s8815_s29 + $0x2f0] sm:$0xff] %v3677_v37  ;;  %4094 = vst [vmem:[%s8815_s29 + $0x2f8] sm:$0xff] %v3678_v27  ;;  %v12952_v34 = vsub.f32 %v12951_v58, %v12947_v49  ;;  %v12954_v45 = vsub.f32 %v12953_v2, %v12947_v49  ;;  %v12956_v61 = vsub.f32 %v12955_v47, %v12947_v49  ;;  %v12967_v18 = vld [vmem:[#allocation98_spill] sm:$0xff]  ;;  %v12969_v58 = vld [vmem:[#allocation99_spill] sm:$0xff] }
 0x29b   : > { %4095 = vst [vmem:[%s8815_s29 + $0x300] sm:$0xff] %v3679_v14  ;;  %4096 = vst [vmem:[%s8815_s29 + $0x308] sm:$0xff] %v3680_v7  ;;  %v2695_v60 = vmul.f32 %v8821_v53, %v12948_v43  ;;  %v2696_v51 = vmul.f32 %v8821_v53, %v12950_v15  ;;  %v12958_v46 = vsub.f32 %v12957_v22, %v12947_v49  ;;  %v12961_v14 = vld [vmem:[#allocation95_spill] sm:$0xff] }
 0x29c   : > { %4097 = vst [vmem:[%s8815_s29 + $0x310] sm:$0xff] %v3681_v21  ;;  %v2697_v23 = vmul.f32 %v8821_v53, %v12952_v34  ;;  %4098 = vst [vmem:[%s8815_s29 + $0x318] sm:$0xff] %v3682_v17  ;;  %v2698_v6 = vmul.f32 %v8821_v53, %v12954_v45  ;;  %v2699_v24 = vmul.f32 %v8821_v53, %v12956_v61  ;;  %v12963_v17 = vld [vmem:[#allocation96_spill] sm:$0xff] }
 0x29d   : > { %4099 = vst [vmem:[%s8815_s29 + $0x320] sm:$0xff] %v3683_v56  ;;  %4100 = vst [vmem:[%s8815_s29 + $0x328] sm:$0xff] %v3684_v32  ;;  %v2700_v11 = vmul.f32 %v8821_v53, %v12958_v46  ;;  %v12960_v37 = vsub.f32 %v12959_v3, %v12947_v49  ;;  %v12962_v7 = vsub.f32 %v12961_v14, %v12947_v49  ;;  %v12971_v45 = vld [vmem:[#allocation100_spill] sm:$0xff] }
 0x29e   : > { %4101 = vst [vmem:[%s8815_s29 + $0x330] sm:$0xff] %v3685_v54  ;;  %4102 = vst.msk [vmem:[%s8815_s29 + $0x338] sm:$0xff] %vm610_vm0, %v3686_v25  ;;  %v12964_v56 = vsub.f32 %v12963_v17, %v12947_v49  ;;  %v12965_v54 = vld [vmem:[#allocation97_spill] sm:$0xff]  ;;  %v12968_v15 = vsub.f32 %v12967_v18, %v12947_v49  ;;  %v12970_v34 = vsub.f32 %v12969_v58, %v12947_v49 }
 0x29f   : > { %v2701_v27 = vmul.f32 %v8821_v53, %v12960_v37  ;;  %v2702_v21 = vmul.f32 %v8821_v53, %v12962_v7  ;;  %v12966_v30 = vsub.f32 %v12965_v54, %v12947_v49  ;;  %v12972_v47 = vsub.f32 %v12971_v45, %v12947_v49 }
 0x2a0   : > { %v2703_v32 = vmul.f32 %v8821_v53, %v12964_v56  ;;  %v2705_v25 = vmul.f32 %v8821_v53, %v12968_v15  ;;  %v2706_v2 = vmul.f32 %v8821_v53, %v12970_v34  ;;  %v3178_v22 = vmul.f32 %v8646_v0, %v2695_v60  ;;  %v12973_v34 = vld [vmem:[#allocation101_spill] sm:$0xff] }
 0x2a1   : > { %v2704_v43 = vmul.f32 %v8821_v53, %v12966_v30  ;;  %v2707_v61 = vmul.f32 %v8821_v53, %v12972_v47  ;;  %v3179_v46 = vmul.f32 %v8648_v13, %v2696_v51  ;;  %v3180_v3 = vmul.f32 %v8650_v36, %v2697_v23  ;;  %v12975_v47 = vld [vmem:[#allocation102_spill] sm:$0xff] }
 0x2a2   : > { %v3181_v37 = vmul.f32 %v12768_v38, %v2698_v6  ;;  %v3182_v14 = vmul.f32 %v12769_v59, %v2699_v24  ;;  %v3183_v7 = vmul.f32 %v12770_v5, %v2700_v11  ;;  %v3184_v17 = vmul.f32 %v12771_v33, %v2701_v27 }
 0x2a3   : > { %v3185_v56 = vmul.f32 %v12772_v31, %v2702_v21  ;;  %v3186_v49 = vmul.f32 %v12773_v57, %v2703_v32  ;;  %v3187_v53 = vmul.f32 %v12774_v41, %v2704_v43  ;;  %v3188_v60 = vmul.f32 %v12775_v19, %v2705_v25 }
 0x2a4   : > { %v3189_v51 = vmul.f32 %v12776_v63, %v2706_v2  ;;  %v3190_v23 = vmul.f32 %v8673_v1, %v2707_v61  ;;  %v3661_v6 = vadd.f32 %v12777_v39, %v3178_v22  ;;  %v3662_v24 = vadd.f32 %v12778_v62, %v3179_v46  ;;  %v12977_v46 = vld [vmem:[#allocation103_spill] sm:$0xff] }
 0x2a5   : > { %v3663_v11 = vadd.f32 %v12779_v40, %v3180_v3  ;;  %v3664_v27 = vadd.f32 %v12780_v20, %v3181_v37  ;;  %v3665_v21 = vadd.f32 %v8683_v16, %v3182_v14  ;;  %v3666_v32 = vadd.f32 %v8685_v52, %v3183_v7  ;;  %v12979_v14 = vld [vmem:[#allocation104_spill] sm:$0xff] }
 0x2a6   : > { %v3667_v54 = vadd.f32 %v12781_v12, %v3184_v17  ;;  %v3668_v30 = vadd.f32 %v8689_v42, %v3185_v56  ;;  %v3669_v43 = vadd.f32 %v8691_v48, %v3186_v49  ;;  %4077 = vst [vmem:[%s8815_s29 + $0x270] sm:$0xff] %v3661_v6  ;;  %v3670_v18 = vadd.f32 %v8693_v55, %v3187_v53  ;;  %v12981_v56 = vld [vmem:[#allocation105_spill] sm:$0xff]  ;;  %v12985_v6 = vld [vmem:[#allocation107_spill] sm:$0xff] }
 0x2a7   : > { %v3671_v15 = vadd.f32 %v8695_v10, %v3188_v60  ;;  %v3672_v25 = vadd.f32 %v12782_v4, %v3189_v51  ;;  %v3673_v58 = vadd.f32 %v12783_v29, %v3190_v23  ;;  %4078 = vst [vmem:[%s8815_s29 + $0x278] sm:$0xff] %v3662_v24  ;;  %4079 = vst [vmem:[%s8815_s29 + $0x280] sm:$0xff] %v3663_v11  ;;  %v12983_v60 = vld [vmem:[#allocation106_spill] sm:$0xff] }
 0x2a8   : > { %4080 = vst [vmem:[%s8815_s29 + $0x288] sm:$0xff] %v3664_v27  ;;  %4081 = vst [vmem:[%s8815_s29 + $0x290] sm:$0xff] %v3665_v21  ;;  %v12974_v2 = vsub.f32 %v12973_v34, %v7027_v28  ;;  %v12976_v61 = vsub.f32 %v12975_v47, %v7027_v28  ;;  %v12978_v3 = vsub.f32 %v12977_v46, %v7027_v28  ;;  %v12987_v27 = vld [vmem:[#allocation108_spill] sm:$0xff] }
 0x2a9   : > { %4082 = vst [vmem:[%s8815_s29 + $0x298] sm:$0xff] %v3666_v32  ;;  %4083 = vst [vmem:[%s8815_s29 + $0x2a0] sm:$0xff] %v3667_v54  ;;  %v12980_v7 = vsub.f32 %v12979_v14, %v7027_v28  ;;  %v12982_v49 = vsub.f32 %v12981_v56, %v7027_v28  ;;  %v12984_v51 = vsub.f32 %v12983_v60, %v7027_v28  ;;  %v12989_v54 = vld [vmem:[#allocation109_spill] sm:$0xff]  ;;  %v12995_v47 = vld [vmem:[#allocation112_spill] sm:$0xff] }
 0x2aa   : > { %4084 = vst [vmem:[%s8815_s29 + $0x2a8] sm:$0xff] %v3668_v30  ;;  %4085 = vst [vmem:[%s8815_s29 + $0x2b0] sm:$0xff] %v3669_v43  ;;  %v2734_v45 = vmul.f32 %v8831_v8, %v12974_v2  ;;  %v2735_v22 = vmul.f32 %v8831_v8, %v12976_v61  ;;  %v2736_v37 = vmul.f32 %v8831_v8, %v12978_v3  ;;  %v12997_v3 = vld [vmem:[#allocation113_spill] sm:$0xff] }
 0x2ab   : > { %v2737_v17 = vmul.f32 %v8831_v8, %v12980_v7  ;;  %4086 = vst [vmem:[%s8815_s29 + $0x2b8] sm:$0xff] %v3670_v18  ;;  %4087 = vst [vmem:[%s8815_s29 + $0x2c0] sm:$0xff] %v3671_v15  ;;  %v2738_v53 = vmul.f32 %v8831_v8, %v12982_v49  ;;  %v2739_v23 = vmul.f32 %v8831_v8, %v12984_v51  ;;  %v12991_v18 = vld [vmem:[#allocation110_spill] sm:$0xff] }
 0x2ac   : > { %4088 = vst [vmem:[%s8815_s29 + $0x2c8] sm:$0xff] %v3672_v25  ;;  %4089 = vst.msk [vmem:[%s8815_s29 + $0x2d0] sm:$0xff] %vm610_vm0, %v3673_v58  ;;  %v12986_v24 = vsub.f32 %v12985_v6, %v7027_v28  ;;  %v12988_v21 = vsub.f32 %v12987_v27, %v7027_v28  ;;  %v12990_v30 = vsub.f32 %v12989_v54, %v7027_v28  ;;  %v12993_v58 = vld [vmem:[#allocation111_spill] sm:$0xff] }
 0x2ad   : > { %v12992_v15 = vsub.f32 %v12991_v18, %v7027_v28  ;;  %v12994_v34 = vsub.f32 %v12993_v58, %v7027_v28  ;;  %v12996_v61 = vsub.f32 %v12995_v47, %v7027_v28  ;;  %v12998_v14 = vsub.f32 %v12997_v3, %v7027_v28  ;;  %v9579_v58 = vpop.xlane.xlu1 %1797 }
 0x2ae   : > { %v2740_v11 = vmul.f32 %v8831_v8, %v12986_v24  ;;  %v2741_v32 = vmul.f32 %v8831_v8, %v12988_v21  ;;  %v2742_v43 = vmul.f32 %v8831_v8, %v12990_v30  ;;  %v3217_v56 = vmul.f32 %v8646_v0, %v2734_v45  ;;  %v9571_v30 = vpop.xlane.xlu0 %1752 }
 0x2af   : > { %v2743_v25 = vmul.f32 %v8831_v8, %v12992_v15  ;;  %v2744_v2 = vmul.f32 %v8831_v8, %v12994_v34  ;;  %v2745_v46 = vmul.f32 %v8831_v8, %v12996_v61  ;;  %v2746_v7 = vmul.f32 %v8831_v8, %v12998_v14  ;;  %v12999_v61 = vld [vmem:[#allocation114_spill] sm:$0xff]  ;;  %v13001_v14 = vld [vmem:[#allocation115_spill] sm:$0xff] }
 0x2b0   : > { %v3218_v49 = vmul.f32 %v8648_v13, %v2735_v22  ;;  %v3219_v60 = vmul.f32 %v8650_v36, %v2736_v37  ;;  %v3220_v51 = vmul.f32 %v12768_v38, %v2737_v17  ;;  %v3221_v6 = vmul.f32 %v12769_v59, %v2738_v53 }
 0x2b1   : > { %v3222_v24 = vmul.f32 %v12770_v5, %v2739_v23  ;;  %v3223_v27 = vmul.f32 %v12771_v33, %v2740_v11  ;;  %v3224_v21 = vmul.f32 %v12772_v31, %v2741_v32  ;;  %v3225_v28 = vmul.f32 %v12773_v57, %v2742_v43 }
 0x2b2   : > { %v3226_v8 = vmul.f32 %v12774_v41, %v2743_v25  ;;  %v3227_v45 = vmul.f32 %v12775_v19, %v2744_v2  ;;  %v3228_v22 = vmul.f32 %v12776_v63, %v2745_v46  ;;  %v3229_v37 = vmul.f32 %v8673_v1, %v2746_v7 }
 0x2b3   : > { %v3700_v17 = vadd.f32 %v12777_v39, %v3217_v56  ;;  %v3701_v53 = vadd.f32 %v12778_v62, %v3218_v49  ;;  %v3702_v23 = vadd.f32 %v12779_v40, %v3219_v60  ;;  %v3703_v11 = vadd.f32 %v12780_v20, %v3220_v51  ;;  %v13003_v49 = vld [vmem:[#allocation116_spill] sm:$0xff] }
 0x2b4   : > { %v3704_v32 = vadd.f32 %v8683_v16, %v3221_v6  ;;  %v3705_v54 = vadd.f32 %v8685_v52, %v3222_v24  ;;  %v3706_v43 = vadd.f32 %v12781_v12, %v3223_v27  ;;  %v3707_v18 = vadd.f32 %v8689_v42, %v3224_v21  ;;  %v13005_v6 = vld [vmem:[#allocation117_spill] sm:$0xff]  ;;  %v13007_v21 = vld [vmem:[#allocation118_spill] sm:$0xff] }
 0x2b5   : > { %v3708_v15 = vadd.f32 %v8691_v48, %v3225_v28  ;;  %v3709_v25 = vadd.f32 %v8693_v55, %v3226_v8  ;;  %4116 = vst [vmem:[%s8815_s29 + $0x3a8] sm:$0xff] %v3700_v17  ;;  %4117 = vst [vmem:[%s8815_s29 + $0x3b0] sm:$0xff] %v3701_v53  ;;  %v3710_v34 = vadd.f32 %v8695_v10, %v3227_v45  ;;  %v13009_v45 = vld [vmem:[#allocation119_spill] sm:$0xff]  ;;  %v13011_v17 = vld [vmem:[#allocation120_spill] sm:$0xff]  ;;  %v2026_v9 = vmul.f32 0.000625, %v9579_v58 }
 0x2b6   : > { %v3711_v2 = vadd.f32 %v12782_v4, %v3228_v22  ;;  %v3712_v47 = vadd.f32 %v12783_v29, %v3229_v37  ;;  %4118 = vst [vmem:[%s8815_s29 + $0x3b8] sm:$0xff] %v3702_v23  ;;  %4119 = vst [vmem:[%s8815_s29 + $0x3c0] sm:$0xff] %v3703_v11  ;;  %v13000_v46 = vsub.f32 %v12999_v61, %v7029_v35  ;;  %v13013_v11 = vld [vmem:[#allocation121_spill] sm:$0xff] }
 0x2b7   : > { %4120 = vst [vmem:[%s8815_s29 + $0x3c8] sm:$0xff] %v3704_v32  ;;  %4121 = vst [vmem:[%s8815_s29 + $0x3d0] sm:$0xff] %v3705_v54  ;;  %v13002_v7 = vsub.f32 %v13001_v14, %v7029_v35  ;;  %v13004_v60 = vsub.f32 %v13003_v49, %v7029_v35  ;;  %v13006_v24 = vsub.f32 %v13005_v6, %v7029_v35  ;;  %v13021_v14 = vld [vmem:[#allocation125_spill] sm:$0xff] }
 0x2b8   : > { %v2721_v3 = vmul.f32 %v8839_v26, %v13000_v46  ;;  %4122 = vst [vmem:[%s8815_s29 + $0x3d8] sm:$0xff] %v3706_v43  ;;  %4123 = vst [vmem:[%s8815_s29 + $0x3e0] sm:$0xff] %v3707_v18  ;;  %v13008_v28 = vsub.f32 %v13007_v21, %v7029_v35  ;;  %v13010_v22 = vsub.f32 %v13009_v45, %v7029_v35  ;;  %v13015_v43 = vld [vmem:[#allocation122_spill] sm:$0xff] }
 0x2b9   : > { %4124 = vst [vmem:[%s8815_s29 + $0x3e8] sm:$0xff] %v3708_v15  ;;  %4125 = vst [vmem:[%s8815_s29 + $0x3f0] sm:$0xff] %v3709_v25  ;;  %v2722_v56 = vmul.f32 %v8839_v26, %v13002_v7  ;;  %v2723_v51 = vmul.f32 %v8839_v26, %v13004_v60  ;;  %v2724_v27 = vmul.f32 %v8839_v26, %v13006_v24  ;;  %v13017_v25 = vld [vmem:[#allocation123_spill] sm:$0xff]  ;;  %v13023_v60 = vld [vmem:[#allocation126_spill] sm:$0xff] }
 0x2ba   : > { %v2725_v8 = vmul.f32 %v8839_v26, %v13008_v28  ;;  %4126 = vst [vmem:[%s8815_s29 + $0x3f8] sm:$0xff] %v3710_v34  ;;  %4127 = vst [vmem:[%s8815_s29 + $0x400] sm:$0xff] %v3711_v2  ;;  %v2726_v37 = vmul.f32 %v8839_v26, %v13010_v22  ;;  %v13012_v53 = vsub.f32 %v13011_v17, %v7029_v35  ;;  %v1783_v17 = vpop.xlane.xlu0 %1782 }
 0x2bb   : > { %4128 = vst.msk [vmem:[%s8815_s29 + $0x408] sm:$0xff] %vm610_vm0, %v3712_v47  ;;  %v13014_v32 = vsub.f32 %v13013_v11, %v7029_v35  ;;  %v13016_v18 = vsub.f32 %v13015_v43, %v7029_v35  ;;  %v13018_v34 = vsub.f32 %v13017_v25, %v7029_v35  ;;  %v13019_v47 = vld [vmem:[#allocation124_spill] sm:$0xff]  ;;  %v13022_v7 = vsub.f32 %v13021_v14, %v7029_v35 }
 0x2bc   : > { %v2727_v23 = vmul.f32 %v8839_v26, %v13012_v53  ;;  %v13020_v61 = vsub.f32 %v13019_v47, %v7029_v35  ;;  %v13024_v6 = vsub.f32 %v13023_v60, %v7029_v35  ;;  %v3204_v21 = vmul.f32 %v8646_v0, %v2721_v3  ;;  %v1828_v35 = vpop.xlane.xlu1 %1827  ;;  %v13025_v60 = vld [vmem:[#allocation420_spill] sm:$0xff] }
 0x2bd   : > { %v2728_v54 = vmul.f32 %v8839_v26, %v13014_v32  ;;  %v2729_v15 = vmul.f32 %v8839_v26, %v13016_v18  ;;  %v2730_v2 = vmul.f32 %v8839_v26, %v13018_v34  ;;  %v2732_v49 = vmul.f32 %v8839_v26, %v13022_v7 }
 0x2be   : > { %v2731_v46 = vmul.f32 %v8839_v26, %v13020_v61  ;;  %v2733_v24 = vmul.f32 %v8839_v26, %v13024_v6  ;;  %v3205_v28 = vmul.f32 %v8648_v13, %v2722_v56  ;;  %v3206_v45 = vmul.f32 %v8650_v36, %v2723_v51  ;;  %v13026_v6 = vld [vmem:[#allocation422_spill] sm:$0xff] }
 0x2bf   : > { %v3207_v22 = vmul.f32 %v12768_v38, %v2724_v27  ;;  %v3208_v53 = vmul.f32 %v12769_v59, %v2725_v8  ;;  %v3209_v11 = vmul.f32 %v12770_v5, %v2726_v37  ;;  %v3210_v32 = vmul.f32 %v12771_v33, %v2727_v23 }
 0x2c0   : > { %v3211_v43 = vmul.f32 %v12772_v31, %v2728_v54  ;;  %v3212_v26 = vmul.f32 %v12773_v57, %v2729_v15  ;;  %v3213_v3 = vmul.f32 %v12774_v41, %v2730_v2  ;;  %v3214_v56 = vmul.f32 %v12775_v19, %v2731_v46 }
 0x2c1   : > { %v3215_v51 = vmul.f32 %v12776_v63, %v2732_v49  ;;  %v3216_v27 = vmul.f32 %v8673_v1, %v2733_v24  ;;  %v3687_v8 = vadd.f32 %v12777_v39, %v3204_v21  ;;  %v3688_v37 = vadd.f32 %v12778_v62, %v3205_v28  ;;  %v1813_v49 = vpop.xlane.xlu0 %1812  ;;  %v13027_v21 = vld [vmem:[#allocation421_spill] sm:$0xff]  ;;  %v13028_v28 = vld [vmem:[#allocation424_spill] sm:$0xff] }
 0x2c2   : > { %v3689_v23 = vadd.f32 %v12779_v40, %v3206_v45  ;;  %v3690_v54 = vadd.f32 %v12780_v20, %v3207_v22  ;;  %v3691_v18 = vadd.f32 %v8683_v16, %v3208_v53  ;;  %v3692_v15 = vadd.f32 %v8685_v52, %v3209_v11  ;;  %v1858_v53 = vpop.xlane.xlu1 %1857 }
 0x2c3   : > { %v3693_v25 = vadd.f32 %v12781_v12, %v3210_v32  ;;  %v3694_v34 = vadd.f32 %v8689_v42, %v3211_v43  ;;  %v3695_v2 = vadd.f32 %v8691_v48, %v3212_v26  ;;  %v3696_v47 = vadd.f32 %v8693_v55, %v3213_v3  ;;  %4103 = vst [vmem:[%s8815_s29 + $0x340] sm:$0xff] %v3687_v8  ;;  %v13030_v26 = vld [vmem:[#allocation423_spill] sm:$0xff] }
 0x2c4   : > { %v3697_v61 = vadd.f32 %v8695_v10, %v3214_v56  ;;  %4104 = vst [vmem:[%s8815_s29 + $0x348] sm:$0xff] %v3688_v37  ;;  %4105 = vst [vmem:[%s8815_s29 + $0x350] sm:$0xff] %v3689_v23  ;;  %v3698_v46 = vadd.f32 %v12782_v4, %v3215_v51  ;;  %v3699_v14 = vadd.f32 %v12783_v29, %v3216_v27  ;;  %v2150_v7 = vadd.f32 1e-05, %v8736_v44  ;;  %v13029_v44 = vld [vmem:[#allocation215_spill] sm:$0xff]  ;;  %v13031_v56 = vld [vmem:[#allocation225_spill] sm:$0xff] }
 0x2c5   : > { %4106 = vst [vmem:[%s8815_s29 + $0x358] sm:$0xff] %v3690_v54  ;;  %4107 = vst [vmem:[%s8815_s29 + $0x360] sm:$0xff] %v3691_v18  ;;  %v2085_v24 = vsub.f32 %v13026_v6, %v13025_v60  ;;  %v2088_v45 = vsub.f32 %v13028_v28, %v13027_v21  ;;  %v2023_v22 = vmul.f32 0.000625, %v9571_v30  ;;  %v2057_v11 = vmul.f32 %v13029_v44, %v13029_v44  ;;  %v13032_v27 = vld [vmem:[#allocation425_spill] sm:$0xff]  ;;  %v13033_v23 = vld [vmem:[#allocation226_spill] sm:$0xff] }
 0x2c6   : > { %4108 = vst [vmem:[%s8815_s29 + $0x368] sm:$0xff] %v3692_v15  ;;  %4109 = vst [vmem:[%s8815_s29 + $0x370] sm:$0xff] %v3693_v25  ;;  %4517 = vrsqrt.f32 %v2150_v7  ;;  %v2025_v32 = vmul.f32 0.000625, %v1783_v17  ;;  %v2060_v51 = vmul.f32 %v13031_v56, %v13031_v56  ;;  %v2090_v30 = vsub.f32 %v2026_v9, %v13032_v27  ;;  %v13034_v25 = vld [vmem:[#allocation227_spill] sm:$0xff]  ;;  %v13035_v7 = vld [vmem:[#allocation230_spill] sm:$0xff]  ;;  %v1888_v6 = vpop.xlane.xlu1 %1887 }
 0x2c7   : > { %4110 = vst [vmem:[%s8815_s29 + $0x378] sm:$0xff] %v3694_v34  ;;  %4111 = vst [vmem:[%s8815_s29 + $0x380] sm:$0xff] %v3695_v2  ;;  %v2117_v50 = vmax.f32 %v2085_v24, 0.0  ;;  %v2120_v43 = vmax.f32 %v2088_v45, 0.0  ;;  %v2087_v3 = vsub.f32 %v2023_v22, %v13030_v26  ;;  %v2028_v37 = vmul.f32 0.000625, %v1828_v35 }
 0x2c8   : > { %4112 = vst [vmem:[%s8815_s29 + $0x388] sm:$0xff] %v3696_v47  ;;  %4113 = vst [vmem:[%s8815_s29 + $0x390] sm:$0xff] %v3697_v61  ;;  %v2089_v8 = vsub.f32 %v2025_v32, %v2057_v11  ;;  %v9705_v54 = vmul.f32 %v13033_v23, %v13033_v23  ;;  %v9709_v17 = vmul.f32 %v13034_v25, %v13034_v25  ;;  %v2122_v34 = vmax.f32 %v2090_v30, 0.0  ;;  %v13036_v11 = vld [vmem:[#allocation286_spill] sm:$0xff]  ;;  %v13039_v26 = vld [vmem:[#allocation127_spill] sm:$0xff] }
 0x2c9   : > { %4114 = vst [vmem:[%s8815_s29 + $0x398] sm:$0xff] %v3698_v46  ;;  %4115 = vst.msk [vmem:[%s8815_s29 + $0x3a0] sm:$0xff] %vm610_vm0, %v3699_v14  ;;  %v2149_v58 = vadd.f32 1e-05, %v2117_v50  ;;  %v2152_v18 = vadd.f32 1e-05, %v2120_v43  ;;  %v2092_v47 = vsub.f32 %v2028_v37, %v2060_v51  ;;  %v1843_v46 = vpop.xlane.xlu0 %1842  ;;  %v9717_v60 = vmul.f32 %v13035_v7, %v13035_v7 }
 0x2ca   : > { %v2119_v15 = vmax.f32 %v2087_v3, 0.0  ;;  %v2121_v2 = vmax.f32 %v2089_v8, 0.0  ;;  %v9711_v61 = vmul.f32 0.000625, %v1813_v49  ;;  %v9713_v35 = vmul.f32 0.000625, %v1858_v53  ;;  %v4514_v53 = vpop.eup %4513 }
 0x2cb   : > { %4519 = vrsqrt.f32 %v2149_v58  ;;  %v2154_v24 = vadd.f32 1e-05, %v2122_v34  ;;  %v2124_v28 = vmax.f32 %v2092_v47, 0.0  ;;  %v9725_v22 = vmul.f32 0.000625, %v1843_v46  ;;  %v9735_v43 = vpop.eup %4515  ;;  %v13040_v3 = vld [vmem:[#allocation89_spill] sm:$0xff] }
 0x2cc   : > { %v2151_v14 = vadd.f32 1e-05, %v2119_v15  ;;  %4521 = vrsqrt.f32 %v2152_v18  ;;  %v9719_v21 = vadd.f32 1e-05, %v2121_v2  ;;  %v9731_v32 = vmul.f32 %v13036_v11, %v13036_v11  ;;  %v13042_v30 = vld [vmem:[#allocation128_spill] sm:$0xff]  ;;  %v13044_v58 = vld [vmem:[#allocation129_spill] sm:$0xff] }
 0x2cd   : > { %v9727_v9 = vadd.f32 1e-05, %v2124_v28  ;;  %v9733_v50 = vmul.f32 0.000625, %v1888_v6  ;;  %v13041_v51 = vsub.f32 %v13039_v26, %v13040_v3  ;;  %v13043_v8 = vsub.f32 %v13042_v30, %v13040_v3  ;;  %v13046_v34 = vld [vmem:[#allocation130_spill] sm:$0xff]  ;;  %v13050_v28 = vld [vmem:[#allocation132_spill] sm:$0xff] }
 0x2ce   : > { %4523 = vrsqrt.f32 %v2151_v14  ;;  %13037 = vst [vmem:[#allocation404_spill] sm:$0xff] %v9731_v32  ;;  %v13045_v18 = vsub.f32 %v13044_v58, %v13040_v3  ;;  %v13047_v2 = vsub.f32 %v13046_v34, %v13040_v3  ;;  %v13048_v14 = vld [vmem:[#allocation131_spill] sm:$0xff]  ;;  %v13051_v26 = vsub.f32 %v13050_v28, %v13040_v3  ;;  %v13052_v30 = vld [vmem:[#allocation134_spill] sm:$0xff]  ;;  %v13056_v34 = vld [vmem:[#allocation136_spill] sm:$0xff] }
 0x2cf   : > { %4525 = vrsqrt.f32 %v2154_v24  ;;  %13038 = vst [vmem:[#allocation405_spill] sm:$0xff] %v9733_v50  ;;  %v2760_v27 = vmul.f32 %v4514_v53, %v13041_v51  ;;  %v2761_v37 = vmul.f32 %v4514_v53, %v13043_v8  ;;  %v13049_v6 = vsub.f32 %v13048_v14, %v13040_v3  ;;  %v13054_v58 = vld [vmem:[#allocation135_spill] sm:$0xff]  ;;  %v13058_v7 = vld [vmem:[#allocation137_spill] sm:$0xff]  ;;  %v13060_v25 = vld [vmem:[#allocation138_spill] sm:$0xff] }
 0x2d0   : > { %v2762_v15 = vmul.f32 %v4514_v53, %v13045_v18  ;;  %v2763_v47 = vmul.f32 %v4514_v53, %v13047_v2  ;;  %v9749_v46 = vpop.eup %4517  ;;  %v2765_v51 = vmul.f32 %v4514_v53, %v13051_v26  ;;  %v13053_v8 = vsub.f32 %v13052_v30, %v13040_v3  ;;  %v13062_v23 = vld [vmem:[#allocation139_spill] sm:$0xff]  ;;  %v13064_v56 = vld [vmem:[#allocation140_spill] sm:$0xff] }
 0x2d1   : > { %v2764_v24 = vmul.f32 %v4514_v53, %v13049_v6  ;;  %v13055_v18 = vsub.f32 %v13054_v58, %v13040_v3  ;;  %v13057_v2 = vsub.f32 %v13056_v34, %v13040_v3  ;;  %v13059_v14 = vsub.f32 %v13058_v7, %v13040_v3 }
 0x2d2   : > { %v2766_v45 = vmul.f32 %v4514_v53, %v13053_v8  ;;  %v13061_v28 = vsub.f32 %v13060_v25, %v13040_v3  ;;  %v13063_v30 = vsub.f32 %v13062_v23, %v13040_v3  ;;  %v13065_v58 = vsub.f32 %v13064_v56, %v13040_v3 }
 0x2d3   : > { %v2767_v49 = vmul.f32 %v4514_v53, %v13055_v18  ;;  %v2768_v11 = vmul.f32 %v4514_v53, %v13057_v2  ;;  %v2769_v6 = vmul.f32 %v4514_v53, %v13059_v14  ;;  %v3243_v44 = vmul.f32 %v8646_v0, %v2760_v27 }
 0x2d4   : > { %v2770_v26 = vmul.f32 %v4514_v53, %v13061_v28  ;;  %v2771_v8 = vmul.f32 %v4514_v53, %v13063_v30  ;;  %v2772_v18 = vmul.f32 %v4514_v53, %v13065_v58  ;;  %v3244_v34 = vmul.f32 %v8648_v13, %v2761_v37 }
 0x2d5   : > { %v3245_v2 = vmul.f32 %v8650_v36, %v2762_v15  ;;  %v3246_v7 = vmul.f32 %v12768_v38, %v2763_v47  ;;  %v3247_v14 = vmul.f32 %v12769_v59, %v2764_v24  ;;  %v3248_v25 = vmul.f32 %v12770_v5, %v2765_v51  ;;  %v9789_v3 = vpop.eup %4519 }
 0x2d6   : > { %v3249_v28 = vmul.f32 %v12771_v33, %v2766_v45  ;;  %v3250_v23 = vmul.f32 %v12772_v31, %v2767_v49  ;;  %v3251_v30 = vmul.f32 %v12773_v57, %v2768_v11  ;;  %v3252_v56 = vmul.f32 %v12774_v41, %v2769_v6  ;;  %v9795_v47 = vpop.eup %4521 }
 0x2d7   : > { %v3253_v53 = vmul.f32 %v12775_v19, %v2770_v26  ;;  %v3254_v27 = vmul.f32 %v12776_v63, %v2771_v8  ;;  %v3255_v37 = vmul.f32 %v8673_v1, %v2772_v18  ;;  %v3726_v15 = vadd.f32 %v12777_v39, %v3243_v44 }
 0x2d8   : > { %v3727_v45 = vadd.f32 %v12778_v62, %v3244_v34  ;;  %v3728_v49 = vadd.f32 %v12779_v40, %v3245_v2  ;;  %v3729_v11 = vadd.f32 %v12780_v20, %v3246_v7  ;;  %v3730_v24 = vadd.f32 %v8683_v16, %v3247_v14  ;;  %v9801_v6 = vpop.eup %4523  ;;  %v13066_v14 = vld [vmem:[#allocation145_spill] sm:$0xff] }
 0x2d9   : > { %v3731_v51 = vadd.f32 %v8685_v52, %v3248_v25  ;;  %v3732_v44 = vadd.f32 %v12781_v12, %v3249_v28  ;;  %v3733_v26 = vadd.f32 %v8689_v42, %v3250_v23  ;;  %v3734_v8 = vadd.f32 %v8691_v48, %v3251_v30  ;;  %4142 = vst [vmem:[%s8815_s29 + $0x478] sm:$0xff] %v3726_v15  ;;  %v9809_v18 = vpop.eup %4525  ;;  %v13067_v25 = vld [vmem:[#allocation133_spill] sm:$0xff]  ;;  %v13069_v30 = vld [vmem:[#allocation146_spill] sm:$0xff] }
 0x2da   : > { %v3735_v58 = vadd.f32 %v8693_v55, %v3252_v56  ;;  %4143 = vst [vmem:[%s8815_s29 + $0x480] sm:$0xff] %v3727_v45  ;;  %v3736_v34 = vadd.f32 %v8695_v10, %v3253_v53  ;;  %v3737_v2 = vadd.f32 %v12782_v4, %v3254_v27  ;;  %v3738_v7 = vadd.f32 %v12783_v29, %v3255_v37  ;;  %v13071_v27 = vld [vmem:[#allocation148_spill] sm:$0xff]  ;;  %v13073_v45 = vld [vmem:[#allocation149_spill] sm:$0xff] }
 0x2db   : > { %4144 = vst [vmem:[%s8815_s29 + $0x488] sm:$0xff] %v3728_v49  ;;  %4145 = vst [vmem:[%s8815_s29 + $0x490] sm:$0xff] %v3729_v11  ;;  %v13068_v28 = vsub.f32 %v13066_v14, %v13067_v25  ;;  %v13070_v56 = vsub.f32 %v13069_v30, %v13067_v25  ;;  %v13072_v37 = vsub.f32 %v13071_v27, %v13067_v25  ;;  %v13079_v14 = vld [vmem:[#allocation152_spill] sm:$0xff]  ;;  %4527 = vrsqrt.f32 %v9719_v21  ;;  %v13233_v21 = vld [vmem:[#allocation405_spill] sm:$0xff] }
 0x2dc   : > { %4146 = vst [vmem:[%s8815_s29 + $0x498] sm:$0xff] %v3730_v24  ;;  %4147 = vst [vmem:[%s8815_s29 + $0x4a0] sm:$0xff] %v3731_v51  ;;  %v13074_v49 = vsub.f32 %v13073_v45, %v13067_v25  ;;  %v13075_v24 = vld [vmem:[#allocation150_spill] sm:$0xff]  ;;  %4529 = vrsqrt.f32 %v9727_v9 }
 0x2dd   : > { %v2747_v23 = vmul.f32 %v9735_v43, %v13068_v28  ;;  %4148 = vst [vmem:[%s8815_s29 + $0x4a8] sm:$0xff] %v3732_v44  ;;  %4149 = vst [vmem:[%s8815_s29 + $0x4b0] sm:$0xff] %v3733_v26  ;;  %v2748_v53 = vmul.f32 %v9735_v43, %v13070_v56  ;;  %v2749_v15 = vmul.f32 %v9735_v43, %v13072_v37  ;;  %v13077_v26 = vld [vmem:[#allocation151_spill] sm:$0xff]  ;;  %v13081_v56 = vld [vmem:[#allocation153_spill] sm:$0xff] }
 0x2de   : > { %4150 = vst [vmem:[%s8815_s29 + $0x4b8] sm:$0xff] %v3734_v8  ;;  %4151 = vst [vmem:[%s8815_s29 + $0x4c0] sm:$0xff] %v3735_v58  ;;  %v2750_v11 = vmul.f32 %v9735_v43, %v13074_v49  ;;  %v13076_v51 = vsub.f32 %v13075_v24, %v13067_v25  ;;  %v13078_v8 = vsub.f32 %v13077_v26, %v13067_v25  ;;  %v13083_v45 = vld [vmem:[#allocation154_spill] sm:$0xff] }
 0x2df   : > { %4152 = vst [vmem:[%s8815_s29 + $0x4c8] sm:$0xff] %v3736_v34  ;;  %4153 = vst [vmem:[%s8815_s29 + $0x4d0] sm:$0xff] %v3737_v2  ;;  %v13080_v28 = vsub.f32 %v13079_v14, %v13067_v25  ;;  %v13082_v27 = vsub.f32 %v13081_v56, %v13067_v25  ;;  %v13084_v34 = vsub.f32 %v13083_v45, %v13067_v25  ;;  %v13089_v14 = vld [vmem:[#allocation157_spill] sm:$0xff] }
 0x2e0   : > { %v2751_v44 = vmul.f32 %v9735_v43, %v13076_v51  ;;  %4154 = vst.msk [vmem:[%s8815_s29 + $0x4d8] sm:$0xff] %vm610_vm0, %v3738_v7  ;;  %v2752_v58 = vmul.f32 %v9735_v43, %v13078_v8  ;;  %v13085_v7 = vld [vmem:[#allocation155_spill] sm:$0xff]  ;;  %v13087_v51 = vld [vmem:[#allocation156_spill] sm:$0xff]  ;;  %v3230_v50 = vmul.f32 %v8646_v0, %v2747_v23 }
 0x2e1   : > { %v2753_v30 = vmul.f32 %v9735_v43, %v13080_v28  ;;  %v2754_v37 = vmul.f32 %v9735_v43, %v13082_v27  ;;  %v2755_v2 = vmul.f32 %v9735_v43, %v13084_v34  ;;  %v13086_v49 = vsub.f32 %v13085_v7, %v13067_v25  ;;  %v13091_v27 = vld [vmem:[#allocation158_spill] sm:$0xff] }
 0x2e2   : > { %v13088_v26 = vsub.f32 %v13087_v51, %v13067_v25  ;;  %v13090_v28 = vsub.f32 %v13089_v14, %v13067_v25  ;;  %v13092_v45 = vsub.f32 %v13091_v27, %v13067_v25  ;;  %v3231_v7 = vmul.f32 %v8648_v13, %v2748_v53 }
 0x2e3   : > { %v2756_v24 = vmul.f32 %v9735_v43, %v13086_v49  ;;  %v3232_v49 = vmul.f32 %v8650_v36, %v2749_v15  ;;  %v3233_v51 = vmul.f32 %v12768_v38, %v2750_v11  ;;  %v3235_v32 = vmul.f32 %v12770_v5, %v2752_v58 }
 0x2e4   : > { %v2757_v8 = vmul.f32 %v9735_v43, %v13088_v26  ;;  %v2758_v56 = vmul.f32 %v9735_v43, %v13090_v28  ;;  %v2759_v34 = vmul.f32 %v9735_v43, %v13092_v45  ;;  %v3234_v26 = vmul.f32 %v12769_v59, %v2751_v44 }
 0x2e5   : > { %v3236_v14 = vmul.f32 %v12771_v33, %v2753_v30  ;;  %v3237_v28 = vmul.f32 %v12772_v31, %v2754_v37  ;;  %v3238_v25 = vmul.f32 %v12773_v57, %v2755_v2  ;;  %v3239_v43 = vmul.f32 %v12774_v41, %v2756_v24 }
 0x2e6   : > { %v3240_v23 = vmul.f32 %v12775_v19, %v2757_v8  ;;  %v3241_v53 = vmul.f32 %v12776_v63, %v2758_v56  ;;  %v3242_v15 = vmul.f32 %v8673_v1, %v2759_v34  ;;  %v3713_v11 = vadd.f32 %v12777_v39, %v3230_v50  ;;  %v13093_v34 = vld [vmem:[#allocation159_spill] sm:$0xff] }
 0x2e7   : > { %v3714_v44 = vadd.f32 %v12778_v62, %v3231_v7  ;;  %v3715_v58 = vadd.f32 %v12779_v40, %v3232_v49  ;;  %v3716_v30 = vadd.f32 %v12780_v20, %v3233_v51  ;;  %v3717_v37 = vadd.f32 %v8683_v16, %v3234_v26  ;;  %v13094_v7 = vld [vmem:[#allocation141_spill] sm:$0xff]  ;;  %v13096_v26 = vld [vmem:[#allocation160_spill] sm:$0xff] }
 0x2e8   : > { %v3718_v2 = vadd.f32 %v8685_v52, %v3235_v32  ;;  %v3719_v24 = vadd.f32 %v12781_v12, %v3236_v14  ;;  %v3720_v8 = vadd.f32 %v8689_v42, %v3237_v28  ;;  %v3721_v50 = vadd.f32 %v8691_v48, %v3238_v25  ;;  %4129 = vst [vmem:[%s8815_s29 + $0x410] sm:$0xff] %v3713_v11  ;;  %v13098_v25 = vld [vmem:[#allocation161_spill] sm:$0xff] }
 0x2e9   : > { %v3722_v56 = vadd.f32 %v8693_v55, %v3239_v43  ;;  %v3723_v27 = vadd.f32 %v8695_v10, %v3240_v23  ;;  %4130 = vst [vmem:[%s8815_s29 + $0x418] sm:$0xff] %v3714_v44  ;;  %4131 = vst [vmem:[%s8815_s29 + $0x420] sm:$0xff] %v3715_v58  ;;  %v3724_v45 = vadd.f32 %v12782_v4, %v3241_v53  ;;  %v13100_v53 = vld [vmem:[#allocation162_spill] sm:$0xff]  ;;  %v13102_v44 = vld [vmem:[#allocation163_spill] sm:$0xff] }
 0x2ea   : > { %v3725_v32 = vadd.f32 %v12783_v29, %v3242_v15  ;;  %4132 = vst [vmem:[%s8815_s29 + $0x428] sm:$0xff] %v3716_v30  ;;  %4133 = vst [vmem:[%s8815_s29 + $0x430] sm:$0xff] %v3717_v37  ;;  %v13095_v49 = vsub.f32 %v13093_v34, %v13094_v7  ;;  %v13097_v14 = vsub.f32 %v13096_v26, %v13094_v7  ;;  %v13104_v37 = vld [vmem:[#allocation164_spill] sm:$0xff]  ;;  %v13110_v26 = vld [vmem:[#allocation167_spill] sm:$0xff] }
 0x2eb   : > { %4134 = vst [vmem:[%s8815_s29 + $0x438] sm:$0xff] %v3718_v2  ;;  %4135 = vst [vmem:[%s8815_s29 + $0x440] sm:$0xff] %v3719_v24  ;;  %v13099_v43 = vsub.f32 %v13098_v25, %v13094_v7  ;;  %v13101_v15 = vsub.f32 %v13100_v53, %v13094_v7  ;;  %v13103_v58 = vsub.f32 %v13102_v44, %v13094_v7  ;;  %v13114_v53 = vld [vmem:[#allocation169_spill] sm:$0xff] }
 0x2ec   : > { %v2786_v51 = vmul.f32 %v9749_v46, %v13095_v49  ;;  %v2787_v28 = vmul.f32 %v9749_v46, %v13097_v14  ;;  %4136 = vst [vmem:[%s8815_s29 + $0x448] sm:$0xff] %v3720_v8  ;;  %4137 = vst [vmem:[%s8815_s29 + $0x450] sm:$0xff] %v3721_v50  ;;  %v13105_v2 = vsub.f32 %v13104_v37, %v13094_v7  ;;  %v13106_v8 = vld [vmem:[#allocation165_spill] sm:$0xff] }
 0x2ed   : > { %4138 = vst [vmem:[%s8815_s29 + $0x458] sm:$0xff] %v3722_v56  ;;  %4139 = vst [vmem:[%s8815_s29 + $0x460] sm:$0xff] %v3723_v27  ;;  %v2788_v23 = vmul.f32 %v9749_v46, %v13099_v43  ;;  %v2789_v11 = vmul.f32 %v9749_v46, %v13101_v15  ;;  %v2790_v30 = vmul.f32 %v9749_v46, %v13103_v58  ;;  %v13108_v27 = vld [vmem:[#allocation166_spill] sm:$0xff]  ;;  %v13112_v43 = vld [vmem:[#allocation168_spill] sm:$0xff] }
 0x2ee   : > { %v2791_v24 = vmul.f32 %v9749_v46, %v13105_v2  ;;  %4140 = vst [vmem:[%s8815_s29 + $0x468] sm:$0xff] %v3724_v45  ;;  %4141 = vst.msk [vmem:[%s8815_s29 + $0x470] sm:$0xff] %vm610_vm0, %v3725_v32  ;;  %v13107_v50 = vsub.f32 %v13106_v8, %v13094_v7  ;;  %v13109_v34 = vsub.f32 %v13108_v27, %v13094_v7  ;;  %v13116_v58 = vld [vmem:[#allocation170_spill] sm:$0xff]  ;;  %v13118_v8 = vld [vmem:[#allocation171_spill] sm:$0xff] }
 0x2ef   : > { %v13111_v14 = vsub.f32 %v13110_v26, %v13094_v7  ;;  %v13113_v45 = vsub.f32 %v13112_v43, %v13094_v7  ;;  %v13115_v15 = vsub.f32 %v13114_v53, %v13094_v7  ;;  %v13117_v37 = vsub.f32 %v13116_v58, %v13094_v7 }
 0x2f0   : > { %v2792_v56 = vmul.f32 %v9749_v46, %v13107_v50  ;;  %v2793_v49 = vmul.f32 %v9749_v46, %v13109_v34  ;;  %v13119_v50 = vsub.f32 %v13118_v8, %v13094_v7  ;;  %v3269_v34 = vmul.f32 %v8646_v0, %v2786_v51 }
 0x2f1   : > { %v2794_v25 = vmul.f32 %v9749_v46, %v13111_v14  ;;  %v2795_v32 = vmul.f32 %v9749_v46, %v13113_v45  ;;  %v2796_v44 = vmul.f32 %v9749_v46, %v13115_v15  ;;  %v2797_v2 = vmul.f32 %v9749_v46, %v13117_v37 }
 0x2f2   : > { %v2798_v27 = vmul.f32 %v9749_v46, %v13119_v50  ;;  %v3270_v26 = vmul.f32 %v8648_v13, %v2787_v28  ;;  %v3271_v14 = vmul.f32 %v8650_v36, %v2788_v23  ;;  %v3272_v43 = vmul.f32 %v12768_v38, %v2789_v11 }
 0x2f3   : > { %v3273_v45 = vmul.f32 %v12769_v59, %v2790_v30  ;;  %v3274_v53 = vmul.f32 %v12770_v5, %v2791_v24  ;;  %v3275_v15 = vmul.f32 %v12771_v33, %v2792_v56  ;;  %v3276_v58 = vmul.f32 %v12772_v31, %v2793_v49 }
 0x2f4   : > { %v3277_v7 = vmul.f32 %v12773_v57, %v2794_v25  ;;  %v3278_v46 = vmul.f32 %v12774_v41, %v2795_v32  ;;  %v3279_v51 = vmul.f32 %v12775_v19, %v2796_v44  ;;  %v3280_v28 = vmul.f32 %v12776_v63, %v2797_v2 }
 0x2f5   : > { %v3281_v23 = vmul.f32 %v8673_v1, %v2798_v27  ;;  %v3752_v11 = vadd.f32 %v12777_v39, %v3269_v34  ;;  %v3753_v30 = vadd.f32 %v12778_v62, %v3270_v26  ;;  %v3754_v24 = vadd.f32 %v12779_v40, %v3271_v14  ;;  %v13120_v34 = vld [vmem:[#allocation172_spill] sm:$0xff]  ;;  %v13121_v26 = vld [vmem:[#allocation142_spill] sm:$0xff] }
 0x2f6   : > { %v3755_v56 = vadd.f32 %v12780_v20, %v3272_v43  ;;  %v3756_v49 = vadd.f32 %v8683_v16, %v3273_v45  ;;  %v3757_v25 = vadd.f32 %v8685_v52, %v3274_v53  ;;  %v3758_v32 = vadd.f32 %v12781_v12, %v3275_v15  ;;  %v13123_v45 = vld [vmem:[#allocation173_spill] sm:$0xff] }
 0x2f7   : > { %v3759_v44 = vadd.f32 %v8689_v42, %v3276_v58  ;;  %v3760_v37 = vadd.f32 %v8691_v48, %v3277_v7  ;;  %v3761_v2 = vadd.f32 %v8693_v55, %v3278_v46  ;;  %v3762_v8 = vadd.f32 %v8695_v10, %v3279_v51  ;;  %4168 = vst [vmem:[%s8815_s29 + $0x548] sm:$0xff] %v3752_v11  ;;  %v13125_v58 = vld [vmem:[#allocation174_spill] sm:$0xff]  ;;  %v13127_v51 = vld [vmem:[#allocation175_spill] sm:$0xff]  ;;  %v13129_v11 = vld [vmem:[#allocation176_spill] sm:$0xff] }
 0x2f8   : > { %v3763_v50 = vadd.f32 %v12782_v4, %v3280_v28  ;;  %4169 = vst [vmem:[%s8815_s29 + $0x550] sm:$0xff] %v3753_v30  ;;  %4170 = vst [vmem:[%s8815_s29 + $0x558] sm:$0xff] %v3754_v24  ;;  %v3764_v27 = vadd.f32 %v12783_v29, %v3281_v23  ;;  %v13122_v14 = vsub.f32 %v13120_v34, %v13121_v26  ;;  %v13137_v34 = vld [vmem:[#allocation180_spill] sm:$0xff] }
 0x2f9   : > { %4171 = vst [vmem:[%s8815_s29 + $0x560] sm:$0xff] %v3755_v56  ;;  %4172 = vst [vmem:[%s8815_s29 + $0x568] sm:$0xff] %v3756_v49  ;;  %v13124_v53 = vsub.f32 %v13123_v45, %v13121_v26  ;;  %v13126_v7 = vsub.f32 %v13125_v58, %v13121_v26  ;;  %v13128_v28 = vsub.f32 %v13127_v51, %v13121_v26  ;;  %v13131_v56 = vld [vmem:[#allocation177_spill] sm:$0xff]  ;;  %v13141_v51 = vld [vmem:[#allocation182_spill] sm:$0xff] }
 0x2fa   : > { %4173 = vst [vmem:[%s8815_s29 + $0x570] sm:$0xff] %v3757_v25  ;;  %4174 = vst [vmem:[%s8815_s29 + $0x578] sm:$0xff] %v3758_v32  ;;  %v2773_v43 = vmul.f32 %v9789_v3, %v13122_v14  ;;  %v13130_v30 = vsub.f32 %v13129_v11, %v13121_v26  ;;  %v13132_v49 = vsub.f32 %v13131_v56, %v13121_v26  ;;  %v13133_v32 = vld [vmem:[#allocation178_spill] sm:$0xff]  ;;  %v13143_v11 = vld [vmem:[#allocation183_spill] sm:$0xff] }
 0x2fb   : > { %4175 = vst [vmem:[%s8815_s29 + $0x580] sm:$0xff] %v3759_v44  ;;  %v2774_v15 = vmul.f32 %v9789_v3, %v13124_v53  ;;  %v2775_v46 = vmul.f32 %v9789_v3, %v13126_v7  ;;  %4176 = vst [vmem:[%s8815_s29 + $0x588] sm:$0xff] %v3760_v37  ;;  %v2776_v23 = vmul.f32 %v9789_v3, %v13128_v28  ;;  %v13139_v53 = vld [vmem:[#allocation181_spill] sm:$0xff] }
 0x2fc   : > { %4177 = vst [vmem:[%s8815_s29 + $0x590] sm:$0xff] %v3761_v2  ;;  %4178 = vst [vmem:[%s8815_s29 + $0x598] sm:$0xff] %v3762_v8  ;;  %v2777_v24 = vmul.f32 %v9789_v3, %v13130_v30  ;;  %v2778_v25 = vmul.f32 %v9789_v3, %v13132_v49  ;;  %v13134_v44 = vsub.f32 %v13133_v32, %v13121_v26  ;;  %v13135_v2 = vld [vmem:[#allocation179_spill] sm:$0xff]  ;;  %v13145_v49 = vld [vmem:[#allocation184_spill] sm:$0xff] }
 0x2fd   : > { %4179 = vst [vmem:[%s8815_s29 + $0x5a0] sm:$0xff] %v3763_v50  ;;  %4180 = vst.msk [vmem:[%s8815_s29 + $0x5a8] sm:$0xff] %vm610_vm0, %v3764_v27  ;;  %v13136_v8 = vsub.f32 %v13135_v2, %v13121_v26  ;;  %v13138_v14 = vsub.f32 %v13137_v34, %v13121_v26  ;;  %v13140_v58 = vsub.f32 %v13139_v53, %v13121_v26 }
 0x2fe   : > { %v2779_v37 = vmul.f32 %v9789_v3, %v13134_v44  ;;  %v13142_v28 = vsub.f32 %v13141_v51, %v13121_v26  ;;  %v13144_v30 = vsub.f32 %v13143_v11, %v13121_v26  ;;  %v13146_v32 = vsub.f32 %v13145_v49, %v13121_v26 }
 0x2ff   : > { %v2780_v50 = vmul.f32 %v9789_v3, %v13136_v8  ;;  %v2781_v45 = vmul.f32 %v9789_v3, %v13138_v14  ;;  %v2782_v7 = vmul.f32 %v9789_v3, %v13140_v58  ;;  %v3256_v2 = vmul.f32 %v8646_v0, %v2773_v43 }
 0x300   : > { %v2783_v27 = vmul.f32 %v9789_v3, %v13142_v28  ;;  %v2784_v56 = vmul.f32 %v9789_v3, %v13144_v30  ;;  %v2785_v44 = vmul.f32 %v9789_v3, %v13146_v32  ;;  %v3257_v8 = vmul.f32 %v8648_v13, %v2774_v15 }
 0x301   : > { %v3258_v34 = vmul.f32 %v8650_v36, %v2775_v46  ;;  %v3259_v14 = vmul.f32 %v12768_v38, %v2776_v23  ;;  %v3260_v53 = vmul.f32 %v12769_v59, %v2777_v24  ;;  %v3261_v58 = vmul.f32 %v12770_v5, %v2778_v25 }
 0x302   : > { %v3262_v51 = vmul.f32 %v12771_v33, %v2779_v37  ;;  %v3263_v28 = vmul.f32 %v12772_v31, %v2780_v50  ;;  %v3264_v26 = vmul.f32 %v12773_v57, %v2781_v45  ;;  %v3265_v3 = vmul.f32 %v12774_v41, %v2782_v7 }
 0x303   : > { %v3266_v43 = vmul.f32 %v12775_v19, %v2783_v27  ;;  %v3267_v15 = vmul.f32 %v12776_v63, %v2784_v56  ;;  %v3268_v46 = vmul.f32 %v8673_v1, %v2785_v44  ;;  %v3739_v23 = vadd.f32 %v12777_v39, %v3256_v2  ;;  %v13147_v44 = vld [vmem:[#allocation185_spill] sm:$0xff]  ;;  %v13148_v2 = vld [vmem:[#allocation143_spill] sm:$0xff] }
 0x304   : > { %v3740_v24 = vadd.f32 %v12778_v62, %v3257_v8  ;;  %v3741_v25 = vadd.f32 %v12779_v40, %v3258_v34  ;;  %v3742_v37 = vadd.f32 %v12780_v20, %v3259_v14  ;;  %v3743_v50 = vadd.f32 %v8683_v16, %v3260_v53  ;;  %v13150_v14 = vld [vmem:[#allocation186_spill] sm:$0xff] }
 0x305   : > { %v3744_v45 = vadd.f32 %v8685_v52, %v3261_v58  ;;  %v3745_v7 = vadd.f32 %v12781_v12, %v3262_v51  ;;  %v3746_v27 = vadd.f32 %v8689_v42, %v3263_v28  ;;  %v3747_v11 = vadd.f32 %v8691_v48, %v3264_v26  ;;  %4155 = vst [vmem:[%s8815_s29 + $0x4e0] sm:$0xff] %v3739_v23  ;;  %v13152_v51 = vld [vmem:[#allocation187_spill] sm:$0xff] }
 0x306   : > { %v3748_v30 = vadd.f32 %v8693_v55, %v3265_v3  ;;  %v3749_v56 = vadd.f32 %v8695_v10, %v3266_v43  ;;  %v3750_v49 = vadd.f32 %v12782_v4, %v3267_v15  ;;  %v3751_v32 = vadd.f32 %v12783_v29, %v3268_v46  ;;  %4156 = vst [vmem:[%s8815_s29 + $0x4e8] sm:$0xff] %v3740_v24  ;;  %v13154_v3 = vld [vmem:[#allocation188_spill] sm:$0xff]  ;;  %v13156_v46 = vld [vmem:[#allocation189_spill] sm:$0xff] }
 0x307   : > { %4157 = vst [vmem:[%s8815_s29 + $0x4f0] sm:$0xff] %v3741_v25  ;;  %4158 = vst [vmem:[%s8815_s29 + $0x4f8] sm:$0xff] %v3742_v37  ;;  %v13149_v8 = vsub.f32 %v13147_v44, %v13148_v2  ;;  %v13151_v53 = vsub.f32 %v13150_v14, %v13148_v2  ;;  %v13153_v28 = vsub.f32 %v13152_v51, %v13148_v2  ;;  %v13158_v25 = vld [vmem:[#allocation190_spill] sm:$0xff]  ;;  %v13168_v51 = vld [vmem:[#allocation195_spill] sm:$0xff] }
 0x308   : > { %4159 = vst [vmem:[%s8815_s29 + $0x500] sm:$0xff] %v3743_v50  ;;  %4160 = vst [vmem:[%s8815_s29 + $0x508] sm:$0xff] %v3744_v45  ;;  %v13155_v43 = vsub.f32 %v13154_v3, %v13148_v2  ;;  %v13157_v23 = vsub.f32 %v13156_v46, %v13148_v2  ;;  %v13159_v37 = vsub.f32 %v13158_v25, %v13148_v2  ;;  %v13160_v45 = vld [vmem:[#allocation191_spill] sm:$0xff]  ;;  %v13172_v25 = vld [vmem:[#allocation197_spill] sm:$0xff] }
 0x309   : > { %4161 = vst [vmem:[%s8815_s29 + $0x510] sm:$0xff] %v3745_v7  ;;  %4162 = vst [vmem:[%s8815_s29 + $0x518] sm:$0xff] %v3746_v27  ;;  %v2812_v34 = vmul.f32 %v9795_v47, %v13149_v8  ;;  %v2813_v58 = vmul.f32 %v9795_v47, %v13151_v53  ;;  %v2814_v26 = vmul.f32 %v9795_v47, %v13153_v28  ;;  %v13166_v8 = vld [vmem:[#allocation194_spill] sm:$0xff] }
 0x30a   : > { %4163 = vst [vmem:[%s8815_s29 + $0x520] sm:$0xff] %v3747_v11  ;;  %v2815_v15 = vmul.f32 %v9795_v47, %v13155_v43  ;;  %4164 = vst [vmem:[%s8815_s29 + $0x528] sm:$0xff] %v3748_v30  ;;  %v2816_v24 = vmul.f32 %v9795_v47, %v13157_v23  ;;  %v2817_v50 = vmul.f32 %v9795_v47, %v13159_v37  ;;  %v13162_v11 = vld [vmem:[#allocation192_spill] sm:$0xff] }
 0x30b   : > { %4165 = vst [vmem:[%s8815_s29 + $0x530] sm:$0xff] %v3749_v56  ;;  %4166 = vst [vmem:[%s8815_s29 + $0x538] sm:$0xff] %v3750_v49  ;;  %v13161_v7 = vsub.f32 %v13160_v45, %v13148_v2  ;;  %v13163_v30 = vsub.f32 %v13162_v11, %v13148_v2  ;;  %v13164_v49 = vld [vmem:[#allocation193_spill] sm:$0xff]  ;;  %v13167_v14 = vsub.f32 %v13166_v8, %v13148_v2  ;;  %v13170_v43 = vld [vmem:[#allocation196_spill] sm:$0xff] }
 0x30c   : > { %4167 = vst.msk [vmem:[%s8815_s29 + $0x540] sm:$0xff] %vm610_vm0, %v3751_v32  ;;  %v13165_v32 = vsub.f32 %v13164_v49, %v13148_v2  ;;  %v13169_v28 = vsub.f32 %v13168_v51, %v13148_v2  ;;  %v13171_v46 = vsub.f32 %v13170_v43, %v13148_v2  ;;  %v13173_v37 = vsub.f32 %v13172_v25, %v13148_v2 }
 0x30d   : > { %v2818_v27 = vmul.f32 %v9795_v47, %v13161_v7  ;;  %v2819_v56 = vmul.f32 %v9795_v47, %v13163_v30  ;;  %v2821_v53 = vmul.f32 %v9795_v47, %v13167_v14  ;;  %v3295_v7 = vmul.f32 %v8646_v0, %v2812_v34 }
 0x30e   : > { %v2820_v44 = vmul.f32 %v9795_v47, %v13165_v32  ;;  %v2822_v3 = vmul.f32 %v9795_v47, %v13169_v28  ;;  %v2823_v23 = vmul.f32 %v9795_v47, %v13171_v46  ;;  %v2824_v45 = vmul.f32 %v9795_v47, %v13173_v37  ;;  %v13174_v37 = vld [vmem:[#allocation198_spill] sm:$0xff] }
 0x30f   : > { %v3296_v11 = vmul.f32 %v8648_v13, %v2813_v58  ;;  %v3297_v30 = vmul.f32 %v8650_v36, %v2814_v26  ;;  %v3298_v49 = vmul.f32 %v12768_v38, %v2815_v15  ;;  %v3299_v32 = vmul.f32 %v12769_v59, %v2816_v24 }
 0x310   : > { %v3300_v8 = vmul.f32 %v12770_v5, %v2817_v50  ;;  %v3301_v14 = vmul.f32 %v12771_v33, %v2818_v27  ;;  %v3302_v51 = vmul.f32 %v12772_v31, %v2819_v56  ;;  %v3303_v2 = vmul.f32 %v12773_v57, %v2820_v44 }
 0x311   : > { %v3304_v47 = vmul.f32 %v12774_v41, %v2821_v53  ;;  %v3305_v34 = vmul.f32 %v12775_v19, %v2822_v3  ;;  %v3306_v58 = vmul.f32 %v12776_v63, %v2823_v23  ;;  %v3307_v26 = vmul.f32 %v8673_v1, %v2824_v45  ;;  %v13175_v45 = vld [vmem:[#allocation144_spill] sm:$0xff] }
 0x312   : > { %v3778_v15 = vadd.f32 %v12777_v39, %v3295_v7  ;;  %v3779_v24 = vadd.f32 %v12778_v62, %v3296_v11  ;;  %v3780_v50 = vadd.f32 %v12779_v40, %v3297_v30  ;;  %v3781_v27 = vadd.f32 %v12780_v20, %v3298_v49  ;;  %v13177_v30 = vld [vmem:[#allocation199_spill] sm:$0xff] }
 0x313   : > { %v3782_v56 = vadd.f32 %v8683_v16, %v3299_v32  ;;  %v3783_v44 = vadd.f32 %v8685_v52, %v3300_v8  ;;  %v3784_v53 = vadd.f32 %v12781_v12, %v3301_v14  ;;  %v3785_v28 = vadd.f32 %v8689_v42, %v3302_v51  ;;  %v13179_v8 = vld [vmem:[#allocation200_spill] sm:$0xff] }
 0x314   : > { %v3786_v3 = vadd.f32 %v8691_v48, %v3303_v2  ;;  %v3787_v43 = vadd.f32 %v8693_v55, %v3304_v47  ;;  %4194 = vst [vmem:[%s8815_s29 + $0x618] sm:$0xff] %v3778_v15  ;;  %4195 = vst [vmem:[%s8815_s29 + $0x620] sm:$0xff] %v3779_v24  ;;  %v3788_v46 = vadd.f32 %v8695_v10, %v3305_v34  ;;  %v13181_v2 = vld [vmem:[#allocation201_spill] sm:$0xff]  ;;  %v13185_v24 = vld [vmem:[#allocation203_spill] sm:$0xff] }
 0x315   : > { %v3789_v23 = vadd.f32 %v12782_v4, %v3306_v58  ;;  %v3790_v25 = vadd.f32 %v12783_v29, %v3307_v26  ;;  %4196 = vst [vmem:[%s8815_s29 + $0x628] sm:$0xff] %v3780_v50  ;;  %4197 = vst [vmem:[%s8815_s29 + $0x630] sm:$0xff] %v3781_v27  ;;  %v13176_v7 = vsub.f32 %v13174_v37, %v13175_v45  ;;  %v13183_v58 = vld [vmem:[#allocation202_spill] sm:$0xff] }
 0x316   : > { %4198 = vst [vmem:[%s8815_s29 + $0x638] sm:$0xff] %v3782_v56  ;;  %4199 = vst [vmem:[%s8815_s29 + $0x640] sm:$0xff] %v3783_v44  ;;  %v13178_v49 = vsub.f32 %v13177_v30, %v13175_v45  ;;  %v13180_v14 = vsub.f32 %v13179_v8, %v13175_v45  ;;  %v13182_v47 = vsub.f32 %v13181_v2, %v13175_v45  ;;  %v13187_v56 = vld [vmem:[#allocation204_spill] sm:$0xff]  ;;  %v13191_v37 = vld [vmem:[#allocation206_spill] sm:$0xff] }
 0x317   : > { %v2799_v11 = vmul.f32 %v9801_v6, %v13176_v7  ;;  %4200 = vst [vmem:[%s8815_s29 + $0x648] sm:$0xff] %v3784_v53  ;;  %4201 = vst [vmem:[%s8815_s29 + $0x650] sm:$0xff] %v3785_v28  ;;  %v13184_v26 = vsub.f32 %v13183_v58, %v13175_v45  ;;  %v13186_v50 = vsub.f32 %v13185_v24, %v13175_v45  ;;  %v13189_v28 = vld [vmem:[#allocation205_spill] sm:$0xff] }
 0x318   : > { %4202 = vst [vmem:[%s8815_s29 + $0x658] sm:$0xff] %v3786_v3  ;;  %4203 = vst [vmem:[%s8815_s29 + $0x660] sm:$0xff] %v3787_v43  ;;  %v2800_v32 = vmul.f32 %v9801_v6, %v13178_v49  ;;  %v2801_v51 = vmul.f32 %v9801_v6, %v13180_v14  ;;  %v2802_v34 = vmul.f32 %v9801_v6, %v13182_v47  ;;  %v13195_v49 = vld [vmem:[#allocation208_spill] sm:$0xff]  ;;  %v13197_v2 = vld [vmem:[#allocation209_spill] sm:$0xff] }
 0x319   : > { %v2803_v15 = vmul.f32 %v9801_v6, %v13184_v26  ;;  %4204 = vst [vmem:[%s8815_s29 + $0x668] sm:$0xff] %v3788_v46  ;;  %4205 = vst [vmem:[%s8815_s29 + $0x670] sm:$0xff] %v3789_v23  ;;  %v2804_v27 = vmul.f32 %v9801_v6, %v13186_v50  ;;  %v13188_v44 = vsub.f32 %v13187_v56, %v13175_v45  ;;  %v13199_v26 = vld [vmem:[#allocation210_spill] sm:$0xff] }
 0x31a   : > { %4206 = vst.msk [vmem:[%s8815_s29 + $0x678] sm:$0xff] %vm610_vm0, %v3790_v25  ;;  %v13190_v3 = vsub.f32 %v13189_v28, %v13175_v45  ;;  %v13192_v46 = vsub.f32 %v13191_v37, %v13175_v45  ;;  %v13193_v25 = vld [vmem:[#allocation207_spill] sm:$0xff]  ;;  %v13196_v8 = vsub.f32 %v13195_v49, %v13175_v45  ;;  %v13198_v47 = vsub.f32 %v13197_v2, %v13175_v45 }
 0x31b   : > { %v2805_v53 = vmul.f32 %v9801_v6, %v13188_v44  ;;  %v13194_v7 = vsub.f32 %v13193_v25, %v13175_v45  ;;  %v13200_v24 = vsub.f32 %v13199_v26, %v13175_v45  ;;  %v3282_v56 = vmul.f32 %v8646_v0, %v2799_v11 }
 0x31c   : > { %v2806_v43 = vmul.f32 %v9801_v6, %v13190_v3  ;;  %v2807_v23 = vmul.f32 %v9801_v6, %v13192_v46  ;;  %v2809_v14 = vmul.f32 %v9801_v6, %v13196_v8  ;;  %v2810_v58 = vmul.f32 %v9801_v6, %v13198_v47  ;;  %v10273_v47 = vpop.xlane.xlu0 %1872 }
 0x31d   : > { %v2808_v30 = vmul.f32 %v9801_v6, %v13194_v7  ;;  %v2811_v50 = vmul.f32 %v9801_v6, %v13200_v24  ;;  %v3283_v44 = vmul.f32 %v8648_v13, %v2800_v32  ;;  %v3284_v28 = vmul.f32 %v8650_v36, %v2801_v51  ;;  %v13201_v24 = vld [vmem:[#allocation211_spill] sm:$0xff] }
 0x31e   : > { %v3285_v3 = vmul.f32 %v12768_v38, %v2802_v34  ;;  %v3286_v37 = vmul.f32 %v12769_v59, %v2803_v15  ;;  %v3287_v46 = vmul.f32 %v12770_v5, %v2804_v27  ;;  %v3288_v25 = vmul.f32 %v12771_v33, %v2805_v53 }
 0x31f   : > { %v3289_v7 = vmul.f32 %v12772_v31, %v2806_v43  ;;  %v3290_v45 = vmul.f32 %v12773_v57, %v2807_v23  ;;  %v3291_v6 = vmul.f32 %v12774_v41, %v2808_v30  ;;  %v3292_v11 = vmul.f32 %v12775_v19, %v2809_v14 }
 0x320   : > { %v3293_v32 = vmul.f32 %v12776_v63, %v2810_v58  ;;  %v3294_v51 = vmul.f32 %v8673_v1, %v2811_v50  ;;  %v3765_v34 = vadd.f32 %v12777_v39, %v3282_v56  ;;  %v3766_v15 = vadd.f32 %v12778_v62, %v3283_v44  ;;  %v13202_v50 = vld [vmem:[#allocation147_spill] sm:$0xff] }
 0x321   : > { %v3767_v27 = vadd.f32 %v12779_v40, %v3284_v28  ;;  %v3768_v53 = vadd.f32 %v12780_v20, %v3285_v3  ;;  %v3769_v43 = vadd.f32 %v8683_v16, %v3286_v37  ;;  %v3770_v23 = vadd.f32 %v8685_v52, %v3287_v46  ;;  %v13204_v28 = vld [vmem:[#allocation212_spill] sm:$0xff]  ;;  %v13206_v46 = vld [vmem:[#allocation213_spill] sm:$0xff] }
 0x322   : > { %v3771_v30 = vadd.f32 %v12781_v12, %v3288_v25  ;;  %v3772_v49 = vadd.f32 %v8689_v42, %v3289_v7  ;;  %v3773_v8 = vadd.f32 %v8691_v48, %v3290_v45  ;;  %v3774_v14 = vadd.f32 %v8693_v55, %v3291_v6  ;;  %4181 = vst [vmem:[%s8815_s29 + $0x5b0] sm:$0xff] %v3765_v34  ;;  %v13208_v45 = vld [vmem:[#allocation214_spill] sm:$0xff] }
 0x323   : > { %v3775_v2 = vadd.f32 %v8695_v10, %v3292_v11  ;;  %4182 = vst [vmem:[%s8815_s29 + $0x5b8] sm:$0xff] %v3766_v15  ;;  %4183 = vst [vmem:[%s8815_s29 + $0x5c0] sm:$0xff] %v3767_v27  ;;  %v3776_v58 = vadd.f32 %v12782_v4, %v3293_v32  ;;  %v3777_v26 = vadd.f32 %v12783_v29, %v3294_v51  ;;  %v13210_v32 = vld [vmem:[#allocation216_spill] sm:$0xff]  ;;  %v13212_v15 = vld [vmem:[#allocation217_spill] sm:$0xff] }
 0x324   : > { %4184 = vst [vmem:[%s8815_s29 + $0x5c8] sm:$0xff] %v3768_v53  ;;  %4185 = vst [vmem:[%s8815_s29 + $0x5d0] sm:$0xff] %v3769_v43  ;;  %v13203_v56 = vsub.f32 %v13201_v24, %v13202_v50  ;;  %v13205_v3 = vsub.f32 %v13204_v28, %v13202_v50  ;;  %v13207_v25 = vsub.f32 %v13206_v46, %v13202_v50  ;;  %v13214_v43 = vld [vmem:[#allocation218_spill] sm:$0xff]  ;;  %v13220_v28 = vld [vmem:[#allocation221_spill] sm:$0xff] }
 0x325   : > { %4186 = vst [vmem:[%s8815_s29 + $0x5d8] sm:$0xff] %v3770_v23  ;;  %4187 = vst [vmem:[%s8815_s29 + $0x5e0] sm:$0xff] %v3771_v30  ;;  %v13209_v6 = vsub.f32 %v13208_v45, %v13202_v50  ;;  %v13211_v51 = vsub.f32 %v13210_v32, %v13202_v50  ;;  %v13213_v27 = vsub.f32 %v13212_v15, %v13202_v50  ;;  %v13224_v45 = vld [vmem:[#allocation223_spill] sm:$0xff] }
 0x326   : > { %v2838_v44 = vmul.f32 %v9809_v18, %v13203_v56  ;;  %v2839_v37 = vmul.f32 %v9809_v18, %v13205_v3  ;;  %4188 = vst [vmem:[%s8815_s29 + $0x5e8] sm:$0xff] %v3772_v49  ;;  %4189 = vst [vmem:[%s8815_s29 + $0x5f0] sm:$0xff] %v3773_v8  ;;  %v2840_v7 = vmul.f32 %v9809_v18, %v13207_v25  ;;  %v13216_v49 = vld [vmem:[#allocation219_spill] sm:$0xff]  ;;  %v13222_v3 = vld [vmem:[#allocation222_spill] sm:$0xff] }
 0x327   : > { %4190 = vst [vmem:[%s8815_s29 + $0x5f8] sm:$0xff] %v3774_v14  ;;  %4191 = vst [vmem:[%s8815_s29 + $0x600] sm:$0xff] %v3775_v2  ;;  %v2841_v11 = vmul.f32 %v9809_v18, %v13209_v6  ;;  %v2842_v34 = vmul.f32 %v9809_v18, %v13211_v51  ;;  %v2843_v53 = vmul.f32 %v9809_v18, %v13213_v27  ;;  %v13218_v2 = vld [vmem:[#allocation220_spill] sm:$0xff] }
 0x328   : > { %4192 = vst [vmem:[%s8815_s29 + $0x608] sm:$0xff] %v3776_v58  ;;  %4193 = vst.msk [vmem:[%s8815_s29 + $0x610] sm:$0xff] %vm610_vm0, %v3777_v26  ;;  %v13215_v23 = vsub.f32 %v13214_v43, %v13202_v50  ;;  %v13217_v8 = vsub.f32 %v13216_v49, %v13202_v50  ;;  %v13219_v24 = vsub.f32 %v13218_v2, %v13202_v50  ;;  %v13226_v51 = vld [vmem:[#allocation224_spill] sm:$0xff] }
 0x329   : > { %v13221_v58 = vsub.f32 %v13220_v28, %v13202_v50  ;;  %v13223_v46 = vsub.f32 %v13222_v3, %v13202_v50  ;;  %v13225_v6 = vsub.f32 %v13224_v45, %v13202_v50  ;;  %v13227_v15 = vsub.f32 %v13226_v51, %v13202_v50 }
 0x32a   : > { %v2844_v30 = vmul.f32 %v9809_v18, %v13215_v23  ;;  %v2845_v14 = vmul.f32 %v9809_v18, %v13217_v8  ;;  %v2846_v56 = vmul.f32 %v9809_v18, %v13219_v24  ;;  %v3321_v43 = vmul.f32 %v8646_v0, %v2838_v44  ;;  %v1918_v24 = vpop.xlane.xlu1 %1917 }
 0x32b   : > { %v2847_v26 = vmul.f32 %v9809_v18, %v13221_v58  ;;  %v2848_v25 = vmul.f32 %v9809_v18, %v13223_v46  ;;  %v2849_v32 = vmul.f32 %v9809_v18, %v13225_v6  ;;  %v2850_v27 = vmul.f32 %v9809_v18, %v13227_v15  ;;  %v1903_v18 = vpop.xlane.xlu0 %1902 }
 0x32c   : > { %v3322_v23 = vmul.f32 %v8648_v13, %v2839_v37  ;;  %v3323_v49 = vmul.f32 %v8650_v36, %v2840_v7  ;;  %v3324_v8 = vmul.f32 %v12768_v38, %v2841_v11  ;;  %v3325_v2 = vmul.f32 %v12769_v59, %v2842_v34 }
 0x32d   : > { %v3326_v28 = vmul.f32 %v12770_v5, %v2843_v53  ;;  %v3327_v58 = vmul.f32 %v12771_v33, %v2844_v30  ;;  %v3328_v3 = vmul.f32 %v12772_v31, %v2845_v14  ;;  %v3329_v50 = vmul.f32 %v12773_v57, %v2846_v56 }
 0x32e   : > { %v3330_v44 = vmul.f32 %v12774_v41, %v2847_v26  ;;  %v3331_v37 = vmul.f32 %v12775_v19, %v2848_v25  ;;  %v3332_v7 = vmul.f32 %v12776_v63, %v2849_v32  ;;  %v3333_v11 = vmul.f32 %v8673_v1, %v2850_v27 }
 0x32f   : > { %v3804_v34 = vadd.f32 %v12777_v39, %v3321_v43  ;;  %v3805_v53 = vadd.f32 %v12778_v62, %v3322_v23  ;;  %v3806_v30 = vadd.f32 %v12779_v40, %v3323_v49  ;;  %v3807_v14 = vadd.f32 %v12780_v20, %v3324_v8  ;;  %v1948_v8 = vpop.xlane.xlu1 %1947 }
 0x330   : > { %v3808_v56 = vadd.f32 %v8683_v16, %v3325_v2  ;;  %v3809_v26 = vadd.f32 %v8685_v52, %v3326_v28  ;;  %v3810_v46 = vadd.f32 %v12781_v12, %v3327_v58  ;;  %v3811_v25 = vadd.f32 %v8689_v42, %v3328_v3  ;;  %v10382_v2 = vld [vmem:[%s5394_s18 + $0xba8] sm:$0xff] }
 0x331   : > { %v3812_v45 = vadd.f32 %v8691_v48, %v3329_v50  ;;  %v3813_v6 = vadd.f32 %v8693_v55, %v3330_v44  ;;  %v3814_v32 = vadd.f32 %v8695_v10, %v3331_v37  ;;  %v3815_v51 = vadd.f32 %v12782_v4, %v3332_v7  ;;  %4220 = vst [vmem:[%s8815_s29 + $0x6e8] sm:$0xff] %v3804_v34  ;;  %v13231_v28 = vld [vmem:[#allocation379_spill] sm:$0xff]  ;;  %v13234_v44 = vld [vmem:[#allocation294_spill] sm:$0xff] }
 0x332   : > { %4221 = vst [vmem:[%s8815_s29 + $0x6f0] sm:$0xff] %v3805_v53  ;;  %4222 = vst [vmem:[%s8815_s29 + $0x6f8] sm:$0xff] %v3806_v30  ;;  %v3816_v15 = vadd.f32 %v12783_v29, %v3333_v11  ;;  %v13228_v27 = vsub.f32 %v9711_v61, %v9705_v54  ;;  %v13229_v23 = vsub.f32 %v9713_v35, %v9709_v17  ;;  %v13232_v61 = vld [vmem:[#allocation404_spill] sm:$0xff]  ;;  %v1933_v17 = vpop.xlane.xlu0 %1932  ;;  %v2031_v7 = vmul.f32 0.000625, %v10273_v47  ;;  %v13256_v58 = vld [vmem:[#allocation235_spill] sm:$0xff] }
 0x333   : > { %4223 = vst [vmem:[%s8815_s29 + $0x700] sm:$0xff] %v3807_v14  ;;  %4224 = vst [vmem:[%s8815_s29 + $0x708] sm:$0xff] %v3808_v56  ;;  %v2093_v54 = vsub.f32 %v9725_v22, %v9717_v60  ;;  %v2096_v3 = vsub.f32 %v13233_v21, %v13232_v61  ;;  %v2063_v37 = vmul.f32 %v13234_v44, %v13234_v44  ;;  %v13235_v53 = vld [vmem:[#allocation296_spill] sm:$0xff]  ;;  %v2034_v30 = vmul.f32 0.000625, %v1918_v24  ;;  %v13236_v22 = vld [vmem:[#allocation297_spill] sm:$0xff] }
 0x334   : > { %4225 = vst [vmem:[%s8815_s29 + $0x710] sm:$0xff] %v3809_v26  ;;  %4226 = vst [vmem:[%s8815_s29 + $0x718] sm:$0xff] %v3810_v46  ;;  %v2123_v43 = vmax.f32 %v13228_v27, 0.0  ;;  %v2126_v49 = vmax.f32 %v13229_v23, 0.0  ;;  %v2066_v9 = vmul.f32 %v13235_v53, %v13235_v53  ;;  %v2065_v14 = vmul.f32 %v13236_v22, %v13236_v22  ;;  %v13238_v24 = vld [vmem:[#allocation301_spill] sm:$0xff] }
 0x335   : > { %4227 = vst [vmem:[%s8815_s29 + $0x720] sm:$0xff] %v3811_v25  ;;  %13230 = vst [vmem:[#allocation406_spill] sm:$0xff] %v10382_v2  ;;  %v2125_v11 = vmax.f32 %v2093_v54, 0.0  ;;  %v2128_v34 = vmax.f32 %v2096_v3, 0.0  ;;  %v2095_v60 = vsub.f32 %v2031_v7, %v2063_v37  ;;  %v2033_v56 = vmul.f32 0.000625, %v1903_v18  ;;  %v4528_v37 = vpop.eup %4527 }
 0x336   : > { %4228 = vst [vmem:[%s8815_s29 + $0x728] sm:$0xff] %v3812_v45  ;;  %4229 = vst [vmem:[%s8815_s29 + $0x730] sm:$0xff] %v3813_v6  ;;  %v2155_v35 = vadd.f32 1e-05, %v2123_v43  ;;  %v2158_v50 = vadd.f32 1e-05, %v2126_v49  ;;  %v2098_v25 = vsub.f32 %v2034_v30, %v2066_v9  ;;  %v10408_v43 = vmul.f32 %v13238_v24, %v13238_v24  ;;  %v1963_v18 = vpop.xlane.xlu0 %1962 }
 0x337   : > { %4230 = vst [vmem:[%s8815_s29 + $0x738] sm:$0xff] %v3814_v32  ;;  %4231 = vst [vmem:[%s8815_s29 + $0x740] sm:$0xff] %v3815_v51  ;;  %v2157_v26 = vadd.f32 1e-05, %v2125_v11  ;;  %v2160_v46 = vadd.f32 1e-05, %v2128_v34  ;;  %v2097_v32 = vsub.f32 %v2033_v56, %v2065_v14  ;;  %v10428_v7 = vmul.f32 %v13231_v28, %v13231_v28  ;;  %v10432_v34 = vpop.eup %4529 }
 0x338   : > { %4232 = vst.msk [vmem:[%s8815_s29 + $0x748] sm:$0xff] %vm610_vm0, %v3816_v15  ;;  %4531 = vrsqrt.f32 %v2155_v35  ;;  %v13237_v45 = vld [vmem:[#allocation298_spill] sm:$0xff]  ;;  %v2127_v47 = vmax.f32 %v2095_v60, 0.0  ;;  %v2036_v51 = vmul.f32 0.000625, %v1948_v8  ;;  %v1978_v15 = vpop.xlane.xlu1 %1977  ;;  %v2130_v27 = vmax.f32 %v2098_v25, 0.0 }
 0x339   : > { %v2068_v6 = vmul.f32 %v13237_v45, %v13237_v45  ;;  %4533 = vrsqrt.f32 %v2158_v50  ;;  %v10410_v23 = vmul.f32 0.000625, %v1933_v17  ;;  %v13239_v61 = vld [vmem:[#allocation369_spill] sm:$0xff]  ;;  %v10418_v8 = vmax.f32 %v2097_v32, 0.0  ;;  %13241 = vst [vmem:[#allocation408_spill] sm:$0xff] %v10428_v7  ;;  %v13243_v9 = vld [vmem:[#allocation228_spill] sm:$0xff] }
 0x33a   : > { %4535 = vrsqrt.f32 %v2157_v26  ;;  %v2159_v49 = vadd.f32 1e-05, %v2127_v47  ;;  %v10414_v21 = vmul.f32 %v13239_v61, %v13239_v61  ;;  %v10416_v3 = vadd.f32 1e-05, %v2130_v27  ;;  %v13244_v30 = vld [vmem:[#allocation215_spill] sm:$0xff]  ;;  %v13246_v56 = vld [vmem:[#allocation229_spill] sm:$0xff] }
 0x33b   : > { %4537 = vrsqrt.f32 %v2160_v46  ;;  %v2100_v54 = vsub.f32 %v2036_v51, %v2068_v6  ;;  %v10422_v50 = vmul.f32 0.000625, %v1978_v15  ;;  %v10430_v11 = vmul.f32 0.000625, %v1963_v18  ;;  %v13248_v25 = vld [vmem:[#allocation231_spill] sm:$0xff]  ;;  %v13250_v32 = vld [vmem:[#allocation232_spill] sm:$0xff] }
 0x33c   : > { %4539 = vrsqrt.f32 %v2159_v49  ;;  %v13245_v60 = vsub.f32 %v13243_v9, %v13244_v30  ;;  %v13247_v26 = vsub.f32 %v13246_v56, %v13244_v30  ;;  %v13249_v6 = vsub.f32 %v13248_v25, %v13244_v30  ;;  %v13252_v27 = vld [vmem:[#allocation233_spill] sm:$0xff]  ;;  %v13258_v35 = vld [vmem:[#allocation236_spill] sm:$0xff]  ;;  %v13262_v61 = vld [vmem:[#allocation238_spill] sm:$0xff] }
 0x33d   : > { %v10424_v17 = vmax.f32 %v2100_v54, 0.0  ;;  %13242 = vst [vmem:[#allocation409_spill] sm:$0xff] %v10430_v11  ;;  %v13251_v51 = vsub.f32 %v13250_v32, %v13244_v30  ;;  %v13253_v18 = vsub.f32 %v13252_v27, %v13244_v30  ;;  %v13254_v54 = vld [vmem:[#allocation234_spill] sm:$0xff]  ;;  %v13257_v56 = vsub.f32 %v13256_v58, %v13244_v30  ;;  %v13260_v2 = vld [vmem:[#allocation237_spill] sm:$0xff]  ;;  %v13264_v24 = vld [vmem:[#allocation239_spill] sm:$0xff] }
 0x33e   : > { %v2825_v14 = vmul.f32 %v4528_v37, %v13245_v60  ;;  %v2826_v46 = vmul.f32 %v4528_v37, %v13247_v26  ;;  %v2827_v47 = vmul.f32 %v4528_v37, %v13249_v6  ;;  %v13255_v9 = vsub.f32 %v13254_v54, %v13244_v30  ;;  %v13266_v45 = vld [vmem:[#allocation240_spill] sm:$0xff] }
 0x33f   : > { %13240 = vst [vmem:[#allocation407_spill] sm:$0xff] %v10424_v17  ;;  %v2828_v15 = vmul.f32 %v4528_v37, %v13251_v51  ;;  %v2829_v49 = vmul.f32 %v4528_v37, %v13253_v18  ;;  %v2831_v26 = vmul.f32 %v4528_v37, %v13257_v56  ;;  %v13259_v25 = vsub.f32 %v13258_v35, %v13244_v30  ;;  %v13268_v35 = vld [vmem:[#allocation241_spill] sm:$0xff] }
 0x340   : > { %v2830_v60 = vmul.f32 %v4528_v37, %v13255_v9  ;;  %v13261_v32 = vsub.f32 %v13260_v2, %v13244_v30  ;;  %v13263_v27 = vsub.f32 %v13262_v61, %v13244_v30  ;;  %v13265_v54 = vsub.f32 %v13264_v24, %v13244_v30 }
 0x341   : > { %v2832_v6 = vmul.f32 %v4528_v37, %v13259_v25  ;;  %v13267_v58 = vsub.f32 %v13266_v45, %v13244_v30  ;;  %v13269_v25 = vsub.f32 %v13268_v35, %v13244_v30  ;;  %v3308_v2 = vmul.f32 %v8646_v0, %v2825_v14 }
 0x342   : > { %v2833_v51 = vmul.f32 %v4528_v37, %v13261_v32  ;;  %v2834_v18 = vmul.f32 %v4528_v37, %v13263_v27  ;;  %v2835_v9 = vmul.f32 %v4528_v37, %v13265_v54  ;;  %v10470_v22 = vpop.eup %4531  ;;  %v3309_v32 = vmul.f32 %v8648_v13, %v2826_v46 }
 0x343   : > { %v2836_v56 = vmul.f32 %v4528_v37, %v13267_v58  ;;  %v2837_v53 = vmul.f32 %v4528_v37, %v13269_v25  ;;  %v3310_v61 = vmul.f32 %v8650_v36, %v2827_v47  ;;  %v3311_v27 = vmul.f32 %v12768_v38, %v2828_v15  ;;  %v10482_v58 = vpop.eup %4533 }
 0x344   : > { %v3312_v24 = vmul.f32 %v12769_v59, %v2829_v49  ;;  %v3313_v54 = vmul.f32 %v12770_v5, %v2830_v60  ;;  %v3314_v45 = vmul.f32 %v12771_v33, %v2831_v26  ;;  %v3315_v17 = vmul.f32 %v12772_v31, %v2832_v6  ;;  %v10488_v46 = vpop.eup %4535 }
 0x345   : > { %v3316_v37 = vmul.f32 %v12773_v57, %v2833_v51  ;;  %v3317_v30 = vmul.f32 %v12774_v41, %v2834_v18  ;;  %v3318_v14 = vmul.f32 %v12775_v19, %v2835_v9  ;;  %v3319_v47 = vmul.f32 %v12776_v63, %v2836_v56  ;;  %v10494_v26 = vpop.eup %4537 }
 0x346   : > { %v3320_v15 = vmul.f32 %v8673_v1, %v2837_v53  ;;  %v3791_v49 = vadd.f32 %v12777_v39, %v3308_v2  ;;  %v3792_v60 = vadd.f32 %v12778_v62, %v3309_v32  ;;  %v3793_v6 = vadd.f32 %v12779_v40, %v3310_v61  ;;  %v10506_v2 = vpop.eup %4539 }
 0x347   : > { %v3794_v51 = vadd.f32 %v12780_v20, %v3311_v27  ;;  %v3795_v18 = vadd.f32 %v8683_v16, %v3312_v24  ;;  %v3796_v9 = vadd.f32 %v8685_v52, %v3313_v54  ;;  %v3797_v53 = vadd.f32 %v12781_v12, %v3314_v45  ;;  %v13271_v24 = vld [vmem:[#allocation225_spill] sm:$0xff] }
 0x348   : > { %v3798_v56 = vadd.f32 %v8689_v42, %v3315_v17  ;;  %v3799_v35 = vadd.f32 %v8691_v48, %v3316_v37  ;;  %v3800_v25 = vadd.f32 %v8693_v55, %v3317_v30  ;;  %4207 = vst [vmem:[%s8815_s29 + $0x680] sm:$0xff] %v3791_v49  ;;  %4208 = vst [vmem:[%s8815_s29 + $0x688] sm:$0xff] %v3792_v60  ;;  %v13270_v17 = vld [vmem:[#allocation242_spill] sm:$0xff]  ;;  %v13273_v37 = vld [vmem:[#allocation243_spill] sm:$0xff]  ;;  %4541 = vrsqrt.f32 %v10416_v3 }
 0x349   : > { %v3801_v32 = vadd.f32 %v8695_v10, %v3318_v14  ;;  %v3802_v61 = vadd.f32 %v12782_v4, %v3319_v47  ;;  %v3803_v27 = vadd.f32 %v12783_v29, %v3320_v15  ;;  %4209 = vst [vmem:[%s8815_s29 + $0x690] sm:$0xff] %v3793_v6  ;;  %4210 = vst [vmem:[%s8815_s29 + $0x698] sm:$0xff] %v3794_v51  ;;  %v13275_v47 = vld [vmem:[#allocation244_spill] sm:$0xff]  ;;  %v13277_v60 = vld [vmem:[#allocation245_spill] sm:$0xff] }
 0x34a   : > { %4211 = vst [vmem:[%s8815_s29 + $0x6a0] sm:$0xff] %v3795_v18  ;;  %4212 = vst [vmem:[%s8815_s29 + $0x6a8] sm:$0xff] %v3796_v9  ;;  %v13272_v54 = vsub.f32 %v13270_v17, %v13271_v24  ;;  %v13274_v30 = vsub.f32 %v13273_v37, %v13271_v24  ;;  %v13276_v15 = vsub.f32 %v13275_v47, %v13271_v24  ;;  %v13279_v18 = vld [vmem:[#allocation246_spill] sm:$0xff]  ;;  %v13283_v17 = vld [vmem:[#allocation248_spill] sm:$0xff] }
 0x34b   : > { %4213 = vst [vmem:[%s8815_s29 + $0x6b0] sm:$0xff] %v3797_v53  ;;  %4214 = vst [vmem:[%s8815_s29 + $0x6b8] sm:$0xff] %v3798_v56  ;;  %v13278_v6 = vsub.f32 %v13277_v60, %v13271_v24  ;;  %v13280_v9 = vsub.f32 %v13279_v18, %v13271_v24  ;;  %v13281_v56 = vld [vmem:[#allocation247_spill] sm:$0xff]  ;;  %v13287_v60 = vld [vmem:[#allocation250_spill] sm:$0xff]  ;;  %v2102_v3 = vsub.f32 %v10422_v50, %v10414_v21 }
 0x34c   : > { %v2864_v45 = vmul.f32 %v10432_v34, %v13272_v54  ;;  %4215 = vst [vmem:[%s8815_s29 + $0x6c0] sm:$0xff] %v3799_v35  ;;  %4216 = vst [vmem:[%s8815_s29 + $0x6c8] sm:$0xff] %v3800_v25  ;;  %v2865_v14 = vmul.f32 %v10432_v34, %v13274_v30  ;;  %v2866_v49 = vmul.f32 %v10432_v34, %v13276_v15  ;;  %v13285_v30 = vld [vmem:[#allocation249_spill] sm:$0xff]  ;;  %v11100_v50 = vld [vmem:[%s5394_s18 + $0xbc0] sm:$0xff] }
 0x34d   : > { %v2867_v51 = vmul.f32 %v10432_v34, %v13278_v6  ;;  %v2868_v53 = vmul.f32 %v10432_v34, %v13280_v9  ;;  %4217 = vst [vmem:[%s8815_s29 + $0x6d0] sm:$0xff] %v3801_v32  ;;  %4218 = vst [vmem:[%s8815_s29 + $0x6d8] sm:$0xff] %v3802_v61  ;;  %v13282_v35 = vsub.f32 %v13281_v56, %v13271_v24  ;;  %v13291_v9 = vld [vmem:[#allocation252_spill] sm:$0xff] }
 0x34e   : > { %4219 = vst.msk [vmem:[%s8815_s29 + $0x6e0] sm:$0xff] %vm610_vm0, %v3803_v27  ;;  %v13284_v54 = vsub.f32 %v13283_v17, %v13271_v24  ;;  %v13286_v47 = vsub.f32 %v13285_v30, %v13271_v24  ;;  %v13288_v32 = vsub.f32 %v13287_v60, %v13271_v24  ;;  %v13289_v27 = vld [vmem:[#allocation251_spill] sm:$0xff]  ;;  %v13292_v56 = vsub.f32 %v13291_v9, %v13271_v24  ;;  %v13293_v17 = vld [vmem:[#allocation253_spill] sm:$0xff] }
 0x34f   : > { %v2869_v25 = vmul.f32 %v10432_v34, %v13282_v35  ;;  %v13290_v6 = vsub.f32 %v13289_v27, %v13271_v24  ;;  %v3347_v11 = vmul.f32 %v8646_v0, %v2864_v45  ;;  %v3348_v27 = vmul.f32 %v8648_v13, %v2865_v14 }
 0x350   : > { %v2870_v37 = vmul.f32 %v10432_v34, %v13284_v54  ;;  %v2871_v15 = vmul.f32 %v10432_v34, %v13286_v47  ;;  %v2872_v61 = vmul.f32 %v10432_v34, %v13288_v32  ;;  %v2874_v35 = vmul.f32 %v10432_v34, %v13292_v56  ;;  %v13295_v47 = vld [vmem:[#allocation254_spill] sm:$0xff] }
 0x351   : > { %v2873_v18 = vmul.f32 %v10432_v34, %v13290_v6  ;;  %v13294_v54 = vsub.f32 %v13293_v17, %v13271_v24  ;;  %v13296_v60 = vsub.f32 %v13295_v47, %v13271_v24  ;;  %v3349_v6 = vmul.f32 %v8650_v36, %v2866_v49 }
 0x352   : > { %v3350_v9 = vmul.f32 %v12768_v38, %v2867_v51  ;;  %v3351_v56 = vmul.f32 %v12769_v59, %v2868_v53  ;;  %v3352_v7 = vmul.f32 %v12770_v5, %v2869_v25  ;;  %v3353_v17 = vmul.f32 %v12771_v33, %v2870_v37 }
 0x353   : > { %v2875_v30 = vmul.f32 %v10432_v34, %v13294_v54  ;;  %v2876_v32 = vmul.f32 %v10432_v34, %v13296_v60  ;;  %v3354_v54 = vmul.f32 %v12772_v31, %v2871_v15  ;;  %v3355_v24 = vmul.f32 %v12773_v57, %v2872_v61 }
 0x354   : > { %v3356_v34 = vmul.f32 %v12774_v41, %v2873_v18  ;;  %v3357_v45 = vmul.f32 %v12775_v19, %v2874_v35  ;;  %v3830_v51 = vadd.f32 %v12777_v39, %v3347_v11  ;;  %v3831_v53 = vadd.f32 %v12778_v62, %v3348_v27  ;;  %v13298_v27 = vld [vmem:[#allocation226_spill] sm:$0xff] }
 0x355   : > { %v3358_v14 = vmul.f32 %v12776_v63, %v2875_v30  ;;  %v3359_v49 = vmul.f32 %v8673_v1, %v2876_v32  ;;  %v3832_v25 = vadd.f32 %v12779_v40, %v3349_v6  ;;  %v3833_v37 = vadd.f32 %v12780_v20, %v3350_v9  ;;  %v13297_v32 = vld [vmem:[#allocation255_spill] sm:$0xff] }
 0x356   : > { %v3834_v15 = vadd.f32 %v8683_v16, %v3351_v56  ;;  %v3835_v61 = vadd.f32 %v8685_v52, %v3352_v7  ;;  %v3836_v18 = vadd.f32 %v12781_v12, %v3353_v17  ;;  %v3837_v35 = vadd.f32 %v8689_v42, %v3354_v54  ;;  %4246 = vst [vmem:[%s8815_s29 + $0x7b8] sm:$0xff] %v3830_v51  ;;  %v13300_v56 = vld [vmem:[#allocation256_spill] sm:$0xff] }
 0x357   : > { %v3838_v11 = vadd.f32 %v8691_v48, %v3355_v24  ;;  %v3839_v30 = vadd.f32 %v8693_v55, %v3356_v34  ;;  %v3840_v47 = vadd.f32 %v8695_v10, %v3357_v45  ;;  %4247 = vst [vmem:[%s8815_s29 + $0x7c0] sm:$0xff] %v3831_v53  ;;  %4248 = vst [vmem:[%s8815_s29 + $0x7c8] sm:$0xff] %v3832_v25  ;;  %v13302_v24 = vld [vmem:[#allocation257_spill] sm:$0xff]  ;;  %v13306_v53 = vld [vmem:[#allocation259_spill] sm:$0xff] }
 0x358   : > { %v3841_v60 = vadd.f32 %v12782_v4, %v3358_v14  ;;  %v3842_v7 = vadd.f32 %v12783_v29, %v3359_v49  ;;  %4249 = vst [vmem:[%s8815_s29 + $0x7d0] sm:$0xff] %v3833_v37  ;;  %4250 = vst [vmem:[%s8815_s29 + $0x7d8] sm:$0xff] %v3834_v15  ;;  %v13299_v6 = vsub.f32 %v13297_v32, %v13298_v27  ;;  %v13304_v14 = vld [vmem:[#allocation258_spill] sm:$0xff]  ;;  %v13308_v15 = vld [vmem:[#allocation260_spill] sm:$0xff] }
 0x359   : > { %4251 = vst [vmem:[%s8815_s29 + $0x7e0] sm:$0xff] %v3835_v61  ;;  %4252 = vst [vmem:[%s8815_s29 + $0x7e8] sm:$0xff] %v3836_v18  ;;  %v13301_v17 = vsub.f32 %v13300_v56, %v13298_v27  ;;  %v13303_v34 = vsub.f32 %v13302_v24, %v13298_v27  ;;  %v13305_v49 = vsub.f32 %v13304_v14, %v13298_v27  ;;  %v13314_v56 = vld [vmem:[#allocation263_spill] sm:$0xff]  ;;  %v13318_v14 = vld [vmem:[#allocation265_spill] sm:$0xff] }
 0x35a   : > { %v2851_v9 = vmul.f32 %v10470_v22, %v13299_v6  ;;  %4253 = vst [vmem:[%s8815_s29 + $0x7f0] sm:$0xff] %v3837_v35  ;;  %4254 = vst [vmem:[%s8815_s29 + $0x7f8] sm:$0xff] %v3838_v11  ;;  %v13307_v25 = vsub.f32 %v13306_v53, %v13298_v27  ;;  %v13309_v61 = vsub.f32 %v13308_v15, %v13298_v27  ;;  %v13310_v35 = vld [vmem:[#allocation261_spill] sm:$0xff] }
 0x35b   : > { %v2852_v54 = vmul.f32 %v10470_v22, %v13301_v17  ;;  %4255 = vst [vmem:[%s8815_s29 + $0x800] sm:$0xff] %v3839_v30  ;;  %4256 = vst [vmem:[%s8815_s29 + $0x808] sm:$0xff] %v3840_v47  ;;  %v2853_v45 = vmul.f32 %v10470_v22, %v13303_v34  ;;  %v2854_v51 = vmul.f32 %v10470_v22, %v13305_v49  ;;  %v13312_v47 = vld [vmem:[#allocation262_spill] sm:$0xff]  ;;  %v13316_v34 = vld [vmem:[#allocation264_spill] sm:$0xff] }
 0x35c   : > { %v2855_v37 = vmul.f32 %v10470_v22, %v13307_v25  ;;  %v2856_v18 = vmul.f32 %v10470_v22, %v13309_v61  ;;  %4257 = vst [vmem:[%s8815_s29 + $0x810] sm:$0xff] %v3841_v60  ;;  %4258 = vst.msk [vmem:[%s8815_s29 + $0x818] sm:$0xff] %vm610_vm0, %v3842_v7  ;;  %v13311_v11 = vsub.f32 %v13310_v35, %v13298_v27  ;;  %v13320_v25 = vld [vmem:[#allocation266_spill] sm:$0xff]  ;;  %v13322_v35 = vld [vmem:[#allocation267_spill] sm:$0xff] }
 0x35d   : > { %v13313_v32 = vsub.f32 %v13312_v47, %v13298_v27  ;;  %v13315_v17 = vsub.f32 %v13314_v56, %v13298_v27  ;;  %v13317_v60 = vsub.f32 %v13316_v34, %v13298_v27  ;;  %v13319_v49 = vsub.f32 %v13318_v14, %v13298_v27 }
 0x35e   : > { %v2857_v30 = vmul.f32 %v10470_v22, %v13311_v11  ;;  %v13321_v15 = vsub.f32 %v13320_v25, %v13298_v27  ;;  %v13323_v11 = vsub.f32 %v13322_v35, %v13298_v27  ;;  %v3335_v56 = vmul.f32 %v8648_v13, %v2852_v54 }
 0x35f   : > { %v2858_v6 = vmul.f32 %v10470_v22, %v13313_v32  ;;  %v2859_v24 = vmul.f32 %v10470_v22, %v13315_v17  ;;  %v2860_v7 = vmul.f32 %v10470_v22, %v13317_v60  ;;  %v2861_v53 = vmul.f32 %v10470_v22, %v13319_v49 }
 0x360   : > { %v2862_v61 = vmul.f32 %v10470_v22, %v13321_v15  ;;  %v2863_v47 = vmul.f32 %v10470_v22, %v13323_v11  ;;  %v3334_v32 = vmul.f32 %v8646_v0, %v2851_v9  ;;  %v3336_v17 = vmul.f32 %v8650_v36, %v2853_v45 }
 0x361   : > { %v3337_v34 = vmul.f32 %v12768_v38, %v2854_v51  ;;  %v3338_v60 = vmul.f32 %v12769_v59, %v2855_v37  ;;  %v3339_v14 = vmul.f32 %v12770_v5, %v2856_v18  ;;  %v3340_v49 = vmul.f32 %v12771_v33, %v2857_v30 }
 0x362   : > { %v3341_v25 = vmul.f32 %v12772_v31, %v2858_v6  ;;  %v3342_v27 = vmul.f32 %v12773_v57, %v2859_v24  ;;  %v3343_v22 = vmul.f32 %v12774_v41, %v2860_v7  ;;  %v3344_v9 = vmul.f32 %v12775_v19, %v2861_v53 }
 0x363   : > { %v3345_v54 = vmul.f32 %v12776_v63, %v2862_v61  ;;  %v3346_v45 = vmul.f32 %v8673_v1, %v2863_v47  ;;  %v3817_v51 = vadd.f32 %v12777_v39, %v3334_v32  ;;  %v3818_v37 = vadd.f32 %v12778_v62, %v3335_v56  ;;  %v13324_v32 = vld [vmem:[#allocation268_spill] sm:$0xff]  ;;  %v13325_v56 = vld [vmem:[#allocation227_spill] sm:$0xff] }
 0x364   : > { %v3819_v18 = vadd.f32 %v12779_v40, %v3336_v17  ;;  %v3820_v30 = vadd.f32 %v12780_v20, %v3337_v34  ;;  %v3821_v6 = vadd.f32 %v8683_v16, %v3338_v60  ;;  %v3822_v24 = vadd.f32 %v8685_v52, %v3339_v14  ;;  %v13327_v60 = vld [vmem:[#allocation269_spill] sm:$0xff] }
 0x365   : > { %v3823_v7 = vadd.f32 %v12781_v12, %v3340_v49  ;;  %v3824_v53 = vadd.f32 %v8689_v42, %v3341_v25  ;;  %v3825_v15 = vadd.f32 %v8691_v48, %v3342_v27  ;;  %v3826_v61 = vadd.f32 %v8693_v55, %v3343_v22  ;;  %4233 = vst [vmem:[%s8815_s29 + $0x750] sm:$0xff] %v3817_v51  ;;  %v13329_v25 = vld [vmem:[#allocation270_spill] sm:$0xff]  ;;  %v13333_v51 = vld [vmem:[#allocation272_spill] sm:$0xff] }
 0x366   : > { %v3827_v35 = vadd.f32 %v8695_v10, %v3344_v9  ;;  %v3828_v11 = vadd.f32 %v12782_v4, %v3345_v54  ;;  %4234 = vst [vmem:[%s8815_s29 + $0x758] sm:$0xff] %v3818_v37  ;;  %4235 = vst [vmem:[%s8815_s29 + $0x760] sm:$0xff] %v3819_v18  ;;  %v3829_v47 = vadd.f32 %v12783_v29, %v3346_v45  ;;  %v13331_v9 = vld [vmem:[#allocation271_spill] sm:$0xff] }
 0x367   : > { %4236 = vst [vmem:[%s8815_s29 + $0x768] sm:$0xff] %v3820_v30  ;;  %4237 = vst [vmem:[%s8815_s29 + $0x770] sm:$0xff] %v3821_v6  ;;  %v13326_v17 = vsub.f32 %v13324_v32, %v13325_v56  ;;  %v13328_v14 = vsub.f32 %v13327_v60, %v13325_v56  ;;  %v13330_v27 = vsub.f32 %v13329_v25, %v13325_v56  ;;  %v13335_v30 = vld [vmem:[#allocation273_spill] sm:$0xff]  ;;  %v13341_v32 = vld [vmem:[#allocation276_spill] sm:$0xff] }
 0x368   : > { %4238 = vst [vmem:[%s8815_s29 + $0x778] sm:$0xff] %v3822_v24  ;;  %4239 = vst [vmem:[%s8815_s29 + $0x780] sm:$0xff] %v3823_v7  ;;  %v13332_v54 = vsub.f32 %v13331_v9, %v13325_v56  ;;  %v13334_v37 = vsub.f32 %v13333_v51, %v13325_v56  ;;  %v13336_v6 = vsub.f32 %v13335_v30, %v13325_v56  ;;  %v13337_v7 = vld [vmem:[#allocation274_spill] sm:$0xff]  ;;  %v13347_v51 = vld [vmem:[#allocation279_spill] sm:$0xff] }
 0x369   : > { %4240 = vst [vmem:[%s8815_s29 + $0x788] sm:$0xff] %v3824_v53  ;;  %v2890_v34 = vmul.f32 %v10482_v58, %v13326_v17  ;;  %v2891_v49 = vmul.f32 %v10482_v58, %v13328_v14  ;;  %v2892_v22 = vmul.f32 %v10482_v58, %v13330_v27  ;;  %4241 = vst [vmem:[%s8815_s29 + $0x790] sm:$0xff] %v3825_v15  ;;  %v13343_v14 = vld [vmem:[#allocation277_spill] sm:$0xff]  ;;  %v13345_v9 = vld [vmem:[#allocation278_spill] sm:$0xff] }
 0x36a   : > { %4242 = vst [vmem:[%s8815_s29 + $0x798] sm:$0xff] %v3826_v61  ;;  %4243 = vst [vmem:[%s8815_s29 + $0x7a0] sm:$0xff] %v3827_v35  ;;  %v2893_v45 = vmul.f32 %v10482_v58, %v13332_v54  ;;  %v2894_v18 = vmul.f32 %v10482_v58, %v13334_v37  ;;  %v2895_v24 = vmul.f32 %v10482_v58, %v13336_v6  ;;  %v13339_v61 = vld [vmem:[#allocation275_spill] sm:$0xff]  ;;  %v13349_v6 = vld [vmem:[#allocation280_spill] sm:$0xff] }
 0x36b   : > { %4244 = vst [vmem:[%s8815_s29 + $0x7a8] sm:$0xff] %v3828_v11  ;;  %v13338_v53 = vsub.f32 %v13337_v7, %v13325_v56  ;;  %4245 = vst.msk [vmem:[%s8815_s29 + $0x7b0] sm:$0xff] %vm610_vm0, %v3829_v47  ;;  %v13340_v35 = vsub.f32 %v13339_v61, %v13325_v56  ;;  %v13342_v17 = vsub.f32 %v13341_v32, %v13325_v56 }
 0x36c   : > { %v13344_v25 = vsub.f32 %v13343_v14, %v13325_v56  ;;  %v13346_v54 = vsub.f32 %v13345_v9, %v13325_v56  ;;  %v13348_v37 = vsub.f32 %v13347_v51, %v13325_v56  ;;  %v13350_v7 = vsub.f32 %v13349_v6, %v13325_v56 }
 0x36d   : > { %v2896_v15 = vmul.f32 %v10482_v58, %v13338_v53  ;;  %v2897_v11 = vmul.f32 %v10482_v58, %v13340_v35  ;;  %v2898_v60 = vmul.f32 %v10482_v58, %v13342_v17  ;;  %v3373_v61 = vmul.f32 %v8646_v0, %v2890_v34 }
 0x36e   : > { %v2899_v27 = vmul.f32 %v10482_v58, %v13344_v25  ;;  %v2900_v47 = vmul.f32 %v10482_v58, %v13346_v54  ;;  %v2901_v30 = vmul.f32 %v10482_v58, %v13348_v37  ;;  %v2902_v53 = vmul.f32 %v10482_v58, %v13350_v7 }
 0x36f   : > { %v3374_v35 = vmul.f32 %v8648_v13, %v2891_v49  ;;  %v3375_v32 = vmul.f32 %v8650_v36, %v2892_v22  ;;  %v3376_v17 = vmul.f32 %v12768_v38, %v2893_v45  ;;  %v3377_v14 = vmul.f32 %v12769_v59, %v2894_v18 }
 0x370   : > { %v3378_v25 = vmul.f32 %v12770_v5, %v2895_v24  ;;  %v3379_v9 = vmul.f32 %v12771_v33, %v2896_v15  ;;  %v3380_v54 = vmul.f32 %v12772_v31, %v2897_v11  ;;  %v3381_v56 = vmul.f32 %v12773_v57, %v2898_v60 }
 0x371   : > { %v3382_v58 = vmul.f32 %v12774_v41, %v2899_v27  ;;  %v3383_v34 = vmul.f32 %v12775_v19, %v2900_v47  ;;  %v3384_v49 = vmul.f32 %v12776_v63, %v2901_v30  ;;  %v3385_v22 = vmul.f32 %v8673_v1, %v2902_v53  ;;  %v13351_v53 = vld [vmem:[#allocation281_spill] sm:$0xff] }
 0x372   : > { %v3856_v45 = vadd.f32 %v12777_v39, %v3373_v61  ;;  %v3857_v18 = vadd.f32 %v12778_v62, %v3374_v35  ;;  %v3858_v24 = vadd.f32 %v12779_v40, %v3375_v32  ;;  %v3859_v15 = vadd.f32 %v12780_v20, %v3376_v17  ;;  %v13352_v61 = vld [vmem:[#allocation230_spill] sm:$0xff] }
 0x373   : > { %v3860_v11 = vadd.f32 %v8683_v16, %v3377_v14  ;;  %v3861_v60 = vadd.f32 %v8685_v52, %v3378_v25  ;;  %v3862_v27 = vadd.f32 %v12781_v12, %v3379_v9  ;;  %v3863_v47 = vadd.f32 %v8689_v42, %v3380_v54  ;;  %v13354_v17 = vld [vmem:[#allocation282_spill] sm:$0xff]  ;;  %v13356_v9 = vld [vmem:[#allocation283_spill] sm:$0xff] }
 0x374   : > { %v3864_v51 = vadd.f32 %v8691_v48, %v3381_v56  ;;  %4272 = vst [vmem:[%s8815_s29 + $0x888] sm:$0xff] %v3856_v45  ;;  %v3865_v37 = vadd.f32 %v8693_v55, %v3382_v58  ;;  %v3866_v30 = vadd.f32 %v8695_v10, %v3383_v34  ;;  %v3867_v6 = vadd.f32 %v12782_v4, %v3384_v49  ;;  %v13358_v58 = vld [vmem:[#allocation284_spill] sm:$0xff] }
 0x375   : > { %v3868_v7 = vadd.f32 %v12783_v29, %v3385_v22  ;;  %4273 = vst [vmem:[%s8815_s29 + $0x890] sm:$0xff] %v3857_v18  ;;  %4274 = vst [vmem:[%s8815_s29 + $0x898] sm:$0xff] %v3858_v24  ;;  %v13353_v35 = vsub.f32 %v13351_v53, %v13352_v61  ;;  %v13355_v14 = vsub.f32 %v13354_v17, %v13352_v61  ;;  %v13360_v22 = vld [vmem:[#allocation285_spill] sm:$0xff]  ;;  %v13362_v24 = vld [vmem:[#allocation287_spill] sm:$0xff] }
 0x376   : > { %4275 = vst [vmem:[%s8815_s29 + $0x8a0] sm:$0xff] %v3859_v15  ;;  %4276 = vst [vmem:[%s8815_s29 + $0x8a8] sm:$0xff] %v3860_v11  ;;  %v13357_v54 = vsub.f32 %v13356_v9, %v13352_v61  ;;  %v13359_v34 = vsub.f32 %v13358_v58, %v13352_v61  ;;  %v13361_v45 = vsub.f32 %v13360_v22, %v13352_v61  ;;  %v13372_v9 = vld [vmem:[#allocation292_spill] sm:$0xff] }
 0x377   : > { %4277 = vst [vmem:[%s8815_s29 + $0x8b0] sm:$0xff] %v3861_v60  ;;  %4278 = vst [vmem:[%s8815_s29 + $0x8b8] sm:$0xff] %v3862_v27  ;;  %v2877_v32 = vmul.f32 %v10488_v46, %v13353_v35  ;;  %v2878_v25 = vmul.f32 %v10488_v46, %v13355_v14  ;;  %v13363_v15 = vsub.f32 %v13362_v24, %v13352_v61  ;;  %v13364_v60 = vld [vmem:[#allocation288_spill] sm:$0xff]  ;;  %v13370_v35 = vld [vmem:[#allocation291_spill] sm:$0xff] }
 0x378   : > { %4279 = vst [vmem:[%s8815_s29 + $0x8c0] sm:$0xff] %v3863_v47  ;;  %4280 = vst [vmem:[%s8815_s29 + $0x8c8] sm:$0xff] %v3864_v51  ;;  %v2879_v56 = vmul.f32 %v10488_v46, %v13357_v54  ;;  %v2880_v49 = vmul.f32 %v10488_v46, %v13359_v34  ;;  %v2881_v18 = vmul.f32 %v10488_v46, %v13361_v45  ;;  %v13366_v51 = vld [vmem:[#allocation289_spill] sm:$0xff]  ;;  %v13376_v24 = vld [vmem:[#allocation295_spill] sm:$0xff] }
 0x379   : > { %4281 = vst [vmem:[%s8815_s29 + $0x8d0] sm:$0xff] %v3865_v37  ;;  %4282 = vst [vmem:[%s8815_s29 + $0x8d8] sm:$0xff] %v3866_v30  ;;  %v2882_v11 = vmul.f32 %v10488_v46, %v13363_v15  ;;  %v13365_v27 = vsub.f32 %v13364_v60, %v13352_v61  ;;  %v13367_v37 = vsub.f32 %v13366_v51, %v13352_v61  ;;  %v13374_v34 = vld [vmem:[#allocation293_spill] sm:$0xff] }
 0x37a   : > { %4283 = vst [vmem:[%s8815_s29 + $0x8e0] sm:$0xff] %v3867_v6  ;;  %4284 = vst.msk [vmem:[%s8815_s29 + $0x8e8] sm:$0xff] %vm610_vm0, %v3868_v7  ;;  %v13368_v6 = vld [vmem:[#allocation290_spill] sm:$0xff]  ;;  %v13371_v17 = vsub.f32 %v13370_v35, %v13352_v61  ;;  %v13373_v54 = vsub.f32 %v13372_v9, %v13352_v61  ;;  %v13375_v22 = vsub.f32 %v13374_v34, %v13352_v61 }
 0x37b   : > { %v2883_v47 = vmul.f32 %v10488_v46, %v13365_v27  ;;  %v2884_v30 = vmul.f32 %v10488_v46, %v13367_v37  ;;  %v13369_v7 = vsub.f32 %v13368_v6, %v13352_v61  ;;  %v13377_v15 = vsub.f32 %v13376_v24, %v13352_v61 }
 0x37c   : > { %v2886_v14 = vmul.f32 %v10488_v46, %v13371_v17  ;;  %v2887_v58 = vmul.f32 %v10488_v46, %v13373_v54  ;;  %v2888_v45 = vmul.f32 %v10488_v46, %v13375_v22  ;;  %v3360_v27 = vmul.f32 %v8646_v0, %v2877_v32 }
 0x37d   : > { %v2885_v53 = vmul.f32 %v10488_v46, %v13369_v7  ;;  %v2889_v60 = vmul.f32 %v10488_v46, %v13377_v15  ;;  %v3361_v51 = vmul.f32 %v8648_v13, %v2878_v25  ;;  %v3362_v37 = vmul.f32 %v8650_v36, %v2879_v56  ;;  %v13378_v15 = vld [vmem:[#allocation299_spill] sm:$0xff] }
 0x37e   : > { %v3363_v6 = vmul.f32 %v12768_v38, %v2880_v49  ;;  %v3364_v7 = vmul.f32 %v12769_v59, %v2881_v18  ;;  %v3365_v35 = vmul.f32 %v12770_v5, %v2882_v11  ;;  %v3366_v17 = vmul.f32 %v12771_v33, %v2883_v47 }
 0x37f   : > { %v3367_v9 = vmul.f32 %v12772_v31, %v2884_v30  ;;  %v3368_v61 = vmul.f32 %v12773_v57, %v2885_v53  ;;  %v3369_v46 = vmul.f32 %v12774_v41, %v2886_v14  ;;  %v3370_v32 = vmul.f32 %v12775_v19, %v2887_v58 }
 0x380   : > { %v3371_v25 = vmul.f32 %v12776_v63, %v2888_v45  ;;  %v3372_v56 = vmul.f32 %v8673_v1, %v2889_v60  ;;  %v3843_v49 = vadd.f32 %v12777_v39, %v3360_v27  ;;  %v3844_v18 = vadd.f32 %v12778_v62, %v3361_v51  ;;  %v13379_v60 = vld [vmem:[#allocation286_spill] sm:$0xff] }
 0x381   : > { %v3845_v11 = vadd.f32 %v12779_v40, %v3362_v37  ;;  %v3846_v47 = vadd.f32 %v12780_v20, %v3363_v6  ;;  %v3847_v30 = vadd.f32 %v8683_v16, %v3364_v7  ;;  %v3848_v53 = vadd.f32 %v8685_v52, %v3365_v35  ;;  %v13381_v37 = vld [vmem:[#allocation300_spill] sm:$0xff]  ;;  %v13383_v35 = vld [vmem:[#allocation302_spill] sm:$0xff] }
 0x382   : > { %v3849_v14 = vadd.f32 %v12781_v12, %v3366_v17  ;;  %v3850_v54 = vadd.f32 %v8689_v42, %v3367_v9  ;;  %v3851_v58 = vadd.f32 %v8691_v48, %v3368_v61  ;;  %v3852_v34 = vadd.f32 %v8693_v55, %v3369_v46  ;;  %4259 = vst [vmem:[%s8815_s29 + $0x820] sm:$0xff] %v3843_v49  ;;  %v13385_v61 = vld [vmem:[#allocation303_spill] sm:$0xff] }
 0x383   : > { %4260 = vst [vmem:[%s8815_s29 + $0x828] sm:$0xff] %v3844_v18  ;;  %v3853_v22 = vadd.f32 %v8695_v10, %v3370_v32  ;;  %v3854_v45 = vadd.f32 %v12782_v4, %v3371_v25  ;;  %v3855_v24 = vadd.f32 %v12783_v29, %v3372_v56  ;;  %4261 = vst [vmem:[%s8815_s29 + $0x830] sm:$0xff] %v3845_v11  ;;  %v13387_v25 = vld [vmem:[#allocation304_spill] sm:$0xff]  ;;  %v13389_v18 = vld [vmem:[#allocation305_spill] sm:$0xff] }
 0x384   : > { %4262 = vst [vmem:[%s8815_s29 + $0x838] sm:$0xff] %v3846_v47  ;;  %4263 = vst [vmem:[%s8815_s29 + $0x840] sm:$0xff] %v3847_v30  ;;  %v13380_v27 = vsub.f32 %v13378_v15, %v13379_v60  ;;  %v13382_v6 = vsub.f32 %v13381_v37, %v13379_v60  ;;  %v13384_v17 = vsub.f32 %v13383_v35, %v13379_v60  ;;  %v13391_v30 = vld [vmem:[#allocation306_spill] sm:$0xff]  ;;  %v13395_v15 = vld [vmem:[#allocation308_spill] sm:$0xff] }
 0x385   : > { %4264 = vst [vmem:[%s8815_s29 + $0x848] sm:$0xff] %v3848_v53  ;;  %4265 = vst [vmem:[%s8815_s29 + $0x850] sm:$0xff] %v3849_v14  ;;  %v13386_v46 = vsub.f32 %v13385_v61, %v13379_v60  ;;  %v13388_v56 = vsub.f32 %v13387_v25, %v13379_v60  ;;  %v13390_v11 = vsub.f32 %v13389_v18, %v13379_v60  ;;  %v13401_v61 = vld [vmem:[#allocation311_spill] sm:$0xff] }
 0x386   : > { %v2916_v51 = vmul.f32 %v10494_v26, %v13380_v27  ;;  %4266 = vst [vmem:[%s8815_s29 + $0x858] sm:$0xff] %v3850_v54  ;;  %4267 = vst [vmem:[%s8815_s29 + $0x860] sm:$0xff] %v3851_v58  ;;  %v2917_v7 = vmul.f32 %v10494_v26, %v13382_v6  ;;  %v2918_v9 = vmul.f32 %v10494_v26, %v13384_v17  ;;  %v13393_v54 = vld [vmem:[#allocation307_spill] sm:$0xff]  ;;  %v13399_v6 = vld [vmem:[#allocation310_spill] sm:$0xff] }
 0x387   : > { %4268 = vst [vmem:[%s8815_s29 + $0x868] sm:$0xff] %v3852_v34  ;;  %v2919_v32 = vmul.f32 %v10494_v26, %v13386_v46  ;;  %v2920_v49 = vmul.f32 %v10494_v26, %v13388_v56  ;;  %4269 = vst [vmem:[%s8815_s29 + $0x870] sm:$0xff] %v3853_v22  ;;  %v2921_v47 = vmul.f32 %v10494_v26, %v13390_v11  ;;  %v13403_v56 = vld [vmem:[#allocation312_spill] sm:$0xff] }
 0x388   : > { %4270 = vst [vmem:[%s8815_s29 + $0x878] sm:$0xff] %v3854_v45  ;;  %4271 = vst.msk [vmem:[%s8815_s29 + $0x880] sm:$0xff] %vm610_vm0, %v3855_v24  ;;  %v13392_v53 = vsub.f32 %v13391_v30, %v13379_v60  ;;  %v13394_v58 = vsub.f32 %v13393_v54, %v13379_v60  ;;  %v13396_v22 = vsub.f32 %v13395_v15, %v13379_v60  ;;  %v13397_v24 = vld [vmem:[#allocation309_spill] sm:$0xff] }
 0x389   : > { %v13398_v27 = vsub.f32 %v13397_v24, %v13379_v60  ;;  %v13400_v35 = vsub.f32 %v13399_v6, %v13379_v60  ;;  %v13402_v46 = vsub.f32 %v13401_v61, %v13379_v60  ;;  %v13404_v18 = vsub.f32 %v13403_v56, %v13379_v60  ;;  %v13405_v56 = vld [vmem:[#allocation313_spill] sm:$0xff] }
 0x38a   : > { %v2922_v14 = vmul.f32 %v10494_v26, %v13392_v53  ;;  %v2923_v34 = vmul.f32 %v10494_v26, %v13394_v58  ;;  %v2924_v45 = vmul.f32 %v10494_v26, %v13396_v22  ;;  %v3399_v30 = vmul.f32 %v8646_v0, %v2916_v51 }
 0x38b   : > { %v2925_v37 = vmul.f32 %v10494_v26, %v13398_v27  ;;  %v2926_v17 = vmul.f32 %v10494_v26, %v13400_v35  ;;  %v2927_v25 = vmul.f32 %v10494_v26, %v13402_v46  ;;  %v2928_v11 = vmul.f32 %v10494_v26, %v13404_v18 }
 0x38c   : > { %v3400_v53 = vmul.f32 %v8648_v13, %v2917_v7  ;;  %v3401_v54 = vmul.f32 %v8650_v36, %v2918_v9  ;;  %v3402_v58 = vmul.f32 %v12768_v38, %v2919_v32  ;;  %v3403_v15 = vmul.f32 %v12769_v59, %v2920_v49 }
 0x38d   : > { %v3404_v22 = vmul.f32 %v12770_v5, %v2921_v47  ;;  %v3405_v24 = vmul.f32 %v12771_v33, %v2922_v14  ;;  %v3406_v27 = vmul.f32 %v12772_v31, %v2923_v34  ;;  %v3407_v60 = vmul.f32 %v12773_v57, %v2924_v45 }
 0x38e   : > { %v3408_v26 = vmul.f32 %v12774_v41, %v2925_v37  ;;  %v3409_v51 = vmul.f32 %v12775_v19, %v2926_v17  ;;  %v3410_v7 = vmul.f32 %v12776_v63, %v2927_v25  ;;  %v3411_v9 = vmul.f32 %v8673_v1, %v2928_v11 }
 0x38f   : > { %v3882_v32 = vadd.f32 %v12777_v39, %v3399_v30  ;;  %v3883_v49 = vadd.f32 %v12778_v62, %v3400_v53  ;;  %v3884_v47 = vadd.f32 %v12779_v40, %v3401_v54  ;;  %v3885_v14 = vadd.f32 %v12780_v20, %v3402_v58  ;;  %v13407_v30 = vld [vmem:[#allocation314_spill] sm:$0xff]  ;;  %v13409_v58 = vld [vmem:[#allocation315_spill] sm:$0xff] }
 0x390   : > { %v3886_v34 = vadd.f32 %v8683_v16, %v3403_v15  ;;  %v3887_v45 = vadd.f32 %v8685_v52, %v3404_v22  ;;  %v3888_v37 = vadd.f32 %v12781_v12, %v3405_v24  ;;  %v3889_v6 = vadd.f32 %v8689_v42, %v3406_v27  ;;  %v13411_v24 = vld [vmem:[#allocation316_spill] sm:$0xff] }
 0x391   : > { %v3890_v35 = vadd.f32 %v8691_v48, %v3407_v60  ;;  %v3891_v17 = vadd.f32 %v8693_v55, %v3408_v26  ;;  %v3892_v61 = vadd.f32 %v8695_v10, %v3409_v51  ;;  %4298 = vst [vmem:[%s8815_s29 + $0x958] sm:$0xff] %v3882_v32  ;;  %4299 = vst [vmem:[%s8815_s29 + $0x960] sm:$0xff] %v3883_v49  ;;  %v13413_v26 = vld [vmem:[#allocation317_spill] sm:$0xff] }
 0x392   : > { %4300 = vst [vmem:[%s8815_s29 + $0x968] sm:$0xff] %v3884_v47  ;;  %v3893_v46 = vadd.f32 %v12782_v4, %v3410_v7  ;;  %v3894_v25 = vadd.f32 %v12783_v29, %v3411_v9  ;;  %4301 = vst [vmem:[%s8815_s29 + $0x970] sm:$0xff] %v3885_v14  ;;  %v13406_v18 = vsub.f32 %v13405_v56, %v13234_v44  ;;  %v13415_v9 = vld [vmem:[#allocation318_spill] sm:$0xff]  ;;  %v13417_v47 = vld [vmem:[#allocation319_spill] sm:$0xff] }
 0x393   : > { %4302 = vst [vmem:[%s8815_s29 + $0x978] sm:$0xff] %v3886_v34  ;;  %4303 = vst [vmem:[%s8815_s29 + $0x980] sm:$0xff] %v3887_v45  ;;  %v13408_v53 = vsub.f32 %v13407_v30, %v13234_v44  ;;  %v13410_v15 = vsub.f32 %v13409_v58, %v13234_v44  ;;  %v13412_v27 = vsub.f32 %v13411_v24, %v13234_v44  ;;  %v13419_v45 = vld [vmem:[#allocation320_spill] sm:$0xff]  ;;  %v13423_v56 = vld [vmem:[#allocation322_spill] sm:$0xff] }
 0x394   : > { %4304 = vst [vmem:[%s8815_s29 + $0x988] sm:$0xff] %v3888_v37  ;;  %v2903_v11 = vmul.f32 %v10506_v2, %v13406_v18  ;;  %4305 = vst [vmem:[%s8815_s29 + $0x990] sm:$0xff] %v3889_v6  ;;  %v13414_v51 = vsub.f32 %v13413_v26, %v13234_v44  ;;  %v13416_v32 = vsub.f32 %v13415_v9, %v13234_v44  ;;  %v13425_v18 = vld [vmem:[#allocation323_spill] sm:$0xff]  ;;  %v13427_v58 = vld [vmem:[#allocation324_spill] sm:$0xff] }
 0x395   : > { %v2904_v54 = vmul.f32 %v10506_v2, %v13408_v53  ;;  %4306 = vst [vmem:[%s8815_s29 + $0x998] sm:$0xff] %v3890_v35  ;;  %4307 = vst [vmem:[%s8815_s29 + $0x9a0] sm:$0xff] %v3891_v17  ;;  %v2905_v22 = vmul.f32 %v10506_v2, %v13410_v15  ;;  %v2906_v60 = vmul.f32 %v10506_v2, %v13412_v27  ;;  %v13421_v35 = vld [vmem:[#allocation321_spill] sm:$0xff] }
 0x396   : > { %4308 = vst [vmem:[%s8815_s29 + $0x9a8] sm:$0xff] %v3892_v61  ;;  %v2907_v7 = vmul.f32 %v10506_v2, %v13414_v51  ;;  %v2908_v49 = vmul.f32 %v10506_v2, %v13416_v32  ;;  %4309 = vst [vmem:[%s8815_s29 + $0x9b0] sm:$0xff] %v3893_v46  ;;  %v13418_v14 = vsub.f32 %v13417_v47, %v13234_v44  ;;  %v13429_v27 = vld [vmem:[#allocation325_spill] sm:$0xff] }
 0x397   : > { %4310 = vst.msk [vmem:[%s8815_s29 + $0x9b8] sm:$0xff] %vm610_vm0, %v3894_v25  ;;  %v13420_v37 = vsub.f32 %v13419_v45, %v13234_v44  ;;  %v13422_v17 = vsub.f32 %v13421_v35, %v13234_v44  ;;  %v13424_v46 = vsub.f32 %v13423_v56, %v13234_v44  ;;  %v13426_v30 = vsub.f32 %v13425_v18, %v13234_v44 }
 0x398   : > { %v2909_v34 = vmul.f32 %v10506_v2, %v13418_v14  ;;  %v13428_v15 = vsub.f32 %v13427_v58, %v13234_v44  ;;  %v13430_v26 = vsub.f32 %v13429_v27, %v13234_v44  ;;  %v3386_v9 = vmul.f32 %v8646_v0, %v2903_v11  ;;  %v2008_v58 = vpop.xlane.xlu1 %2007 }
 0x399   : > { %v2910_v6 = vmul.f32 %v10506_v2, %v13420_v37  ;;  %v2911_v61 = vmul.f32 %v10506_v2, %v13422_v17  ;;  %v2912_v25 = vmul.f32 %v10506_v2, %v13424_v46  ;;  %v2913_v53 = vmul.f32 %v10506_v2, %v13426_v30 }
 0x39a   : > { %v2914_v24 = vmul.f32 %v10506_v2, %v13428_v15  ;;  %v2915_v51 = vmul.f32 %v10506_v2, %v13430_v26  ;;  %v3387_v32 = vmul.f32 %v8648_v13, %v2904_v54  ;;  %v3388_v47 = vmul.f32 %v8650_v36, %v2905_v22  ;;  %v11065_v15 = vld [vmem:[%s5394_s18 + $0xbb0] sm:$0xff] }
 0x39b   : > { %v3389_v14 = vmul.f32 %v12768_v38, %v2906_v60  ;;  %v3390_v45 = vmul.f32 %v12769_v59, %v2907_v7  ;;  %v3391_v37 = vmul.f32 %v12770_v5, %v2908_v49  ;;  %v3392_v35 = vmul.f32 %v12771_v33, %v2909_v34 }
 0x39c   : > { %v3393_v17 = vmul.f32 %v12772_v31, %v2910_v6  ;;  %v3394_v44 = vmul.f32 %v12773_v57, %v2911_v61  ;;  %v3395_v2 = vmul.f32 %v12774_v41, %v2912_v25  ;;  %v3396_v11 = vmul.f32 %v12775_v19, %v2913_v53 }
 0x39d   : > { %v3397_v54 = vmul.f32 %v12776_v63, %v2914_v24  ;;  %v3398_v22 = vmul.f32 %v8673_v1, %v2915_v51  ;;  %v3869_v60 = vadd.f32 %v12777_v39, %v3386_v9  ;;  %v3870_v7 = vadd.f32 %v12778_v62, %v3387_v32  ;;  %v1993_v9 = vpop.xlane.xlu0 %1992  ;;  %v11079_v32 = vld [vmem:[%s5394_s18 + $0xbb8] sm:$0xff]  ;;  %v13460_v24 = vld [vmem:[#allocation331_spill] sm:$0xff] }
 0x39e   : > { %v3871_v49 = vadd.f32 %v12779_v40, %v3388_v47  ;;  %v3872_v34 = vadd.f32 %v12780_v20, %v3389_v14  ;;  %v3873_v6 = vadd.f32 %v8683_v16, %v3390_v45  ;;  %v3874_v61 = vadd.f32 %v8685_v52, %v3391_v37  ;;  %v13434_v37 = vld [vmem:[#allocation407_spill] sm:$0xff] }
 0x39f   : > { %v3875_v56 = vadd.f32 %v12781_v12, %v3392_v35  ;;  %v3876_v46 = vadd.f32 %v8689_v42, %v3393_v17  ;;  %v3877_v25 = vadd.f32 %v8691_v48, %v3394_v44  ;;  %v3878_v18 = vadd.f32 %v8693_v55, %v3395_v2  ;;  %4285 = vst [vmem:[%s8815_s29 + $0x8f0] sm:$0xff] %v3869_v60  ;;  %v13435_v44 = vld [vmem:[#allocation380_spill] sm:$0xff] }
 0x3a0   : > { %v3879_v30 = vadd.f32 %v8695_v10, %v3396_v11  ;;  %v3880_v53 = vadd.f32 %v12782_v4, %v3397_v54  ;;  %4286 = vst [vmem:[%s8815_s29 + $0x8f8] sm:$0xff] %v3870_v7  ;;  %4287 = vst [vmem:[%s8815_s29 + $0x900] sm:$0xff] %v3871_v49  ;;  %v3881_v27 = vadd.f32 %v12783_v29, %v3398_v22  ;;  %v2161_v14 = vadd.f32 1e-05, %v10418_v8  ;;  %v13436_v8 = vld [vmem:[#allocation381_spill] sm:$0xff] }
 0x3a1   : > { %4288 = vst [vmem:[%s8815_s29 + $0x908] sm:$0xff] %v3872_v34  ;;  %4289 = vst [vmem:[%s8815_s29 + $0x910] sm:$0xff] %v3873_v6  ;;  %v13431_v26 = vsub.f32 %v10410_v23, %v10408_v43  ;;  %v13432_v43 = vld [vmem:[#allocation408_spill] sm:$0xff]  ;;  %v13433_v23 = vld [vmem:[#allocation409_spill] sm:$0xff]  ;;  %v2164_v35 = vadd.f32 1e-05, %v13434_v37  ;;  %v2072_v2 = vmul.f32 %v13435_v44, %v13435_v44  ;;  %v2071_v60 = vmul.f32 %v13436_v8, %v13436_v8 }
 0x3a2   : > { %4290 = vst [vmem:[%s8815_s29 + $0x918] sm:$0xff] %v3874_v61  ;;  %4291 = vst [vmem:[%s8815_s29 + $0x920] sm:$0xff] %v3875_v56  ;;  %v2101_v45 = vsub.f32 %v13433_v23, %v13432_v43  ;;  %v2040_v11 = vmul.f32 0.000625, %v2008_v58  ;;  %v2134_v54 = vmax.f32 %v2102_v3, 0.0  ;;  %v11105_v49 = vld [vmem:[%s5394_s18 + $0xc98] sm:$0xff]  ;;  %4543 = vrsqrt.f32 %v2161_v14 }
 0x3a3   : > { %4292 = vst [vmem:[%s8815_s29 + $0x928] sm:$0xff] %v3876_v46  ;;  %v2131_v51 = vmax.f32 %v13431_v26, 0.0  ;;  %4293 = vst [vmem:[%s8815_s29 + $0x930] sm:$0xff] %v3877_v25  ;;  %v2039_v21 = vmul.f32 0.000625, %v1993_v9  ;;  %v11110_v6 = vld [vmem:[%s5394_s18 + $0xca0] sm:$0xff]  ;;  %4545 = vrsqrt.f32 %v2164_v35 }
 0x3a4   : > { %4294 = vst [vmem:[%s8815_s29 + $0x938] sm:$0xff] %v3878_v18  ;;  %4295 = vst [vmem:[%s8815_s29 + $0x940] sm:$0xff] %v3879_v30  ;;  %v2133_v22 = vmax.f32 %v2101_v45, 0.0  ;;  %v2104_v56 = vsub.f32 %v2040_v11, %v2072_v2  ;;  %v2166_v46 = vadd.f32 1e-05, %v2134_v54  ;;  %v11115_v30 = vld [vmem:[%s5394_s18 + $0xca8] sm:$0xff] }
 0x3a5   : > { %4296 = vst [vmem:[%s8815_s29 + $0x948] sm:$0xff] %v3880_v53  ;;  %4297 = vst.msk [vmem:[%s8815_s29 + $0x950] sm:$0xff] %vm610_vm0, %v3881_v27  ;;  %v2163_v17 = vadd.f32 1e-05, %v2131_v51  ;;  %v2103_v18 = vsub.f32 %v2039_v21, %v2071_v60  ;;  %v11120_v58 = vld [vmem:[%s5394_s18 + $0xcb0] sm:$0xff]  ;;  %v11125_v51 = vld [vmem:[%s5394_s18 + $0xcb8] sm:$0xff] }
 0x3a6   : > { %v2165_v25 = vadd.f32 1e-05, %v2133_v22  ;;  %13437 = vst [vmem:[#allocation410_spill] sm:$0xff] %v11115_v30  ;;  %13438 = vst [vmem:[#allocation411_spill] sm:$0xff] %v11120_v58  ;;  %v2136_v26 = vmax.f32 %v2104_v56, 0.0  ;;  %v11130_v14 = vld [vmem:[%s5394_s18 + $0xcc0] sm:$0xff]  ;;  %v4542_v56 = vpop.eup %4541 }
 0x3a7   : > { %13439 = vst [vmem:[#allocation412_spill] sm:$0xff] %v11125_v51  ;;  %13440 = vst [vmem:[#allocation413_spill] sm:$0xff] %v11130_v14  ;;  %4547 = vrsqrt.f32 %v2163_v17  ;;  %v2135_v43 = vmax.f32 %v2103_v18, 0.0  ;;  %v11135_v23 = vld [vmem:[%s5394_s18 + $0xcc8] sm:$0xff]  ;;  %v11140_v37 = vld [vmem:[%s5394_s18 + $0xcd0] sm:$0xff] }
 0x3a8   : > { %13441 = vst [vmem:[#allocation414_spill] sm:$0xff] %v11135_v23  ;;  %13442 = vst [vmem:[#allocation415_spill] sm:$0xff] %v11140_v37  ;;  %4549 = vrsqrt.f32 %v2166_v46  ;;  %v2168_v2 = vadd.f32 1e-05, %v2136_v26  ;;  %v11145_v11 = vld [vmem:[%s5394_s18 + $0xcd8] sm:$0xff]  ;;  %v11150_v54 = vld [vmem:[%s5394_s18 + $0xce0] sm:$0xff] }
 0x3a9   : > { %13443 = vst [vmem:[#allocation416_spill] sm:$0xff] %v11145_v11  ;;  %13444 = vst [vmem:[#allocation417_spill] sm:$0xff] %v11150_v54  ;;  %v11155_v60 = vld [vmem:[%s5394_s18 + $0xce8] sm:$0xff]  ;;  %4551 = vrsqrt.f32 %v2165_v25  ;;  %v11160_v18 = vld [vmem:[%s5394_s18 + $0xcf0] sm:$0xff]  ;;  %v11169_v35 = vadd.f32 1e-05, %v2135_v43 }
 0x3aa   : > { %13445 = vst [vmem:[#allocation418_spill] sm:$0xff] %v11155_v60  ;;  %13446 = vst [vmem:[#allocation419_spill] sm:$0xff] %v11160_v18  ;;  %v11165_v26 = vld [vmem:[%s5394_s18 + $0xcf8] sm:$0xff]  ;;  %4553 = vrsqrt.f32 %v2168_v2  ;;  %v13449_v22 = vld [vmem:[#allocation326_spill] sm:$0xff] }
 0x3ab   : > { %13447 = vst [vmem:[#allocation18_spill] sm:$0xff] %v11165_v26  ;;  %13448 = vst [vmem:[#allocation3_spill] sm:$0xff] %v11169_v35  ;;  %v13450_v45 = vld [vmem:[#allocation296_spill] sm:$0xff]  ;;  %v13452_v21 = vld [vmem:[#allocation327_spill] sm:$0xff] }
 0x3ac   : > { %v13451_v3 = vsub.f32 %v13449_v22, %v13450_v45  ;;  %v13453_v25 = vsub.f32 %v13452_v21, %v13450_v45  ;;  %v13454_v53 = vld [vmem:[#allocation328_spill] sm:$0xff]  ;;  %v13456_v34 = vld [vmem:[#allocation329_spill] sm:$0xff]  ;;  %v13458_v17 = vld [vmem:[#allocation330_spill] sm:$0xff]  ;;  %v13461_v22 = vsub.f32 %v13460_v24, %v13450_v45 }
 0x3ad   : > { %v13455_v61 = vsub.f32 %v13454_v53, %v13450_v45  ;;  %v13457_v7 = vsub.f32 %v13456_v34, %v13450_v45  ;;  %v13459_v43 = vsub.f32 %v13458_v17, %v13450_v45  ;;  %v13462_v8 = vld [vmem:[#allocation332_spill] sm:$0xff]  ;;  %v13464_v35 = vld [vmem:[#allocation333_spill] sm:$0xff]  ;;  %v13466_v26 = vld [vmem:[#allocation334_spill] sm:$0xff] }
 0x3ae   : > { %v2942_v9 = vmul.f32 %v4542_v56, %v13451_v3  ;;  %v2943_v27 = vmul.f32 %v4542_v56, %v13453_v25  ;;  %v2947_v3 = vmul.f32 %v4542_v56, %v13461_v22  ;;  %v13463_v21 = vsub.f32 %v13462_v8, %v13450_v45  ;;  %v13468_v18 = vld [vmem:[#allocation335_spill] sm:$0xff]  ;;  %v13470_v60 = vld [vmem:[#allocation336_spill] sm:$0xff]  ;;  %v13472_v54 = vld [vmem:[#allocation337_spill] sm:$0xff] }
 0x3af   : > { %v2944_v46 = vmul.f32 %v4542_v56, %v13455_v61  ;;  %v2945_v47 = vmul.f32 %v4542_v56, %v13457_v7  ;;  %v2946_v2 = vmul.f32 %v4542_v56, %v13459_v43  ;;  %v13465_v53 = vsub.f32 %v13464_v35, %v13450_v45  ;;  %v13474_v11 = vld [vmem:[#allocation338_spill] sm:$0xff]  ;;  %v13497_v14 = vld [vmem:[#allocation349_spill] sm:$0xff]  ;;  %v13501_v58 = vld [vmem:[#allocation351_spill] sm:$0xff] }
 0x3b0   : > { %v2948_v25 = vmul.f32 %v4542_v56, %v13463_v21  ;;  %v13467_v34 = vsub.f32 %v13466_v26, %v13450_v45  ;;  %v13469_v17 = vsub.f32 %v13468_v18, %v13450_v45  ;;  %v13471_v24 = vsub.f32 %v13470_v60, %v13450_v45  ;;  %v4544_v18 = vpop.eup %4543  ;;  %v13499_v51 = vld [vmem:[#allocation350_spill] sm:$0xff] }
 0x3b1   : > { %v2949_v61 = vmul.f32 %v4542_v56, %v13465_v53  ;;  %v13473_v8 = vsub.f32 %v13472_v54, %v13450_v45  ;;  %v13475_v35 = vsub.f32 %v13474_v11, %v13450_v45  ;;  %v3425_v37 = vmul.f32 %v8646_v0, %v2942_v9 }
 0x3b2   : > { %v2950_v7 = vmul.f32 %v4542_v56, %v13467_v34  ;;  %v2951_v43 = vmul.f32 %v4542_v56, %v13469_v17  ;;  %v2952_v22 = vmul.f32 %v4542_v56, %v13471_v24  ;;  %v3426_v26 = vmul.f32 %v8648_v13, %v2943_v27 }
 0x3b3   : > { %v2953_v21 = vmul.f32 %v4542_v56, %v13473_v8  ;;  %v2954_v53 = vmul.f32 %v4542_v56, %v13475_v35  ;;  %v3427_v34 = vmul.f32 %v8650_v36, %v2944_v46  ;;  %v3428_v17 = vmul.f32 %v12768_v38, %v2945_v47  ;;  %v11217_v8 = vpop.eup %4545 }
 0x3b4   : > { %v3429_v60 = vmul.f32 %v12769_v59, %v2946_v2  ;;  %v3430_v24 = vmul.f32 %v12770_v5, %v2947_v3  ;;  %v3431_v54 = vmul.f32 %v12771_v33, %v2948_v25  ;;  %v3432_v45 = vmul.f32 %v12772_v31, %v2949_v61  ;;  %v11223_v56 = vpop.eup %4547 }
 0x3b5   : > { %v3433_v11 = vmul.f32 %v12773_v57, %v2950_v7  ;;  %v3434_v9 = vmul.f32 %v12774_v41, %v2951_v43  ;;  %v3435_v27 = vmul.f32 %v12775_v19, %v2952_v22  ;;  %v3436_v47 = vmul.f32 %v12776_v63, %v2953_v21  ;;  %v11229_v25 = vpop.eup %4549 }
 0x3b6   : > { %v3437_v46 = vmul.f32 %v8673_v1, %v2954_v53  ;;  %v3908_v2 = vadd.f32 %v12777_v39, %v3425_v37  ;;  %v3909_v3 = vadd.f32 %v12778_v62, %v3426_v26  ;;  %v3910_v61 = vadd.f32 %v12779_v40, %v3427_v34  ;;  %v11235_v21 = vpop.eup %4551 }
 0x3b7   : > { %v3911_v7 = vadd.f32 %v12780_v20, %v3428_v17  ;;  %v3912_v43 = vadd.f32 %v8683_v16, %v3429_v60  ;;  %v3913_v22 = vadd.f32 %v8685_v52, %v3430_v24  ;;  %v3914_v37 = vadd.f32 %v12781_v12, %v3431_v54  ;;  %v11243_v34 = vpop.eup %4553  ;;  %v13476_v54 = vld [vmem:[#allocation339_spill] sm:$0xff] }
 0x3b8   : > { %v3915_v35 = vadd.f32 %v8689_v42, %v3432_v45  ;;  %v3916_v53 = vadd.f32 %v8691_v48, %v3433_v11  ;;  %v3917_v26 = vadd.f32 %v8693_v55, %v3434_v9  ;;  %4324 = vst [vmem:[%s8815_s29 + $0xa28] sm:$0xff] %v3908_v2  ;;  %4325 = vst [vmem:[%s8815_s29 + $0xa30] sm:$0xff] %v3909_v3  ;;  %v13477_v45 = vld [vmem:[#allocation297_spill] sm:$0xff] }
 0x3b9   : > { %v3918_v17 = vadd.f32 %v8695_v10, %v3435_v27  ;;  %v3919_v60 = vadd.f32 %v12782_v4, %v3436_v47  ;;  %v3920_v24 = vadd.f32 %v12783_v29, %v3437_v46  ;;  %4326 = vst [vmem:[%s8815_s29 + $0xa38] sm:$0xff] %v3910_v61  ;;  %4327 = vst [vmem:[%s8815_s29 + $0xa40] sm:$0xff] %v3911_v7  ;;  %v13479_v27 = vld [vmem:[#allocation340_spill] sm:$0xff]  ;;  %v13481_v3 = vld [vmem:[#allocation341_spill] sm:$0xff] }
 0x3ba   : > { %4328 = vst [vmem:[%s8815_s29 + $0xa48] sm:$0xff] %v3912_v43  ;;  %4329 = vst [vmem:[%s8815_s29 + $0xa50] sm:$0xff] %v3913_v22  ;;  %v13478_v11 = vsub.f32 %v13476_v54, %v13477_v45  ;;  %v13480_v2 = vsub.f32 %v13479_v27, %v13477_v45  ;;  %v13482_v46 = vsub.f32 %v13481_v3, %v13477_v45  ;;  %v13483_v61 = vld [vmem:[#allocation342_spill] sm:$0xff]  ;;  %v13485_v22 = vld [vmem:[#allocation343_spill] sm:$0xff] }
 0x3bb   : > { %4330 = vst [vmem:[%s8815_s29 + $0xa58] sm:$0xff] %v3914_v37  ;;  %4331 = vst [vmem:[%s8815_s29 + $0xa60] sm:$0xff] %v3915_v35  ;;  %v13484_v7 = vsub.f32 %v13483_v61, %v13477_v45  ;;  %v13486_v54 = vsub.f32 %v13485_v22, %v13477_v45  ;;  %v13487_v37 = vld [vmem:[#allocation344_spill] sm:$0xff]  ;;  %v13491_v3 = vld [vmem:[#allocation346_spill] sm:$0xff] }
 0x3bc   : > { %v2929_v9 = vmul.f32 %v4544_v18, %v13478_v11  ;;  %4332 = vst [vmem:[%s8815_s29 + $0xa68] sm:$0xff] %v3916_v53  ;;  %4333 = vst [vmem:[%s8815_s29 + $0xa70] sm:$0xff] %v3917_v26  ;;  %v2930_v47 = vmul.f32 %v4544_v18, %v13480_v2  ;;  %v2931_v23 = vmul.f32 %v4544_v18, %v13482_v46  ;;  %v13489_v26 = vld [vmem:[#allocation345_spill] sm:$0xff] }
 0x3bd   : > { %v2932_v43 = vmul.f32 %v4544_v18, %v13484_v7  ;;  %v2933_v11 = vmul.f32 %v4544_v18, %v13486_v54  ;;  %4334 = vst [vmem:[%s8815_s29 + $0xa78] sm:$0xff] %v3918_v17  ;;  %4335 = vst [vmem:[%s8815_s29 + $0xa80] sm:$0xff] %v3919_v60  ;;  %v13488_v35 = vsub.f32 %v13487_v37, %v13477_v45  ;;  %v13493_v7 = vld [vmem:[#allocation347_spill] sm:$0xff]  ;;  %v13495_v17 = vld [vmem:[#allocation348_spill] sm:$0xff] }
 0x3be   : > { %4336 = vst.msk [vmem:[%s8815_s29 + $0xa88] sm:$0xff] %vm610_vm0, %v3920_v24  ;;  %v13490_v27 = vsub.f32 %v13489_v26, %v13477_v45  ;;  %v13492_v46 = vsub.f32 %v13491_v3, %v13477_v45  ;;  %v13494_v22 = vsub.f32 %v13493_v7, %v13477_v45  ;;  %v13496_v60 = vsub.f32 %v13495_v17, %v13477_v45 }
 0x3bf   : > { %v2934_v53 = vmul.f32 %v4544_v18, %v13488_v35  ;;  %v13498_v37 = vsub.f32 %v13497_v14, %v13477_v45  ;;  %v13500_v26 = vsub.f32 %v13499_v51, %v13477_v45  ;;  %v13502_v3 = vsub.f32 %v13501_v58, %v13477_v45 }
 0x3c0   : > { %v2935_v2 = vmul.f32 %v4544_v18, %v13490_v27  ;;  %v2936_v61 = vmul.f32 %v4544_v18, %v13492_v46  ;;  %v2937_v54 = vmul.f32 %v4544_v18, %v13494_v22  ;;  %v2938_v24 = vmul.f32 %v4544_v18, %v13496_v60 }
 0x3c1   : > { %v2939_v35 = vmul.f32 %v4544_v18, %v13498_v37  ;;  %v2940_v27 = vmul.f32 %v4544_v18, %v13500_v26  ;;  %v2941_v46 = vmul.f32 %v4544_v18, %v13502_v3  ;;  %v3412_v30 = vmul.f32 %v8646_v0, %v2929_v9 }
 0x3c2   : > { %v3413_v7 = vmul.f32 %v8648_v13, %v2930_v47  ;;  %v3414_v22 = vmul.f32 %v8650_v36, %v2931_v23  ;;  %v3415_v17 = vmul.f32 %v12768_v38, %v2932_v43  ;;  %v3416_v60 = vmul.f32 %v12769_v59, %v2933_v11 }
 0x3c3   : > { %v3417_v14 = vmul.f32 %v12770_v5, %v2934_v53  ;;  %v3418_v37 = vmul.f32 %v12771_v33, %v2935_v2  ;;  %v3419_v51 = vmul.f32 %v12772_v31, %v2936_v61  ;;  %v3420_v26 = vmul.f32 %v12773_v57, %v2937_v54 }
 0x3c4   : > { %v3421_v58 = vmul.f32 %v12774_v41, %v2938_v24  ;;  %v3422_v18 = vmul.f32 %v12775_v19, %v2939_v35  ;;  %v3423_v23 = vmul.f32 %v12776_v63, %v2940_v27  ;;  %v3424_v45 = vmul.f32 %v8673_v1, %v2941_v46  ;;  %v13503_v46 = vld [vmem:[#allocation352_spill] sm:$0xff] }
 0x3c5   : > { %v3895_v9 = vadd.f32 %v12777_v39, %v3412_v30  ;;  %v3896_v47 = vadd.f32 %v12778_v62, %v3413_v7  ;;  %v3897_v43 = vadd.f32 %v12779_v40, %v3414_v22  ;;  %v3898_v11 = vadd.f32 %v12780_v20, %v3415_v17  ;;  %v13504_v7 = vld [vmem:[#allocation298_spill] sm:$0xff] }
 0x3c6   : > { %v3899_v53 = vadd.f32 %v8683_v16, %v3416_v60  ;;  %v3900_v2 = vadd.f32 %v8685_v52, %v3417_v14  ;;  %v3901_v61 = vadd.f32 %v12781_v12, %v3418_v37  ;;  %v3902_v54 = vadd.f32 %v8689_v42, %v3419_v51  ;;  %v13506_v60 = vld [vmem:[#allocation353_spill] sm:$0xff]  ;;  %v13508_v51 = vld [vmem:[#allocation354_spill] sm:$0xff] }
 0x3c7   : > { %v3903_v30 = vadd.f32 %v8691_v48, %v3420_v26  ;;  %v3904_v24 = vadd.f32 %v8693_v55, %v3421_v58  ;;  %v3905_v35 = vadd.f32 %v8695_v10, %v3422_v18  ;;  %4311 = vst [vmem:[%s8815_s29 + $0x9c0] sm:$0xff] %v3895_v9  ;;  %4312 = vst [vmem:[%s8815_s29 + $0x9c8] sm:$0xff] %v3896_v47  ;;  %v13510_v18 = vld [vmem:[#allocation355_spill] sm:$0xff]  ;;  %v13512_v9 = vld [vmem:[#allocation356_spill] sm:$0xff] }
 0x3c8   : > { %4313 = vst [vmem:[%s8815_s29 + $0x9d0] sm:$0xff] %v3897_v43  ;;  %v3906_v27 = vadd.f32 %v12782_v4, %v3423_v23  ;;  %v3907_v3 = vadd.f32 %v12783_v29, %v3424_v45  ;;  %4314 = vst [vmem:[%s8815_s29 + $0x9d8] sm:$0xff] %v3898_v11  ;;  %v13505_v22 = vsub.f32 %v13503_v46, %v13504_v7  ;;  %v13514_v11 = vld [vmem:[#allocation357_spill] sm:$0xff] }
 0x3c9   : > { %4315 = vst [vmem:[%s8815_s29 + $0x9e0] sm:$0xff] %v3899_v53  ;;  %4316 = vst [vmem:[%s8815_s29 + $0x9e8] sm:$0xff] %v3900_v2  ;;  %v13507_v14 = vsub.f32 %v13506_v60, %v13504_v7  ;;  %v13509_v26 = vsub.f32 %v13508_v51, %v13504_v7  ;;  %v13511_v23 = vsub.f32 %v13510_v18, %v13504_v7  ;;  %v13522_v51 = vld [vmem:[#allocation361_spill] sm:$0xff] }
 0x3ca   : > { %4317 = vst [vmem:[%s8815_s29 + $0x9f0] sm:$0xff] %v3901_v61  ;;  %v2968_v17 = vmul.f32 %v11217_v8, %v13505_v22  ;;  %4318 = vst [vmem:[%s8815_s29 + $0x9f8] sm:$0xff] %v3902_v54  ;;  %v13513_v47 = vsub.f32 %v13512_v9, %v13504_v7  ;;  %v13515_v53 = vsub.f32 %v13514_v11, %v13504_v7  ;;  %v13516_v61 = vld [vmem:[#allocation358_spill] sm:$0xff]  ;;  %v13520_v22 = vld [vmem:[#allocation360_spill] sm:$0xff] }
 0x3cb   : > { %v2969_v37 = vmul.f32 %v11217_v8, %v13507_v14  ;;  %4319 = vst [vmem:[%s8815_s29 + $0xa00] sm:$0xff] %v3903_v30  ;;  %4320 = vst [vmem:[%s8815_s29 + $0xa08] sm:$0xff] %v3904_v24  ;;  %v2970_v58 = vmul.f32 %v11217_v8, %v13509_v26  ;;  %v2971_v45 = vmul.f32 %v11217_v8, %v13511_v23  ;;  %v13518_v24 = vld [vmem:[#allocation359_spill] sm:$0xff]  ;;  %v13524_v26 = vld [vmem:[#allocation362_spill] sm:$0xff] }
 0x3cc   : > { %4321 = vst [vmem:[%s8815_s29 + $0xa10] sm:$0xff] %v3905_v35  ;;  %v2972_v43 = vmul.f32 %v11217_v8, %v13513_v47  ;;  %v2973_v2 = vmul.f32 %v11217_v8, %v13515_v53  ;;  %4322 = vst [vmem:[%s8815_s29 + $0xa18] sm:$0xff] %v3906_v27  ;;  %v13517_v54 = vsub.f32 %v13516_v61, %v13504_v7  ;;  %v13526_v9 = vld [vmem:[#allocation363_spill] sm:$0xff]  ;;  %v13528_v53 = vld [vmem:[#allocation364_spill] sm:$0xff] }
 0x3cd   : > { %4323 = vst.msk [vmem:[%s8815_s29 + $0xa20] sm:$0xff] %vm610_vm0, %v3907_v3  ;;  %v13519_v35 = vsub.f32 %v13518_v24, %v13504_v7  ;;  %v13521_v60 = vsub.f32 %v13520_v22, %v13504_v7  ;;  %v13523_v27 = vsub.f32 %v13522_v51, %v13504_v7  ;;  %v13525_v18 = vsub.f32 %v13524_v26, %v13504_v7 }
 0x3ce   : > { %v2974_v30 = vmul.f32 %v11217_v8, %v13517_v54  ;;  %v13527_v47 = vsub.f32 %v13526_v9, %v13504_v7  ;;  %v13529_v61 = vsub.f32 %v13528_v53, %v13504_v7  ;;  %v3451_v24 = vmul.f32 %v8646_v0, %v2968_v17 }
 0x3cf   : > { %v2975_v46 = vmul.f32 %v11217_v8, %v13519_v35  ;;  %v2976_v14 = vmul.f32 %v11217_v8, %v13521_v60  ;;  %v2977_v3 = vmul.f32 %v11217_v8, %v13523_v27  ;;  %v2978_v23 = vmul.f32 %v11217_v8, %v13525_v18 }
 0x3d0   : > { %v2979_v11 = vmul.f32 %v11217_v8, %v13527_v47  ;;  %v2980_v54 = vmul.f32 %v11217_v8, %v13529_v61  ;;  %v3452_v35 = vmul.f32 %v8648_v13, %v2969_v37  ;;  %v3453_v22 = vmul.f32 %v8650_v36, %v2970_v58 }
 0x3d1   : > { %v3454_v60 = vmul.f32 %v12768_v38, %v2971_v45  ;;  %v3455_v51 = vmul.f32 %v12769_v59, %v2972_v43  ;;  %v3456_v27 = vmul.f32 %v12770_v5, %v2973_v2  ;;  %v3457_v26 = vmul.f32 %v12771_v33, %v2974_v30 }
 0x3d2   : > { %v3458_v18 = vmul.f32 %v12772_v31, %v2975_v46  ;;  %v3459_v7 = vmul.f32 %v12773_v57, %v2976_v14  ;;  %v3460_v8 = vmul.f32 %v12774_v41, %v2977_v3  ;;  %v3461_v17 = vmul.f32 %v12775_v19, %v2978_v23 }
 0x3d3   : > { %v3462_v37 = vmul.f32 %v12776_v63, %v2979_v11  ;;  %v3463_v58 = vmul.f32 %v8673_v1, %v2980_v54  ;;  %v3934_v45 = vadd.f32 %v12777_v39, %v3451_v24  ;;  %v3935_v43 = vadd.f32 %v12778_v62, %v3452_v35  ;;  %v13530_v54 = vld [vmem:[#allocation365_spill] sm:$0xff] }
 0x3d4   : > { %v3936_v2 = vadd.f32 %v12779_v40, %v3453_v22  ;;  %v3937_v30 = vadd.f32 %v12780_v20, %v3454_v60  ;;  %v3938_v46 = vadd.f32 %v8683_v16, %v3455_v51  ;;  %v3939_v14 = vadd.f32 %v8685_v52, %v3456_v27  ;;  %v13531_v24 = vld [vmem:[#allocation301_spill] sm:$0xff]  ;;  %v13533_v60 = vld [vmem:[#allocation366_spill] sm:$0xff] }
 0x3d5   : > { %v3940_v3 = vadd.f32 %v12781_v12, %v3457_v26  ;;  %v3941_v23 = vadd.f32 %v8689_v42, %v3458_v18  ;;  %v3942_v9 = vadd.f32 %v8691_v48, %v3459_v7  ;;  %v3943_v47 = vadd.f32 %v8693_v55, %v3460_v8  ;;  %4350 = vst [vmem:[%s8815_s29 + $0xaf8] sm:$0xff] %v3934_v45  ;;  %v13535_v26 = vld [vmem:[#allocation367_spill] sm:$0xff]  ;;  %v13537_v8 = vld [vmem:[#allocation368_spill] sm:$0xff] }
 0x3d6   : > { %v3944_v11 = vadd.f32 %v8695_v10, %v3461_v17  ;;  %v3945_v53 = vadd.f32 %v12782_v4, %v3462_v37  ;;  %4351 = vst [vmem:[%s8815_s29 + $0xb00] sm:$0xff] %v3935_v43  ;;  %4352 = vst [vmem:[%s8815_s29 + $0xb08] sm:$0xff] %v3936_v2  ;;  %v3946_v61 = vadd.f32 %v12783_v29, %v3463_v58  ;;  %v13539_v58 = vld [vmem:[#allocation370_spill] sm:$0xff]  ;;  %v13541_v2 = vld [vmem:[#allocation371_spill] sm:$0xff] }
 0x3d7   : > { %4353 = vst [vmem:[%s8815_s29 + $0xb10] sm:$0xff] %v3937_v30  ;;  %4354 = vst [vmem:[%s8815_s29 + $0xb18] sm:$0xff] %v3938_v46  ;;  %v13532_v35 = vsub.f32 %v13530_v54, %v13531_v24  ;;  %v13534_v51 = vsub.f32 %v13533_v60, %v13531_v24  ;;  %v13536_v18 = vsub.f32 %v13535_v26, %v13531_v24  ;;  %v13549_v60 = vld [vmem:[#allocation375_spill] sm:$0xff] }
 0x3d8   : > { %4355 = vst [vmem:[%s8815_s29 + $0xb20] sm:$0xff] %v3939_v14  ;;  %4356 = vst [vmem:[%s8815_s29 + $0xb28] sm:$0xff] %v3940_v3  ;;  %v13538_v17 = vsub.f32 %v13537_v8, %v13531_v24  ;;  %v13540_v45 = vsub.f32 %v13539_v58, %v13531_v24  ;;  %v13542_v30 = vsub.f32 %v13541_v2, %v13531_v24  ;;  %v13543_v14 = vld [vmem:[#allocation372_spill] sm:$0xff]  ;;  %v13555_v2 = vld [vmem:[#allocation378_spill] sm:$0xff] }
 0x3d9   : > { %4357 = vst [vmem:[%s8815_s29 + $0xb30] sm:$0xff] %v3941_v23  ;;  %v2955_v22 = vmul.f32 %v11223_v56, %v13532_v35  ;;  %v2956_v27 = vmul.f32 %v11223_v56, %v13534_v51  ;;  %v2957_v7 = vmul.f32 %v11223_v56, %v13536_v18  ;;  %4358 = vst [vmem:[%s8815_s29 + $0xb38] sm:$0xff] %v3942_v9  ;;  %v13545_v9 = vld [vmem:[#allocation373_spill] sm:$0xff]  ;;  %v13551_v18 = vld [vmem:[#allocation376_spill] sm:$0xff] }
 0x3da   : > { %4359 = vst [vmem:[%s8815_s29 + $0xb40] sm:$0xff] %v3943_v47  ;;  %4360 = vst [vmem:[%s8815_s29 + $0xb48] sm:$0xff] %v3944_v11  ;;  %v2958_v37 = vmul.f32 %v11223_v56, %v13538_v17  ;;  %v2959_v43 = vmul.f32 %v11223_v56, %v13540_v45  ;;  %v2960_v46 = vmul.f32 %v11223_v56, %v13542_v30  ;;  %v13553_v17 = vld [vmem:[#allocation377_spill] sm:$0xff] }
 0x3db   : > { %4361 = vst [vmem:[%s8815_s29 + $0xb50] sm:$0xff] %v3945_v53  ;;  %v13544_v3 = vsub.f32 %v13543_v14, %v13531_v24  ;;  %4362 = vst.msk [vmem:[%s8815_s29 + $0xb58] sm:$0xff] %vm610_vm0, %v3946_v61  ;;  %v13546_v47 = vsub.f32 %v13545_v9, %v13531_v24  ;;  %v13547_v53 = vld [vmem:[#allocation374_spill] sm:$0xff]  ;;  %v13550_v51 = vsub.f32 %v13549_v60, %v13531_v24 }
 0x3dc   : > { %v13548_v54 = vsub.f32 %v13547_v53, %v13531_v24  ;;  %v13552_v8 = vsub.f32 %v13551_v18, %v13531_v24  ;;  %v13554_v58 = vsub.f32 %v13553_v17, %v13531_v24  ;;  %v13556_v30 = vsub.f32 %v13555_v2, %v13531_v24 }
 0x3dd   : > { %v2961_v23 = vmul.f32 %v11223_v56, %v13544_v3  ;;  %v2962_v11 = vmul.f32 %v11223_v56, %v13546_v47  ;;  %v2964_v26 = vmul.f32 %v11223_v56, %v13550_v51  ;;  %v3438_v3 = vmul.f32 %v8646_v0, %v2955_v22 }
 0x3de   : > { %v2963_v35 = vmul.f32 %v11223_v56, %v13548_v54  ;;  %v2965_v61 = vmul.f32 %v11223_v56, %v13552_v8  ;;  %v2966_v45 = vmul.f32 %v11223_v56, %v13554_v58  ;;  %v2967_v14 = vmul.f32 %v11223_v56, %v13556_v30  ;;  %v13557_v30 = vld [vmem:[#allocation382_spill] sm:$0xff] }
 0x3df   : > { %v3439_v9 = vmul.f32 %v8648_v13, %v2956_v27  ;;  %v3440_v47 = vmul.f32 %v8650_v36, %v2957_v7  ;;  %v3441_v53 = vmul.f32 %v12768_v38, %v2958_v37  ;;  %v3442_v54 = vmul.f32 %v12769_v59, %v2959_v43 }
 0x3e0   : > { %v3443_v60 = vmul.f32 %v12770_v5, %v2960_v46  ;;  %v3444_v51 = vmul.f32 %v12771_v33, %v2961_v23  ;;  %v3445_v18 = vmul.f32 %v12772_v31, %v2962_v11  ;;  %v3446_v24 = vmul.f32 %v12773_v57, %v2963_v35 }
 0x3e1   : > { %v3447_v56 = vmul.f32 %v12774_v41, %v2964_v26  ;;  %v3448_v22 = vmul.f32 %v12775_v19, %v2965_v61  ;;  %v3449_v27 = vmul.f32 %v12776_v63, %v2966_v45  ;;  %v3450_v7 = vmul.f32 %v8673_v1, %v2967_v14  ;;  %v13558_v14 = vld [vmem:[#allocation369_spill] sm:$0xff] }
 0x3e2   : > { %v3921_v37 = vadd.f32 %v12777_v39, %v3438_v3  ;;  %v3922_v43 = vadd.f32 %v12778_v62, %v3439_v9  ;;  %v3923_v46 = vadd.f32 %v12779_v40, %v3440_v47  ;;  %v3924_v23 = vadd.f32 %v12780_v20, %v3441_v53  ;;  %v13560_v47 = vld [vmem:[#allocation383_spill] sm:$0xff] }
 0x3e3   : > { %v3925_v11 = vadd.f32 %v8683_v16, %v3442_v54  ;;  %v3926_v35 = vadd.f32 %v8685_v52, %v3443_v60  ;;  %v3927_v26 = vadd.f32 %v12781_v12, %v3444_v51  ;;  %v3928_v8 = vadd.f32 %v8689_v42, %v3445_v18  ;;  %v13562_v60 = vld [vmem:[#allocation384_spill] sm:$0xff] }
 0x3e4   : > { %v3929_v61 = vadd.f32 %v8691_v48, %v3446_v24  ;;  %4337 = vst [vmem:[%s8815_s29 + $0xa90] sm:$0xff] %v3921_v37  ;;  %v3930_v17 = vadd.f32 %v8693_v55, %v3447_v56  ;;  %v3931_v58 = vadd.f32 %v8695_v10, %v3448_v22  ;;  %v3932_v45 = vadd.f32 %v12782_v4, %v3449_v27  ;;  %v13564_v24 = vld [vmem:[#allocation385_spill] sm:$0xff]  ;;  %v13566_v27 = vld [vmem:[#allocation386_spill] sm:$0xff] }
 0x3e5   : > { %v3933_v2 = vadd.f32 %v12783_v29, %v3450_v7  ;;  %4338 = vst [vmem:[%s8815_s29 + $0xa98] sm:$0xff] %v3922_v43  ;;  %4339 = vst [vmem:[%s8815_s29 + $0xaa0] sm:$0xff] %v3923_v46  ;;  %v13559_v3 = vsub.f32 %v13557_v30, %v13558_v14  ;;  %v13561_v53 = vsub.f32 %v13560_v47, %v13558_v14  ;;  %v13568_v43 = vld [vmem:[#allocation387_spill] sm:$0xff] }
 0x3e6   : > { %4340 = vst [vmem:[%s8815_s29 + $0xaa8] sm:$0xff] %v3924_v23  ;;  %4341 = vst [vmem:[%s8815_s29 + $0xab0] sm:$0xff] %v3925_v11  ;;  %v13563_v51 = vsub.f32 %v13562_v60, %v13558_v14  ;;  %v13565_v56 = vsub.f32 %v13564_v24, %v13558_v14  ;;  %v13567_v7 = vsub.f32 %v13566_v27, %v13558_v14  ;;  %v13570_v11 = vld [vmem:[#allocation388_spill] sm:$0xff]  ;;  %v13576_v30 = vld [vmem:[#allocation391_spill] sm:$0xff] }
 0x3e7   : > { %4342 = vst [vmem:[%s8815_s29 + $0xab8] sm:$0xff] %v3926_v35  ;;  %4343 = vst [vmem:[%s8815_s29 + $0xac0] sm:$0xff] %v3927_v26  ;;  %v2994_v9 = vmul.f32 %v11229_v25, %v13559_v3  ;;  %v2995_v54 = vmul.f32 %v11229_v25, %v13561_v53  ;;  %v13569_v46 = vsub.f32 %v13568_v43, %v13558_v14  ;;  %v13578_v53 = vld [vmem:[#allocation392_spill] sm:$0xff]  ;;  %v13580_v24 = vld [vmem:[#allocation393_spill] sm:$0xff] }
 0x3e8   : > { %4344 = vst [vmem:[%s8815_s29 + $0xac8] sm:$0xff] %v3928_v8  ;;  %4345 = vst [vmem:[%s8815_s29 + $0xad0] sm:$0xff] %v3929_v61  ;;  %v2996_v18 = vmul.f32 %v11229_v25, %v13563_v51  ;;  %v2997_v22 = vmul.f32 %v11229_v25, %v13565_v56  ;;  %v2998_v37 = vmul.f32 %v11229_v25, %v13567_v7  ;;  %v13572_v8 = vld [vmem:[#allocation389_spill] sm:$0xff]  ;;  %v13582_v7 = vld [vmem:[#allocation394_spill] sm:$0xff] }
 0x3e9   : > { %4346 = vst [vmem:[%s8815_s29 + $0xad8] sm:$0xff] %v3930_v17  ;;  %4347 = vst [vmem:[%s8815_s29 + $0xae0] sm:$0xff] %v3931_v58  ;;  %v2999_v23 = vmul.f32 %v11229_v25, %v13569_v46  ;;  %v13571_v35 = vsub.f32 %v13570_v11, %v13558_v14  ;;  %v13573_v61 = vsub.f32 %v13572_v8, %v13558_v14  ;;  %v13574_v58 = vld [vmem:[#allocation390_spill] sm:$0xff] }
 0x3ea   : > { %4348 = vst [vmem:[%s8815_s29 + $0xae8] sm:$0xff] %v3932_v45  ;;  %4349 = vst.msk [vmem:[%s8815_s29 + $0xaf0] sm:$0xff] %vm610_vm0, %v3933_v2  ;;  %v13575_v45 = vsub.f32 %v13574_v58, %v13558_v14  ;;  %v13577_v3 = vsub.f32 %v13576_v30, %v13558_v14  ;;  %v13579_v60 = vsub.f32 %v13578_v53, %v13558_v14 }
 0x3eb   : > { %v3000_v26 = vmul.f32 %v11229_v25, %v13571_v35  ;;  %v3001_v17 = vmul.f32 %v11229_v25, %v13573_v61  ;;  %v13581_v56 = vsub.f32 %v13580_v24, %v13558_v14  ;;  %v13583_v43 = vsub.f32 %v13582_v7, %v13558_v14  ;;  %v13584_v7 = vld [vmem:[#allocation395_spill] sm:$0xff] }
 0x3ec   : > { %v3002_v2 = vmul.f32 %v11229_v25, %v13575_v45  ;;  %v3003_v47 = vmul.f32 %v11229_v25, %v13577_v3  ;;  %v3004_v51 = vmul.f32 %v11229_v25, %v13579_v60  ;;  %v3477_v11 = vmul.f32 %v8646_v0, %v2994_v9 }
 0x3ed   : > { %v3005_v27 = vmul.f32 %v11229_v25, %v13581_v56  ;;  %v3006_v46 = vmul.f32 %v11229_v25, %v13583_v43  ;;  %v3478_v35 = vmul.f32 %v8648_v13, %v2995_v54  ;;  %v3479_v8 = vmul.f32 %v8650_v36, %v2996_v18 }
 0x3ee   : > { %v3480_v61 = vmul.f32 %v12768_v38, %v2997_v22  ;;  %v3481_v58 = vmul.f32 %v12769_v59, %v2998_v37  ;;  %v3482_v45 = vmul.f32 %v12770_v5, %v2999_v23  ;;  %v3483_v30 = vmul.f32 %v12771_v33, %v3000_v26 }
 0x3ef   : > { %v3484_v3 = vmul.f32 %v12772_v31, %v3001_v17  ;;  %v3485_v14 = vmul.f32 %v12773_v57, %v3002_v2  ;;  %v3486_v25 = vmul.f32 %v12774_v41, %v3003_v47  ;;  %v3487_v9 = vmul.f32 %v12775_v19, %v3004_v51 }
 0x3f0   : > { %v3488_v54 = vmul.f32 %v12776_v63, %v3005_v27  ;;  %v3489_v18 = vmul.f32 %v8673_v1, %v3006_v46  ;;  %v3960_v22 = vadd.f32 %v12777_v39, %v3477_v11  ;;  %v3961_v37 = vadd.f32 %v12778_v62, %v3478_v35  ;;  %v13586_v11 = vld [vmem:[#allocation396_spill] sm:$0xff] }
 0x3f1   : > { %v3962_v23 = vadd.f32 %v12779_v40, %v3479_v8  ;;  %v3963_v26 = vadd.f32 %v12780_v20, %v3480_v61  ;;  %v3964_v17 = vadd.f32 %v8683_v16, %v3481_v58  ;;  %v3965_v2 = vadd.f32 %v8685_v52, %v3482_v45  ;;  %v13588_v61 = vld [vmem:[#allocation397_spill] sm:$0xff] }
 0x3f2   : > { %v3966_v47 = vadd.f32 %v12781_v12, %v3483_v30  ;;  %v3967_v53 = vadd.f32 %v8689_v42, %v3484_v3  ;;  %v3968_v60 = vadd.f32 %v8691_v48, %v3485_v14  ;;  %v3969_v51 = vadd.f32 %v8693_v55, %v3486_v25  ;;  %4376 = vst [vmem:[%s8815_s29 + $0xbc8] sm:$0xff] %v3960_v22  ;;  %v13590_v30 = vld [vmem:[#allocation398_spill] sm:$0xff]  ;;  %v13592_v25 = vld [vmem:[#allocation399_spill] sm:$0xff] }
 0x3f3   : > { %4377 = vst [vmem:[%s8815_s29 + $0xbd0] sm:$0xff] %v3961_v37  ;;  %v3970_v24 = vadd.f32 %v8695_v10, %v3487_v9  ;;  %v3971_v56 = vadd.f32 %v12782_v4, %v3488_v54  ;;  %v3972_v27 = vadd.f32 %v12783_v29, %v3489_v18  ;;  %4378 = vst [vmem:[%s8815_s29 + $0xbd8] sm:$0xff] %v3962_v23  ;;  %v13594_v18 = vld [vmem:[#allocation400_spill] sm:$0xff]  ;;  %v13596_v23 = vld [vmem:[#allocation401_spill] sm:$0xff] }
 0x3f4   : > { %4379 = vst [vmem:[%s8815_s29 + $0xbe0] sm:$0xff] %v3963_v26  ;;  %4380 = vst [vmem:[%s8815_s29 + $0xbe8] sm:$0xff] %v3964_v17  ;;  %v13585_v43 = vsub.f32 %v13584_v7, %v13231_v28  ;;  %v13587_v35 = vsub.f32 %v13586_v11, %v13231_v28  ;;  %v13589_v58 = vsub.f32 %v13588_v61, %v13231_v28 }
 0x3f5   : > { %4381 = vst [vmem:[%s8815_s29 + $0xbf0] sm:$0xff] %v3965_v2  ;;  %4382 = vst [vmem:[%s8815_s29 + $0xbf8] sm:$0xff] %v3966_v47  ;;  %v13591_v3 = vsub.f32 %v13590_v30, %v13231_v28  ;;  %v13593_v9 = vsub.f32 %v13592_v25, %v13231_v28  ;;  %v13595_v22 = vsub.f32 %v13594_v18, %v13231_v28  ;;  %v13598_v2 = vld [vmem:[#allocation402_spill] sm:$0xff] }
 0x3f6   : > { %v2981_v46 = vmul.f32 %v11235_v21, %v13585_v43  ;;  %4383 = vst [vmem:[%s8815_s29 + $0xc00] sm:$0xff] %v3967_v53  ;;  %4384 = vst [vmem:[%s8815_s29 + $0xc08] sm:$0xff] %v3968_v60  ;;  %v2982_v8 = vmul.f32 %v11235_v21, %v13587_v35  ;;  %v2983_v45 = vmul.f32 %v11235_v21, %v13589_v58  ;;  %v13600_v60 = vld [vmem:[#allocation403_spill] sm:$0xff] }
 0x3f7   : > { %4385 = vst [vmem:[%s8815_s29 + $0xc10] sm:$0xff] %v3969_v51  ;;  %v2984_v14 = vmul.f32 %v11235_v21, %v13591_v3  ;;  %v2985_v54 = vmul.f32 %v11235_v21, %v13593_v9  ;;  %4386 = vst [vmem:[%s8815_s29 + $0xc18] sm:$0xff] %v3970_v24  ;;  %v2986_v37 = vmul.f32 %v11235_v21, %v13595_v22 }
 0x3f8   : > { %4387 = vst [vmem:[%s8815_s29 + $0xc20] sm:$0xff] %v3971_v56  ;;  %4388 = vst.msk [vmem:[%s8815_s29 + $0xc28] sm:$0xff] %vm610_vm0, %v3972_v27  ;;  %v13597_v26 = vsub.f32 %v13596_v23, %v13231_v28  ;;  %v13599_v47 = vsub.f32 %v13598_v2, %v13231_v28  ;;  %v13601_v51 = vsub.f32 %v13600_v60, %v13231_v28  ;;  %v13602_v56 = vld [vmem:[#allocation406_spill] sm:$0xff] }
 0x3f9   : > { %v13603_v27 = vsub.f32 %v13602_v56, %v13231_v28  ;;  %v13604_v43 = vsub.f32 %v11065_v15, %v13231_v28  ;;  %v13605_v35 = vsub.f32 %v11079_v32, %v13231_v28  ;;  %v13606_v58 = vsub.f32 %v11100_v50, %v13231_v28 }
 0x3fa   : > { %v2987_v17 = vmul.f32 %v11235_v21, %v13597_v26  ;;  %v2988_v53 = vmul.f32 %v11235_v21, %v13599_v47  ;;  %v2989_v24 = vmul.f32 %v11235_v21, %v13601_v51  ;;  %v3464_v3 = vmul.f32 %v8646_v0, %v2981_v46 }
 0x3fb   : > { %v2990_v7 = vmul.f32 %v11235_v21, %v13603_v27  ;;  %v2991_v11 = vmul.f32 %v11235_v21, %v13604_v43  ;;  %v2992_v61 = vmul.f32 %v11235_v21, %v13605_v35  ;;  %v2993_v30 = vmul.f32 %v11235_v21, %v13606_v58  ;;  %v13609_v35 = vld [vmem:[#allocation410_spill] sm:$0xff] }
 0x3fc   : > { %v3465_v25 = vmul.f32 %v8648_v13, %v2982_v8  ;;  %v3466_v9 = vmul.f32 %v8650_v36, %v2983_v45  ;;  %v3467_v15 = vmul.f32 %v12768_v38, %v2984_v14  ;;  %v3468_v18 = vmul.f32 %v12769_v59, %v2985_v54 }
 0x3fd   : > { %v3469_v22 = vmul.f32 %v12770_v5, %v2986_v37  ;;  %v3470_v32 = vmul.f32 %v12771_v33, %v2987_v17  ;;  %v3471_v23 = vmul.f32 %v12772_v31, %v2988_v53  ;;  %v3472_v28 = vmul.f32 %v12773_v57, %v2989_v24 }
 0x3fe   : > { %v3473_v50 = vmul.f32 %v12774_v41, %v2990_v7  ;;  %v3474_v21 = vmul.f32 %v12775_v19, %v2991_v11  ;;  %v3475_v46 = vmul.f32 %v12776_v63, %v2992_v61  ;;  %v3476_v8 = vmul.f32 %v8673_v1, %v2993_v30  ;;  %v13611_v30 = vld [vmem:[#allocation411_spill] sm:$0xff] }
 0x3ff   : > { %v3947_v45 = vadd.f32 %v12777_v39, %v3464_v3  ;;  %v3948_v14 = vadd.f32 %v12778_v62, %v3465_v25  ;;  %v3949_v54 = vadd.f32 %v12779_v40, %v3466_v9  ;;  %v3950_v37 = vadd.f32 %v12780_v20, %v3467_v15  ;;  %v13613_v25 = vld [vmem:[#allocation412_spill] sm:$0xff]  ;;  %v13615_v15 = vld [vmem:[#allocation413_spill] sm:$0xff] }
 0x400   : > { %v3951_v26 = vadd.f32 %v8683_v16, %v3468_v18  ;;  %v3952_v17 = vadd.f32 %v8685_v52, %v3469_v22  ;;  %v3953_v2 = vadd.f32 %v12781_v12, %v3470_v32  ;;  %v3954_v47 = vadd.f32 %v8689_v42, %v3471_v23  ;;  %v13617_v32 = vld [vmem:[#allocation414_spill] sm:$0xff] }
 0x401   : > { %v3955_v53 = vadd.f32 %v8691_v48, %v3472_v28  ;;  %v3956_v60 = vadd.f32 %v8693_v55, %v3473_v50  ;;  %v3957_v51 = vadd.f32 %v8695_v10, %v3474_v21  ;;  %4363 = vst [vmem:[%s8815_s29 + $0xb60] sm:$0xff] %v3947_v45  ;;  %4364 = vst [vmem:[%s8815_s29 + $0xb68] sm:$0xff] %v3948_v14  ;;  %v13619_v50 = vld [vmem:[#allocation415_spill] sm:$0xff] }
 0x402   : > { %4365 = vst [vmem:[%s8815_s29 + $0xb70] sm:$0xff] %v3949_v54  ;;  %v3958_v24 = vadd.f32 %v12782_v4, %v3475_v46  ;;  %v3959_v56 = vadd.f32 %v12783_v29, %v3476_v8  ;;  %4366 = vst [vmem:[%s8815_s29 + $0xb78] sm:$0xff] %v3950_v37  ;;  %v13607_v27 = vsub.f32 %v11105_v49, %v13435_v44  ;;  %v13621_v8 = vld [vmem:[#allocation416_spill] sm:$0xff]  ;;  %v13623_v54 = vld [vmem:[#allocation417_spill] sm:$0xff] }
 0x403   : > { %4367 = vst [vmem:[%s8815_s29 + $0xb80] sm:$0xff] %v3951_v26  ;;  %4368 = vst [vmem:[%s8815_s29 + $0xb88] sm:$0xff] %v3952_v17  ;;  %v13608_v43 = vsub.f32 %v11110_v6, %v13435_v44  ;;  %v13610_v61 = vsub.f32 %v13609_v35, %v13435_v44  ;;  %v13612_v3 = vsub.f32 %v13611_v30, %v13435_v44  ;;  %v13625_v17 = vld [vmem:[#allocation418_spill] sm:$0xff] }
 0x404   : > { %4369 = vst [vmem:[%s8815_s29 + $0xb90] sm:$0xff] %v3953_v2  ;;  %v3020_v7 = vmul.f32 %v11243_v34, %v13607_v27  ;;  %4370 = vst [vmem:[%s8815_s29 + $0xb98] sm:$0xff] %v3954_v47  ;;  %v13614_v9 = vsub.f32 %v13613_v25, %v13435_v44  ;;  %v13616_v18 = vsub.f32 %v13615_v15, %v13435_v44 }
 0x405   : > { %v3021_v11 = vmul.f32 %v11243_v34, %v13608_v43  ;;  %4371 = vst [vmem:[%s8815_s29 + $0xba0] sm:$0xff] %v3955_v53  ;;  %4372 = vst [vmem:[%s8815_s29 + $0xba8] sm:$0xff] %v3956_v60  ;;  %v3022_v58 = vmul.f32 %v11243_v34, %v13610_v61  ;;  %v3023_v49 = vmul.f32 %v11243_v34, %v13612_v3  ;;  %v13627_v53 = vld [vmem:[#allocation419_spill] sm:$0xff] }
 0x406   : > { %4373 = vst [vmem:[%s8815_s29 + $0xbb0] sm:$0xff] %v3957_v51  ;;  %v3024_v6 = vmul.f32 %v11243_v34, %v13614_v9  ;;  %v3025_v22 = vmul.f32 %v11243_v34, %v13616_v18  ;;  %4374 = vst [vmem:[%s8815_s29 + $0xbb8] sm:$0xff] %v3958_v24  ;;  %v13618_v23 = vsub.f32 %v13617_v32, %v13435_v44  ;;  %v13629_v24 = vld [vmem:[#allocation18_spill] sm:$0xff] }
 0x407   : > { %4375 = vst.msk [vmem:[%s8815_s29 + $0xbc0] sm:$0xff] %vm610_vm0, %v3959_v56  ;;  %v13620_v21 = vsub.f32 %v13619_v50, %v13435_v44  ;;  %v13622_v45 = vsub.f32 %v13621_v8, %v13435_v44  ;;  %v13624_v37 = vsub.f32 %v13623_v54, %v13435_v44  ;;  %v13626_v2 = vsub.f32 %v13625_v17, %v13435_v44  ;;  %v13631_v54 = vld [vmem:[#allocation3_spill] sm:$0xff] }
 0x408   : > { %v3026_v28 = vmul.f32 %v11243_v34, %v13618_v23  ;;  %v13628_v60 = vsub.f32 %v13627_v53, %v13435_v44  ;;  %v13630_v56 = vsub.f32 %v13629_v24, %v13435_v44  ;;  %v3503_v43 = vmul.f32 %v8646_v0, %v3020_v7  ;;  %v5339_v53 = vld [vmem:[%s5394_s18 + $0xc40] sm:$0xff] }
 0x409   : > { %v3027_v46 = vmul.f32 %v11243_v34, %v13620_v21  ;;  %v3028_v14 = vmul.f32 %v11243_v34, %v13622_v45  ;;  %v3029_v26 = vmul.f32 %v11243_v34, %v13624_v37  ;;  %v3030_v47 = vmul.f32 %v11243_v34, %v13626_v2  ;;  %v5337_v37 = vld [vmem:[%s5394_s18 + $0xc30] sm:$0xff]  ;;  %v5338_v2 = vld [vmem:[%s5394_s18 + $0xc38] sm:$0xff] }
 0x40a   : > { %v3031_v51 = vmul.f32 %v11243_v34, %v13628_v60  ;;  %v3032_v27 = vmul.f32 %v11243_v34, %v13630_v56  ;;  %v3504_v35 = vmul.f32 %v8648_v13, %v3021_v11  ;;  %v3505_v61 = vmul.f32 %v8650_v36, %v3022_v58  ;;  %v5341_v56 = vld [vmem:[%s5394_s18 + $0xc50] sm:$0xff] }
 0x40b   : > { %v3506_v30 = vmul.f32 %v12768_v38, %v3023_v49  ;;  %v3507_v3 = vmul.f32 %v12769_v59, %v3024_v6  ;;  %v3508_v25 = vmul.f32 %v12770_v5, %v3025_v22  ;;  %v3509_v9 = vmul.f32 %v12771_v33, %v3026_v28 }
 0x40c   : > { %v3510_v15 = vmul.f32 %v12772_v31, %v3027_v46  ;;  %v3511_v44 = vmul.f32 %v12773_v57, %v3028_v14  ;;  %v3512_v34 = vmul.f32 %v12774_v41, %v3029_v26  ;;  %v3513_v7 = vmul.f32 %v12775_v19, %v3030_v47  ;;  %v13632_v26 = vld [vmem:[#allocation381_spill] sm:$0xff] }
 0x40d   : > { %v3514_v11 = vmul.f32 %v12776_v63, %v3031_v51  ;;  %v3515_v58 = vmul.f32 %v8673_v1, %v3032_v27  ;;  %v3986_v49 = vadd.f32 %v12777_v39, %v3503_v43  ;;  %v3987_v6 = vadd.f32 %v12778_v62, %v3504_v35  ;;  %v5340_v51 = vld [vmem:[%s5394_s18 + $0xc48] sm:$0xff]  ;;  %v5342_v43 = vld [vmem:[%s5394_s18 + $0xc58] sm:$0xff] }
 0x40e   : > { %v3988_v18 = vadd.f32 %v12779_v40, %v3505_v61  ;;  %v3989_v22 = vadd.f32 %v12780_v20, %v3506_v30  ;;  %v3990_v32 = vadd.f32 %v8683_v16, %v3507_v3  ;;  %v3991_v23 = vadd.f32 %v8685_v52, %v3508_v25  ;;  %v5343_v61 = vld [vmem:[%s5394_s18 + $0xc60] sm:$0xff]  ;;  %v5344_v3 = vld [vmem:[%s5394_s18 + $0xc68] sm:$0xff] }
 0x40f   : > { %v3992_v28 = vadd.f32 %v12781_v12, %v3509_v9  ;;  %v3993_v50 = vadd.f32 %v8689_v42, %v3510_v15  ;;  %v3994_v21 = vadd.f32 %v8691_v48, %v3511_v44  ;;  %v3995_v46 = vadd.f32 %v8693_v55, %v3512_v34  ;;  %4402 = vst [vmem:[%s8815_s29 + $0xc98] sm:$0xff] %v3986_v49  ;;  %v5345_v9 = vld [vmem:[%s5394_s18 + $0xc70] sm:$0xff]  ;;  %v5346_v34 = vld [vmem:[%s5394_s18 + $0xc78] sm:$0xff]  ;;  %v5348_v49 = vld [vmem:[%s5394_s18 + $0xc88] sm:$0xff] }
 0x410   : > { %v3996_v8 = vadd.f32 %v8695_v10, %v3513_v7  ;;  %v3997_v45 = vadd.f32 %v12782_v4, %v3514_v11  ;;  %4403 = vst [vmem:[%s8815_s29 + $0xca0] sm:$0xff] %v3987_v6  ;;  %4404 = vst [vmem:[%s8815_s29 + $0xca8] sm:$0xff] %v3988_v18  ;;  %v3998_v14 = vadd.f32 %v12783_v29, %v3515_v58  ;;  %4555 = vrsqrt.f32 %v13631_v54  ;;  %v5347_v11 = vld [vmem:[%s5394_s18 + $0xc80] sm:$0xff]  ;;  %v5349_v18 = vld [vmem:[%s5394_s18 + $0xc90] sm:$0xff] }
 0x411   : > { %4405 = vst [vmem:[%s8815_s29 + $0xcb0] sm:$0xff] %v3989_v22  ;;  %4406 = vst [vmem:[%s8815_s29 + $0xcb8] sm:$0xff] %v3990_v32  ;;  %v2591_v17 = vsub.f32 %v5337_v37, %v13632_v26  ;;  %v2592_v47 = vsub.f32 %v5338_v2, %v13632_v26  ;;  %v2593_v60 = vsub.f32 %v5339_v53, %v13632_v26 }
 0x412   : > { %4407 = vst [vmem:[%s8815_s29 + $0xcc0] sm:$0xff] %v3991_v23  ;;  %4408 = vst [vmem:[%s8815_s29 + $0xcc8] sm:$0xff] %v3992_v28  ;;  %v2594_v24 = vsub.f32 %v5340_v51, %v13632_v26  ;;  %v2595_v27 = vsub.f32 %v5341_v56, %v13632_v26  ;;  %v2596_v35 = vsub.f32 %v5342_v43, %v13632_v26 }
 0x413   : > { %4409 = vst [vmem:[%s8815_s29 + $0xcd0] sm:$0xff] %v3993_v50  ;;  %4410 = vst [vmem:[%s8815_s29 + $0xcd8] sm:$0xff] %v3994_v21  ;;  %v2597_v30 = vsub.f32 %v5343_v61, %v13632_v26  ;;  %v2598_v25 = vsub.f32 %v5344_v3, %v13632_v26  ;;  %v2599_v15 = vsub.f32 %v5345_v9, %v13632_v26 }
 0x414   : > { %4411 = vst [vmem:[%s8815_s29 + $0xce0] sm:$0xff] %v3995_v46  ;;  %4412 = vst [vmem:[%s8815_s29 + $0xce8] sm:$0xff] %v3996_v8  ;;  %v2600_v7 = vsub.f32 %v5346_v34, %v13632_v26  ;;  %v2601_v58 = vsub.f32 %v5347_v11, %v13632_v26  ;;  %v2602_v6 = vsub.f32 %v5348_v49, %v13632_v26 }
 0x415   : > { %4413 = vst [vmem:[%s8815_s29 + $0xcf0] sm:$0xff] %v3997_v45  ;;  %4414 = vst.msk [vmem:[%s8815_s29 + $0xcf8] sm:$0xff] %vm610_vm0, %v3998_v14  ;;  %v2603_v22 = vsub.f32 %v5349_v18, %v13632_v26 }
 0x41a   : > { %v4556_v44 = vpop.eup %4555 }
 0x41b   : > { %v3007_v32 = vmul.f32 %v4556_v44, %v2591_v17  ;;  %v3008_v23 = vmul.f32 %v4556_v44, %v2592_v47  ;;  %v3009_v28 = vmul.f32 %v4556_v44, %v2593_v60  ;;  %v3010_v50 = vmul.f32 %v4556_v44, %v2594_v24 }
 0x41c   : > { %v3011_v21 = vmul.f32 %v4556_v44, %v2595_v27  ;;  %v3012_v46 = vmul.f32 %v4556_v44, %v2596_v35  ;;  %v3013_v8 = vmul.f32 %v4556_v44, %v2597_v30  ;;  %v3014_v45 = vmul.f32 %v4556_v44, %v2598_v25 }
 0x41d   : > { %v3015_v14 = vmul.f32 %v4556_v44, %v2599_v15  ;;  %v3016_v54 = vmul.f32 %v4556_v44, %v2600_v7  ;;  %v3017_v37 = vmul.f32 %v4556_v44, %v2601_v58  ;;  %v3018_v2 = vmul.f32 %v4556_v44, %v2602_v6 }
 0x41e   : > { %v3019_v53 = vmul.f32 %v4556_v44, %v2603_v22  ;;  %v3490_v51 = vmul.f32 %v8646_v0, %v3007_v32  ;;  %v3491_v56 = vmul.f32 %v8648_v13, %v3008_v23  ;;  %v3492_v43 = vmul.f32 %v8650_v36, %v3009_v28 }
 0x41f   : > { %v3493_v26 = vmul.f32 %v12768_v38, %v3010_v50  ;;  %v3494_v17 = vmul.f32 %v12769_v59, %v3011_v21  ;;  %v3495_v47 = vmul.f32 %v12770_v5, %v3012_v46  ;;  %v3496_v60 = vmul.f32 %v12771_v33, %v3013_v8 }
 0x420   : > { %v3497_v24 = vmul.f32 %v12772_v31, %v3014_v45  ;;  %v3498_v27 = vmul.f32 %v12773_v57, %v3015_v14  ;;  %v3499_v0 = vmul.f32 %v12774_v41, %v3016_v54  ;;  %v3500_v13 = vmul.f32 %v12775_v19, %v3017_v37 }
 0x421   : > { %v3501_v36 = vmul.f32 %v12776_v63, %v3018_v2  ;;  %v3502_v38 = vmul.f32 %v8673_v1, %v3019_v53  ;;  %v3973_v59 = vadd.f32 %v12777_v39, %v3490_v51  ;;  %v3974_v5 = vadd.f32 %v12778_v62, %v3491_v56 }
 0x422   : > { %v3975_v33 = vadd.f32 %v12779_v40, %v3492_v43  ;;  %v3976_v31 = vadd.f32 %v12780_v20, %v3493_v26  ;;  %v3977_v57 = vadd.f32 %v8683_v16, %v3494_v17  ;;  %v3978_v41 = vadd.f32 %v8685_v52, %v3495_v47 }
 0x423   : > { %v3979_v1 = vadd.f32 %v12781_v12, %v3496_v60  ;;  %v3980_v19 = vadd.f32 %v8689_v42, %v3497_v24  ;;  %v3981_v62 = vadd.f32 %v8691_v48, %v3498_v27  ;;  %v3982_v40 = vadd.f32 %v8693_v55, %v3499_v0  ;;  %4389 = vst [vmem:[%s8815_s29 + $0xc30] sm:$0xff] %v3973_v59 }
 0x424   : > { %4390 = vst [vmem:[%s8815_s29 + $0xc38] sm:$0xff] %v3974_v5  ;;  %v3983_v16 = vadd.f32 %v8695_v10, %v3500_v13  ;;  %v3984_v63 = vadd.f32 %v12782_v4, %v3501_v36  ;;  %v3985_v52 = vadd.f32 %v12783_v29, %v3502_v38  ;;  %4391 = vst [vmem:[%s8815_s29 + $0xc40] sm:$0xff] %v3975_v33 }
 0x425   : > { %4392 = vst [vmem:[%s8815_s29 + $0xc48] sm:$0xff] %v3976_v31  ;;  %4393 = vst [vmem:[%s8815_s29 + $0xc50] sm:$0xff] %v3977_v57 }
 0x426   : > { %4394 = vst [vmem:[%s8815_s29 + $0xc58] sm:$0xff] %v3978_v41  ;;  %4395 = vst [vmem:[%s8815_s29 + $0xc60] sm:$0xff] %v3979_v1 }
 0x427   : > { %4396 = vst [vmem:[%s8815_s29 + $0xc68] sm:$0xff] %v3980_v19  ;;  %4397 = vst [vmem:[%s8815_s29 + $0xc70] sm:$0xff] %v3981_v62 }
 0x428   : > { %4398 = vst [vmem:[%s8815_s29 + $0xc78] sm:$0xff] %v3982_v40  ;;  %4399 = vst [vmem:[%s8815_s29 + $0xc80] sm:$0xff] %v3983_v16 }
 0x429   : > { %4400 = vst [vmem:[%s8815_s29 + $0xc88] sm:$0xff] %v3984_v63  ;;  %4401 = vst.msk [vmem:[%s8815_s29 + $0xc90] sm:$0xff] %vm610_vm0, %v3985_v52 }
 0x42a PF: > { %s13_s12 = sadd.s32 1, %s5356_s12  }
 0x42b   : > { %p10_p4 = scmp.ge.s32.totalorder %s13_s12, 4  }
 0x42d   :  { %12 = sbr.rel (!%p10_p4) target bundleno = 1 (0x1), region = 62 }

</bundles_post_ra>
